<compile_context>
chip_gen: v7x
topology: tpu7x:2x2x1
jax: 0.10.0
libtpu: 0.0.40
codegen_flags: <defaults>
</compile_context>

<pallas_src>
import functools

import jax
import jax.numpy as jnp
from jax import lax
from jax.experimental import pallas as pl
from jax.experimental.pallas import tpu as pltpu
import numpy as np


# ----------------------------- shift helpers (VPU/XLU, no MXU) --------------------

def _shift_flat(x, off):
    """shifted[:, i] = x[:, i + off], zero outside [0, HW).  x: (R, HW), off static."""
    if off == 0:
        return x
    r = x.shape[0]
    if off > 0:
        return jnp.concatenate([x[:, off:], jnp.zeros((r, off), x.dtype)], axis=1)
    return jnp.concatenate([jnp.zeros((r, -off), x.dtype), x[:, :off]], axis=1)


def _shift2d_pair(p, dy, dx):
    """shifted[k, i, j] = p[k, i+dy, j+dx], zero-padded.  p: (2, R, C); one shift op
    serves both the max- and mean-pooled planes of a gate."""
    _, a, b = p.shape
    if dy > 0:
        p = jnp.concatenate([p[:, dy:, :], jnp.zeros((2, dy, b), p.dtype)], axis=1)
    elif dy < 0:
        p = jnp.concatenate([jnp.zeros((2, -dy, b), p.dtype), p[:, :dy, :]], axis=1)
    if dx > 0:
        p = jnp.concatenate([p[:, :, dx:], jnp.zeros((2, a, dx), p.dtype)], axis=2)
    elif dx < 0:
        p = jnp.concatenate([jnp.zeros((2, a, -dx), p.dtype), p[:, :, :dx]], axis=2)
    return p


def _tree_reduce(vals, op):
    """Balanced pairwise reduction of a Python list (short dependency chain)."""
    vals = list(vals)
    while len(vals) > 1:
        nxt = [op(vals[i], vals[i + 1]) for i in range(0, len(vals) - 1, 2)]
        if len(vals) % 2 == 1:
            nxt.append(vals[-1])
        vals = nxt
    return vals[0]


# ----------------------------- in-kernel building blocks --------------------------

def _conv3x3_flat(x, w_im2col, bias, mask_m1, mask_p1, W):
    """3x3 'same' conv + folded BN on a lane-dense (Cin, H*W) tile: one im2col MXU dot.

    x: (Cin, HW) f32;  w_im2col: (Cout, 9*Cin) bf16 (tap-major, then channel);
    bias: (Cout, 1) f32;  mask_m1/mask_p1: (1, HW) row-wrap masks for dx = -1 / +1.
    """
    planes = []
    for ky in range(3):
        xr = _shift_flat(x, (ky - 1) * W)        # pure row shift: zero-fill is exact
        for kx in range(3):
            dx = kx - 1
            xs = _shift_flat(xr, dx)
            if dx == -1:
                xs = xs * mask_m1                # kill lanes that wrapped across rows
            elif dx == 1:
                xs = xs * mask_p1
            planes.append(xs.astype(jnp.bfloat16))
    im = jnp.concatenate(planes, axis=0)         # (9*Cin, HW) bf16
    return jnp.dot(w_im2col, im, preferred_element_type=jnp.float32) + bias


def _gate_plane(p_max, p_mean, g_ref, base):
    """3x3 (2->1) gate conv + folded BN + sigmoid on a genuinely-2D pooled plane.

    p_max/p_mean: (R, Cc) f32.  Weights/bias are scalars in SMEM at g_ref[base:base+19]
    laid out [ci(max,mean), ky, kx] then bias.  Shifts shared between max/mean planes.
    """
    st = jnp.stack([p_max, p_mean], axis=0)      # (2, R, Cc)
    acc = None
    for ky in range(3):
        for kx in range(3):
            sh = _shift2d_pair(st, ky - 1, kx - 1)
            t = ky * 3 + kx
            contrib = g_ref[base + t] * sh[0] + g_ref[base + 9 + t] * sh[1]
            acc = contrib if acc is None else acc + contrib
    return 1.0 / (1.0 + jnp.exp(-(acc + g_ref[base + 18])))      # sigmoid (exp on EUP)


def _gate_flat(p_max, p_mean, g_ref, base, W, mask_m1, mask_p1):
    """Same gate conv, but on flat lane-dense (1, H*W) planes (SpatialGate branch)."""
    st = jnp.concatenate([p_max, p_mean], axis=0)                 # (2, HW)
    acc = None
    for ky in range(3):
        pr = _shift_flat(st, (ky - 1) * W)
        for kx in range(3):
            dx = kx - 1
            ps = _shift_flat(pr, dx)
            if dx == -1:
                ps = ps * mask_m1
            elif dx == 1:
                ps = ps * mask_p1
            t = ky * 3 + kx
            contrib = g_ref[base + t] * ps[0:1, :] + g_ref[base + 9 + t] * ps[1:2, :]
            acc = contrib if acc is None else acc + contrib
    return 1.0 / (1.0 + jnp.exp(-(acc + g_ref[base + 18])))       # (1, HW)


def _triplet_add_relu(r, sc, g_ref, H, W, mask_m1, mask_p1):
    """TripletAttention(r) + shortcut, ReLU.  r/sc: (C, H*W) f32 -> (C, H*W) f32.

    The (0,2,1,3)/(0,3,2,1) permutes of the PyTorch module become pooling-axis choices
    on the VMEM-resident tile; nothing is materialized in a permuted layout.
    """
    C = r.shape[0]

    # ---- pools, vectorized over channels ----
    rows = [r[:, h * W:(h + 1) * W] for h in range(H)]            # H x (C, W) views
    mx_h = _tree_reduce(rows, jnp.maximum)                        # (C, W)  max over H
    mn_h = _tree_reduce(rows, jnp.add) * (1.0 / H)                # (C, W)  mean over H
    mx_w = jnp.concatenate([jnp.max(b, axis=1, keepdims=True) for b in rows], axis=1)
    mn_w = jnp.concatenate([jnp.sum(b, axis=1, keepdims=True) for b in rows],
                           axis=1) * (1.0 / W)                    # (C, H)
    mx_c = jnp.max(r, axis=0, keepdims=True)                      # (1, HW) max over C
    mn_c = jnp.sum(r, axis=0, keepdims=True) * (1.0 / C)          # (1, HW) mean over C

    # ---- three 2->1 gate convs (branch-2 taps are pre-transposed in the wrapper) ----
    s_h = _gate_plane(mx_h, mn_h, g_ref, 0)                       # (C, W)  ChannelGateH
    s_w = _gate_plane(mx_w, mn_w, g_ref, 19)                      # (C, H)  ChannelGateW
    s_s = _gate_flat(mx_c, mn_c, g_ref, 38, W, mask_m1, mask_p1)  # (1, HW) SpatialGate

    # ---- combine (o1 + o2 + o3)/3, add shortcut, ReLU: one whole-tile expression ----
    s_h_full = jnp.concatenate([s_h] * H, axis=1)                 # s_h[c, p % W]
    s_w_full = jnp.concatenate(
        [jnp.broadcast_to(s_w[:, h:h + 1], (C, W)) for h in range(H)], axis=1)
    scale = (s_s + s_h_full + s_w_full) * (1.0 / 3.0)             # (C, HW)
    return jnp.maximum(r * scale + sc, 0.0)


# ----------------------------- the fused BasicBlock kernel ------------------------

def _block_kernel(x_ref, w1_ref, b1_ref, w2_ref, b2_ref, m1_ref, g_ref, *rest,
                  W0, H1, W1, stride, has_proj):
    pos = 0
    if has_proj:
        ws_ref, bs_ref = rest[pos], rest[pos + 1]
        pos += 2
    if stride > 1:
        sel_ref, m2_ref = rest[pos], rest[pos + 1]
        pos += 2
    else:
        m2_ref = m1_ref
    o_ref = rest[pos]

    nb = x_ref.shape[0]
    w1 = w1_ref[...].astype(jnp.bfloat16)
    w2 = w2_ref[...].astype(jnp.bfloat16)
    b1 = b1_ref[...]
    b2 = b2_ref[...]
    m1_m1, m1_p1 = m1_ref[0:1, :], m1_ref[1:2, :]
    m2_m1, m2_p1 = m2_ref[0:1, :], m2_ref[1:2, :]
    ws = ws_ref[...].astype(jnp.bfloat16) if has_proj else None
    bs = bs_ref[...] if has_proj else None
    sel = sel_ref[...] if stride > 1 else None

    for n in range(nb):                                    # NB small: unrolled
        x = x_ref[n]                                       # (Cin, H0*W0) f32

        # residual conv1 (3x3 'same') + BN + ReLU, then in-kernel stride subsample
        y1 = jnp.maximum(_conv3x3_flat(x, w1, b1, m1_m1, m1_p1, W0), 0.0)
        if stride > 1:
            # TODO(synk): strided conv still computes all stride-1 outputs; a strided
            # im2col would cut conv1 FLOPs by stride^2.  0/1 selection -> HIGHEST (exact).
            y1 = jnp.dot(y1, sel, precision=lax.Precision.HIGHEST,
                         preferred_element_type=jnp.float32)

        # residual conv2 (3x3 'same') + BN + ReLU
        r = jnp.maximum(_conv3x3_flat(y1, w2, b2, m2_m1, m2_p1, W1), 0.0)

        # shortcut (identity or 1x1 conv + BN), subsampled in-kernel for stride > 1
        if has_proj:
            xs = x
            if stride > 1:
                xs = jnp.dot(x, sel, precision=lax.Precision.HIGHEST,
                             preferred_element_type=jnp.float32)
            sc = jnp.dot(ws, xs.astype(jnp.bfloat16),
                         preferred_element_type=jnp.float32) + bs
        else:
            sc = x                                         # stride==1 and Cin==Cout

        # fused TripletAttention + residual add + ReLU; lane-dense whole-tile store
        o_ref[n] = _triplet_add_relu(r, sc, g_ref, H1, W1, m2_m1, m2_p1)


# ----------------------------- parameter folding ---------------------------------

def _fold_conv_bn(p, eps=1e-5):
    s = p["gamma"] / jnp.sqrt(p["var"] + eps)              # (Cout,)
    w = p["w"] * s[:, None, None, None]                    # (Cout, Cin, k, k)
    b = p["beta"] + (p["b"] - p["mean"]) * s               # (Cout,)
    return w, b


def _im2col_w(w):
    """(Cout, Cin, 3, 3) -> (Cout, 9*Cin), tap-major then channel (matches plane stack)."""
    co, ci = w.shape[0], w.shape[1]
    return jnp.transpose(w, (0, 2, 3, 1)).reshape(co, 9 * ci)


def _fold_gate(g, transpose_taps=False, eps=1e-5):
    s = g["gamma"][0] / jnp.sqrt(g["var"][0] + eps)
    w = g["w"][0] * s                                      # (2, 3, 3)  [ci, ky, kx]
    if transpose_taps:                                     # gate applied on transposed plane
        w = jnp.transpose(w, (0, 2, 1))
    b = (g["beta"][0] - g["mean"][0] * s).reshape(1)
    return jnp.concatenate([w.reshape(-1), b]).astype(jnp.float32)   # (19,)


def _row_masks(width, hw):
    lane_w = jnp.arange(hw, dtype=jnp.int32) % width
    return jnp.stack([(lane_w >= 1), (lane_w <= width - 2)]).astype(jnp.float32)


def _subsample_matrix(H0, W0, H1, W1, s):
    """One-hot (H0*W0, H1*W1) column-selection matrix: strided spatial subsample."""
    sel = np.zeros((H0 * W0, H1 * W1), np.float32)
    for oy in range(H1):
        for ox in range(W1):
            sel[(s * oy) * W0 + s * ox, oy * W1 + ox] = 1.0
    return jnp.asarray(sel)


# ----------------------------- BasicBlock forward ---------------------------------

def basic_block_forward(x, params, stride=1, images_per_step=4):
    N, Cin, H0, W0 = x.shape
    Cout = params["conv1"]["w"].shape[0]
    H1, W1 = -(-H0 // stride), -(-W0 // stride)
    HW0, HW1 = H0 * W0, H1 * W1
    has_proj = params.get("shortcut") is not None
    if not has_proj:
        assert stride == 1 and Cin == Cout, "identity shortcut needs stride=1, Cin==Cout"

    # fold BN running stats into the conv weights / biases (inference mode)
    w1, b1 = _fold_conv_bn(params["conv1"])
    w2, b2 = _fold_conv_bn(params["conv2"])
    gate_vec = jnp.concatenate([
        _fold_gate(params["gate_h"], transpose_taps=False),
        _fold_gate(params["gate_w"], transpose_taps=True),   # (H,C)-plane conv done on (C,H)
        _fold_gate(params["gate_s"], transpose_taps=False),
    ])

    # batch blocking: NB images per grid step (amortizes per-step overhead)
    NB = int(min(N, images_per_step))
    n_pad = -(-N // NB) * NB
    x_flat = x.reshape(N, Cin, HW0)
    if n_pad != N:
        x_flat = jnp.concatenate(
            [x_flat, jnp.zeros((n_pad - N, Cin, HW0), x_flat.dtype)], axis=0)

    inputs = [x_flat, _im2col_w(w1), b1.reshape(Cout, 1), _im2col_w(w2),
              b2.reshape(Cout, 1), _row_masks(W0, HW0), gate_vec]
    in_specs = [
        pl.BlockSpec((NB, Cin, HW0), lambda b: (b, 0, 0)),
        pl.BlockSpec((Cout, 9 * Cin), lambda b: (0, 0)),
        pl.BlockSpec((Cout, 1), lambda b: (0, 0)),
        pl.BlockSpec((Cout, 9 * Cout), lambda b: (0, 0)),
        pl.BlockSpec((Cout, 1), lambda b: (0, 0)),
        pl.BlockSpec((2, HW0), lambda b: (0, 0)),
        pl.BlockSpec(memory_space=pltpu.MemorySpace.SMEM),     # 57 gate scalars
    ]
    if has_proj:
        ws, bs = _fold_conv_bn(params["shortcut"])
        inputs += [ws[:, :, 0, 0], bs.reshape(Cout, 1)]
        in_specs += [pl.BlockSpec((Cout, Cin), lambda b: (0, 0)),
                     pl.BlockSpec((Cout, 1), lambda b: (0, 0))]
    if stride > 1:
        inputs += [_subsample_matrix(H0, W0, H1, W1, stride), _row_masks(W1, HW1)]
        in_specs += [pl.BlockSpec((HW0, HW1), lambda b: (0, 0)),
                     pl.BlockSpec((2, HW1), lambda b: (0, 0))]

    kernel = functools.partial(_block_kernel, W0=W0, H1=H1, W1=W1,
                               stride=stride, has_proj=has_proj)
    out = pl.pallas_call(
        kernel,
        out_shape=jax.ShapeDtypeStruct((n_pad, Cout, HW1), jnp.float32),
        grid=(n_pad // NB,),
        in_specs=in_specs,
        out_specs=pl.BlockSpec((NB, Cout, HW1), lambda b: (b, 0, 0)),
        compiler_params=pltpu.CompilerParams(dimension_semantics=("parallel",)),
    )(*inputs)
    return out[:N].reshape(N, Cout, H1, W1)


# ----------------------------- pure-JAX reference ---------------------------------

def _bn_inf(y, gamma, beta, mean, var, eps=1e-5):
    s = gamma / jnp.sqrt(var + eps)
    return y * s.reshape(1, -1, 1, 1) + (beta - mean * s).reshape(1, -1, 1, 1)


def _conv2d_ref(x, w, stride, padding):
    return lax.conv_general_dilated(
        x, w, (stride, stride), ((padding, padding), (padding, padding)),
        dimension_numbers=("NCHW", "OIHW", "NCHW"),
        precision=lax.Precision.HIGHEST)


def _gate_ref(x, g):
    mx = jnp.max(x, axis=1, keepdims=True)
    mn = jnp.mean(x, axis=1, keepdims=True)
    pooled = jnp.concatenate([mx, mn], axis=1)
    y = _conv2d_ref(pooled, g["w"], 1, 1)
    y = _bn_inf(y, g["gamma"], g["beta"], g["mean"], g["var"])
    return x * jax.nn.sigmoid(y)


def _triplet_ref(x, gh, gw, gs):
    o1 = jnp.transpose(_gate_ref(jnp.transpose(x, (0, 2, 1, 3)), gh), (0, 2, 1, 3))
    o2 = jnp.transpose(_gate_ref(jnp.transpose(x, (0, 3, 2, 1)), gw), (0, 3, 2, 1))
    o3 = _gate_ref(x, gs)
    return (o1 + o2 + o3) * (1.0 / 3.0)


def _basic_block_ref(x, params, stride=1):
    p1, p2 = params["conv1"], params["conv2"]
    r = _conv2d_ref(x, p1["w"], stride, 1) + p1["b"].reshape(1, -1, 1, 1)
    r = jax.nn.relu(_bn_inf(r, p1["gamma"], p1["beta"], p1["mean"], p1["var"]))
    r = _conv2d_ref(r, p2["w"], 1, 1) + p2["b"].reshape(1, -1, 1, 1)
    r = jax.nn.relu(_bn_inf(r, p2["gamma"], p2["beta"], p2["mean"], p2["var"]))
    r = _triplet_ref(r, params["gate_h"], params["gate_w"], params["gate_s"])
    if params.get("shortcut") is None:
        sc = x if stride == 1 else x[:, :, ::stride, ::stride]
    else:
        ps = params["shortcut"]
        sc = _conv2d_ref(x, ps["w"], stride, 0) + ps["b"].reshape(1, -1, 1, 1)
        sc = _bn_inf(sc, ps["gamma"], ps["beta"], ps["mean"], ps["var"])
    return jax.nn.relu(r + sc)


# ----------------------------- params & main --------------------------------------

def init_params(key, in_channels, out_channels, stride=1):
    keys = jax.random.split(key, 6)

    def conv_bn(k, co, ci, ksize):
        kw, kb, kg, kbe, km, kv = jax.random.split(k, 6)
        return {
            "w": 0.2 * jax.random.normal(kw, (co, ci, ksize, ksize), jnp.float32),
            "b": 0.1 * jax.random.normal(kb, (co,), jnp.float32),
            "gamma": 1.0 + 0.1 * jax.random.normal(kg, (co,), jnp.float32),
            "beta": 0.1 * jax.random.normal(kbe, (co,), jnp.float32),
            "mean": 0.1 * jax.random.normal(km, (co,), jnp.float32),
            "var": 1.0 + 0.1 * jnp.abs(jax.random.normal(kv, (co,), jnp.float32)),
        }

    def gate(k):
        kw, kg, kbe, km, kv = jax.random.split(k, 5)
        return {
            "w": 0.2 * jax.random.normal(kw, (1, 2, 3, 3), jnp.float32),
            "gamma": 1.0 + 0.1 * jax.random.normal(kg, (1,), jnp.float32),
            "beta": 0.1 * jax.random.normal(kbe, (1,), jnp.float32),
            "mean": 0.1 * jax.random.normal(km, (1,), jnp.float32),
            "var": 1.0 + 0.1 * jnp.abs(jax.random.normal(kv, (1,), jnp.float32)),
        }

    params = {
        "conv1": conv_bn(keys[0], out_channels, in_channels, 3),
        "conv2": conv_bn(keys[1], out_channels, out_channels, 3),
        "gate_h": gate(keys[3]),
        "gate_w": gate(keys[4]),
        "gate_s": gate(keys[5]),
    }
    if stride != 1 or in_channels != out_channels:
        params["shortcut"] = conv_bn(keys[2], out_channels, in_channels, 1)
    else:
        params["shortcut"] = None
    return params


if __name__ == "__main__":
    key = jax.random.PRNGKey(0)
    kx, kp = jax.random.split(key)

    N, Cin, Cout, H, W, stride = 2, 4, 8, 16, 16, 1
    x = jax.random.normal(kx, (N, Cin, H, W), jnp.float32)
    params = init_params(kp, Cin, Cout, stride)

    fwd = jax.jit(functools.partial(basic_block_forward, stride=stride))
    out = jax.block_until_ready(fwd(x, params))

    # Kernel convs run as bf16 MXU passes with f32 accumulation (HIGHEST dropped per the
    # perf review); the reference is full f32, so the tolerance is loosened accordingly.
    ref = _basic_block_ref(x, params, stride=stride)
    np.testing.assert_allclose(np.asarray(out), np.asarray(ref), rtol=2e-2, atol=2e-2)

    print("KERNEL_OK")
</pallas_src>

<mosaic_0001>
module attributes {stable_mosaic.version = 11 : i64} {
  func.func @_block_kernel(%arg0: i32, %arg1: memref<2x4x256xf32, #tpu.memory_space<vmem>>, %arg2: memref<8x36xf32, #tpu.memory_space<vmem>>, %arg3: memref<8x1xf32, #tpu.memory_space<vmem>>, %arg4: memref<8x72xf32, #tpu.memory_space<vmem>>, %arg5: memref<8x1xf32, #tpu.memory_space<vmem>>, %arg6: memref<2x256xf32, #tpu.memory_space<vmem>>, %arg7: memref<57xf32, #tpu.memory_space<smem>>, %arg8: memref<8x4xf32, #tpu.memory_space<vmem>>, %arg9: memref<8x1xf32, #tpu.memory_space<vmem>>, %arg10: memref<2x8x256xf32, #tpu.memory_space<vmem>>) attributes {dimension_semantics = [#tpu.dimension_semantics<parallel>], iteration_bounds = array<i64: 1>, scalar_prefetch = 0 : i64, scratch_operands = 0 : i64, tpu.core_type = #tpu.core_type<tc>, window_params = [{transform_indices = @transform_0, window_bounds = array<i64: 2, 4, 256>}, {pipeline_mode = #tpu.pipeline_mode<synchronous>, transform_indices = @transform_1, window_bounds = array<i64: 8, 36>}, {pipeline_mode = #tpu.pipeline_mode<synchronous>, transform_indices = @transform_2, window_bounds = array<i64: 8, 1>}, {pipeline_mode = #tpu.pipeline_mode<synchronous>, transform_indices = @transform_3, window_bounds = array<i64: 8, 72>}, {pipeline_mode = #tpu.pipeline_mode<synchronous>, transform_indices = @transform_4, window_bounds = array<i64: 8, 1>}, {pipeline_mode = #tpu.pipeline_mode<synchronous>, transform_indices = @transform_5, window_bounds = array<i64: 2, 256>}, {transform_indices = @transform_6, window_bounds = array<i64: 57>}, {pipeline_mode = #tpu.pipeline_mode<synchronous>, transform_indices = @transform_7, window_bounds = array<i64: 8, 4>}, {pipeline_mode = #tpu.pipeline_mode<synchronous>, transform_indices = @transform_8, window_bounds = array<i64: 8, 1>}, {transform_indices = @transform_9, window_bounds = array<i64: 2, 8, 256>}]} {
    %c0 = arith.constant 0 : index
    %c0_0 = arith.constant 0 : index
    %0 = vector.load %arg2[%c0, %c0_0] : memref<8x36xf32, #tpu.memory_space<vmem>>, vector<8x36xf32>
    %1 = arith.truncf %0 : vector<8x36xf32> to vector<8x36xbf16>
    %c0_1 = arith.constant 0 : index
    %c0_2 = arith.constant 0 : index
    %2 = vector.load %arg4[%c0_1, %c0_2] : memref<8x72xf32, #tpu.memory_space<vmem>>, vector<8x72xf32>
    %3 = arith.truncf %2 : vector<8x72xf32> to vector<8x72xbf16>
    %c0_3 = arith.constant 0 : index
    %c0_4 = arith.constant 0 : index
    %4 = vector.load %arg3[%c0_3, %c0_4] : memref<8x1xf32, #tpu.memory_space<vmem>>, vector<8x1xf32>
    %c0_5 = arith.constant 0 : index
    %c0_6 = arith.constant 0 : index
    %5 = vector.load %arg5[%c0_5, %c0_6] : memref<8x1xf32, #tpu.memory_space<vmem>>, vector<8x1xf32>
    %c0_7 = arith.constant 0 : index
    %c0_8 = arith.constant 0 : index
    %6 = vector.load %arg6[%c0_7, %c0_8] : memref<2x256xf32, #tpu.memory_space<vmem>>, vector<1x256xf32>
    %c1 = arith.constant 1 : index
    %c0_9 = arith.constant 0 : index
    %7 = vector.load %arg6[%c1, %c0_9] : memref<2x256xf32, #tpu.memory_space<vmem>>, vector<1x256xf32>
    %c0_10 = arith.constant 0 : index
    %c0_11 = arith.constant 0 : index
    %8 = vector.load %arg6[%c0_10, %c0_11] : memref<2x256xf32, #tpu.memory_space<vmem>>, vector<1x256xf32>
    %c1_12 = arith.constant 1 : index
    %c0_13 = arith.constant 0 : index
    %9 = vector.load %arg6[%c1_12, %c0_13] : memref<2x256xf32, #tpu.memory_space<vmem>>, vector<1x256xf32>
    %c0_14 = arith.constant 0 : index
    %c0_15 = arith.constant 0 : index
    %10 = vector.load %arg8[%c0_14, %c0_15] : memref<8x4xf32, #tpu.memory_space<vmem>>, vector<8x4xf32>
    %11 = arith.truncf %10 : vector<8x4xf32> to vector<8x4xbf16>
    %c0_16 = arith.constant 0 : index
    %c0_17 = arith.constant 0 : index
    %12 = vector.load %arg9[%c0_16, %c0_17] : memref<8x1xf32, #tpu.memory_space<vmem>>, vector<8x1xf32>
    %c0_18 = arith.constant 0 : index
    %c0_19 = arith.constant 0 : index
    %c0_20 = arith.constant 0 : index
    %13 = vector.load %arg1[%c0_18, %c0_19, %c0_20] : memref<2x4x256xf32, #tpu.memory_space<vmem>>, vector<1x4x256xf32>
    %14 = vector.shape_cast %13 : vector<1x4x256xf32> to vector<4x256xf32>
    %cst = arith.constant 0.000000e+00 : f32
    %15 = vector.broadcast %cst : f32 to vector<4x16xf32>
    %16 = vector.extract_strided_slice %14 {offsets = [0, 0], sizes = [4, 240], strides = [1, 1]} : vector<4x256xf32> to vector<4x240xf32>
    %17 = tpu.concatenate %15, %16 in 1 : vector<4x16xf32>, vector<4x240xf32> -> vector<4x256xf32>
    %cst_21 = arith.constant 0.000000e+00 : f32
    %18 = vector.broadcast %cst_21 : f32 to vector<4x1xf32>
    %19 = vector.extract_strided_slice %17 {offsets = [0, 0], sizes = [4, 255], strides = [1, 1]} : vector<4x256xf32> to vector<4x255xf32>
    %20 = tpu.concatenate %18, %19 in 1 : vector<4x1xf32>, vector<4x255xf32> -> vector<4x256xf32>
    %21 = vector.broadcast %6 : vector<1x256xf32> to vector<4x256xf32>
    %22 = arith.mulf %20, %21 : vector<4x256xf32>
    %23 = arith.truncf %22 : vector<4x256xf32> to vector<4x256xbf16>
    %24 = arith.truncf %17 : vector<4x256xf32> to vector<4x256xbf16>
    %25 = vector.extract_strided_slice %17 {offsets = [0, 1], sizes = [4, 255], strides = [1, 1]} : vector<4x256xf32> to vector<4x255xf32>
    %cst_22 = arith.constant 0.000000e+00 : f32
    %26 = vector.broadcast %cst_22 : f32 to vector<4x1xf32>
    %27 = tpu.concatenate %25, %26 in 1 : vector<4x255xf32>, vector<4x1xf32> -> vector<4x256xf32>
    %28 = vector.broadcast %7 : vector<1x256xf32> to vector<4x256xf32>
    %29 = arith.mulf %27, %28 : vector<4x256xf32>
    %30 = arith.truncf %29 : vector<4x256xf32> to vector<4x256xbf16>
    %cst_23 = arith.constant 0.000000e+00 : f32
    %31 = vector.broadcast %cst_23 : f32 to vector<4x1xf32>
    %32 = vector.extract_strided_slice %14 {offsets = [0, 0], sizes = [4, 255], strides = [1, 1]} : vector<4x256xf32> to vector<4x255xf32>
    %33 = tpu.concatenate %31, %32 in 1 : vector<4x1xf32>, vector<4x255xf32> -> vector<4x256xf32>
    %34 = vector.broadcast %6 : vector<1x256xf32> to vector<4x256xf32>
    %35 = arith.mulf %33, %34 : vector<4x256xf32>
    %36 = arith.truncf %35 : vector<4x256xf32> to vector<4x256xbf16>
    %37 = arith.truncf %14 : vector<4x256xf32> to vector<4x256xbf16>
    %38 = vector.extract_strided_slice %14 {offsets = [0, 1], sizes = [4, 255], strides = [1, 1]} : vector<4x256xf32> to vector<4x255xf32>
    %cst_24 = arith.constant 0.000000e+00 : f32
    %39 = vector.broadcast %cst_24 : f32 to vector<4x1xf32>
    %40 = tpu.concatenate %38, %39 in 1 : vector<4x255xf32>, vector<4x1xf32> -> vector<4x256xf32>
    %41 = vector.broadcast %7 : vector<1x256xf32> to vector<4x256xf32>
    %42 = arith.mulf %40, %41 : vector<4x256xf32>
    %43 = arith.truncf %42 : vector<4x256xf32> to vector<4x256xbf16>
    %44 = vector.extract_strided_slice %14 {offsets = [0, 16], sizes = [4, 240], strides = [1, 1]} : vector<4x256xf32> to vector<4x240xf32>
    %cst_25 = arith.constant 0.000000e+00 : f32
    %45 = vector.broadcast %cst_25 : f32 to vector<4x16xf32>
    %46 = tpu.concatenate %44, %45 in 1 : vector<4x240xf32>, vector<4x16xf32> -> vector<4x256xf32>
    %cst_26 = arith.constant 0.000000e+00 : f32
    %47 = vector.broadcast %cst_26 : f32 to vector<4x1xf32>
    %48 = vector.extract_strided_slice %46 {offsets = [0, 0], sizes = [4, 255], strides = [1, 1]} : vector<4x256xf32> to vector<4x255xf32>
    %49 = tpu.concatenate %47, %48 in 1 : vector<4x1xf32>, vector<4x255xf32> -> vector<4x256xf32>
    %50 = vector.broadcast %6 : vector<1x256xf32> to vector<4x256xf32>
    %51 = arith.mulf %49, %50 : vector<4x256xf32>
    %52 = arith.truncf %51 : vector<4x256xf32> to vector<4x256xbf16>
    %53 = arith.truncf %46 : vector<4x256xf32> to vector<4x256xbf16>
    %54 = vector.extract_strided_slice %46 {offsets = [0, 1], sizes = [4, 255], strides = [1, 1]} : vector<4x256xf32> to vector<4x255xf32>
    %cst_27 = arith.constant 0.000000e+00 : f32
    %55 = vector.broadcast %cst_27 : f32 to vector<4x1xf32>
    %56 = tpu.concatenate %54, %55 in 1 : vector<4x255xf32>, vector<4x1xf32> -> vector<4x256xf32>
    %57 = vector.broadcast %7 : vector<1x256xf32> to vector<4x256xf32>
    %58 = arith.mulf %56, %57 : vector<4x256xf32>
    %59 = arith.truncf %58 : vector<4x256xf32> to vector<4x256xbf16>
    %60 = tpu.concatenate %23, %24, %30, %36, %37, %43, %52, %53, %59 in 0 : vector<4x256xbf16>, vector<4x256xbf16>, vector<4x256xbf16>, vector<4x256xbf16>, vector<4x256xbf16>, vector<4x256xbf16>, vector<4x256xbf16>, vector<4x256xbf16>, vector<4x256xbf16> -> vector<36x256xbf16>
    %cst_28 = arith.constant dense<0.000000e+00> : vector<8x256xf32>
    %61 = tpu.matmul %1, %60, %cst_28 {dimension_numbers = #tpu.dot_dimension_numbers<[1], [0], [0], [1], [0, 0, 1, 1], [], []>} : vector<8x36xbf16>, vector<36x256xbf16>, vector<8x256xf32> -> vector<8x256xf32>
    %62 = vector.broadcast %4 : vector<8x1xf32> to vector<8x256xf32>
    %63 = arith.addf %61, %62 : vector<8x256xf32>
    %cst_29 = arith.constant 0.000000e+00 : f32
    %64 = vector.broadcast %cst_29 : f32 to vector<8x256xf32>
    %65 = arith.maximumf %63, %64 : vector<8x256xf32>
    %cst_30 = arith.constant 0.000000e+00 : f32
    %66 = vector.broadcast %cst_30 : f32 to vector<8x16xf32>
    %67 = vector.extract_strided_slice %65 {offsets = [0, 0], sizes = [8, 240], strides = [1, 1]} : vector<8x256xf32> to vector<8x240xf32>
    %68 = tpu.concatenate %66, %67 in 1 : vector<8x16xf32>, vector<8x240xf32> -> vector<8x256xf32>
    %cst_31 = arith.constant 0.000000e+00 : f32
    %69 = vector.broadcast %cst_31 : f32 to vector<8x1xf32>
    %70 = vector.extract_strided_slice %68 {offsets = [0, 0], sizes = [8, 255], strides = [1, 1]} : vector<8x256xf32> to vector<8x255xf32>
    %71 = tpu.concatenate %69, %70 in 1 : vector<8x1xf32>, vector<8x255xf32> -> vector<8x256xf32>
    %72 = vector.broadcast %8 : vector<1x256xf32> to vector<8x256xf32>
    %73 = arith.mulf %71, %72 : vector<8x256xf32>
    %74 = arith.truncf %73 : vector<8x256xf32> to vector<8x256xbf16>
    %75 = arith.truncf %68 : vector<8x256xf32> to vector<8x256xbf16>
    %76 = vector.extract_strided_slice %68 {offsets = [0, 1], sizes = [8, 255], strides = [1, 1]} : vector<8x256xf32> to vector<8x255xf32>
    %cst_32 = arith.constant 0.000000e+00 : f32
    %77 = vector.broadcast %cst_32 : f32 to vector<8x1xf32>
    %78 = tpu.concatenate %76, %77 in 1 : vector<8x255xf32>, vector<8x1xf32> -> vector<8x256xf32>
    %79 = vector.broadcast %9 : vector<1x256xf32> to vector<8x256xf32>
    %80 = arith.mulf %78, %79 : vector<8x256xf32>
    %81 = arith.truncf %80 : vector<8x256xf32> to vector<8x256xbf16>
    %cst_33 = arith.constant 0.000000e+00 : f32
    %82 = vector.broadcast %cst_33 : f32 to vector<8x1xf32>
    %83 = vector.extract_strided_slice %65 {offsets = [0, 0], sizes = [8, 255], strides = [1, 1]} : vector<8x256xf32> to vector<8x255xf32>
    %84 = tpu.concatenate %82, %83 in 1 : vector<8x1xf32>, vector<8x255xf32> -> vector<8x256xf32>
    %85 = vector.broadcast %8 : vector<1x256xf32> to vector<8x256xf32>
    %86 = arith.mulf %84, %85 : vector<8x256xf32>
    %87 = arith.truncf %86 : vector<8x256xf32> to vector<8x256xbf16>
    %88 = arith.truncf %65 : vector<8x256xf32> to vector<8x256xbf16>
    %89 = vector.extract_strided_slice %65 {offsets = [0, 1], sizes = [8, 255], strides = [1, 1]} : vector<8x256xf32> to vector<8x255xf32>
    %cst_34 = arith.constant 0.000000e+00 : f32
    %90 = vector.broadcast %cst_34 : f32 to vector<8x1xf32>
    %91 = tpu.concatenate %89, %90 in 1 : vector<8x255xf32>, vector<8x1xf32> -> vector<8x256xf32>
    %92 = vector.broadcast %9 : vector<1x256xf32> to vector<8x256xf32>
    %93 = arith.mulf %91, %92 : vector<8x256xf32>
    %94 = arith.truncf %93 : vector<8x256xf32> to vector<8x256xbf16>
    %95 = vector.extract_strided_slice %65 {offsets = [0, 16], sizes = [8, 240], strides = [1, 1]} : vector<8x256xf32> to vector<8x240xf32>
    %cst_35 = arith.constant 0.000000e+00 : f32
    %96 = vector.broadcast %cst_35 : f32 to vector<8x16xf32>
    %97 = tpu.concatenate %95, %96 in 1 : vector<8x240xf32>, vector<8x16xf32> -> vector<8x256xf32>
    %cst_36 = arith.constant 0.000000e+00 : f32
    %98 = vector.broadcast %cst_36 : f32 to vector<8x1xf32>
    %99 = vector.extract_strided_slice %97 {offsets = [0, 0], sizes = [8, 255], strides = [1, 1]} : vector<8x256xf32> to vector<8x255xf32>
    %100 = tpu.concatenate %98, %99 in 1 : vector<8x1xf32>, vector<8x255xf32> -> vector<8x256xf32>
    %101 = vector.broadcast %8 : vector<1x256xf32> to vector<8x256xf32>
    %102 = arith.mulf %100, %101 : vector<8x256xf32>
    %103 = arith.truncf %102 : vector<8x256xf32> to vector<8x256xbf16>
    %104 = arith.truncf %97 : vector<8x256xf32> to vector<8x256xbf16>
    %105 = vector.extract_strided_slice %97 {offsets = [0, 1], sizes = [8, 255], strides = [1, 1]} : vector<8x256xf32> to vector<8x255xf32>
    %cst_37 = arith.constant 0.000000e+00 : f32
    %106 = vector.broadcast %cst_37 : f32 to vector<8x1xf32>
    %107 = tpu.concatenate %105, %106 in 1 : vector<8x255xf32>, vector<8x1xf32> -> vector<8x256xf32>
    %108 = vector.broadcast %9 : vector<1x256xf32> to vector<8x256xf32>
    %109 = arith.mulf %107, %108 : vector<8x256xf32>
    %110 = arith.truncf %109 : vector<8x256xf32> to vector<8x256xbf16>
    %111 = tpu.concatenate %74, %75, %81, %87, %88, %94, %103, %104, %110 in 0 : vector<8x256xbf16>, vector<8x256xbf16>, vector<8x256xbf16>, vector<8x256xbf16>, vector<8x256xbf16>, vector<8x256xbf16>, vector<8x256xbf16>, vector<8x256xbf16>, vector<8x256xbf16> -> vector<72x256xbf16>
    %cst_38 = arith.constant dense<0.000000e+00> : vector<8x256xf32>
    %112 = tpu.matmul %3, %111, %cst_38 {dimension_numbers = #tpu.dot_dimension_numbers<[1], [0], [0], [1], [0, 0, 1, 1], [], []>} : vector<8x72xbf16>, vector<72x256xbf16>, vector<8x256xf32> -> vector<8x256xf32>
    %113 = vector.broadcast %5 : vector<8x1xf32> to vector<8x256xf32>
    %114 = arith.addf %112, %113 : vector<8x256xf32>
    %cst_39 = arith.constant 0.000000e+00 : f32
    %115 = vector.broadcast %cst_39 : f32 to vector<8x256xf32>
    %116 = arith.maximumf %114, %115 : vector<8x256xf32>
    %117 = arith.truncf %14 : vector<4x256xf32> to vector<4x256xbf16>
    %cst_40 = arith.constant dense<0.000000e+00> : vector<8x256xf32>
    %118 = tpu.matmul %11, %117, %cst_40 {dimension_numbers = #tpu.dot_dimension_numbers<[1], [0], [0], [1], [0, 0, 1, 1], [], []>} : vector<8x4xbf16>, vector<4x256xbf16>, vector<8x256xf32> -> vector<8x256xf32>
    %119 = vector.broadcast %12 : vector<8x1xf32> to vector<8x256xf32>
    %120 = arith.addf %118, %119 : vector<8x256xf32>
    %121 = vector.extract_strided_slice %116 {offsets = [0, 0], sizes = [8, 16], strides = [1, 1]} : vector<8x256xf32> to vector<8x16xf32>
    %122 = vector.extract_strided_slice %116 {offsets = [0, 16], sizes = [8, 16], strides = [1, 1]} : vector<8x256xf32> to vector<8x16xf32>
    %123 = vector.extract_strided_slice %116 {offsets = [0, 32], sizes = [8, 16], strides = [1, 1]} : vector<8x256xf32> to vector<8x16xf32>
    %124 = vector.extract_strided_slice %116 {offsets = [0, 48], sizes = [8, 16], strides = [1, 1]} : vector<8x256xf32> to vector<8x16xf32>
    %125 = vector.extract_strided_slice %116 {offsets = [0, 64], sizes = [8, 16], strides = [1, 1]} : vector<8x256xf32> to vector<8x16xf32>
    %126 = vector.extract_strided_slice %116 {offsets = [0, 80], sizes = [8, 16], strides = [1, 1]} : vector<8x256xf32> to vector<8x16xf32>
    %127 = vector.extract_strided_slice %116 {offsets = [0, 96], sizes = [8, 16], strides = [1, 1]} : vector<8x256xf32> to vector<8x16xf32>
    %128 = vector.extract_strided_slice %116 {offsets = [0, 112], sizes = [8, 16], strides = [1, 1]} : vector<8x256xf32> to vector<8x16xf32>
    %129 = vector.extract_strided_slice %116 {offsets = [0, 128], sizes = [8, 16], strides = [1, 1]} : vector<8x256xf32> to vector<8x16xf32>
    %130 = vector.extract_strided_slice %116 {offsets = [0, 144], sizes = [8, 16], strides = [1, 1]} : vector<8x256xf32> to vector<8x16xf32>
    %131 = vector.extract_strided_slice %116 {offsets = [0, 160], sizes = [8, 16], strides = [1, 1]} : vector<8x256xf32> to vector<8x16xf32>
    %132 = vector.extract_strided_slice %116 {offsets = [0, 176], sizes = [8, 16], strides = [1, 1]} : vector<8x256xf32> to vector<8x16xf32>
    %133 = vector.extract_strided_slice %116 {offsets = [0, 192], sizes = [8, 16], strides = [1, 1]} : vector<8x256xf32> to vector<8x16xf32>
    %134 = vector.extract_strided_slice %116 {offsets = [0, 208], sizes = [8, 16], strides = [1, 1]} : vector<8x256xf32> to vector<8x16xf32>
    %135 = vector.extract_strided_slice %116 {offsets = [0, 224], sizes = [8, 16], strides = [1, 1]} : vector<8x256xf32> to vector<8x16xf32>
    %136 = vector.extract_strided_slice %116 {offsets = [0, 240], sizes = [8, 16], strides = [1, 1]} : vector<8x256xf32> to vector<8x16xf32>
    %137 = arith.maximumf %121, %122 : vector<8x16xf32>
    %138 = arith.maximumf %123, %124 : vector<8x16xf32>
    %139 = arith.maximumf %125, %126 : vector<8x16xf32>
    %140 = arith.maximumf %127, %128 : vector<8x16xf32>
    %141 = arith.maximumf %129, %130 : vector<8x16xf32>
    %142 = arith.maximumf %131, %132 : vector<8x16xf32>
    %143 = arith.maximumf %133, %134 : vector<8x16xf32>
    %144 = arith.maximumf %135, %136 : vector<8x16xf32>
    %145 = arith.maximumf %137, %138 : vector<8x16xf32>
    %146 = arith.maximumf %139, %140 : vector<8x16xf32>
    %147 = arith.maximumf %141, %142 : vector<8x16xf32>
    %148 = arith.maximumf %143, %144 : vector<8x16xf32>
    %149 = arith.maximumf %145, %146 : vector<8x16xf32>
    %150 = arith.maximumf %147, %148 : vector<8x16xf32>
    %151 = arith.maximumf %149, %150 : vector<8x16xf32>
    %152 = arith.addf %121, %122 : vector<8x16xf32>
    %153 = arith.addf %123, %124 : vector<8x16xf32>
    %154 = arith.addf %125, %126 : vector<8x16xf32>
    %155 = arith.addf %127, %128 : vector<8x16xf32>
    %156 = arith.addf %129, %130 : vector<8x16xf32>
    %157 = arith.addf %131, %132 : vector<8x16xf32>
    %158 = arith.addf %133, %134 : vector<8x16xf32>
    %159 = arith.addf %135, %136 : vector<8x16xf32>
    %160 = arith.addf %152, %153 : vector<8x16xf32>
    %161 = arith.addf %154, %155 : vector<8x16xf32>
    %162 = arith.addf %156, %157 : vector<8x16xf32>
    %163 = arith.addf %158, %159 : vector<8x16xf32>
    %164 = arith.addf %160, %161 : vector<8x16xf32>
    %165 = arith.addf %162, %163 : vector<8x16xf32>
    %166 = arith.addf %164, %165 : vector<8x16xf32>
    %cst_41 = arith.constant 6.250000e-02 : f32
    %167 = vector.broadcast %cst_41 : f32 to vector<8x16xf32>
    %168 = arith.mulf %166, %167 : vector<8x16xf32>
    %cst_42 = arith.constant dense<0xFF800000> : vector<8xf32>
    %169 = vector.multi_reduction <maximumf>, %121, %cst_42 [1] : vector<8x16xf32> to vector<8xf32>
    %170 = vector.shape_cast %169 : vector<8xf32> to vector<8x1xf32>
    %cst_43 = arith.constant dense<0xFF800000> : vector<8xf32>
    %171 = vector.multi_reduction <maximumf>, %122, %cst_43 [1] : vector<8x16xf32> to vector<8xf32>
    %172 = vector.shape_cast %171 : vector<8xf32> to vector<8x1xf32>
    %cst_44 = arith.constant dense<0xFF800000> : vector<8xf32>
    %173 = vector.multi_reduction <maximumf>, %123, %cst_44 [1] : vector<8x16xf32> to vector<8xf32>
    %174 = vector.shape_cast %173 : vector<8xf32> to vector<8x1xf32>
    %cst_45 = arith.constant dense<0xFF800000> : vector<8xf32>
    %175 = vector.multi_reduction <maximumf>, %124, %cst_45 [1] : vector<8x16xf32> to vector<8xf32>
    %176 = vector.shape_cast %175 : vector<8xf32> to vector<8x1xf32>
    %cst_46 = arith.constant dense<0xFF800000> : vector<8xf32>
    %177 = vector.multi_reduction <maximumf>, %125, %cst_46 [1] : vector<8x16xf32> to vector<8xf32>
    %178 = vector.shape_cast %177 : vector<8xf32> to vector<8x1xf32>
    %cst_47 = arith.constant dense<0xFF800000> : vector<8xf32>
    %179 = vector.multi_reduction <maximumf>, %126, %cst_47 [1] : vector<8x16xf32> to vector<8xf32>
    %180 = vector.shape_cast %179 : vector<8xf32> to vector<8x1xf32>
    %cst_48 = arith.constant dense<0xFF800000> : vector<8xf32>
    %181 = vector.multi_reduction <maximumf>, %127, %cst_48 [1] : vector<8x16xf32> to vector<8xf32>
    %182 = vector.shape_cast %181 : vector<8xf32> to vector<8x1xf32>
    %cst_49 = arith.constant dense<0xFF800000> : vector<8xf32>
    %183 = vector.multi_reduction <maximumf>, %128, %cst_49 [1] : vector<8x16xf32> to vector<8xf32>
    %184 = vector.shape_cast %183 : vector<8xf32> to vector<8x1xf32>
    %cst_50 = arith.constant dense<0xFF800000> : vector<8xf32>
    %185 = vector.multi_reduction <maximumf>, %129, %cst_50 [1] : vector<8x16xf32> to vector<8xf32>
    %186 = vector.shape_cast %185 : vector<8xf32> to vector<8x1xf32>
    %cst_51 = arith.constant dense<0xFF800000> : vector<8xf32>
    %187 = vector.multi_reduction <maximumf>, %130, %cst_51 [1] : vector<8x16xf32> to vector<8xf32>
    %188 = vector.shape_cast %187 : vector<8xf32> to vector<8x1xf32>
    %cst_52 = arith.constant dense<0xFF800000> : vector<8xf32>
    %189 = vector.multi_reduction <maximumf>, %131, %cst_52 [1] : vector<8x16xf32> to vector<8xf32>
    %190 = vector.shape_cast %189 : vector<8xf32> to vector<8x1xf32>
    %cst_53 = arith.constant dense<0xFF800000> : vector<8xf32>
    %191 = vector.multi_reduction <maximumf>, %132, %cst_53 [1] : vector<8x16xf32> to vector<8xf32>
    %192 = vector.shape_cast %191 : vector<8xf32> to vector<8x1xf32>
    %cst_54 = arith.constant dense<0xFF800000> : vector<8xf32>
    %193 = vector.multi_reduction <maximumf>, %133, %cst_54 [1] : vector<8x16xf32> to vector<8xf32>
    %194 = vector.shape_cast %193 : vector<8xf32> to vector<8x1xf32>
    %cst_55 = arith.constant dense<0xFF800000> : vector<8xf32>
    %195 = vector.multi_reduction <maximumf>, %134, %cst_55 [1] : vector<8x16xf32> to vector<8xf32>
    %196 = vector.shape_cast %195 : vector<8xf32> to vector<8x1xf32>
    %cst_56 = arith.constant dense<0xFF800000> : vector<8xf32>
    %197 = vector.multi_reduction <maximumf>, %135, %cst_56 [1] : vector<8x16xf32> to vector<8xf32>
    %198 = vector.shape_cast %197 : vector<8xf32> to vector<8x1xf32>
    %cst_57 = arith.constant dense<0xFF800000> : vector<8xf32>
    %199 = vector.multi_reduction <maximumf>, %136, %cst_57 [1] : vector<8x16xf32> to vector<8xf32>
    %200 = vector.shape_cast %199 : vector<8xf32> to vector<8x1xf32>
    %201 = tpu.concatenate %170, %172, %174, %176, %178, %180, %182, %184, %186, %188, %190, %192, %194, %196, %198, %200 in 1 : vector<8x1xf32>, vector<8x1xf32>, vector<8x1xf32>, vector<8x1xf32>, vector<8x1xf32>, vector<8x1xf32>, vector<8x1xf32>, vector<8x1xf32>, vector<8x1xf32>, vector<8x1xf32>, vector<8x1xf32>, vector<8x1xf32>, vector<8x1xf32>, vector<8x1xf32>, vector<8x1xf32>, vector<8x1xf32> -> vector<8x16xf32>
    %cst_58 = arith.constant dense<0.000000e+00> : vector<8xf32>
    %202 = vector.multi_reduction <add>, %121, %cst_58 [1] : vector<8x16xf32> to vector<8xf32>
    %203 = vector.shape_cast %202 : vector<8xf32> to vector<8x1xf32>
    %cst_59 = arith.constant dense<0.000000e+00> : vector<8xf32>
    %204 = vector.multi_reduction <add>, %122, %cst_59 [1] : vector<8x16xf32> to vector<8xf32>
    %205 = vector.shape_cast %204 : vector<8xf32> to vector<8x1xf32>
    %cst_60 = arith.constant dense<0.000000e+00> : vector<8xf32>
    %206 = vector.multi_reduction <add>, %123, %cst_60 [1] : vector<8x16xf32> to vector<8xf32>
    %207 = vector.shape_cast %206 : vector<8xf32> to vector<8x1xf32>
    %cst_61 = arith.constant dense<0.000000e+00> : vector<8xf32>
    %208 = vector.multi_reduction <add>, %124, %cst_61 [1] : vector<8x16xf32> to vector<8xf32>
    %209 = vector.shape_cast %208 : vector<8xf32> to vector<8x1xf32>
    %cst_62 = arith.constant dense<0.000000e+00> : vector<8xf32>
    %210 = vector.multi_reduction <add>, %125, %cst_62 [1] : vector<8x16xf32> to vector<8xf32>
    %211 = vector.shape_cast %210 : vector<8xf32> to vector<8x1xf32>
    %cst_63 = arith.constant dense<0.000000e+00> : vector<8xf32>
    %212 = vector.multi_reduction <add>, %126, %cst_63 [1] : vector<8x16xf32> to vector<8xf32>
    %213 = vector.shape_cast %212 : vector<8xf32> to vector<8x1xf32>
    %cst_64 = arith.constant dense<0.000000e+00> : vector<8xf32>
    %214 = vector.multi_reduction <add>, %127, %cst_64 [1] : vector<8x16xf32> to vector<8xf32>
    %215 = vector.shape_cast %214 : vector<8xf32> to vector<8x1xf32>
    %cst_65 = arith.constant dense<0.000000e+00> : vector<8xf32>
    %216 = vector.multi_reduction <add>, %128, %cst_65 [1] : vector<8x16xf32> to vector<8xf32>
    %217 = vector.shape_cast %216 : vector<8xf32> to vector<8x1xf32>
    %cst_66 = arith.constant dense<0.000000e+00> : vector<8xf32>
    %218 = vector.multi_reduction <add>, %129, %cst_66 [1] : vector<8x16xf32> to vector<8xf32>
    %219 = vector.shape_cast %218 : vector<8xf32> to vector<8x1xf32>
    %cst_67 = arith.constant dense<0.000000e+00> : vector<8xf32>
    %220 = vector.multi_reduction <add>, %130, %cst_67 [1] : vector<8x16xf32> to vector<8xf32>
    %221 = vector.shape_cast %220 : vector<8xf32> to vector<8x1xf32>
    %cst_68 = arith.constant dense<0.000000e+00> : vector<8xf32>
    %222 = vector.multi_reduction <add>, %131, %cst_68 [1] : vector<8x16xf32> to vector<8xf32>
    %223 = vector.shape_cast %222 : vector<8xf32> to vector<8x1xf32>
    %cst_69 = arith.constant dense<0.000000e+00> : vector<8xf32>
    %224 = vector.multi_reduction <add>, %132, %cst_69 [1] : vector<8x16xf32> to vector<8xf32>
    %225 = vector.shape_cast %224 : vector<8xf32> to vector<8x1xf32>
    %cst_70 = arith.constant dense<0.000000e+00> : vector<8xf32>
    %226 = vector.multi_reduction <add>, %133, %cst_70 [1] : vector<8x16xf32> to vector<8xf32>
    %227 = vector.shape_cast %226 : vector<8xf32> to vector<8x1xf32>
    %cst_71 = arith.constant dense<0.000000e+00> : vector<8xf32>
    %228 = vector.multi_reduction <add>, %134, %cst_71 [1] : vector<8x16xf32> to vector<8xf32>
    %229 = vector.shape_cast %228 : vector<8xf32> to vector<8x1xf32>
    %cst_72 = arith.constant dense<0.000000e+00> : vector<8xf32>
    %230 = vector.multi_reduction <add>, %135, %cst_72 [1] : vector<8x16xf32> to vector<8xf32>
    %231 = vector.shape_cast %230 : vector<8xf32> to vector<8x1xf32>
    %cst_73 = arith.constant dense<0.000000e+00> : vector<8xf32>
    %232 = vector.multi_reduction <add>, %136, %cst_73 [1] : vector<8x16xf32> to vector<8xf32>
    %233 = vector.shape_cast %232 : vector<8xf32> to vector<8x1xf32>
    %234 = tpu.concatenate %203, %205, %207, %209, %211, %213, %215, %217, %219, %221, %223, %225, %227, %229, %231, %233 in 1 : vector<8x1xf32>, vector<8x1xf32>, vector<8x1xf32>, vector<8x1xf32>, vector<8x1xf32>, vector<8x1xf32>, vector<8x1xf32>, vector<8x1xf32>, vector<8x1xf32>, vector<8x1xf32>, vector<8x1xf32>, vector<8x1xf32>, vector<8x1xf32>, vector<8x1xf32>, vector<8x1xf32>, vector<8x1xf32> -> vector<8x16xf32>
    %cst_74 = arith.constant 6.250000e-02 : f32
    %235 = vector.broadcast %cst_74 : f32 to vector<8x16xf32>
    %236 = arith.mulf %234, %235 : vector<8x16xf32>
    %cst_75 = arith.constant dense<0xFF800000> : vector<256xf32>
    %237 = vector.multi_reduction <maximumf>, %116, %cst_75 [0] : vector<8x256xf32> to vector<256xf32>
    %238 = vector.shape_cast %237 : vector<256xf32> to vector<1x256xf32>
    %cst_76 = arith.constant dense<0.000000e+00> : vector<256xf32>
    %239 = vector.multi_reduction <add>, %116, %cst_76 [0] : vector<8x256xf32> to vector<256xf32>
    %240 = vector.shape_cast %239 : vector<256xf32> to vector<1x256xf32>
    %cst_77 = arith.constant 1.250000e-01 : f32
    %241 = vector.broadcast %cst_77 : f32 to vector<1x256xf32>
    %242 = arith.mulf %240, %241 : vector<1x256xf32>
    %243 = vector.shape_cast %151 : vector<8x16xf32> to vector<1x8x16xf32>
    %244 = vector.shape_cast %168 : vector<8x16xf32> to vector<1x8x16xf32>
    %245 = tpu.concatenate %243, %244 in 0 : vector<1x8x16xf32>, vector<1x8x16xf32> -> vector<2x8x16xf32>
    %cst_78 = arith.constant 0.000000e+00 : f32
    %246 = vector.broadcast %cst_78 : f32 to vector<2x1x16xf32>
    %247 = vector.extract_strided_slice %245 {offsets = [0, 0, 0], sizes = [2, 7, 16], strides = [1, 1, 1]} : vector<2x8x16xf32> to vector<2x7x16xf32>
    %248 = tpu.concatenate %246, %247 in 1 : vector<2x1x16xf32>, vector<2x7x16xf32> -> vector<2x8x16xf32>
    %cst_79 = arith.constant 0.000000e+00 : f32
    %249 = vector.broadcast %cst_79 : f32 to vector<2x8x1xf32>
    %250 = vector.extract_strided_slice %248 {offsets = [0, 0, 0], sizes = [2, 8, 15], strides = [1, 1, 1]} : vector<2x8x16xf32> to vector<2x8x15xf32>
    %251 = tpu.concatenate %249, %250 in 2 : vector<2x8x1xf32>, vector<2x8x15xf32> -> vector<2x8x16xf32>
    %c0_80 = arith.constant 0 : index
    %252 = memref.load %arg7[%c0_80] : memref<57xf32, #tpu.memory_space<smem>>
    %253 = vector.extract_strided_slice %251 {offsets = [0, 0, 0], sizes = [1, 8, 16], strides = [1, 1, 1]} : vector<2x8x16xf32> to vector<1x8x16xf32>
    %254 = vector.shape_cast %253 : vector<1x8x16xf32> to vector<8x16xf32>
    %255 = vector.broadcast %252 : f32 to vector<8x16xf32>
    %256 = arith.mulf %255, %254 : vector<8x16xf32>
    %c9 = arith.constant 9 : index
    %257 = memref.load %arg7[%c9] : memref<57xf32, #tpu.memory_space<smem>>
    %258 = vector.extract_strided_slice %251 {offsets = [1, 0, 0], sizes = [1, 8, 16], strides = [1, 1, 1]} : vector<2x8x16xf32> to vector<1x8x16xf32>
    %259 = vector.shape_cast %258 : vector<1x8x16xf32> to vector<8x16xf32>
    %260 = vector.broadcast %257 : f32 to vector<8x16xf32>
    %261 = arith.mulf %260, %259 : vector<8x16xf32>
    %262 = arith.addf %256, %261 : vector<8x16xf32>
    %cst_81 = arith.constant 0.000000e+00 : f32
    %263 = vector.broadcast %cst_81 : f32 to vector<2x1x16xf32>
    %264 = vector.extract_strided_slice %245 {offsets = [0, 0, 0], sizes = [2, 7, 16], strides = [1, 1, 1]} : vector<2x8x16xf32> to vector<2x7x16xf32>
    %265 = tpu.concatenate %263, %264 in 1 : vector<2x1x16xf32>, vector<2x7x16xf32> -> vector<2x8x16xf32>
    %c1_82 = arith.constant 1 : index
    %266 = memref.load %arg7[%c1_82] : memref<57xf32, #tpu.memory_space<smem>>
    %267 = vector.extract_strided_slice %265 {offsets = [0, 0, 0], sizes = [1, 8, 16], strides = [1, 1, 1]} : vector<2x8x16xf32> to vector<1x8x16xf32>
    %268 = vector.shape_cast %267 : vector<1x8x16xf32> to vector<8x16xf32>
    %269 = vector.broadcast %266 : f32 to vector<8x16xf32>
    %270 = arith.mulf %269, %268 : vector<8x16xf32>
    %c10 = arith.constant 10 : index
    %271 = memref.load %arg7[%c10] : memref<57xf32, #tpu.memory_space<smem>>
    %272 = vector.extract_strided_slice %265 {offsets = [1, 0, 0], sizes = [1, 8, 16], strides = [1, 1, 1]} : vector<2x8x16xf32> to vector<1x8x16xf32>
    %273 = vector.shape_cast %272 : vector<1x8x16xf32> to vector<8x16xf32>
    %274 = vector.broadcast %271 : f32 to vector<8x16xf32>
    %275 = arith.mulf %274, %273 : vector<8x16xf32>
    %276 = arith.addf %270, %275 : vector<8x16xf32>
    %277 = arith.addf %262, %276 : vector<8x16xf32>
    %cst_83 = arith.constant 0.000000e+00 : f32
    %278 = vector.broadcast %cst_83 : f32 to vector<2x1x16xf32>
    %279 = vector.extract_strided_slice %245 {offsets = [0, 0, 0], sizes = [2, 7, 16], strides = [1, 1, 1]} : vector<2x8x16xf32> to vector<2x7x16xf32>
    %280 = tpu.concatenate %278, %279 in 1 : vector<2x1x16xf32>, vector<2x7x16xf32> -> vector<2x8x16xf32>
    %281 = vector.extract_strided_slice %280 {offsets = [0, 0, 1], sizes = [2, 8, 15], strides = [1, 1, 1]} : vector<2x8x16xf32> to vector<2x8x15xf32>
    %cst_84 = arith.constant 0.000000e+00 : f32
    %282 = vector.broadcast %cst_84 : f32 to vector<2x8x1xf32>
    %283 = tpu.concatenate %281, %282 in 2 : vector<2x8x15xf32>, vector<2x8x1xf32> -> vector<2x8x16xf32>
    %c2 = arith.constant 2 : index
    %284 = memref.load %arg7[%c2] : memref<57xf32, #tpu.memory_space<smem>>
    %285 = vector.extract_strided_slice %283 {offsets = [0, 0, 0], sizes = [1, 8, 16], strides = [1, 1, 1]} : vector<2x8x16xf32> to vector<1x8x16xf32>
    %286 = vector.shape_cast %285 : vector<1x8x16xf32> to vector<8x16xf32>
    %287 = vector.broadcast %284 : f32 to vector<8x16xf32>
    %288 = arith.mulf %287, %286 : vector<8x16xf32>
    %c11 = arith.constant 11 : index
    %289 = memref.load %arg7[%c11] : memref<57xf32, #tpu.memory_space<smem>>
    %290 = vector.extract_strided_slice %283 {offsets = [1, 0, 0], sizes = [1, 8, 16], strides = [1, 1, 1]} : vector<2x8x16xf32> to vector<1x8x16xf32>
    %291 = vector.shape_cast %290 : vector<1x8x16xf32> to vector<8x16xf32>
    %292 = vector.broadcast %289 : f32 to vector<8x16xf32>
    %293 = arith.mulf %292, %291 : vector<8x16xf32>
    %294 = arith.addf %288, %293 : vector<8x16xf32>
    %295 = arith.addf %277, %294 : vector<8x16xf32>
    %cst_85 = arith.constant 0.000000e+00 : f32
    %296 = vector.broadcast %cst_85 : f32 to vector<2x8x1xf32>
    %297 = vector.extract_strided_slice %245 {offsets = [0, 0, 0], sizes = [2, 8, 15], strides = [1, 1, 1]} : vector<2x8x16xf32> to vector<2x8x15xf32>
    %298 = tpu.concatenate %296, %297 in 2 : vector<2x8x1xf32>, vector<2x8x15xf32> -> vector<2x8x16xf32>
    %c3 = arith.constant 3 : index
    %299 = memref.load %arg7[%c3] : memref<57xf32, #tpu.memory_space<smem>>
    %300 = vector.extract_strided_slice %298 {offsets = [0, 0, 0], sizes = [1, 8, 16], strides = [1, 1, 1]} : vector<2x8x16xf32> to vector<1x8x16xf32>
    %301 = vector.shape_cast %300 : vector<1x8x16xf32> to vector<8x16xf32>
    %302 = vector.broadcast %299 : f32 to vector<8x16xf32>
    %303 = arith.mulf %302, %301 : vector<8x16xf32>
    %c12 = arith.constant 12 : index
    %304 = memref.load %arg7[%c12] : memref<57xf32, #tpu.memory_space<smem>>
    %305 = vector.extract_strided_slice %298 {offsets = [1, 0, 0], sizes = [1, 8, 16], strides = [1, 1, 1]} : vector<2x8x16xf32> to vector<1x8x16xf32>
    %306 = vector.shape_cast %305 : vector<1x8x16xf32> to vector<8x16xf32>
    %307 = vector.broadcast %304 : f32 to vector<8x16xf32>
    %308 = arith.mulf %307, %306 : vector<8x16xf32>
    %309 = arith.addf %303, %308 : vector<8x16xf32>
    %310 = arith.addf %295, %309 : vector<8x16xf32>
    %c4 = arith.constant 4 : index
    %311 = memref.load %arg7[%c4] : memref<57xf32, #tpu.memory_space<smem>>
    %312 = vector.extract_strided_slice %245 {offsets = [0, 0, 0], sizes = [1, 8, 16], strides = [1, 1, 1]} : vector<2x8x16xf32> to vector<1x8x16xf32>
    %313 = vector.shape_cast %312 : vector<1x8x16xf32> to vector<8x16xf32>
    %314 = vector.broadcast %311 : f32 to vector<8x16xf32>
    %315 = arith.mulf %314, %313 : vector<8x16xf32>
    %c13 = arith.constant 13 : index
    %316 = memref.load %arg7[%c13] : memref<57xf32, #tpu.memory_space<smem>>
    %317 = vector.extract_strided_slice %245 {offsets = [1, 0, 0], sizes = [1, 8, 16], strides = [1, 1, 1]} : vector<2x8x16xf32> to vector<1x8x16xf32>
    %318 = vector.shape_cast %317 : vector<1x8x16xf32> to vector<8x16xf32>
    %319 = vector.broadcast %316 : f32 to vector<8x16xf32>
    %320 = arith.mulf %319, %318 : vector<8x16xf32>
    %321 = arith.addf %315, %320 : vector<8x16xf32>
    %322 = arith.addf %310, %321 : vector<8x16xf32>
    %323 = vector.extract_strided_slice %245 {offsets = [0, 0, 1], sizes = [2, 8, 15], strides = [1, 1, 1]} : vector<2x8x16xf32> to vector<2x8x15xf32>
    %cst_86 = arith.constant 0.000000e+00 : f32
    %324 = vector.broadcast %cst_86 : f32 to vector<2x8x1xf32>
    %325 = tpu.concatenate %323, %324 in 2 : vector<2x8x15xf32>, vector<2x8x1xf32> -> vector<2x8x16xf32>
    %c5 = arith.constant 5 : index
    %326 = memref.load %arg7[%c5] : memref<57xf32, #tpu.memory_space<smem>>
    %327 = vector.extract_strided_slice %325 {offsets = [0, 0, 0], sizes = [1, 8, 16], strides = [1, 1, 1]} : vector<2x8x16xf32> to vector<1x8x16xf32>
    %328 = vector.shape_cast %327 : vector<1x8x16xf32> to vector<8x16xf32>
    %329 = vector.broadcast %326 : f32 to vector<8x16xf32>
    %330 = arith.mulf %329, %328 : vector<8x16xf32>
    %c14 = arith.constant 14 : index
    %331 = memref.load %arg7[%c14] : memref<57xf32, #tpu.memory_space<smem>>
    %332 = vector.extract_strided_slice %325 {offsets = [1, 0, 0], sizes = [1, 8, 16], strides = [1, 1, 1]} : vector<2x8x16xf32> to vector<1x8x16xf32>
    %333 = vector.shape_cast %332 : vector<1x8x16xf32> to vector<8x16xf32>
    %334 = vector.broadcast %331 : f32 to vector<8x16xf32>
    %335 = arith.mulf %334, %333 : vector<8x16xf32>
    %336 = arith.addf %330, %335 : vector<8x16xf32>
    %337 = arith.addf %322, %336 : vector<8x16xf32>
    %338 = vector.extract_strided_slice %245 {offsets = [0, 1, 0], sizes = [2, 7, 16], strides = [1, 1, 1]} : vector<2x8x16xf32> to vector<2x7x16xf32>
    %cst_87 = arith.constant 0.000000e+00 : f32
    %339 = vector.broadcast %cst_87 : f32 to vector<2x1x16xf32>
    %340 = tpu.concatenate %338, %339 in 1 : vector<2x7x16xf32>, vector<2x1x16xf32> -> vector<2x8x16xf32>
    %cst_88 = arith.constant 0.000000e+00 : f32
    %341 = vector.broadcast %cst_88 : f32 to vector<2x8x1xf32>
    %342 = vector.extract_strided_slice %340 {offsets = [0, 0, 0], sizes = [2, 8, 15], strides = [1, 1, 1]} : vector<2x8x16xf32> to vector<2x8x15xf32>
    %343 = tpu.concatenate %341, %342 in 2 : vector<2x8x1xf32>, vector<2x8x15xf32> -> vector<2x8x16xf32>
    %c6 = arith.constant 6 : index
    %344 = memref.load %arg7[%c6] : memref<57xf32, #tpu.memory_space<smem>>
    %345 = vector.extract_strided_slice %343 {offsets = [0, 0, 0], sizes = [1, 8, 16], strides = [1, 1, 1]} : vector<2x8x16xf32> to vector<1x8x16xf32>
    %346 = vector.shape_cast %345 : vector<1x8x16xf32> to vector<8x16xf32>
    %347 = vector.broadcast %344 : f32 to vector<8x16xf32>
    %348 = arith.mulf %347, %346 : vector<8x16xf32>
    %c15 = arith.constant 15 : index
    %349 = memref.load %arg7[%c15] : memref<57xf32, #tpu.memory_space<smem>>
    %350 = vector.extract_strided_slice %343 {offsets = [1, 0, 0], sizes = [1, 8, 16], strides = [1, 1, 1]} : vector<2x8x16xf32> to vector<1x8x16xf32>
    %351 = vector.shape_cast %350 : vector<1x8x16xf32> to vector<8x16xf32>
    %352 = vector.broadcast %349 : f32 to vector<8x16xf32>
    %353 = arith.mulf %352, %351 : vector<8x16xf32>
    %354 = arith.addf %348, %353 : vector<8x16xf32>
    %355 = arith.addf %337, %354 : vector<8x16xf32>
    %356 = vector.extract_strided_slice %245 {offsets = [0, 1, 0], sizes = [2, 7, 16], strides = [1, 1, 1]} : vector<2x8x16xf32> to vector<2x7x16xf32>
    %cst_89 = arith.constant 0.000000e+00 : f32
    %357 = vector.broadcast %cst_89 : f32 to vector<2x1x16xf32>
    %358 = tpu.concatenate %356, %357 in 1 : vector<2x7x16xf32>, vector<2x1x16xf32> -> vector<2x8x16xf32>
    %c7 = arith.constant 7 : index
    %359 = memref.load %arg7[%c7] : memref<57xf32, #tpu.memory_space<smem>>
    %360 = vector.extract_strided_slice %358 {offsets = [0, 0, 0], sizes = [1, 8, 16], strides = [1, 1, 1]} : vector<2x8x16xf32> to vector<1x8x16xf32>
    %361 = vector.shape_cast %360 : vector<1x8x16xf32> to vector<8x16xf32>
    %362 = vector.broadcast %359 : f32 to vector<8x16xf32>
    %363 = arith.mulf %362, %361 : vector<8x16xf32>
    %c16 = arith.constant 16 : index
    %364 = memref.load %arg7[%c16] : memref<57xf32, #tpu.memory_space<smem>>
    %365 = vector.extract_strided_slice %358 {offsets = [1, 0, 0], sizes = [1, 8, 16], strides = [1, 1, 1]} : vector<2x8x16xf32> to vector<1x8x16xf32>
    %366 = vector.shape_cast %365 : vector<1x8x16xf32> to vector<8x16xf32>
    %367 = vector.broadcast %364 : f32 to vector<8x16xf32>
    %368 = arith.mulf %367, %366 : vector<8x16xf32>
    %369 = arith.addf %363, %368 : vector<8x16xf32>
    %370 = arith.addf %355, %369 : vector<8x16xf32>
    %371 = vector.extract_strided_slice %245 {offsets = [0, 1, 0], sizes = [2, 7, 16], strides = [1, 1, 1]} : vector<2x8x16xf32> to vector<2x7x16xf32>
    %cst_90 = arith.constant 0.000000e+00 : f32
    %372 = vector.broadcast %cst_90 : f32 to vector<2x1x16xf32>
    %373 = tpu.concatenate %371, %372 in 1 : vector<2x7x16xf32>, vector<2x1x16xf32> -> vector<2x8x16xf32>
    %374 = vector.extract_strided_slice %373 {offsets = [0, 0, 1], sizes = [2, 8, 15], strides = [1, 1, 1]} : vector<2x8x16xf32> to vector<2x8x15xf32>
    %cst_91 = arith.constant 0.000000e+00 : f32
    %375 = vector.broadcast %cst_91 : f32 to vector<2x8x1xf32>
    %376 = tpu.concatenate %374, %375 in 2 : vector<2x8x15xf32>, vector<2x8x1xf32> -> vector<2x8x16xf32>
    %c8 = arith.constant 8 : index
    %377 = memref.load %arg7[%c8] : memref<57xf32, #tpu.memory_space<smem>>
    %378 = vector.extract_strided_slice %376 {offsets = [0, 0, 0], sizes = [1, 8, 16], strides = [1, 1, 1]} : vector<2x8x16xf32> to vector<1x8x16xf32>
    %379 = vector.shape_cast %378 : vector<1x8x16xf32> to vector<8x16xf32>
    %380 = vector.broadcast %377 : f32 to vector<8x16xf32>
    %381 = arith.mulf %380, %379 : vector<8x16xf32>
    %c17 = arith.constant 17 : index
    %382 = memref.load %arg7[%c17] : memref<57xf32, #tpu.memory_space<smem>>
    %383 = vector.extract_strided_slice %376 {offsets = [1, 0, 0], sizes = [1, 8, 16], strides = [1, 1, 1]} : vector<2x8x16xf32> to vector<1x8x16xf32>
    %384 = vector.shape_cast %383 : vector<1x8x16xf32> to vector<8x16xf32>
    %385 = vector.broadcast %382 : f32 to vector<8x16xf32>
    %386 = arith.mulf %385, %384 : vector<8x16xf32>
    %387 = arith.addf %381, %386 : vector<8x16xf32>
    %388 = arith.addf %370, %387 : vector<8x16xf32>
    %c18 = arith.constant 18 : index
    %389 = memref.load %arg7[%c18] : memref<57xf32, #tpu.memory_space<smem>>
    %390 = vector.broadcast %389 : f32 to vector<8x16xf32>
    %391 = arith.addf %388, %390 : vector<8x16xf32>
    %cst_92 = arith.constant 0.000000e+00 : f32
    %392 = vector.broadcast %cst_92 : f32 to vector<8x16xf32>
    %393 = arith.subf %392, %391 : vector<8x16xf32>
    %394 = math.exp %393 : vector<8x16xf32>
    %cst_93 = arith.constant 1.000000e+00 : f32
    %395 = vector.broadcast %cst_93 : f32 to vector<8x16xf32>
    %396 = arith.addf %395, %394 : vector<8x16xf32>
    %cst_94 = arith.constant 1.000000e+00 : f32
    %397 = vector.broadcast %cst_94 : f32 to vector<8x16xf32>
    %398 = arith.divf %397, %396 : vector<8x16xf32>
    %399 = vector.shape_cast %201 : vector<8x16xf32> to vector<1x8x16xf32>
    %400 = vector.shape_cast %236 : vector<8x16xf32> to vector<1x8x16xf32>
    %401 = tpu.concatenate %399, %400 in 0 : vector<1x8x16xf32>, vector<1x8x16xf32> -> vector<2x8x16xf32>
    %cst_95 = arith.constant 0.000000e+00 : f32
    %402 = vector.broadcast %cst_95 : f32 to vector<2x1x16xf32>
    %403 = vector.extract_strided_slice %401 {offsets = [0, 0, 0], sizes = [2, 7, 16], strides = [1, 1, 1]} : vector<2x8x16xf32> to vector<2x7x16xf32>
    %404 = tpu.concatenate %402, %403 in 1 : vector<2x1x16xf32>, vector<2x7x16xf32> -> vector<2x8x16xf32>
    %cst_96 = arith.constant 0.000000e+00 : f32
    %405 = vector.broadcast %cst_96 : f32 to vector<2x8x1xf32>
    %406 = vector.extract_strided_slice %404 {offsets = [0, 0, 0], sizes = [2, 8, 15], strides = [1, 1, 1]} : vector<2x8x16xf32> to vector<2x8x15xf32>
    %407 = tpu.concatenate %405, %406 in 2 : vector<2x8x1xf32>, vector<2x8x15xf32> -> vector<2x8x16xf32>
    %c19 = arith.constant 19 : index
    %408 = memref.load %arg7[%c19] : memref<57xf32, #tpu.memory_space<smem>>
    %409 = vector.extract_strided_slice %407 {offsets = [0, 0, 0], sizes = [1, 8, 16], strides = [1, 1, 1]} : vector<2x8x16xf32> to vector<1x8x16xf32>
    %410 = vector.shape_cast %409 : vector<1x8x16xf32> to vector<8x16xf32>
    %411 = vector.broadcast %408 : f32 to vector<8x16xf32>
    %412 = arith.mulf %411, %410 : vector<8x16xf32>
    %c28 = arith.constant 28 : index
    %413 = memref.load %arg7[%c28] : memref<57xf32, #tpu.memory_space<smem>>
    %414 = vector.extract_strided_slice %407 {offsets = [1, 0, 0], sizes = [1, 8, 16], strides = [1, 1, 1]} : vector<2x8x16xf32> to vector<1x8x16xf32>
    %415 = vector.shape_cast %414 : vector<1x8x16xf32> to vector<8x16xf32>
    %416 = vector.broadcast %413 : f32 to vector<8x16xf32>
    %417 = arith.mulf %416, %415 : vector<8x16xf32>
    %418 = arith.addf %412, %417 : vector<8x16xf32>
    %cst_97 = arith.constant 0.000000e+00 : f32
    %419 = vector.broadcast %cst_97 : f32 to vector<2x1x16xf32>
    %420 = vector.extract_strided_slice %401 {offsets = [0, 0, 0], sizes = [2, 7, 16], strides = [1, 1, 1]} : vector<2x8x16xf32> to vector<2x7x16xf32>
    %421 = tpu.concatenate %419, %420 in 1 : vector<2x1x16xf32>, vector<2x7x16xf32> -> vector<2x8x16xf32>
    %c20 = arith.constant 20 : index
    %422 = memref.load %arg7[%c20] : memref<57xf32, #tpu.memory_space<smem>>
    %423 = vector.extract_strided_slice %421 {offsets = [0, 0, 0], sizes = [1, 8, 16], strides = [1, 1, 1]} : vector<2x8x16xf32> to vector<1x8x16xf32>
    %424 = vector.shape_cast %423 : vector<1x8x16xf32> to vector<8x16xf32>
    %425 = vector.broadcast %422 : f32 to vector<8x16xf32>
    %426 = arith.mulf %425, %424 : vector<8x16xf32>
    %c29 = arith.constant 29 : index
    %427 = memref.load %arg7[%c29] : memref<57xf32, #tpu.memory_space<smem>>
    %428 = vector.extract_strided_slice %421 {offsets = [1, 0, 0], sizes = [1, 8, 16], strides = [1, 1, 1]} : vector<2x8x16xf32> to vector<1x8x16xf32>
    %429 = vector.shape_cast %428 : vector<1x8x16xf32> to vector<8x16xf32>
    %430 = vector.broadcast %427 : f32 to vector<8x16xf32>
    %431 = arith.mulf %430, %429 : vector<8x16xf32>
    %432 = arith.addf %426, %431 : vector<8x16xf32>
    %433 = arith.addf %418, %432 : vector<8x16xf32>
    %cst_98 = arith.constant 0.000000e+00 : f32
    %434 = vector.broadcast %cst_98 : f32 to vector<2x1x16xf32>
    %435 = vector.extract_strided_slice %401 {offsets = [0, 0, 0], sizes = [2, 7, 16], strides = [1, 1, 1]} : vector<2x8x16xf32> to vector<2x7x16xf32>
    %436 = tpu.concatenate %434, %435 in 1 : vector<2x1x16xf32>, vector<2x7x16xf32> -> vector<2x8x16xf32>
    %437 = vector.extract_strided_slice %436 {offsets = [0, 0, 1], sizes = [2, 8, 15], strides = [1, 1, 1]} : vector<2x8x16xf32> to vector<2x8x15xf32>
    %cst_99 = arith.constant 0.000000e+00 : f32
    %438 = vector.broadcast %cst_99 : f32 to vector<2x8x1xf32>
    %439 = tpu.concatenate %437, %438 in 2 : vector<2x8x15xf32>, vector<2x8x1xf32> -> vector<2x8x16xf32>
    %c21 = arith.constant 21 : index
    %440 = memref.load %arg7[%c21] : memref<57xf32, #tpu.memory_space<smem>>
    %441 = vector.extract_strided_slice %439 {offsets = [0, 0, 0], sizes = [1, 8, 16], strides = [1, 1, 1]} : vector<2x8x16xf32> to vector<1x8x16xf32>
    %442 = vector.shape_cast %441 : vector<1x8x16xf32> to vector<8x16xf32>
    %443 = vector.broadcast %440 : f32 to vector<8x16xf32>
    %444 = arith.mulf %443, %442 : vector<8x16xf32>
    %c30 = arith.constant 30 : index
    %445 = memref.load %arg7[%c30] : memref<57xf32, #tpu.memory_space<smem>>
    %446 = vector.extract_strided_slice %439 {offsets = [1, 0, 0], sizes = [1, 8, 16], strides = [1, 1, 1]} : vector<2x8x16xf32> to vector<1x8x16xf32>
    %447 = vector.shape_cast %446 : vector<1x8x16xf32> to vector<8x16xf32>
    %448 = vector.broadcast %445 : f32 to vector<8x16xf32>
    %449 = arith.mulf %448, %447 : vector<8x16xf32>
    %450 = arith.addf %444, %449 : vector<8x16xf32>
    %451 = arith.addf %433, %450 : vector<8x16xf32>
    %cst_100 = arith.constant 0.000000e+00 : f32
    %452 = vector.broadcast %cst_100 : f32 to vector<2x8x1xf32>
    %453 = vector.extract_strided_slice %401 {offsets = [0, 0, 0], sizes = [2, 8, 15], strides = [1, 1, 1]} : vector<2x8x16xf32> to vector<2x8x15xf32>
    %454 = tpu.concatenate %452, %453 in 2 : vector<2x8x1xf32>, vector<2x8x15xf32> -> vector<2x8x16xf32>
    %c22 = arith.constant 22 : index
    %455 = memref.load %arg7[%c22] : memref<57xf32, #tpu.memory_space<smem>>
    %456 = vector.extract_strided_slice %454 {offsets = [0, 0, 0], sizes = [1, 8, 16], strides = [1, 1, 1]} : vector<2x8x16xf32> to vector<1x8x16xf32>
    %457 = vector.shape_cast %456 : vector<1x8x16xf32> to vector<8x16xf32>
    %458 = vector.broadcast %455 : f32 to vector<8x16xf32>
    %459 = arith.mulf %458, %457 : vector<8x16xf32>
    %c31 = arith.constant 31 : index
    %460 = memref.load %arg7[%c31] : memref<57xf32, #tpu.memory_space<smem>>
    %461 = vector.extract_strided_slice %454 {offsets = [1, 0, 0], sizes = [1, 8, 16], strides = [1, 1, 1]} : vector<2x8x16xf32> to vector<1x8x16xf32>
    %462 = vector.shape_cast %461 : vector<1x8x16xf32> to vector<8x16xf32>
    %463 = vector.broadcast %460 : f32 to vector<8x16xf32>
    %464 = arith.mulf %463, %462 : vector<8x16xf32>
    %465 = arith.addf %459, %464 : vector<8x16xf32>
    %466 = arith.addf %451, %465 : vector<8x16xf32>
    %c23 = arith.constant 23 : index
    %467 = memref.load %arg7[%c23] : memref<57xf32, #tpu.memory_space<smem>>
    %468 = vector.extract_strided_slice %401 {offsets = [0, 0, 0], sizes = [1, 8, 16], strides = [1, 1, 1]} : vector<2x8x16xf32> to vector<1x8x16xf32>
    %469 = vector.shape_cast %468 : vector<1x8x16xf32> to vector<8x16xf32>
    %470 = vector.broadcast %467 : f32 to vector<8x16xf32>
    %471 = arith.mulf %470, %469 : vector<8x16xf32>
    %c32 = arith.constant 32 : index
    %472 = memref.load %arg7[%c32] : memref<57xf32, #tpu.memory_space<smem>>
    %473 = vector.extract_strided_slice %401 {offsets = [1, 0, 0], sizes = [1, 8, 16], strides = [1, 1, 1]} : vector<2x8x16xf32> to vector<1x8x16xf32>
    %474 = vector.shape_cast %473 : vector<1x8x16xf32> to vector<8x16xf32>
    %475 = vector.broadcast %472 : f32 to vector<8x16xf32>
    %476 = arith.mulf %475, %474 : vector<8x16xf32>
    %477 = arith.addf %471, %476 : vector<8x16xf32>
    %478 = arith.addf %466, %477 : vector<8x16xf32>
    %479 = vector.extract_strided_slice %401 {offsets = [0, 0, 1], sizes = [2, 8, 15], strides = [1, 1, 1]} : vector<2x8x16xf32> to vector<2x8x15xf32>
    %cst_101 = arith.constant 0.000000e+00 : f32
    %480 = vector.broadcast %cst_101 : f32 to vector<2x8x1xf32>
    %481 = tpu.concatenate %479, %480 in 2 : vector<2x8x15xf32>, vector<2x8x1xf32> -> vector<2x8x16xf32>
    %c24 = arith.constant 24 : index
    %482 = memref.load %arg7[%c24] : memref<57xf32, #tpu.memory_space<smem>>
    %483 = vector.extract_strided_slice %481 {offsets = [0, 0, 0], sizes = [1, 8, 16], strides = [1, 1, 1]} : vector<2x8x16xf32> to vector<1x8x16xf32>
    %484 = vector.shape_cast %483 : vector<1x8x16xf32> to vector<8x16xf32>
    %485 = vector.broadcast %482 : f32 to vector<8x16xf32>
    %486 = arith.mulf %485, %484 : vector<8x16xf32>
    %c33 = arith.constant 33 : index
    %487 = memref.load %arg7[%c33] : memref<57xf32, #tpu.memory_space<smem>>
    %488 = vector.extract_strided_slice %481 {offsets = [1, 0, 0], sizes = [1, 8, 16], strides = [1, 1, 1]} : vector<2x8x16xf32> to vector<1x8x16xf32>
    %489 = vector.shape_cast %488 : vector<1x8x16xf32> to vector<8x16xf32>
    %490 = vector.broadcast %487 : f32 to vector<8x16xf32>
    %491 = arith.mulf %490, %489 : vector<8x16xf32>
    %492 = arith.addf %486, %491 : vector<8x16xf32>
    %493 = arith.addf %478, %492 : vector<8x16xf32>
    %494 = vector.extract_strided_slice %401 {offsets = [0, 1, 0], sizes = [2, 7, 16], strides = [1, 1, 1]} : vector<2x8x16xf32> to vector<2x7x16xf32>
    %cst_102 = arith.constant 0.000000e+00 : f32
    %495 = vector.broadcast %cst_102 : f32 to vector<2x1x16xf32>
    %496 = tpu.concatenate %494, %495 in 1 : vector<2x7x16xf32>, vector<2x1x16xf32> -> vector<2x8x16xf32>
    %cst_103 = arith.constant 0.000000e+00 : f32
    %497 = vector.broadcast %cst_103 : f32 to vector<2x8x1xf32>
    %498 = vector.extract_strided_slice %496 {offsets = [0, 0, 0], sizes = [2, 8, 15], strides = [1, 1, 1]} : vector<2x8x16xf32> to vector<2x8x15xf32>
    %499 = tpu.concatenate %497, %498 in 2 : vector<2x8x1xf32>, vector<2x8x15xf32> -> vector<2x8x16xf32>
    %c25 = arith.constant 25 : index
    %500 = memref.load %arg7[%c25] : memref<57xf32, #tpu.memory_space<smem>>
    %501 = vector.extract_strided_slice %499 {offsets = [0, 0, 0], sizes = [1, 8, 16], strides = [1, 1, 1]} : vector<2x8x16xf32> to vector<1x8x16xf32>
    %502 = vector.shape_cast %501 : vector<1x8x16xf32> to vector<8x16xf32>
    %503 = vector.broadcast %500 : f32 to vector<8x16xf32>
    %504 = arith.mulf %503, %502 : vector<8x16xf32>
    %c34 = arith.constant 34 : index
    %505 = memref.load %arg7[%c34] : memref<57xf32, #tpu.memory_space<smem>>
    %506 = vector.extract_strided_slice %499 {offsets = [1, 0, 0], sizes = [1, 8, 16], strides = [1, 1, 1]} : vector<2x8x16xf32> to vector<1x8x16xf32>
    %507 = vector.shape_cast %506 : vector<1x8x16xf32> to vector<8x16xf32>
    %508 = vector.broadcast %505 : f32 to vector<8x16xf32>
    %509 = arith.mulf %508, %507 : vector<8x16xf32>
    %510 = arith.addf %504, %509 : vector<8x16xf32>
    %511 = arith.addf %493, %510 : vector<8x16xf32>
    %512 = vector.extract_strided_slice %401 {offsets = [0, 1, 0], sizes = [2, 7, 16], strides = [1, 1, 1]} : vector<2x8x16xf32> to vector<2x7x16xf32>
    %cst_104 = arith.constant 0.000000e+00 : f32
    %513 = vector.broadcast %cst_104 : f32 to vector<2x1x16xf32>
    %514 = tpu.concatenate %512, %513 in 1 : vector<2x7x16xf32>, vector<2x1x16xf32> -> vector<2x8x16xf32>
    %c26 = arith.constant 26 : index
    %515 = memref.load %arg7[%c26] : memref<57xf32, #tpu.memory_space<smem>>
    %516 = vector.extract_strided_slice %514 {offsets = [0, 0, 0], sizes = [1, 8, 16], strides = [1, 1, 1]} : vector<2x8x16xf32> to vector<1x8x16xf32>
    %517 = vector.shape_cast %516 : vector<1x8x16xf32> to vector<8x16xf32>
    %518 = vector.broadcast %515 : f32 to vector<8x16xf32>
    %519 = arith.mulf %518, %517 : vector<8x16xf32>
    %c35 = arith.constant 35 : index
    %520 = memref.load %arg7[%c35] : memref<57xf32, #tpu.memory_space<smem>>
    %521 = vector.extract_strided_slice %514 {offsets = [1, 0, 0], sizes = [1, 8, 16], strides = [1, 1, 1]} : vector<2x8x16xf32> to vector<1x8x16xf32>
    %522 = vector.shape_cast %521 : vector<1x8x16xf32> to vector<8x16xf32>
    %523 = vector.broadcast %520 : f32 to vector<8x16xf32>
    %524 = arith.mulf %523, %522 : vector<8x16xf32>
    %525 = arith.addf %519, %524 : vector<8x16xf32>
    %526 = arith.addf %511, %525 : vector<8x16xf32>
    %527 = vector.extract_strided_slice %401 {offsets = [0, 1, 0], sizes = [2, 7, 16], strides = [1, 1, 1]} : vector<2x8x16xf32> to vector<2x7x16xf32>
    %cst_105 = arith.constant 0.000000e+00 : f32
    %528 = vector.broadcast %cst_105 : f32 to vector<2x1x16xf32>
    %529 = tpu.concatenate %527, %528 in 1 : vector<2x7x16xf32>, vector<2x1x16xf32> -> vector<2x8x16xf32>
    %530 = vector.extract_strided_slice %529 {offsets = [0, 0, 1], sizes = [2, 8, 15], strides = [1, 1, 1]} : vector<2x8x16xf32> to vector<2x8x15xf32>
    %cst_106 = arith.constant 0.000000e+00 : f32
    %531 = vector.broadcast %cst_106 : f32 to vector<2x8x1xf32>
    %532 = tpu.concatenate %530, %531 in 2 : vector<2x8x15xf32>, vector<2x8x1xf32> -> vector<2x8x16xf32>
    %c27 = arith.constant 27 : index
    %533 = memref.load %arg7[%c27] : memref<57xf32, #tpu.memory_space<smem>>
    %534 = vector.extract_strided_slice %532 {offsets = [0, 0, 0], sizes = [1, 8, 16], strides = [1, 1, 1]} : vector<2x8x16xf32> to vector<1x8x16xf32>
    %535 = vector.shape_cast %534 : vector<1x8x16xf32> to vector<8x16xf32>
    %536 = vector.broadcast %533 : f32 to vector<8x16xf32>
    %537 = arith.mulf %536, %535 : vector<8x16xf32>
    %c36 = arith.constant 36 : index
    %538 = memref.load %arg7[%c36] : memref<57xf32, #tpu.memory_space<smem>>
    %539 = vector.extract_strided_slice %532 {offsets = [1, 0, 0], sizes = [1, 8, 16], strides = [1, 1, 1]} : vector<2x8x16xf32> to vector<1x8x16xf32>
    %540 = vector.shape_cast %539 : vector<1x8x16xf32> to vector<8x16xf32>
    %541 = vector.broadcast %538 : f32 to vector<8x16xf32>
    %542 = arith.mulf %541, %540 : vector<8x16xf32>
    %543 = arith.addf %537, %542 : vector<8x16xf32>
    %544 = arith.addf %526, %543 : vector<8x16xf32>
    %c37 = arith.constant 37 : index
    %545 = memref.load %arg7[%c37] : memref<57xf32, #tpu.memory_space<smem>>
    %546 = vector.broadcast %545 : f32 to vector<8x16xf32>
    %547 = arith.addf %544, %546 : vector<8x16xf32>
    %cst_107 = arith.constant 0.000000e+00 : f32
    %548 = vector.broadcast %cst_107 : f32 to vector<8x16xf32>
    %549 = arith.subf %548, %547 : vector<8x16xf32>
    %550 = math.exp %549 : vector<8x16xf32>
    %cst_108 = arith.constant 1.000000e+00 : f32
    %551 = vector.broadcast %cst_108 : f32 to vector<8x16xf32>
    %552 = arith.addf %551, %550 : vector<8x16xf32>
    %cst_109 = arith.constant 1.000000e+00 : f32
    %553 = vector.broadcast %cst_109 : f32 to vector<8x16xf32>
    %554 = arith.divf %553, %552 : vector<8x16xf32>
    %555 = tpu.concatenate %238, %242 in 0 : vector<1x256xf32>, vector<1x256xf32> -> vector<2x256xf32>
    %cst_110 = arith.constant 0.000000e+00 : f32
    %556 = vector.broadcast %cst_110 : f32 to vector<2x16xf32>
    %557 = vector.extract_strided_slice %555 {offsets = [0, 0], sizes = [2, 240], strides = [1, 1]} : vector<2x256xf32> to vector<2x240xf32>
    %558 = tpu.concatenate %556, %557 in 1 : vector<2x16xf32>, vector<2x240xf32> -> vector<2x256xf32>
    %cst_111 = arith.constant 0.000000e+00 : f32
    %559 = vector.broadcast %cst_111 : f32 to vector<2x1xf32>
    %560 = vector.extract_strided_slice %558 {offsets = [0, 0], sizes = [2, 255], strides = [1, 1]} : vector<2x256xf32> to vector<2x255xf32>
    %561 = tpu.concatenate %559, %560 in 1 : vector<2x1xf32>, vector<2x255xf32> -> vector<2x256xf32>
    %562 = vector.broadcast %8 : vector<1x256xf32> to vector<2x256xf32>
    %563 = arith.mulf %561, %562 : vector<2x256xf32>
    %c38 = arith.constant 38 : index
    %564 = memref.load %arg7[%c38] : memref<57xf32, #tpu.memory_space<smem>>
    %565 = vector.extract_strided_slice %563 {offsets = [0, 0], sizes = [1, 256], strides = [1, 1]} : vector<2x256xf32> to vector<1x256xf32>
    %566 = vector.broadcast %564 : f32 to vector<1x256xf32>
    %567 = arith.mulf %566, %565 : vector<1x256xf32>
    %c47 = arith.constant 47 : index
    %568 = memref.load %arg7[%c47] : memref<57xf32, #tpu.memory_space<smem>>
    %569 = vector.extract_strided_slice %563 {offsets = [1, 0], sizes = [1, 256], strides = [1, 1]} : vector<2x256xf32> to vector<1x256xf32>
    %570 = vector.broadcast %568 : f32 to vector<1x256xf32>
    %571 = arith.mulf %570, %569 : vector<1x256xf32>
    %572 = arith.addf %567, %571 : vector<1x256xf32>
    %c39 = arith.constant 39 : index
    %573 = memref.load %arg7[%c39] : memref<57xf32, #tpu.memory_space<smem>>
    %574 = vector.extract_strided_slice %558 {offsets = [0, 0], sizes = [1, 256], strides = [1, 1]} : vector<2x256xf32> to vector<1x256xf32>
    %575 = vector.broadcast %573 : f32 to vector<1x256xf32>
    %576 = arith.mulf %575, %574 : vector<1x256xf32>
    %c48 = arith.constant 48 : index
    %577 = memref.load %arg7[%c48] : memref<57xf32, #tpu.memory_space<smem>>
    %578 = vector.extract_strided_slice %558 {offsets = [1, 0], sizes = [1, 256], strides = [1, 1]} : vector<2x256xf32> to vector<1x256xf32>
    %579 = vector.broadcast %577 : f32 to vector<1x256xf32>
    %580 = arith.mulf %579, %578 : vector<1x256xf32>
    %581 = arith.addf %576, %580 : vector<1x256xf32>
    %582 = arith.addf %572, %581 : vector<1x256xf32>
    %583 = vector.extract_strided_slice %558 {offsets = [0, 1], sizes = [2, 255], strides = [1, 1]} : vector<2x256xf32> to vector<2x255xf32>
    %cst_112 = arith.constant 0.000000e+00 : f32
    %584 = vector.broadcast %cst_112 : f32 to vector<2x1xf32>
    %585 = tpu.concatenate %583, %584 in 1 : vector<2x255xf32>, vector<2x1xf32> -> vector<2x256xf32>
    %586 = vector.broadcast %9 : vector<1x256xf32> to vector<2x256xf32>
    %587 = arith.mulf %585, %586 : vector<2x256xf32>
    %c40 = arith.constant 40 : index
    %588 = memref.load %arg7[%c40] : memref<57xf32, #tpu.memory_space<smem>>
    %589 = vector.extract_strided_slice %587 {offsets = [0, 0], sizes = [1, 256], strides = [1, 1]} : vector<2x256xf32> to vector<1x256xf32>
    %590 = vector.broadcast %588 : f32 to vector<1x256xf32>
    %591 = arith.mulf %590, %589 : vector<1x256xf32>
    %c49 = arith.constant 49 : index
    %592 = memref.load %arg7[%c49] : memref<57xf32, #tpu.memory_space<smem>>
    %593 = vector.extract_strided_slice %587 {offsets = [1, 0], sizes = [1, 256], strides = [1, 1]} : vector<2x256xf32> to vector<1x256xf32>
    %594 = vector.broadcast %592 : f32 to vector<1x256xf32>
    %595 = arith.mulf %594, %593 : vector<1x256xf32>
    %596 = arith.addf %591, %595 : vector<1x256xf32>
    %597 = arith.addf %582, %596 : vector<1x256xf32>
    %cst_113 = arith.constant 0.000000e+00 : f32
    %598 = vector.broadcast %cst_113 : f32 to vector<2x1xf32>
    %599 = vector.extract_strided_slice %555 {offsets = [0, 0], sizes = [2, 255], strides = [1, 1]} : vector<2x256xf32> to vector<2x255xf32>
    %600 = tpu.concatenate %598, %599 in 1 : vector<2x1xf32>, vector<2x255xf32> -> vector<2x256xf32>
    %601 = vector.broadcast %8 : vector<1x256xf32> to vector<2x256xf32>
    %602 = arith.mulf %600, %601 : vector<2x256xf32>
    %c41 = arith.constant 41 : index
    %603 = memref.load %arg7[%c41] : memref<57xf32, #tpu.memory_space<smem>>
    %604 = vector.extract_strided_slice %602 {offsets = [0, 0], sizes = [1, 256], strides = [1, 1]} : vector<2x256xf32> to vector<1x256xf32>
    %605 = vector.broadcast %603 : f32 to vector<1x256xf32>
    %606 = arith.mulf %605, %604 : vector<1x256xf32>
    %c50 = arith.constant 50 : index
    %607 = memref.load %arg7[%c50] : memref<57xf32, #tpu.memory_space<smem>>
    %608 = vector.extract_strided_slice %602 {offsets = [1, 0], sizes = [1, 256], strides = [1, 1]} : vector<2x256xf32> to vector<1x256xf32>
    %609 = vector.broadcast %607 : f32 to vector<1x256xf32>
    %610 = arith.mulf %609, %608 : vector<1x256xf32>
    %611 = arith.addf %606, %610 : vector<1x256xf32>
    %612 = arith.addf %597, %611 : vector<1x256xf32>
    %c42 = arith.constant 42 : index
    %613 = memref.load %arg7[%c42] : memref<57xf32, #tpu.memory_space<smem>>
    %614 = vector.extract_strided_slice %555 {offsets = [0, 0], sizes = [1, 256], strides = [1, 1]} : vector<2x256xf32> to vector<1x256xf32>
    %615 = vector.broadcast %613 : f32 to vector<1x256xf32>
    %616 = arith.mulf %615, %614 : vector<1x256xf32>
    %c51 = arith.constant 51 : index
    %617 = memref.load %arg7[%c51] : memref<57xf32, #tpu.memory_space<smem>>
    %618 = vector.extract_strided_slice %555 {offsets = [1, 0], sizes = [1, 256], strides = [1, 1]} : vector<2x256xf32> to vector<1x256xf32>
    %619 = vector.broadcast %617 : f32 to vector<1x256xf32>
    %620 = arith.mulf %619, %618 : vector<1x256xf32>
    %621 = arith.addf %616, %620 : vector<1x256xf32>
    %622 = arith.addf %612, %621 : vector<1x256xf32>
    %623 = vector.extract_strided_slice %555 {offsets = [0, 1], sizes = [2, 255], strides = [1, 1]} : vector<2x256xf32> to vector<2x255xf32>
    %cst_114 = arith.constant 0.000000e+00 : f32
    %624 = vector.broadcast %cst_114 : f32 to vector<2x1xf32>
    %625 = tpu.concatenate %623, %624 in 1 : vector<2x255xf32>, vector<2x1xf32> -> vector<2x256xf32>
    %626 = vector.broadcast %9 : vector<1x256xf32> to vector<2x256xf32>
    %627 = arith.mulf %625, %626 : vector<2x256xf32>
    %c43 = arith.constant 43 : index
    %628 = memref.load %arg7[%c43] : memref<57xf32, #tpu.memory_space<smem>>
    %629 = vector.extract_strided_slice %627 {offsets = [0, 0], sizes = [1, 256], strides = [1, 1]} : vector<2x256xf32> to vector<1x256xf32>
    %630 = vector.broadcast %628 : f32 to vector<1x256xf32>
    %631 = arith.mulf %630, %629 : vector<1x256xf32>
    %c52 = arith.constant 52 : index
    %632 = memref.load %arg7[%c52] : memref<57xf32, #tpu.memory_space<smem>>
    %633 = vector.extract_strided_slice %627 {offsets = [1, 0], sizes = [1, 256], strides = [1, 1]} : vector<2x256xf32> to vector<1x256xf32>
    %634 = vector.broadcast %632 : f32 to vector<1x256xf32>
    %635 = arith.mulf %634, %633 : vector<1x256xf32>
    %636 = arith.addf %631, %635 : vector<1x256xf32>
    %637 = arith.addf %622, %636 : vector<1x256xf32>
    %638 = vector.extract_strided_slice %555 {offsets = [0, 16], sizes = [2, 240], strides = [1, 1]} : vector<2x256xf32> to vector<2x240xf32>
    %cst_115 = arith.constant 0.000000e+00 : f32
    %639 = vector.broadcast %cst_115 : f32 to vector<2x16xf32>
    %640 = tpu.concatenate %638, %639 in 1 : vector<2x240xf32>, vector<2x16xf32> -> vector<2x256xf32>
    %cst_116 = arith.constant 0.000000e+00 : f32
    %641 = vector.broadcast %cst_116 : f32 to vector<2x1xf32>
    %642 = vector.extract_strided_slice %640 {offsets = [0, 0], sizes = [2, 255], strides = [1, 1]} : vector<2x256xf32> to vector<2x255xf32>
    %643 = tpu.concatenate %641, %642 in 1 : vector<2x1xf32>, vector<2x255xf32> -> vector<2x256xf32>
    %644 = vector.broadcast %8 : vector<1x256xf32> to vector<2x256xf32>
    %645 = arith.mulf %643, %644 : vector<2x256xf32>
    %c44 = arith.constant 44 : index
    %646 = memref.load %arg7[%c44] : memref<57xf32, #tpu.memory_space<smem>>
    %647 = vector.extract_strided_slice %645 {offsets = [0, 0], sizes = [1, 256], strides = [1, 1]} : vector<2x256xf32> to vector<1x256xf32>
    %648 = vector.broadcast %646 : f32 to vector<1x256xf32>
    %649 = arith.mulf %648, %647 : vector<1x256xf32>
    %c53 = arith.constant 53 : index
    %650 = memref.load %arg7[%c53] : memref<57xf32, #tpu.memory_space<smem>>
    %651 = vector.extract_strided_slice %645 {offsets = [1, 0], sizes = [1, 256], strides = [1, 1]} : vector<2x256xf32> to vector<1x256xf32>
    %652 = vector.broadcast %650 : f32 to vector<1x256xf32>
    %653 = arith.mulf %652, %651 : vector<1x256xf32>
    %654 = arith.addf %649, %653 : vector<1x256xf32>
    %655 = arith.addf %637, %654 : vector<1x256xf32>
    %c45 = arith.constant 45 : index
    %656 = memref.load %arg7[%c45] : memref<57xf32, #tpu.memory_space<smem>>
    %657 = vector.extract_strided_slice %640 {offsets = [0, 0], sizes = [1, 256], strides = [1, 1]} : vector<2x256xf32> to vector<1x256xf32>
    %658 = vector.broadcast %656 : f32 to vector<1x256xf32>
    %659 = arith.mulf %658, %657 : vector<1x256xf32>
    %c54 = arith.constant 54 : index
    %660 = memref.load %arg7[%c54] : memref<57xf32, #tpu.memory_space<smem>>
    %661 = vector.extract_strided_slice %640 {offsets = [1, 0], sizes = [1, 256], strides = [1, 1]} : vector<2x256xf32> to vector<1x256xf32>
    %662 = vector.broadcast %660 : f32 to vector<1x256xf32>
    %663 = arith.mulf %662, %661 : vector<1x256xf32>
    %664 = arith.addf %659, %663 : vector<1x256xf32>
    %665 = arith.addf %655, %664 : vector<1x256xf32>
    %666 = vector.extract_strided_slice %640 {offsets = [0, 1], sizes = [2, 255], strides = [1, 1]} : vector<2x256xf32> to vector<2x255xf32>
    %cst_117 = arith.constant 0.000000e+00 : f32
    %667 = vector.broadcast %cst_117 : f32 to vector<2x1xf32>
    %668 = tpu.concatenate %666, %667 in 1 : vector<2x255xf32>, vector<2x1xf32> -> vector<2x256xf32>
    %669 = vector.broadcast %9 : vector<1x256xf32> to vector<2x256xf32>
    %670 = arith.mulf %668, %669 : vector<2x256xf32>
    %c46 = arith.constant 46 : index
    %671 = memref.load %arg7[%c46] : memref<57xf32, #tpu.memory_space<smem>>
    %672 = vector.extract_strided_slice %670 {offsets = [0, 0], sizes = [1, 256], strides = [1, 1]} : vector<2x256xf32> to vector<1x256xf32>
    %673 = vector.broadcast %671 : f32 to vector<1x256xf32>
    %674 = arith.mulf %673, %672 : vector<1x256xf32>
    %c55 = arith.constant 55 : index
    %675 = memref.load %arg7[%c55] : memref<57xf32, #tpu.memory_space<smem>>
    %676 = vector.extract_strided_slice %670 {offsets = [1, 0], sizes = [1, 256], strides = [1, 1]} : vector<2x256xf32> to vector<1x256xf32>
    %677 = vector.broadcast %675 : f32 to vector<1x256xf32>
    %678 = arith.mulf %677, %676 : vector<1x256xf32>
    %679 = arith.addf %674, %678 : vector<1x256xf32>
    %680 = arith.addf %665, %679 : vector<1x256xf32>
    %c56 = arith.constant 56 : index
    %681 = memref.load %arg7[%c56] : memref<57xf32, #tpu.memory_space<smem>>
    %682 = vector.broadcast %681 : f32 to vector<1x256xf32>
    %683 = arith.addf %680, %682 : vector<1x256xf32>
    %cst_118 = arith.constant 0.000000e+00 : f32
    %684 = vector.broadcast %cst_118 : f32 to vector<1x256xf32>
    %685 = arith.subf %684, %683 : vector<1x256xf32>
    %686 = math.exp %685 : vector<1x256xf32>
    %cst_119 = arith.constant 1.000000e+00 : f32
    %687 = vector.broadcast %cst_119 : f32 to vector<1x256xf32>
    %688 = arith.addf %687, %686 : vector<1x256xf32>
    %cst_120 = arith.constant 1.000000e+00 : f32
    %689 = vector.broadcast %cst_120 : f32 to vector<1x256xf32>
    %690 = arith.divf %689, %688 : vector<1x256xf32>
    %691 = tpu.concatenate %398, %398, %398, %398, %398, %398, %398, %398, %398, %398, %398, %398, %398, %398, %398, %398 in 1 : vector<8x16xf32>, vector<8x16xf32>, vector<8x16xf32>, vector<8x16xf32>, vector<8x16xf32>, vector<8x16xf32>, vector<8x16xf32>, vector<8x16xf32>, vector<8x16xf32>, vector<8x16xf32>, vector<8x16xf32>, vector<8x16xf32>, vector<8x16xf32>, vector<8x16xf32>, vector<8x16xf32>, vector<8x16xf32> -> vector<8x256xf32>
    %692 = vector.extract_strided_slice %554 {offsets = [0, 0], sizes = [8, 1], strides = [1, 1]} : vector<8x16xf32> to vector<8x1xf32>
    %693 = vector.shape_cast %692 : vector<8x1xf32> to vector<8x1xf32>
    %694 = vector.broadcast %693 : vector<8x1xf32> to vector<8x16xf32>
    %695 = vector.extract_strided_slice %554 {offsets = [0, 1], sizes = [8, 1], strides = [1, 1]} : vector<8x16xf32> to vector<8x1xf32>
    %696 = vector.shape_cast %695 : vector<8x1xf32> to vector<8x1xf32>
    %697 = vector.broadcast %696 : vector<8x1xf32> to vector<8x16xf32>
    %698 = vector.extract_strided_slice %554 {offsets = [0, 2], sizes = [8, 1], strides = [1, 1]} : vector<8x16xf32> to vector<8x1xf32>
    %699 = vector.shape_cast %698 : vector<8x1xf32> to vector<8x1xf32>
    %700 = vector.broadcast %699 : vector<8x1xf32> to vector<8x16xf32>
    %701 = vector.extract_strided_slice %554 {offsets = [0, 3], sizes = [8, 1], strides = [1, 1]} : vector<8x16xf32> to vector<8x1xf32>
    %702 = vector.shape_cast %701 : vector<8x1xf32> to vector<8x1xf32>
    %703 = vector.broadcast %702 : vector<8x1xf32> to vector<8x16xf32>
    %704 = vector.extract_strided_slice %554 {offsets = [0, 4], sizes = [8, 1], strides = [1, 1]} : vector<8x16xf32> to vector<8x1xf32>
    %705 = vector.shape_cast %704 : vector<8x1xf32> to vector<8x1xf32>
    %706 = vector.broadcast %705 : vector<8x1xf32> to vector<8x16xf32>
    %707 = vector.extract_strided_slice %554 {offsets = [0, 5], sizes = [8, 1], strides = [1, 1]} : vector<8x16xf32> to vector<8x1xf32>
    %708 = vector.shape_cast %707 : vector<8x1xf32> to vector<8x1xf32>
    %709 = vector.broadcast %708 : vector<8x1xf32> to vector<8x16xf32>
    %710 = vector.extract_strided_slice %554 {offsets = [0, 6], sizes = [8, 1], strides = [1, 1]} : vector<8x16xf32> to vector<8x1xf32>
    %711 = vector.shape_cast %710 : vector<8x1xf32> to vector<8x1xf32>
    %712 = vector.broadcast %711 : vector<8x1xf32> to vector<8x16xf32>
    %713 = vector.extract_strided_slice %554 {offsets = [0, 7], sizes = [8, 1], strides = [1, 1]} : vector<8x16xf32> to vector<8x1xf32>
    %714 = vector.shape_cast %713 : vector<8x1xf32> to vector<8x1xf32>
    %715 = vector.broadcast %714 : vector<8x1xf32> to vector<8x16xf32>
    %716 = vector.extract_strided_slice %554 {offsets = [0, 8], sizes = [8, 1], strides = [1, 1]} : vector<8x16xf32> to vector<8x1xf32>
    %717 = vector.shape_cast %716 : vector<8x1xf32> to vector<8x1xf32>
    %718 = vector.broadcast %717 : vector<8x1xf32> to vector<8x16xf32>
    %719 = vector.extract_strided_slice %554 {offsets = [0, 9], sizes = [8, 1], strides = [1, 1]} : vector<8x16xf32> to vector<8x1xf32>
    %720 = vector.shape_cast %719 : vector<8x1xf32> to vector<8x1xf32>
    %721 = vector.broadcast %720 : vector<8x1xf32> to vector<8x16xf32>
    %722 = vector.extract_strided_slice %554 {offsets = [0, 10], sizes = [8, 1], strides = [1, 1]} : vector<8x16xf32> to vector<8x1xf32>
    %723 = vector.shape_cast %722 : vector<8x1xf32> to vector<8x1xf32>
    %724 = vector.broadcast %723 : vector<8x1xf32> to vector<8x16xf32>
    %725 = vector.extract_strided_slice %554 {offsets = [0, 11], sizes = [8, 1], strides = [1, 1]} : vector<8x16xf32> to vector<8x1xf32>
    %726 = vector.shape_cast %725 : vector<8x1xf32> to vector<8x1xf32>
    %727 = vector.broadcast %726 : vector<8x1xf32> to vector<8x16xf32>
    %728 = vector.extract_strided_slice %554 {offsets = [0, 12], sizes = [8, 1], strides = [1, 1]} : vector<8x16xf32> to vector<8x1xf32>
    %729 = vector.shape_cast %728 : vector<8x1xf32> to vector<8x1xf32>
    %730 = vector.broadcast %729 : vector<8x1xf32> to vector<8x16xf32>
    %731 = vector.extract_strided_slice %554 {offsets = [0, 13], sizes = [8, 1], strides = [1, 1]} : vector<8x16xf32> to vector<8x1xf32>
    %732 = vector.shape_cast %731 : vector<8x1xf32> to vector<8x1xf32>
    %733 = vector.broadcast %732 : vector<8x1xf32> to vector<8x16xf32>
    %734 = vector.extract_strided_slice %554 {offsets = [0, 14], sizes = [8, 1], strides = [1, 1]} : vector<8x16xf32> to vector<8x1xf32>
    %735 = vector.shape_cast %734 : vector<8x1xf32> to vector<8x1xf32>
    %736 = vector.broadcast %735 : vector<8x1xf32> to vector<8x16xf32>
    %737 = vector.extract_strided_slice %554 {offsets = [0, 15], sizes = [8, 1], strides = [1, 1]} : vector<8x16xf32> to vector<8x1xf32>
    %738 = vector.shape_cast %737 : vector<8x1xf32> to vector<8x1xf32>
    %739 = vector.broadcast %738 : vector<8x1xf32> to vector<8x16xf32>
    %740 = tpu.concatenate %694, %697, %700, %703, %706, %709, %712, %715, %718, %721, %724, %727, %730, %733, %736, %739 in 1 : vector<8x16xf32>, vector<8x16xf32>, vector<8x16xf32>, vector<8x16xf32>, vector<8x16xf32>, vector<8x16xf32>, vector<8x16xf32>, vector<8x16xf32>, vector<8x16xf32>, vector<8x16xf32>, vector<8x16xf32>, vector<8x16xf32>, vector<8x16xf32>, vector<8x16xf32>, vector<8x16xf32>, vector<8x16xf32> -> vector<8x256xf32>
    %741 = vector.broadcast %690 : vector<1x256xf32> to vector<8x256xf32>
    %742 = arith.addf %741, %691 : vector<8x256xf32>
    %743 = arith.addf %742, %740 : vector<8x256xf32>
    %cst_121 = arith.constant 0.333333343 : f32
    %744 = vector.broadcast %cst_121 : f32 to vector<8x256xf32>
    %745 = arith.mulf %743, %744 : vector<8x256xf32>
    %746 = arith.mulf %116, %745 : vector<8x256xf32>
    %747 = arith.addf %746, %120 : vector<8x256xf32>
    %cst_122 = arith.constant 0.000000e+00 : f32
    %748 = vector.broadcast %cst_122 : f32 to vector<8x256xf32>
    %749 = arith.maximumf %747, %748 : vector<8x256xf32>
    %c0_123 = arith.constant 0 : index
    %c0_124 = arith.constant 0 : index
    %c0_125 = arith.constant 0 : index
    %750 = vector.load %arg10[%c0_123, %c0_124, %c0_125] : memref<2x8x256xf32, #tpu.memory_space<vmem>>, vector<1x8x256xf32>
    %751 = vector.shape_cast %750 : vector<1x8x256xf32> to vector<8x256xf32>
    %752 = vector.shape_cast %749 : vector<8x256xf32> to vector<1x8x256xf32>
    tpu.vector_store %arg10[%c0_123, %c0_124, %c0_125], %752 {strides = array<i32>} : memref<2x8x256xf32, #tpu.memory_space<vmem>>, vector<1x8x256xf32>,
    %c1_126 = arith.constant 1 : index
    %c0_127 = arith.constant 0 : index
    %c0_128 = arith.constant 0 : index
    %753 = vector.load %arg1[%c1_126, %c0_127, %c0_128] : memref<2x4x256xf32, #tpu.memory_space<vmem>>, vector<1x4x256xf32>
    %754 = vector.shape_cast %753 : vector<1x4x256xf32> to vector<4x256xf32>
    %cst_129 = arith.constant 0.000000e+00 : f32
    %755 = vector.broadcast %cst_129 : f32 to vector<4x16xf32>
    %756 = vector.extract_strided_slice %754 {offsets = [0, 0], sizes = [4, 240], strides = [1, 1]} : vector<4x256xf32> to vector<4x240xf32>
    %757 = tpu.concatenate %755, %756 in 1 : vector<4x16xf32>, vector<4x240xf32> -> vector<4x256xf32>
    %cst_130 = arith.constant 0.000000e+00 : f32
    %758 = vector.broadcast %cst_130 : f32 to vector<4x1xf32>
    %759 = vector.extract_strided_slice %757 {offsets = [0, 0], sizes = [4, 255], strides = [1, 1]} : vector<4x256xf32> to vector<4x255xf32>
    %760 = tpu.concatenate %758, %759 in 1 : vector<4x1xf32>, vector<4x255xf32> -> vector<4x256xf32>
    %761 = vector.broadcast %6 : vector<1x256xf32> to vector<4x256xf32>
    %762 = arith.mulf %760, %761 : vector<4x256xf32>
    %763 = arith.truncf %762 : vector<4x256xf32> to vector<4x256xbf16>
    %764 = arith.truncf %757 : vector<4x256xf32> to vector<4x256xbf16>
    %765 = vector.extract_strided_slice %757 {offsets = [0, 1], sizes = [4, 255], strides = [1, 1]} : vector<4x256xf32> to vector<4x255xf32>
    %cst_131 = arith.constant 0.000000e+00 : f32
    %766 = vector.broadcast %cst_131 : f32 to vector<4x1xf32>
    %767 = tpu.concatenate %765, %766 in 1 : vector<4x255xf32>, vector<4x1xf32> -> vector<4x256xf32>
    %768 = vector.broadcast %7 : vector<1x256xf32> to vector<4x256xf32>
    %769 = arith.mulf %767, %768 : vector<4x256xf32>
    %770 = arith.truncf %769 : vector<4x256xf32> to vector<4x256xbf16>
    %cst_132 = arith.constant 0.000000e+00 : f32
    %771 = vector.broadcast %cst_132 : f32 to vector<4x1xf32>
    %772 = vector.extract_strided_slice %754 {offsets = [0, 0], sizes = [4, 255], strides = [1, 1]} : vector<4x256xf32> to vector<4x255xf32>
    %773 = tpu.concatenate %771, %772 in 1 : vector<4x1xf32>, vector<4x255xf32> -> vector<4x256xf32>
    %774 = vector.broadcast %6 : vector<1x256xf32> to vector<4x256xf32>
    %775 = arith.mulf %773, %774 : vector<4x256xf32>
    %776 = arith.truncf %775 : vector<4x256xf32> to vector<4x256xbf16>
    %777 = arith.truncf %754 : vector<4x256xf32> to vector<4x256xbf16>
    %778 = vector.extract_strided_slice %754 {offsets = [0, 1], sizes = [4, 255], strides = [1, 1]} : vector<4x256xf32> to vector<4x255xf32>
    %cst_133 = arith.constant 0.000000e+00 : f32
    %779 = vector.broadcast %cst_133 : f32 to vector<4x1xf32>
    %780 = tpu.concatenate %778, %779 in 1 : vector<4x255xf32>, vector<4x1xf32> -> vector<4x256xf32>
    %781 = vector.broadcast %7 : vector<1x256xf32> to vector<4x256xf32>
    %782 = arith.mulf %780, %781 : vector<4x256xf32>
    %783 = arith.truncf %782 : vector<4x256xf32> to vector<4x256xbf16>
    %784 = vector.extract_strided_slice %754 {offsets = [0, 16], sizes = [4, 240], strides = [1, 1]} : vector<4x256xf32> to vector<4x240xf32>
    %cst_134 = arith.constant 0.000000e+00 : f32
    %785 = vector.broadcast %cst_134 : f32 to vector<4x16xf32>
    %786 = tpu.concatenate %784, %785 in 1 : vector<4x240xf32>, vector<4x16xf32> -> vector<4x256xf32>
    %cst_135 = arith.constant 0.000000e+00 : f32
    %787 = vector.broadcast %cst_135 : f32 to vector<4x1xf32>
    %788 = vector.extract_strided_slice %786 {offsets = [0, 0], sizes = [4, 255], strides = [1, 1]} : vector<4x256xf32> to vector<4x255xf32>
    %789 = tpu.concatenate %787, %788 in 1 : vector<4x1xf32>, vector<4x255xf32> -> vector<4x256xf32>
    %790 = vector.broadcast %6 : vector<1x256xf32> to vector<4x256xf32>
    %791 = arith.mulf %789, %790 : vector<4x256xf32>
    %792 = arith.truncf %791 : vector<4x256xf32> to vector<4x256xbf16>
    %793 = arith.truncf %786 : vector<4x256xf32> to vector<4x256xbf16>
    %794 = vector.extract_strided_slice %786 {offsets = [0, 1], sizes = [4, 255], strides = [1, 1]} : vector<4x256xf32> to vector<4x255xf32>
    %cst_136 = arith.constant 0.000000e+00 : f32
    %795 = vector.broadcast %cst_136 : f32 to vector<4x1xf32>
    %796 = tpu.concatenate %794, %795 in 1 : vector<4x255xf32>, vector<4x1xf32> -> vector<4x256xf32>
    %797 = vector.broadcast %7 : vector<1x256xf32> to vector<4x256xf32>
    %798 = arith.mulf %796, %797 : vector<4x256xf32>
    %799 = arith.truncf %798 : vector<4x256xf32> to vector<4x256xbf16>
    %800 = tpu.concatenate %763, %764, %770, %776, %777, %783, %792, %793, %799 in 0 : vector<4x256xbf16>, vector<4x256xbf16>, vector<4x256xbf16>, vector<4x256xbf16>, vector<4x256xbf16>, vector<4x256xbf16>, vector<4x256xbf16>, vector<4x256xbf16>, vector<4x256xbf16> -> vector<36x256xbf16>
    %cst_137 = arith.constant dense<0.000000e+00> : vector<8x256xf32>
    %801 = tpu.matmul %1, %800, %cst_137 {dimension_numbers = #tpu.dot_dimension_numbers<[1], [0], [0], [1], [0, 0, 1, 1], [], []>} : vector<8x36xbf16>, vector<36x256xbf16>, vector<8x256xf32> -> vector<8x256xf32>
    %802 = vector.broadcast %4 : vector<8x1xf32> to vector<8x256xf32>
    %803 = arith.addf %801, %802 : vector<8x256xf32>
    %cst_138 = arith.constant 0.000000e+00 : f32
    %804 = vector.broadcast %cst_138 : f32 to vector<8x256xf32>
    %805 = arith.maximumf %803, %804 : vector<8x256xf32>
    %cst_139 = arith.constant 0.000000e+00 : f32
    %806 = vector.broadcast %cst_139 : f32 to vector<8x16xf32>
    %807 = vector.extract_strided_slice %805 {offsets = [0, 0], sizes = [8, 240], strides = [1, 1]} : vector<8x256xf32> to vector<8x240xf32>
    %808 = tpu.concatenate %806, %807 in 1 : vector<8x16xf32>, vector<8x240xf32> -> vector<8x256xf32>
    %cst_140 = arith.constant 0.000000e+00 : f32
    %809 = vector.broadcast %cst_140 : f32 to vector<8x1xf32>
    %810 = vector.extract_strided_slice %808 {offsets = [0, 0], sizes = [8, 255], strides = [1, 1]} : vector<8x256xf32> to vector<8x255xf32>
    %811 = tpu.concatenate %809, %810 in 1 : vector<8x1xf32>, vector<8x255xf32> -> vector<8x256xf32>
    %812 = vector.broadcast %8 : vector<1x256xf32> to vector<8x256xf32>
    %813 = arith.mulf %811, %812 : vector<8x256xf32>
    %814 = arith.truncf %813 : vector<8x256xf32> to vector<8x256xbf16>
    %815 = arith.truncf %808 : vector<8x256xf32> to vector<8x256xbf16>
    %816 = vector.extract_strided_slice %808 {offsets = [0, 1], sizes = [8, 255], strides = [1, 1]} : vector<8x256xf32> to vector<8x255xf32>
    %cst_141 = arith.constant 0.000000e+00 : f32
    %817 = vector.broadcast %cst_141 : f32 to vector<8x1xf32>
    %818 = tpu.concatenate %816, %817 in 1 : vector<8x255xf32>, vector<8x1xf32> -> vector<8x256xf32>
    %819 = vector.broadcast %9 : vector<1x256xf32> to vector<8x256xf32>
    %820 = arith.mulf %818, %819 : vector<8x256xf32>
    %821 = arith.truncf %820 : vector<8x256xf32> to vector<8x256xbf16>
    %cst_142 = arith.constant 0.000000e+00 : f32
    %822 = vector.broadcast %cst_142 : f32 to vector<8x1xf32>
    %823 = vector.extract_strided_slice %805 {offsets = [0, 0], sizes = [8, 255], strides = [1, 1]} : vector<8x256xf32> to vector<8x255xf32>
    %824 = tpu.concatenate %822, %823 in 1 : vector<8x1xf32>, vector<8x255xf32> -> vector<8x256xf32>
    %825 = vector.broadcast %8 : vector<1x256xf32> to vector<8x256xf32>
    %826 = arith.mulf %824, %825 : vector<8x256xf32>
    %827 = arith.truncf %826 : vector<8x256xf32> to vector<8x256xbf16>
    %828 = arith.truncf %805 : vector<8x256xf32> to vector<8x256xbf16>
    %829 = vector.extract_strided_slice %805 {offsets = [0, 1], sizes = [8, 255], strides = [1, 1]} : vector<8x256xf32> to vector<8x255xf32>
    %cst_143 = arith.constant 0.000000e+00 : f32
    %830 = vector.broadcast %cst_143 : f32 to vector<8x1xf32>
    %831 = tpu.concatenate %829, %830 in 1 : vector<8x255xf32>, vector<8x1xf32> -> vector<8x256xf32>
    %832 = vector.broadcast %9 : vector<1x256xf32> to vector<8x256xf32>
    %833 = arith.mulf %831, %832 : vector<8x256xf32>
    %834 = arith.truncf %833 : vector<8x256xf32> to vector<8x256xbf16>
    %835 = vector.extract_strided_slice %805 {offsets = [0, 16], sizes = [8, 240], strides = [1, 1]} : vector<8x256xf32> to vector<8x240xf32>
    %cst_144 = arith.constant 0.000000e+00 : f32
    %836 = vector.broadcast %cst_144 : f32 to vector<8x16xf32>
    %837 = tpu.concatenate %835, %836 in 1 : vector<8x240xf32>, vector<8x16xf32> -> vector<8x256xf32>
    %cst_145 = arith.constant 0.000000e+00 : f32
    %838 = vector.broadcast %cst_145 : f32 to vector<8x1xf32>
    %839 = vector.extract_strided_slice %837 {offsets = [0, 0], sizes = [8, 255], strides = [1, 1]} : vector<8x256xf32> to vector<8x255xf32>
    %840 = tpu.concatenate %838, %839 in 1 : vector<8x1xf32>, vector<8x255xf32> -> vector<8x256xf32>
    %841 = vector.broadcast %8 : vector<1x256xf32> to vector<8x256xf32>
    %842 = arith.mulf %840, %841 : vector<8x256xf32>
    %843 = arith.truncf %842 : vector<8x256xf32> to vector<8x256xbf16>
    %844 = arith.truncf %837 : vector<8x256xf32> to vector<8x256xbf16>
    %845 = vector.extract_strided_slice %837 {offsets = [0, 1], sizes = [8, 255], strides = [1, 1]} : vector<8x256xf32> to vector<8x255xf32>
    %cst_146 = arith.constant 0.000000e+00 : f32
    %846 = vector.broadcast %cst_146 : f32 to vector<8x1xf32>
    %847 = tpu.concatenate %845, %846 in 1 : vector<8x255xf32>, vector<8x1xf32> -> vector<8x256xf32>
    %848 = vector.broadcast %9 : vector<1x256xf32> to vector<8x256xf32>
    %849 = arith.mulf %847, %848 : vector<8x256xf32>
    %850 = arith.truncf %849 : vector<8x256xf32> to vector<8x256xbf16>
    %851 = tpu.concatenate %814, %815, %821, %827, %828, %834, %843, %844, %850 in 0 : vector<8x256xbf16>, vector<8x256xbf16>, vector<8x256xbf16>, vector<8x256xbf16>, vector<8x256xbf16>, vector<8x256xbf16>, vector<8x256xbf16>, vector<8x256xbf16>, vector<8x256xbf16> -> vector<72x256xbf16>
    %cst_147 = arith.constant dense<0.000000e+00> : vector<8x256xf32>
    %852 = tpu.matmul %3, %851, %cst_147 {dimension_numbers = #tpu.dot_dimension_numbers<[1], [0], [0], [1], [0, 0, 1, 1], [], []>} : vector<8x72xbf16>, vector<72x256xbf16>, vector<8x256xf32> -> vector<8x256xf32>
    %853 = vector.broadcast %5 : vector<8x1xf32> to vector<8x256xf32>
    %854 = arith.addf %852, %853 : vector<8x256xf32>
    %cst_148 = arith.constant 0.000000e+00 : f32
    %855 = vector.broadcast %cst_148 : f32 to vector<8x256xf32>
    %856 = arith.maximumf %854, %855 : vector<8x256xf32>
    %857 = arith.truncf %754 : vector<4x256xf32> to vector<4x256xbf16>
    %cst_149 = arith.constant dense<0.000000e+00> : vector<8x256xf32>
    %858 = tpu.matmul %11, %857, %cst_149 {dimension_numbers = #tpu.dot_dimension_numbers<[1], [0], [0], [1], [0, 0, 1, 1], [], []>} : vector<8x4xbf16>, vector<4x256xbf16>, vector<8x256xf32> -> vector<8x256xf32>
    %859 = vector.broadcast %12 : vector<8x1xf32> to vector<8x256xf32>
    %860 = arith.addf %858, %859 : vector<8x256xf32>
    %861 = vector.extract_strided_slice %856 {offsets = [0, 0], sizes = [8, 16], strides = [1, 1]} : vector<8x256xf32> to vector<8x16xf32>
    %862 = vector.extract_strided_slice %856 {offsets = [0, 16], sizes = [8, 16], strides = [1, 1]} : vector<8x256xf32> to vector<8x16xf32>
    %863 = vector.extract_strided_slice %856 {offsets = [0, 32], sizes = [8, 16], strides = [1, 1]} : vector<8x256xf32> to vector<8x16xf32>
    %864 = vector.extract_strided_slice %856 {offsets = [0, 48], sizes = [8, 16], strides = [1, 1]} : vector<8x256xf32> to vector<8x16xf32>
    %865 = vector.extract_strided_slice %856 {offsets = [0, 64], sizes = [8, 16], strides = [1, 1]} : vector<8x256xf32> to vector<8x16xf32>
    %866 = vector.extract_strided_slice %856 {offsets = [0, 80], sizes = [8, 16], strides = [1, 1]} : vector<8x256xf32> to vector<8x16xf32>
    %867 = vector.extract_strided_slice %856 {offsets = [0, 96], sizes = [8, 16], strides = [1, 1]} : vector<8x256xf32> to vector<8x16xf32>
    %868 = vector.extract_strided_slice %856 {offsets = [0, 112], sizes = [8, 16], strides = [1, 1]} : vector<8x256xf32> to vector<8x16xf32>
    %869 = vector.extract_strided_slice %856 {offsets = [0, 128], sizes = [8, 16], strides = [1, 1]} : vector<8x256xf32> to vector<8x16xf32>
    %870 = vector.extract_strided_slice %856 {offsets = [0, 144], sizes = [8, 16], strides = [1, 1]} : vector<8x256xf32> to vector<8x16xf32>
    %871 = vector.extract_strided_slice %856 {offsets = [0, 160], sizes = [8, 16], strides = [1, 1]} : vector<8x256xf32> to vector<8x16xf32>
    %872 = vector.extract_strided_slice %856 {offsets = [0, 176], sizes = [8, 16], strides = [1, 1]} : vector<8x256xf32> to vector<8x16xf32>
    %873 = vector.extract_strided_slice %856 {offsets = [0, 192], sizes = [8, 16], strides = [1, 1]} : vector<8x256xf32> to vector<8x16xf32>
    %874 = vector.extract_strided_slice %856 {offsets = [0, 208], sizes = [8, 16], strides = [1, 1]} : vector<8x256xf32> to vector<8x16xf32>
    %875 = vector.extract_strided_slice %856 {offsets = [0, 224], sizes = [8, 16], strides = [1, 1]} : vector<8x256xf32> to vector<8x16xf32>
    %876 = vector.extract_strided_slice %856 {offsets = [0, 240], sizes = [8, 16], strides = [1, 1]} : vector<8x256xf32> to vector<8x16xf32>
    %877 = arith.maximumf %861, %862 : vector<8x16xf32>
    %878 = arith.maximumf %863, %864 : vector<8x16xf32>
    %879 = arith.maximumf %865, %866 : vector<8x16xf32>
    %880 = arith.maximumf %867, %868 : vector<8x16xf32>
    %881 = arith.maximumf %869, %870 : vector<8x16xf32>
    %882 = arith.maximumf %871, %872 : vector<8x16xf32>
    %883 = arith.maximumf %873, %874 : vector<8x16xf32>
    %884 = arith.maximumf %875, %876 : vector<8x16xf32>
    %885 = arith.maximumf %877, %878 : vector<8x16xf32>
    %886 = arith.maximumf %879, %880 : vector<8x16xf32>
    %887 = arith.maximumf %881, %882 : vector<8x16xf32>
    %888 = arith.maximumf %883, %884 : vector<8x16xf32>
    %889 = arith.maximumf %885, %886 : vector<8x16xf32>
    %890 = arith.maximumf %887, %888 : vector<8x16xf32>
    %891 = arith.maximumf %889, %890 : vector<8x16xf32>
    %892 = arith.addf %861, %862 : vector<8x16xf32>
    %893 = arith.addf %863, %864 : vector<8x16xf32>
    %894 = arith.addf %865, %866 : vector<8x16xf32>
    %895 = arith.addf %867, %868 : vector<8x16xf32>
    %896 = arith.addf %869, %870 : vector<8x16xf32>
    %897 = arith.addf %871, %872 : vector<8x16xf32>
    %898 = arith.addf %873, %874 : vector<8x16xf32>
    %899 = arith.addf %875, %876 : vector<8x16xf32>
    %900 = arith.addf %892, %893 : vector<8x16xf32>
    %901 = arith.addf %894, %895 : vector<8x16xf32>
    %902 = arith.addf %896, %897 : vector<8x16xf32>
    %903 = arith.addf %898, %899 : vector<8x16xf32>
    %904 = arith.addf %900, %901 : vector<8x16xf32>
    %905 = arith.addf %902, %903 : vector<8x16xf32>
    %906 = arith.addf %904, %905 : vector<8x16xf32>
    %cst_150 = arith.constant 6.250000e-02 : f32
    %907 = vector.broadcast %cst_150 : f32 to vector<8x16xf32>
    %908 = arith.mulf %906, %907 : vector<8x16xf32>
    %cst_151 = arith.constant dense<0xFF800000> : vector<8xf32>
    %909 = vector.multi_reduction <maximumf>, %861, %cst_151 [1] : vector<8x16xf32> to vector<8xf32>
    %910 = vector.shape_cast %909 : vector<8xf32> to vector<8x1xf32>
    %cst_152 = arith.constant dense<0xFF800000> : vector<8xf32>
    %911 = vector.multi_reduction <maximumf>, %862, %cst_152 [1] : vector<8x16xf32> to vector<8xf32>
    %912 = vector.shape_cast %911 : vector<8xf32> to vector<8x1xf32>
    %cst_153 = arith.constant dense<0xFF800000> : vector<8xf32>
    %913 = vector.multi_reduction <maximumf>, %863, %cst_153 [1] : vector<8x16xf32> to vector<8xf32>
    %914 = vector.shape_cast %913 : vector<8xf32> to vector<8x1xf32>
    %cst_154 = arith.constant dense<0xFF800000> : vector<8xf32>
    %915 = vector.multi_reduction <maximumf>, %864, %cst_154 [1] : vector<8x16xf32> to vector<8xf32>
    %916 = vector.shape_cast %915 : vector<8xf32> to vector<8x1xf32>
    %cst_155 = arith.constant dense<0xFF800000> : vector<8xf32>
    %917 = vector.multi_reduction <maximumf>, %865, %cst_155 [1] : vector<8x16xf32> to vector<8xf32>
    %918 = vector.shape_cast %917 : vector<8xf32> to vector<8x1xf32>
    %cst_156 = arith.constant dense<0xFF800000> : vector<8xf32>
    %919 = vector.multi_reduction <maximumf>, %866, %cst_156 [1] : vector<8x16xf32> to vector<8xf32>
    %920 = vector.shape_cast %919 : vector<8xf32> to vector<8x1xf32>
    %cst_157 = arith.constant dense<0xFF800000> : vector<8xf32>
    %921 = vector.multi_reduction <maximumf>, %867, %cst_157 [1] : vector<8x16xf32> to vector<8xf32>
    %922 = vector.shape_cast %921 : vector<8xf32> to vector<8x1xf32>
    %cst_158 = arith.constant dense<0xFF800000> : vector<8xf32>
    %923 = vector.multi_reduction <maximumf>, %868, %cst_158 [1] : vector<8x16xf32> to vector<8xf32>
    %924 = vector.shape_cast %923 : vector<8xf32> to vector<8x1xf32>
    %cst_159 = arith.constant dense<0xFF800000> : vector<8xf32>
    %925 = vector.multi_reduction <maximumf>, %869, %cst_159 [1] : vector<8x16xf32> to vector<8xf32>
    %926 = vector.shape_cast %925 : vector<8xf32> to vector<8x1xf32>
    %cst_160 = arith.constant dense<0xFF800000> : vector<8xf32>
    %927 = vector.multi_reduction <maximumf>, %870, %cst_160 [1] : vector<8x16xf32> to vector<8xf32>
    %928 = vector.shape_cast %927 : vector<8xf32> to vector<8x1xf32>
    %cst_161 = arith.constant dense<0xFF800000> : vector<8xf32>
    %929 = vector.multi_reduction <maximumf>, %871, %cst_161 [1] : vector<8x16xf32> to vector<8xf32>
    %930 = vector.shape_cast %929 : vector<8xf32> to vector<8x1xf32>
    %cst_162 = arith.constant dense<0xFF800000> : vector<8xf32>
    %931 = vector.multi_reduction <maximumf>, %872, %cst_162 [1] : vector<8x16xf32> to vector<8xf32>
    %932 = vector.shape_cast %931 : vector<8xf32> to vector<8x1xf32>
    %cst_163 = arith.constant dense<0xFF800000> : vector<8xf32>
    %933 = vector.multi_reduction <maximumf>, %873, %cst_163 [1] : vector<8x16xf32> to vector<8xf32>
    %934 = vector.shape_cast %933 : vector<8xf32> to vector<8x1xf32>
    %cst_164 = arith.constant dense<0xFF800000> : vector<8xf32>
    %935 = vector.multi_reduction <maximumf>, %874, %cst_164 [1] : vector<8x16xf32> to vector<8xf32>
    %936 = vector.shape_cast %935 : vector<8xf32> to vector<8x1xf32>
    %cst_165 = arith.constant dense<0xFF800000> : vector<8xf32>
    %937 = vector.multi_reduction <maximumf>, %875, %cst_165 [1] : vector<8x16xf32> to vector<8xf32>
    %938 = vector.shape_cast %937 : vector<8xf32> to vector<8x1xf32>
    %cst_166 = arith.constant dense<0xFF800000> : vector<8xf32>
    %939 = vector.multi_reduction <maximumf>, %876, %cst_166 [1] : vector<8x16xf32> to vector<8xf32>
    %940 = vector.shape_cast %939 : vector<8xf32> to vector<8x1xf32>
    %941 = tpu.concatenate %910, %912, %914, %916, %918, %920, %922, %924, %926, %928, %930, %932, %934, %936, %938, %940 in 1 : vector<8x1xf32>, vector<8x1xf32>, vector<8x1xf32>, vector<8x1xf32>, vector<8x1xf32>, vector<8x1xf32>, vector<8x1xf32>, vector<8x1xf32>, vector<8x1xf32>, vector<8x1xf32>, vector<8x1xf32>, vector<8x1xf32>, vector<8x1xf32>, vector<8x1xf32>, vector<8x1xf32>, vector<8x1xf32> -> vector<8x16xf32>
    %cst_167 = arith.constant dense<0.000000e+00> : vector<8xf32>
    %942 = vector.multi_reduction <add>, %861, %cst_167 [1] : vector<8x16xf32> to vector<8xf32>
    %943 = vector.shape_cast %942 : vector<8xf32> to vector<8x1xf32>
    %cst_168 = arith.constant dense<0.000000e+00> : vector<8xf32>
    %944 = vector.multi_reduction <add>, %862, %cst_168 [1] : vector<8x16xf32> to vector<8xf32>
    %945 = vector.shape_cast %944 : vector<8xf32> to vector<8x1xf32>
    %cst_169 = arith.constant dense<0.000000e+00> : vector<8xf32>
    %946 = vector.multi_reduction <add>, %863, %cst_169 [1] : vector<8x16xf32> to vector<8xf32>
    %947 = vector.shape_cast %946 : vector<8xf32> to vector<8x1xf32>
    %cst_170 = arith.constant dense<0.000000e+00> : vector<8xf32>
    %948 = vector.multi_reduction <add>, %864, %cst_170 [1] : vector<8x16xf32> to vector<8xf32>
    %949 = vector.shape_cast %948 : vector<8xf32> to vector<8x1xf32>
    %cst_171 = arith.constant dense<0.000000e+00> : vector<8xf32>
    %950 = vector.multi_reduction <add>, %865, %cst_171 [1] : vector<8x16xf32> to vector<8xf32>
    %951 = vector.shape_cast %950 : vector<8xf32> to vector<8x1xf32>
    %cst_172 = arith.constant dense<0.000000e+00> : vector<8xf32>
    %952 = vector.multi_reduction <add>, %866, %cst_172 [1] : vector<8x16xf32> to vector<8xf32>
    %953 = vector.shape_cast %952 : vector<8xf32> to vector<8x1xf32>
    %cst_173 = arith.constant dense<0.000000e+00> : vector<8xf32>
    %954 = vector.multi_reduction <add>, %867, %cst_173 [1] : vector<8x16xf32> to vector<8xf32>
    %955 = vector.shape_cast %954 : vector<8xf32> to vector<8x1xf32>
    %cst_174 = arith.constant dense<0.000000e+00> : vector<8xf32>
    %956 = vector.multi_reduction <add>, %868, %cst_174 [1] : vector<8x16xf32> to vector<8xf32>
    %957 = vector.shape_cast %956 : vector<8xf32> to vector<8x1xf32>
    %cst_175 = arith.constant dense<0.000000e+00> : vector<8xf32>
    %958 = vector.multi_reduction <add>, %869, %cst_175 [1] : vector<8x16xf32> to vector<8xf32>
    %959 = vector.shape_cast %958 : vector<8xf32> to vector<8x1xf32>
    %cst_176 = arith.constant dense<0.000000e+00> : vector<8xf32>
    %960 = vector.multi_reduction <add>, %870, %cst_176 [1] : vector<8x16xf32> to vector<8xf32>
    %961 = vector.shape_cast %960 : vector<8xf32> to vector<8x1xf32>
    %cst_177 = arith.constant dense<0.000000e+00> : vector<8xf32>
    %962 = vector.multi_reduction <add>, %871, %cst_177 [1] : vector<8x16xf32> to vector<8xf32>
    %963 = vector.shape_cast %962 : vector<8xf32> to vector<8x1xf32>
    %cst_178 = arith.constant dense<0.000000e+00> : vector<8xf32>
    %964 = vector.multi_reduction <add>, %872, %cst_178 [1] : vector<8x16xf32> to vector<8xf32>
    %965 = vector.shape_cast %964 : vector<8xf32> to vector<8x1xf32>
    %cst_179 = arith.constant dense<0.000000e+00> : vector<8xf32>
    %966 = vector.multi_reduction <add>, %873, %cst_179 [1] : vector<8x16xf32> to vector<8xf32>
    %967 = vector.shape_cast %966 : vector<8xf32> to vector<8x1xf32>
    %cst_180 = arith.constant dense<0.000000e+00> : vector<8xf32>
    %968 = vector.multi_reduction <add>, %874, %cst_180 [1] : vector<8x16xf32> to vector<8xf32>
    %969 = vector.shape_cast %968 : vector<8xf32> to vector<8x1xf32>
    %cst_181 = arith.constant dense<0.000000e+00> : vector<8xf32>
    %970 = vector.multi_reduction <add>, %875, %cst_181 [1] : vector<8x16xf32> to vector<8xf32>
    %971 = vector.shape_cast %970 : vector<8xf32> to vector<8x1xf32>
    %cst_182 = arith.constant dense<0.000000e+00> : vector<8xf32>
    %972 = vector.multi_reduction <add>, %876, %cst_182 [1] : vector<8x16xf32> to vector<8xf32>
    %973 = vector.shape_cast %972 : vector<8xf32> to vector<8x1xf32>
    %974 = tpu.concatenate %943, %945, %947, %949, %951, %953, %955, %957, %959, %961, %963, %965, %967, %969, %971, %973 in 1 : vector<8x1xf32>, vector<8x1xf32>, vector<8x1xf32>, vector<8x1xf32>, vector<8x1xf32>, vector<8x1xf32>, vector<8x1xf32>, vector<8x1xf32>, vector<8x1xf32>, vector<8x1xf32>, vector<8x1xf32>, vector<8x1xf32>, vector<8x1xf32>, vector<8x1xf32>, vector<8x1xf32>, vector<8x1xf32> -> vector<8x16xf32>
    %cst_183 = arith.constant 6.250000e-02 : f32
    %975 = vector.broadcast %cst_183 : f32 to vector<8x16xf32>
    %976 = arith.mulf %974, %975 : vector<8x16xf32>
    %cst_184 = arith.constant dense<0xFF800000> : vector<256xf32>
    %977 = vector.multi_reduction <maximumf>, %856, %cst_184 [0] : vector<8x256xf32> to vector<256xf32>
    %978 = vector.shape_cast %977 : vector<256xf32> to vector<1x256xf32>
    %cst_185 = arith.constant dense<0.000000e+00> : vector<256xf32>
    %979 = vector.multi_reduction <add>, %856, %cst_185 [0] : vector<8x256xf32> to vector<256xf32>
    %980 = vector.shape_cast %979 : vector<256xf32> to vector<1x256xf32>
    %cst_186 = arith.constant 1.250000e-01 : f32
    %981 = vector.broadcast %cst_186 : f32 to vector<1x256xf32>
    %982 = arith.mulf %980, %981 : vector<1x256xf32>
    %983 = vector.shape_cast %891 : vector<8x16xf32> to vector<1x8x16xf32>
    %984 = vector.shape_cast %908 : vector<8x16xf32> to vector<1x8x16xf32>
    %985 = tpu.concatenate %983, %984 in 0 : vector<1x8x16xf32>, vector<1x8x16xf32> -> vector<2x8x16xf32>
    %cst_187 = arith.constant 0.000000e+00 : f32
    %986 = vector.broadcast %cst_187 : f32 to vector<2x1x16xf32>
    %987 = vector.extract_strided_slice %985 {offsets = [0, 0, 0], sizes = [2, 7, 16], strides = [1, 1, 1]} : vector<2x8x16xf32> to vector<2x7x16xf32>
    %988 = tpu.concatenate %986, %987 in 1 : vector<2x1x16xf32>, vector<2x7x16xf32> -> vector<2x8x16xf32>
    %cst_188 = arith.constant 0.000000e+00 : f32
    %989 = vector.broadcast %cst_188 : f32 to vector<2x8x1xf32>
    %990 = vector.extract_strided_slice %988 {offsets = [0, 0, 0], sizes = [2, 8, 15], strides = [1, 1, 1]} : vector<2x8x16xf32> to vector<2x8x15xf32>
    %991 = tpu.concatenate %989, %990 in 2 : vector<2x8x1xf32>, vector<2x8x15xf32> -> vector<2x8x16xf32>
    %c0_189 = arith.constant 0 : index
    %992 = memref.load %arg7[%c0_189] : memref<57xf32, #tpu.memory_space<smem>>
    %993 = vector.extract_strided_slice %991 {offsets = [0, 0, 0], sizes = [1, 8, 16], strides = [1, 1, 1]} : vector<2x8x16xf32> to vector<1x8x16xf32>
    %994 = vector.shape_cast %993 : vector<1x8x16xf32> to vector<8x16xf32>
    %995 = vector.broadcast %992 : f32 to vector<8x16xf32>
    %996 = arith.mulf %995, %994 : vector<8x16xf32>
    %c9_190 = arith.constant 9 : index
    %997 = memref.load %arg7[%c9_190] : memref<57xf32, #tpu.memory_space<smem>>
    %998 = vector.extract_strided_slice %991 {offsets = [1, 0, 0], sizes = [1, 8, 16], strides = [1, 1, 1]} : vector<2x8x16xf32> to vector<1x8x16xf32>
    %999 = vector.shape_cast %998 : vector<1x8x16xf32> to vector<8x16xf32>
    %1000 = vector.broadcast %997 : f32 to vector<8x16xf32>
    %1001 = arith.mulf %1000, %999 : vector<8x16xf32>
    %1002 = arith.addf %996, %1001 : vector<8x16xf32>
    %cst_191 = arith.constant 0.000000e+00 : f32
    %1003 = vector.broadcast %cst_191 : f32 to vector<2x1x16xf32>
    %1004 = vector.extract_strided_slice %985 {offsets = [0, 0, 0], sizes = [2, 7, 16], strides = [1, 1, 1]} : vector<2x8x16xf32> to vector<2x7x16xf32>
    %1005 = tpu.concatenate %1003, %1004 in 1 : vector<2x1x16xf32>, vector<2x7x16xf32> -> vector<2x8x16xf32>
    %c1_192 = arith.constant 1 : index
    %1006 = memref.load %arg7[%c1_192] : memref<57xf32, #tpu.memory_space<smem>>
    %1007 = vector.extract_strided_slice %1005 {offsets = [0, 0, 0], sizes = [1, 8, 16], strides = [1, 1, 1]} : vector<2x8x16xf32> to vector<1x8x16xf32>
    %1008 = vector.shape_cast %1007 : vector<1x8x16xf32> to vector<8x16xf32>
    %1009 = vector.broadcast %1006 : f32 to vector<8x16xf32>
    %1010 = arith.mulf %1009, %1008 : vector<8x16xf32>
    %c10_193 = arith.constant 10 : index
    %1011 = memref.load %arg7[%c10_193] : memref<57xf32, #tpu.memory_space<smem>>
    %1012 = vector.extract_strided_slice %1005 {offsets = [1, 0, 0], sizes = [1, 8, 16], strides = [1, 1, 1]} : vector<2x8x16xf32> to vector<1x8x16xf32>
    %1013 = vector.shape_cast %1012 : vector<1x8x16xf32> to vector<8x16xf32>
    %1014 = vector.broadcast %1011 : f32 to vector<8x16xf32>
    %1015 = arith.mulf %1014, %1013 : vector<8x16xf32>
    %1016 = arith.addf %1010, %1015 : vector<8x16xf32>
    %1017 = arith.addf %1002, %1016 : vector<8x16xf32>
    %cst_194 = arith.constant 0.000000e+00 : f32
    %1018 = vector.broadcast %cst_194 : f32 to vector<2x1x16xf32>
    %1019 = vector.extract_strided_slice %985 {offsets = [0, 0, 0], sizes = [2, 7, 16], strides = [1, 1, 1]} : vector<2x8x16xf32> to vector<2x7x16xf32>
    %1020 = tpu.concatenate %1018, %1019 in 1 : vector<2x1x16xf32>, vector<2x7x16xf32> -> vector<2x8x16xf32>
    %1021 = vector.extract_strided_slice %1020 {offsets = [0, 0, 1], sizes = [2, 8, 15], strides = [1, 1, 1]} : vector<2x8x16xf32> to vector<2x8x15xf32>
    %cst_195 = arith.constant 0.000000e+00 : f32
    %1022 = vector.broadcast %cst_195 : f32 to vector<2x8x1xf32>
    %1023 = tpu.concatenate %1021, %1022 in 2 : vector<2x8x15xf32>, vector<2x8x1xf32> -> vector<2x8x16xf32>
    %c2_196 = arith.constant 2 : index
    %1024 = memref.load %arg7[%c2_196] : memref<57xf32, #tpu.memory_space<smem>>
    %1025 = vector.extract_strided_slice %1023 {offsets = [0, 0, 0], sizes = [1, 8, 16], strides = [1, 1, 1]} : vector<2x8x16xf32> to vector<1x8x16xf32>
    %1026 = vector.shape_cast %1025 : vector<1x8x16xf32> to vector<8x16xf32>
    %1027 = vector.broadcast %1024 : f32 to vector<8x16xf32>
    %1028 = arith.mulf %1027, %1026 : vector<8x16xf32>
    %c11_197 = arith.constant 11 : index
    %1029 = memref.load %arg7[%c11_197] : memref<57xf32, #tpu.memory_space<smem>>
    %1030 = vector.extract_strided_slice %1023 {offsets = [1, 0, 0], sizes = [1, 8, 16], strides = [1, 1, 1]} : vector<2x8x16xf32> to vector<1x8x16xf32>
    %1031 = vector.shape_cast %1030 : vector<1x8x16xf32> to vector<8x16xf32>
    %1032 = vector.broadcast %1029 : f32 to vector<8x16xf32>
    %1033 = arith.mulf %1032, %1031 : vector<8x16xf32>
    %1034 = arith.addf %1028, %1033 : vector<8x16xf32>
    %1035 = arith.addf %1017, %1034 : vector<8x16xf32>
    %cst_198 = arith.constant 0.000000e+00 : f32
    %1036 = vector.broadcast %cst_198 : f32 to vector<2x8x1xf32>
    %1037 = vector.extract_strided_slice %985 {offsets = [0, 0, 0], sizes = [2, 8, 15], strides = [1, 1, 1]} : vector<2x8x16xf32> to vector<2x8x15xf32>
    %1038 = tpu.concatenate %1036, %1037 in 2 : vector<2x8x1xf32>, vector<2x8x15xf32> -> vector<2x8x16xf32>
    %c3_199 = arith.constant 3 : index
    %1039 = memref.load %arg7[%c3_199] : memref<57xf32, #tpu.memory_space<smem>>
    %1040 = vector.extract_strided_slice %1038 {offsets = [0, 0, 0], sizes = [1, 8, 16], strides = [1, 1, 1]} : vector<2x8x16xf32> to vector<1x8x16xf32>
    %1041 = vector.shape_cast %1040 : vector<1x8x16xf32> to vector<8x16xf32>
    %1042 = vector.broadcast %1039 : f32 to vector<8x16xf32>
    %1043 = arith.mulf %1042, %1041 : vector<8x16xf32>
    %c12_200 = arith.constant 12 : index
    %1044 = memref.load %arg7[%c12_200] : memref<57xf32, #tpu.memory_space<smem>>
    %1045 = vector.extract_strided_slice %1038 {offsets = [1, 0, 0], sizes = [1, 8, 16], strides = [1, 1, 1]} : vector<2x8x16xf32> to vector<1x8x16xf32>
    %1046 = vector.shape_cast %1045 : vector<1x8x16xf32> to vector<8x16xf32>
    %1047 = vector.broadcast %1044 : f32 to vector<8x16xf32>
    %1048 = arith.mulf %1047, %1046 : vector<8x16xf32>
    %1049 = arith.addf %1043, %1048 : vector<8x16xf32>
    %1050 = arith.addf %1035, %1049 : vector<8x16xf32>
    %c4_201 = arith.constant 4 : index
    %1051 = memref.load %arg7[%c4_201] : memref<57xf32, #tpu.memory_space<smem>>
    %1052 = vector.extract_strided_slice %985 {offsets = [0, 0, 0], sizes = [1, 8, 16], strides = [1, 1, 1]} : vector<2x8x16xf32> to vector<1x8x16xf32>
    %1053 = vector.shape_cast %1052 : vector<1x8x16xf32> to vector<8x16xf32>
    %1054 = vector.broadcast %1051 : f32 to vector<8x16xf32>
    %1055 = arith.mulf %1054, %1053 : vector<8x16xf32>
    %c13_202 = arith.constant 13 : index
    %1056 = memref.load %arg7[%c13_202] : memref<57xf32, #tpu.memory_space<smem>>
    %1057 = vector.extract_strided_slice %985 {offsets = [1, 0, 0], sizes = [1, 8, 16], strides = [1, 1, 1]} : vector<2x8x16xf32> to vector<1x8x16xf32>
    %1058 = vector.shape_cast %1057 : vector<1x8x16xf32> to vector<8x16xf32>
    %1059 = vector.broadcast %1056 : f32 to vector<8x16xf32>
    %1060 = arith.mulf %1059, %1058 : vector<8x16xf32>
    %1061 = arith.addf %1055, %1060 : vector<8x16xf32>
    %1062 = arith.addf %1050, %1061 : vector<8x16xf32>
    %1063 = vector.extract_strided_slice %985 {offsets = [0, 0, 1], sizes = [2, 8, 15], strides = [1, 1, 1]} : vector<2x8x16xf32> to vector<2x8x15xf32>
    %cst_203 = arith.constant 0.000000e+00 : f32
    %1064 = vector.broadcast %cst_203 : f32 to vector<2x8x1xf32>
    %1065 = tpu.concatenate %1063, %1064 in 2 : vector<2x8x15xf32>, vector<2x8x1xf32> -> vector<2x8x16xf32>
    %c5_204 = arith.constant 5 : index
    %1066 = memref.load %arg7[%c5_204] : memref<57xf32, #tpu.memory_space<smem>>
    %1067 = vector.extract_strided_slice %1065 {offsets = [0, 0, 0], sizes = [1, 8, 16], strides = [1, 1, 1]} : vector<2x8x16xf32> to vector<1x8x16xf32>
    %1068 = vector.shape_cast %1067 : vector<1x8x16xf32> to vector<8x16xf32>
    %1069 = vector.broadcast %1066 : f32 to vector<8x16xf32>
    %1070 = arith.mulf %1069, %1068 : vector<8x16xf32>
    %c14_205 = arith.constant 14 : index
    %1071 = memref.load %arg7[%c14_205] : memref<57xf32, #tpu.memory_space<smem>>
    %1072 = vector.extract_strided_slice %1065 {offsets = [1, 0, 0], sizes = [1, 8, 16], strides = [1, 1, 1]} : vector<2x8x16xf32> to vector<1x8x16xf32>
    %1073 = vector.shape_cast %1072 : vector<1x8x16xf32> to vector<8x16xf32>
    %1074 = vector.broadcast %1071 : f32 to vector<8x16xf32>
    %1075 = arith.mulf %1074, %1073 : vector<8x16xf32>
    %1076 = arith.addf %1070, %1075 : vector<8x16xf32>
    %1077 = arith.addf %1062, %1076 : vector<8x16xf32>
    %1078 = vector.extract_strided_slice %985 {offsets = [0, 1, 0], sizes = [2, 7, 16], strides = [1, 1, 1]} : vector<2x8x16xf32> to vector<2x7x16xf32>
    %cst_206 = arith.constant 0.000000e+00 : f32
    %1079 = vector.broadcast %cst_206 : f32 to vector<2x1x16xf32>
    %1080 = tpu.concatenate %1078, %1079 in 1 : vector<2x7x16xf32>, vector<2x1x16xf32> -> vector<2x8x16xf32>
    %cst_207 = arith.constant 0.000000e+00 : f32
    %1081 = vector.broadcast %cst_207 : f32 to vector<2x8x1xf32>
    %1082 = vector.extract_strided_slice %1080 {offsets = [0, 0, 0], sizes = [2, 8, 15], strides = [1, 1, 1]} : vector<2x8x16xf32> to vector<2x8x15xf32>
    %1083 = tpu.concatenate %1081, %1082 in 2 : vector<2x8x1xf32>, vector<2x8x15xf32> -> vector<2x8x16xf32>
    %c6_208 = arith.constant 6 : index
    %1084 = memref.load %arg7[%c6_208] : memref<57xf32, #tpu.memory_space<smem>>
    %1085 = vector.extract_strided_slice %1083 {offsets = [0, 0, 0], sizes = [1, 8, 16], strides = [1, 1, 1]} : vector<2x8x16xf32> to vector<1x8x16xf32>
    %1086 = vector.shape_cast %1085 : vector<1x8x16xf32> to vector<8x16xf32>
    %1087 = vector.broadcast %1084 : f32 to vector<8x16xf32>
    %1088 = arith.mulf %1087, %1086 : vector<8x16xf32>
    %c15_209 = arith.constant 15 : index
    %1089 = memref.load %arg7[%c15_209] : memref<57xf32, #tpu.memory_space<smem>>
    %1090 = vector.extract_strided_slice %1083 {offsets = [1, 0, 0], sizes = [1, 8, 16], strides = [1, 1, 1]} : vector<2x8x16xf32> to vector<1x8x16xf32>
    %1091 = vector.shape_cast %1090 : vector<1x8x16xf32> to vector<8x16xf32>
    %1092 = vector.broadcast %1089 : f32 to vector<8x16xf32>
    %1093 = arith.mulf %1092, %1091 : vector<8x16xf32>
    %1094 = arith.addf %1088, %1093 : vector<8x16xf32>
    %1095 = arith.addf %1077, %1094 : vector<8x16xf32>
    %1096 = vector.extract_strided_slice %985 {offsets = [0, 1, 0], sizes = [2, 7, 16], strides = [1, 1, 1]} : vector<2x8x16xf32> to vector<2x7x16xf32>
    %cst_210 = arith.constant 0.000000e+00 : f32
    %1097 = vector.broadcast %cst_210 : f32 to vector<2x1x16xf32>
    %1098 = tpu.concatenate %1096, %1097 in 1 : vector<2x7x16xf32>, vector<2x1x16xf32> -> vector<2x8x16xf32>
    %c7_211 = arith.constant 7 : index
    %1099 = memref.load %arg7[%c7_211] : memref<57xf32, #tpu.memory_space<smem>>
    %1100 = vector.extract_strided_slice %1098 {offsets = [0, 0, 0], sizes = [1, 8, 16], strides = [1, 1, 1]} : vector<2x8x16xf32> to vector<1x8x16xf32>
    %1101 = vector.shape_cast %1100 : vector<1x8x16xf32> to vector<8x16xf32>
    %1102 = vector.broadcast %1099 : f32 to vector<8x16xf32>
    %1103 = arith.mulf %1102, %1101 : vector<8x16xf32>
    %c16_212 = arith.constant 16 : index
    %1104 = memref.load %arg7[%c16_212] : memref<57xf32, #tpu.memory_space<smem>>
    %1105 = vector.extract_strided_slice %1098 {offsets = [1, 0, 0], sizes = [1, 8, 16], strides = [1, 1, 1]} : vector<2x8x16xf32> to vector<1x8x16xf32>
    %1106 = vector.shape_cast %1105 : vector<1x8x16xf32> to vector<8x16xf32>
    %1107 = vector.broadcast %1104 : f32 to vector<8x16xf32>
    %1108 = arith.mulf %1107, %1106 : vector<8x16xf32>
    %1109 = arith.addf %1103, %1108 : vector<8x16xf32>
    %1110 = arith.addf %1095, %1109 : vector<8x16xf32>
    %1111 = vector.extract_strided_slice %985 {offsets = [0, 1, 0], sizes = [2, 7, 16], strides = [1, 1, 1]} : vector<2x8x16xf32> to vector<2x7x16xf32>
    %cst_213 = arith.constant 0.000000e+00 : f32
    %1112 = vector.broadcast %cst_213 : f32 to vector<2x1x16xf32>
    %1113 = tpu.concatenate %1111, %1112 in 1 : vector<2x7x16xf32>, vector<2x1x16xf32> -> vector<2x8x16xf32>
    %1114 = vector.extract_strided_slice %1113 {offsets = [0, 0, 1], sizes = [2, 8, 15], strides = [1, 1, 1]} : vector<2x8x16xf32> to vector<2x8x15xf32>
    %cst_214 = arith.constant 0.000000e+00 : f32
    %1115 = vector.broadcast %cst_214 : f32 to vector<2x8x1xf32>
    %1116 = tpu.concatenate %1114, %1115 in 2 : vector<2x8x15xf32>, vector<2x8x1xf32> -> vector<2x8x16xf32>
    %c8_215 = arith.constant 8 : index
    %1117 = memref.load %arg7[%c8_215] : memref<57xf32, #tpu.memory_space<smem>>
    %1118 = vector.extract_strided_slice %1116 {offsets = [0, 0, 0], sizes = [1, 8, 16], strides = [1, 1, 1]} : vector<2x8x16xf32> to vector<1x8x16xf32>
    %1119 = vector.shape_cast %1118 : vector<1x8x16xf32> to vector<8x16xf32>
    %1120 = vector.broadcast %1117 : f32 to vector<8x16xf32>
    %1121 = arith.mulf %1120, %1119 : vector<8x16xf32>
    %c17_216 = arith.constant 17 : index
    %1122 = memref.load %arg7[%c17_216] : memref<57xf32, #tpu.memory_space<smem>>
    %1123 = vector.extract_strided_slice %1116 {offsets = [1, 0, 0], sizes = [1, 8, 16], strides = [1, 1, 1]} : vector<2x8x16xf32> to vector<1x8x16xf32>
    %1124 = vector.shape_cast %1123 : vector<1x8x16xf32> to vector<8x16xf32>
    %1125 = vector.broadcast %1122 : f32 to vector<8x16xf32>
    %1126 = arith.mulf %1125, %1124 : vector<8x16xf32>
    %1127 = arith.addf %1121, %1126 : vector<8x16xf32>
    %1128 = arith.addf %1110, %1127 : vector<8x16xf32>
    %c18_217 = arith.constant 18 : index
    %1129 = memref.load %arg7[%c18_217] : memref<57xf32, #tpu.memory_space<smem>>
    %1130 = vector.broadcast %1129 : f32 to vector<8x16xf32>
    %1131 = arith.addf %1128, %1130 : vector<8x16xf32>
    %cst_218 = arith.constant 0.000000e+00 : f32
    %1132 = vector.broadcast %cst_218 : f32 to vector<8x16xf32>
    %1133 = arith.subf %1132, %1131 : vector<8x16xf32>
    %1134 = math.exp %1133 : vector<8x16xf32>
    %cst_219 = arith.constant 1.000000e+00 : f32
    %1135 = vector.broadcast %cst_219 : f32 to vector<8x16xf32>
    %1136 = arith.addf %1135, %1134 : vector<8x16xf32>
    %cst_220 = arith.constant 1.000000e+00 : f32
    %1137 = vector.broadcast %cst_220 : f32 to vector<8x16xf32>
    %1138 = arith.divf %1137, %1136 : vector<8x16xf32>
    %1139 = vector.shape_cast %941 : vector<8x16xf32> to vector<1x8x16xf32>
    %1140 = vector.shape_cast %976 : vector<8x16xf32> to vector<1x8x16xf32>
    %1141 = tpu.concatenate %1139, %1140 in 0 : vector<1x8x16xf32>, vector<1x8x16xf32> -> vector<2x8x16xf32>
    %cst_221 = arith.constant 0.000000e+00 : f32
    %1142 = vector.broadcast %cst_221 : f32 to vector<2x1x16xf32>
    %1143 = vector.extract_strided_slice %1141 {offsets = [0, 0, 0], sizes = [2, 7, 16], strides = [1, 1, 1]} : vector<2x8x16xf32> to vector<2x7x16xf32>
    %1144 = tpu.concatenate %1142, %1143 in 1 : vector<2x1x16xf32>, vector<2x7x16xf32> -> vector<2x8x16xf32>
    %cst_222 = arith.constant 0.000000e+00 : f32
    %1145 = vector.broadcast %cst_222 : f32 to vector<2x8x1xf32>
    %1146 = vector.extract_strided_slice %1144 {offsets = [0, 0, 0], sizes = [2, 8, 15], strides = [1, 1, 1]} : vector<2x8x16xf32> to vector<2x8x15xf32>
    %1147 = tpu.concatenate %1145, %1146 in 2 : vector<2x8x1xf32>, vector<2x8x15xf32> -> vector<2x8x16xf32>
    %c19_223 = arith.constant 19 : index
    %1148 = memref.load %arg7[%c19_223] : memref<57xf32, #tpu.memory_space<smem>>
    %1149 = vector.extract_strided_slice %1147 {offsets = [0, 0, 0], sizes = [1, 8, 16], strides = [1, 1, 1]} : vector<2x8x16xf32> to vector<1x8x16xf32>
    %1150 = vector.shape_cast %1149 : vector<1x8x16xf32> to vector<8x16xf32>
    %1151 = vector.broadcast %1148 : f32 to vector<8x16xf32>
    %1152 = arith.mulf %1151, %1150 : vector<8x16xf32>
    %c28_224 = arith.constant 28 : index
    %1153 = memref.load %arg7[%c28_224] : memref<57xf32, #tpu.memory_space<smem>>
    %1154 = vector.extract_strided_slice %1147 {offsets = [1, 0, 0], sizes = [1, 8, 16], strides = [1, 1, 1]} : vector<2x8x16xf32> to vector<1x8x16xf32>
    %1155 = vector.shape_cast %1154 : vector<1x8x16xf32> to vector<8x16xf32>
    %1156 = vector.broadcast %1153 : f32 to vector<8x16xf32>
    %1157 = arith.mulf %1156, %1155 : vector<8x16xf32>
    %1158 = arith.addf %1152, %1157 : vector<8x16xf32>
    %cst_225 = arith.constant 0.000000e+00 : f32
    %1159 = vector.broadcast %cst_225 : f32 to vector<2x1x16xf32>
    %1160 = vector.extract_strided_slice %1141 {offsets = [0, 0, 0], sizes = [2, 7, 16], strides = [1, 1, 1]} : vector<2x8x16xf32> to vector<2x7x16xf32>
    %1161 = tpu.concatenate %1159, %1160 in 1 : vector<2x1x16xf32>, vector<2x7x16xf32> -> vector<2x8x16xf32>
    %c20_226 = arith.constant 20 : index
    %1162 = memref.load %arg7[%c20_226] : memref<57xf32, #tpu.memory_space<smem>>
    %1163 = vector.extract_strided_slice %1161 {offsets = [0, 0, 0], sizes = [1, 8, 16], strides = [1, 1, 1]} : vector<2x8x16xf32> to vector<1x8x16xf32>
    %1164 = vector.shape_cast %1163 : vector<1x8x16xf32> to vector<8x16xf32>
    %1165 = vector.broadcast %1162 : f32 to vector<8x16xf32>
    %1166 = arith.mulf %1165, %1164 : vector<8x16xf32>
    %c29_227 = arith.constant 29 : index
    %1167 = memref.load %arg7[%c29_227] : memref<57xf32, #tpu.memory_space<smem>>
    %1168 = vector.extract_strided_slice %1161 {offsets = [1, 0, 0], sizes = [1, 8, 16], strides = [1, 1, 1]} : vector<2x8x16xf32> to vector<1x8x16xf32>
    %1169 = vector.shape_cast %1168 : vector<1x8x16xf32> to vector<8x16xf32>
    %1170 = vector.broadcast %1167 : f32 to vector<8x16xf32>
    %1171 = arith.mulf %1170, %1169 : vector<8x16xf32>
    %1172 = arith.addf %1166, %1171 : vector<8x16xf32>
    %1173 = arith.addf %1158, %1172 : vector<8x16xf32>
    %cst_228 = arith.constant 0.000000e+00 : f32
    %1174 = vector.broadcast %cst_228 : f32 to vector<2x1x16xf32>
    %1175 = vector.extract_strided_slice %1141 {offsets = [0, 0, 0], sizes = [2, 7, 16], strides = [1, 1, 1]} : vector<2x8x16xf32> to vector<2x7x16xf32>
    %1176 = tpu.concatenate %1174, %1175 in 1 : vector<2x1x16xf32>, vector<2x7x16xf32> -> vector<2x8x16xf32>
    %1177 = vector.extract_strided_slice %1176 {offsets = [0, 0, 1], sizes = [2, 8, 15], strides = [1, 1, 1]} : vector<2x8x16xf32> to vector<2x8x15xf32>
    %cst_229 = arith.constant 0.000000e+00 : f32
    %1178 = vector.broadcast %cst_229 : f32 to vector<2x8x1xf32>
    %1179 = tpu.concatenate %1177, %1178 in 2 : vector<2x8x15xf32>, vector<2x8x1xf32> -> vector<2x8x16xf32>
    %c21_230 = arith.constant 21 : index
    %1180 = memref.load %arg7[%c21_230] : memref<57xf32, #tpu.memory_space<smem>>
    %1181 = vector.extract_strided_slice %1179 {offsets = [0, 0, 0], sizes = [1, 8, 16], strides = [1, 1, 1]} : vector<2x8x16xf32> to vector<1x8x16xf32>
    %1182 = vector.shape_cast %1181 : vector<1x8x16xf32> to vector<8x16xf32>
    %1183 = vector.broadcast %1180 : f32 to vector<8x16xf32>
    %1184 = arith.mulf %1183, %1182 : vector<8x16xf32>
    %c30_231 = arith.constant 30 : index
    %1185 = memref.load %arg7[%c30_231] : memref<57xf32, #tpu.memory_space<smem>>
    %1186 = vector.extract_strided_slice %1179 {offsets = [1, 0, 0], sizes = [1, 8, 16], strides = [1, 1, 1]} : vector<2x8x16xf32> to vector<1x8x16xf32>
    %1187 = vector.shape_cast %1186 : vector<1x8x16xf32> to vector<8x16xf32>
    %1188 = vector.broadcast %1185 : f32 to vector<8x16xf32>
    %1189 = arith.mulf %1188, %1187 : vector<8x16xf32>
    %1190 = arith.addf %1184, %1189 : vector<8x16xf32>
    %1191 = arith.addf %1173, %1190 : vector<8x16xf32>
    %cst_232 = arith.constant 0.000000e+00 : f32
    %1192 = vector.broadcast %cst_232 : f32 to vector<2x8x1xf32>
    %1193 = vector.extract_strided_slice %1141 {offsets = [0, 0, 0], sizes = [2, 8, 15], strides = [1, 1, 1]} : vector<2x8x16xf32> to vector<2x8x15xf32>
    %1194 = tpu.concatenate %1192, %1193 in 2 : vector<2x8x1xf32>, vector<2x8x15xf32> -> vector<2x8x16xf32>
    %c22_233 = arith.constant 22 : index
    %1195 = memref.load %arg7[%c22_233] : memref<57xf32, #tpu.memory_space<smem>>
    %1196 = vector.extract_strided_slice %1194 {offsets = [0, 0, 0], sizes = [1, 8, 16], strides = [1, 1, 1]} : vector<2x8x16xf32> to vector<1x8x16xf32>
    %1197 = vector.shape_cast %1196 : vector<1x8x16xf32> to vector<8x16xf32>
    %1198 = vector.broadcast %1195 : f32 to vector<8x16xf32>
    %1199 = arith.mulf %1198, %1197 : vector<8x16xf32>
    %c31_234 = arith.constant 31 : index
    %1200 = memref.load %arg7[%c31_234] : memref<57xf32, #tpu.memory_space<smem>>
    %1201 = vector.extract_strided_slice %1194 {offsets = [1, 0, 0], sizes = [1, 8, 16], strides = [1, 1, 1]} : vector<2x8x16xf32> to vector<1x8x16xf32>
    %1202 = vector.shape_cast %1201 : vector<1x8x16xf32> to vector<8x16xf32>
    %1203 = vector.broadcast %1200 : f32 to vector<8x16xf32>
    %1204 = arith.mulf %1203, %1202 : vector<8x16xf32>
    %1205 = arith.addf %1199, %1204 : vector<8x16xf32>
    %1206 = arith.addf %1191, %1205 : vector<8x16xf32>
    %c23_235 = arith.constant 23 : index
    %1207 = memref.load %arg7[%c23_235] : memref<57xf32, #tpu.memory_space<smem>>
    %1208 = vector.extract_strided_slice %1141 {offsets = [0, 0, 0], sizes = [1, 8, 16], strides = [1, 1, 1]} : vector<2x8x16xf32> to vector<1x8x16xf32>
    %1209 = vector.shape_cast %1208 : vector<1x8x16xf32> to vector<8x16xf32>
    %1210 = vector.broadcast %1207 : f32 to vector<8x16xf32>
    %1211 = arith.mulf %1210, %1209 : vector<8x16xf32>
    %c32_236 = arith.constant 32 : index
    %1212 = memref.load %arg7[%c32_236] : memref<57xf32, #tpu.memory_space<smem>>
    %1213 = vector.extract_strided_slice %1141 {offsets = [1, 0, 0], sizes = [1, 8, 16], strides = [1, 1, 1]} : vector<2x8x16xf32> to vector<1x8x16xf32>
    %1214 = vector.shape_cast %1213 : vector<1x8x16xf32> to vector<8x16xf32>
    %1215 = vector.broadcast %1212 : f32 to vector<8x16xf32>
    %1216 = arith.mulf %1215, %1214 : vector<8x16xf32>
    %1217 = arith.addf %1211, %1216 : vector<8x16xf32>
    %1218 = arith.addf %1206, %1217 : vector<8x16xf32>
    %1219 = vector.extract_strided_slice %1141 {offsets = [0, 0, 1], sizes = [2, 8, 15], strides = [1, 1, 1]} : vector<2x8x16xf32> to vector<2x8x15xf32>
    %cst_237 = arith.constant 0.000000e+00 : f32
    %1220 = vector.broadcast %cst_237 : f32 to vector<2x8x1xf32>
    %1221 = tpu.concatenate %1219, %1220 in 2 : vector<2x8x15xf32>, vector<2x8x1xf32> -> vector<2x8x16xf32>
    %c24_238 = arith.constant 24 : index
    %1222 = memref.load %arg7[%c24_238] : memref<57xf32, #tpu.memory_space<smem>>
    %1223 = vector.extract_strided_slice %1221 {offsets = [0, 0, 0], sizes = [1, 8, 16], strides = [1, 1, 1]} : vector<2x8x16xf32> to vector<1x8x16xf32>
    %1224 = vector.shape_cast %1223 : vector<1x8x16xf32> to vector<8x16xf32>
    %1225 = vector.broadcast %1222 : f32 to vector<8x16xf32>
    %1226 = arith.mulf %1225, %1224 : vector<8x16xf32>
    %c33_239 = arith.constant 33 : index
    %1227 = memref.load %arg7[%c33_239] : memref<57xf32, #tpu.memory_space<smem>>
    %1228 = vector.extract_strided_slice %1221 {offsets = [1, 0, 0], sizes = [1, 8, 16], strides = [1, 1, 1]} : vector<2x8x16xf32> to vector<1x8x16xf32>
    %1229 = vector.shape_cast %1228 : vector<1x8x16xf32> to vector<8x16xf32>
    %1230 = vector.broadcast %1227 : f32 to vector<8x16xf32>
    %1231 = arith.mulf %1230, %1229 : vector<8x16xf32>
    %1232 = arith.addf %1226, %1231 : vector<8x16xf32>
    %1233 = arith.addf %1218, %1232 : vector<8x16xf32>
    %1234 = vector.extract_strided_slice %1141 {offsets = [0, 1, 0], sizes = [2, 7, 16], strides = [1, 1, 1]} : vector<2x8x16xf32> to vector<2x7x16xf32>
    %cst_240 = arith.constant 0.000000e+00 : f32
    %1235 = vector.broadcast %cst_240 : f32 to vector<2x1x16xf32>
    %1236 = tpu.concatenate %1234, %1235 in 1 : vector<2x7x16xf32>, vector<2x1x16xf32> -> vector<2x8x16xf32>
    %cst_241 = arith.constant 0.000000e+00 : f32
    %1237 = vector.broadcast %cst_241 : f32 to vector<2x8x1xf32>
    %1238 = vector.extract_strided_slice %1236 {offsets = [0, 0, 0], sizes = [2, 8, 15], strides = [1, 1, 1]} : vector<2x8x16xf32> to vector<2x8x15xf32>
    %1239 = tpu.concatenate %1237, %1238 in 2 : vector<2x8x1xf32>, vector<2x8x15xf32> -> vector<2x8x16xf32>
    %c25_242 = arith.constant 25 : index
    %1240 = memref.load %arg7[%c25_242] : memref<57xf32, #tpu.memory_space<smem>>
    %1241 = vector.extract_strided_slice %1239 {offsets = [0, 0, 0], sizes = [1, 8, 16], strides = [1, 1, 1]} : vector<2x8x16xf32> to vector<1x8x16xf32>
    %1242 = vector.shape_cast %1241 : vector<1x8x16xf32> to vector<8x16xf32>
    %1243 = vector.broadcast %1240 : f32 to vector<8x16xf32>
    %1244 = arith.mulf %1243, %1242 : vector<8x16xf32>
    %c34_243 = arith.constant 34 : index
    %1245 = memref.load %arg7[%c34_243] : memref<57xf32, #tpu.memory_space<smem>>
    %1246 = vector.extract_strided_slice %1239 {offsets = [1, 0, 0], sizes = [1, 8, 16], strides = [1, 1, 1]} : vector<2x8x16xf32> to vector<1x8x16xf32>
    %1247 = vector.shape_cast %1246 : vector<1x8x16xf32> to vector<8x16xf32>
    %1248 = vector.broadcast %1245 : f32 to vector<8x16xf32>
    %1249 = arith.mulf %1248, %1247 : vector<8x16xf32>
    %1250 = arith.addf %1244, %1249 : vector<8x16xf32>
    %1251 = arith.addf %1233, %1250 : vector<8x16xf32>
    %1252 = vector.extract_strided_slice %1141 {offsets = [0, 1, 0], sizes = [2, 7, 16], strides = [1, 1, 1]} : vector<2x8x16xf32> to vector<2x7x16xf32>
    %cst_244 = arith.constant 0.000000e+00 : f32
    %1253 = vector.broadcast %cst_244 : f32 to vector<2x1x16xf32>
    %1254 = tpu.concatenate %1252, %1253 in 1 : vector<2x7x16xf32>, vector<2x1x16xf32> -> vector<2x8x16xf32>
    %c26_245 = arith.constant 26 : index
    %1255 = memref.load %arg7[%c26_245] : memref<57xf32, #tpu.memory_space<smem>>
    %1256 = vector.extract_strided_slice %1254 {offsets = [0, 0, 0], sizes = [1, 8, 16], strides = [1, 1, 1]} : vector<2x8x16xf32> to vector<1x8x16xf32>
    %1257 = vector.shape_cast %1256 : vector<1x8x16xf32> to vector<8x16xf32>
    %1258 = vector.broadcast %1255 : f32 to vector<8x16xf32>
    %1259 = arith.mulf %1258, %1257 : vector<8x16xf32>
    %c35_246 = arith.constant 35 : index
    %1260 = memref.load %arg7[%c35_246] : memref<57xf32, #tpu.memory_space<smem>>
    %1261 = vector.extract_strided_slice %1254 {offsets = [1, 0, 0], sizes = [1, 8, 16], strides = [1, 1, 1]} : vector<2x8x16xf32> to vector<1x8x16xf32>
    %1262 = vector.shape_cast %1261 : vector<1x8x16xf32> to vector<8x16xf32>
    %1263 = vector.broadcast %1260 : f32 to vector<8x16xf32>
    %1264 = arith.mulf %1263, %1262 : vector<8x16xf32>
    %1265 = arith.addf %1259, %1264 : vector<8x16xf32>
    %1266 = arith.addf %1251, %1265 : vector<8x16xf32>
    %1267 = vector.extract_strided_slice %1141 {offsets = [0, 1, 0], sizes = [2, 7, 16], strides = [1, 1, 1]} : vector<2x8x16xf32> to vector<2x7x16xf32>
    %cst_247 = arith.constant 0.000000e+00 : f32
    %1268 = vector.broadcast %cst_247 : f32 to vector<2x1x16xf32>
    %1269 = tpu.concatenate %1267, %1268 in 1 : vector<2x7x16xf32>, vector<2x1x16xf32> -> vector<2x8x16xf32>
    %1270 = vector.extract_strided_slice %1269 {offsets = [0, 0, 1], sizes = [2, 8, 15], strides = [1, 1, 1]} : vector<2x8x16xf32> to vector<2x8x15xf32>
    %cst_248 = arith.constant 0.000000e+00 : f32
    %1271 = vector.broadcast %cst_248 : f32 to vector<2x8x1xf32>
    %1272 = tpu.concatenate %1270, %1271 in 2 : vector<2x8x15xf32>, vector<2x8x1xf32> -> vector<2x8x16xf32>
    %c27_249 = arith.constant 27 : index
    %1273 = memref.load %arg7[%c27_249] : memref<57xf32, #tpu.memory_space<smem>>
    %1274 = vector.extract_strided_slice %1272 {offsets = [0, 0, 0], sizes = [1, 8, 16], strides = [1, 1, 1]} : vector<2x8x16xf32> to vector<1x8x16xf32>
    %1275 = vector.shape_cast %1274 : vector<1x8x16xf32> to vector<8x16xf32>
    %1276 = vector.broadcast %1273 : f32 to vector<8x16xf32>
    %1277 = arith.mulf %1276, %1275 : vector<8x16xf32>
    %c36_250 = arith.constant 36 : index
    %1278 = memref.load %arg7[%c36_250] : memref<57xf32, #tpu.memory_space<smem>>
    %1279 = vector.extract_strided_slice %1272 {offsets = [1, 0, 0], sizes = [1, 8, 16], strides = [1, 1, 1]} : vector<2x8x16xf32> to vector<1x8x16xf32>
    %1280 = vector.shape_cast %1279 : vector<1x8x16xf32> to vector<8x16xf32>
    %1281 = vector.broadcast %1278 : f32 to vector<8x16xf32>
    %1282 = arith.mulf %1281, %1280 : vector<8x16xf32>
    %1283 = arith.addf %1277, %1282 : vector<8x16xf32>
    %1284 = arith.addf %1266, %1283 : vector<8x16xf32>
    %c37_251 = arith.constant 37 : index
    %1285 = memref.load %arg7[%c37_251] : memref<57xf32, #tpu.memory_space<smem>>
    %1286 = vector.broadcast %1285 : f32 to vector<8x16xf32>
    %1287 = arith.addf %1284, %1286 : vector<8x16xf32>
    %cst_252 = arith.constant 0.000000e+00 : f32
    %1288 = vector.broadcast %cst_252 : f32 to vector<8x16xf32>
    %1289 = arith.subf %1288, %1287 : vector<8x16xf32>
    %1290 = math.exp %1289 : vector<8x16xf32>
    %cst_253 = arith.constant 1.000000e+00 : f32
    %1291 = vector.broadcast %cst_253 : f32 to vector<8x16xf32>
    %1292 = arith.addf %1291, %1290 : vector<8x16xf32>
    %cst_254 = arith.constant 1.000000e+00 : f32
    %1293 = vector.broadcast %cst_254 : f32 to vector<8x16xf32>
    %1294 = arith.divf %1293, %1292 : vector<8x16xf32>
    %1295 = tpu.concatenate %978, %982 in 0 : vector<1x256xf32>, vector<1x256xf32> -> vector<2x256xf32>
    %cst_255 = arith.constant 0.000000e+00 : f32
    %1296 = vector.broadcast %cst_255 : f32 to vector<2x16xf32>
    %1297 = vector.extract_strided_slice %1295 {offsets = [0, 0], sizes = [2, 240], strides = [1, 1]} : vector<2x256xf32> to vector<2x240xf32>
    %1298 = tpu.concatenate %1296, %1297 in 1 : vector<2x16xf32>, vector<2x240xf32> -> vector<2x256xf32>
    %cst_256 = arith.constant 0.000000e+00 : f32
    %1299 = vector.broadcast %cst_256 : f32 to vector<2x1xf32>
    %1300 = vector.extract_strided_slice %1298 {offsets = [0, 0], sizes = [2, 255], strides = [1, 1]} : vector<2x256xf32> to vector<2x255xf32>
    %1301 = tpu.concatenate %1299, %1300 in 1 : vector<2x1xf32>, vector<2x255xf32> -> vector<2x256xf32>
    %1302 = vector.broadcast %8 : vector<1x256xf32> to vector<2x256xf32>
    %1303 = arith.mulf %1301, %1302 : vector<2x256xf32>
    %c38_257 = arith.constant 38 : index
    %1304 = memref.load %arg7[%c38_257] : memref<57xf32, #tpu.memory_space<smem>>
    %1305 = vector.extract_strided_slice %1303 {offsets = [0, 0], sizes = [1, 256], strides = [1, 1]} : vector<2x256xf32> to vector<1x256xf32>
    %1306 = vector.broadcast %1304 : f32 to vector<1x256xf32>
    %1307 = arith.mulf %1306, %1305 : vector<1x256xf32>
    %c47_258 = arith.constant 47 : index
    %1308 = memref.load %arg7[%c47_258] : memref<57xf32, #tpu.memory_space<smem>>
    %1309 = vector.extract_strided_slice %1303 {offsets = [1, 0], sizes = [1, 256], strides = [1, 1]} : vector<2x256xf32> to vector<1x256xf32>
    %1310 = vector.broadcast %1308 : f32 to vector<1x256xf32>
    %1311 = arith.mulf %1310, %1309 : vector<1x256xf32>
    %1312 = arith.addf %1307, %1311 : vector<1x256xf32>
    %c39_259 = arith.constant 39 : index
    %1313 = memref.load %arg7[%c39_259] : memref<57xf32, #tpu.memory_space<smem>>
    %1314 = vector.extract_strided_slice %1298 {offsets = [0, 0], sizes = [1, 256], strides = [1, 1]} : vector<2x256xf32> to vector<1x256xf32>
    %1315 = vector.broadcast %1313 : f32 to vector<1x256xf32>
    %1316 = arith.mulf %1315, %1314 : vector<1x256xf32>
    %c48_260 = arith.constant 48 : index
    %1317 = memref.load %arg7[%c48_260] : memref<57xf32, #tpu.memory_space<smem>>
    %1318 = vector.extract_strided_slice %1298 {offsets = [1, 0], sizes = [1, 256], strides = [1, 1]} : vector<2x256xf32> to vector<1x256xf32>
    %1319 = vector.broadcast %1317 : f32 to vector<1x256xf32>
    %1320 = arith.mulf %1319, %1318 : vector<1x256xf32>
    %1321 = arith.addf %1316, %1320 : vector<1x256xf32>
    %1322 = arith.addf %1312, %1321 : vector<1x256xf32>
    %1323 = vector.extract_strided_slice %1298 {offsets = [0, 1], sizes = [2, 255], strides = [1, 1]} : vector<2x256xf32> to vector<2x255xf32>
    %cst_261 = arith.constant 0.000000e+00 : f32
    %1324 = vector.broadcast %cst_261 : f32 to vector<2x1xf32>
    %1325 = tpu.concatenate %1323, %1324 in 1 : vector<2x255xf32>, vector<2x1xf32> -> vector<2x256xf32>
    %1326 = vector.broadcast %9 : vector<1x256xf32> to vector<2x256xf32>
    %1327 = arith.mulf %1325, %1326 : vector<2x256xf32>
    %c40_262 = arith.constant 40 : index
    %1328 = memref.load %arg7[%c40_262] : memref<57xf32, #tpu.memory_space<smem>>
    %1329 = vector.extract_strided_slice %1327 {offsets = [0, 0], sizes = [1, 256], strides = [1, 1]} : vector<2x256xf32> to vector<1x256xf32>
    %1330 = vector.broadcast %1328 : f32 to vector<1x256xf32>
    %1331 = arith.mulf %1330, %1329 : vector<1x256xf32>
    %c49_263 = arith.constant 49 : index
    %1332 = memref.load %arg7[%c49_263] : memref<57xf32, #tpu.memory_space<smem>>
    %1333 = vector.extract_strided_slice %1327 {offsets = [1, 0], sizes = [1, 256], strides = [1, 1]} : vector<2x256xf32> to vector<1x256xf32>
    %1334 = vector.broadcast %1332 : f32 to vector<1x256xf32>
    %1335 = arith.mulf %1334, %1333 : vector<1x256xf32>
    %1336 = arith.addf %1331, %1335 : vector<1x256xf32>
    %1337 = arith.addf %1322, %1336 : vector<1x256xf32>
    %cst_264 = arith.constant 0.000000e+00 : f32
    %1338 = vector.broadcast %cst_264 : f32 to vector<2x1xf32>
    %1339 = vector.extract_strided_slice %1295 {offsets = [0, 0], sizes = [2, 255], strides = [1, 1]} : vector<2x256xf32> to vector<2x255xf32>
    %1340 = tpu.concatenate %1338, %1339 in 1 : vector<2x1xf32>, vector<2x255xf32> -> vector<2x256xf32>
    %1341 = vector.broadcast %8 : vector<1x256xf32> to vector<2x256xf32>
    %1342 = arith.mulf %1340, %1341 : vector<2x256xf32>
    %c41_265 = arith.constant 41 : index
    %1343 = memref.load %arg7[%c41_265] : memref<57xf32, #tpu.memory_space<smem>>
    %1344 = vector.extract_strided_slice %1342 {offsets = [0, 0], sizes = [1, 256], strides = [1, 1]} : vector<2x256xf32> to vector<1x256xf32>
    %1345 = vector.broadcast %1343 : f32 to vector<1x256xf32>
    %1346 = arith.mulf %1345, %1344 : vector<1x256xf32>
    %c50_266 = arith.constant 50 : index
    %1347 = memref.load %arg7[%c50_266] : memref<57xf32, #tpu.memory_space<smem>>
    %1348 = vector.extract_strided_slice %1342 {offsets = [1, 0], sizes = [1, 256], strides = [1, 1]} : vector<2x256xf32> to vector<1x256xf32>
    %1349 = vector.broadcast %1347 : f32 to vector<1x256xf32>
    %1350 = arith.mulf %1349, %1348 : vector<1x256xf32>
    %1351 = arith.addf %1346, %1350 : vector<1x256xf32>
    %1352 = arith.addf %1337, %1351 : vector<1x256xf32>
    %c42_267 = arith.constant 42 : index
    %1353 = memref.load %arg7[%c42_267] : memref<57xf32, #tpu.memory_space<smem>>
    %1354 = vector.extract_strided_slice %1295 {offsets = [0, 0], sizes = [1, 256], strides = [1, 1]} : vector<2x256xf32> to vector<1x256xf32>
    %1355 = vector.broadcast %1353 : f32 to vector<1x256xf32>
    %1356 = arith.mulf %1355, %1354 : vector<1x256xf32>
    %c51_268 = arith.constant 51 : index
    %1357 = memref.load %arg7[%c51_268] : memref<57xf32, #tpu.memory_space<smem>>
    %1358 = vector.extract_strided_slice %1295 {offsets = [1, 0], sizes = [1, 256], strides = [1, 1]} : vector<2x256xf32> to vector<1x256xf32>
    %1359 = vector.broadcast %1357 : f32 to vector<1x256xf32>
    %1360 = arith.mulf %1359, %1358 : vector<1x256xf32>
    %1361 = arith.addf %1356, %1360 : vector<1x256xf32>
    %1362 = arith.addf %1352, %1361 : vector<1x256xf32>
    %1363 = vector.extract_strided_slice %1295 {offsets = [0, 1], sizes = [2, 255], strides = [1, 1]} : vector<2x256xf32> to vector<2x255xf32>
    %cst_269 = arith.constant 0.000000e+00 : f32
    %1364 = vector.broadcast %cst_269 : f32 to vector<2x1xf32>
    %1365 = tpu.concatenate %1363, %1364 in 1 : vector<2x255xf32>, vector<2x1xf32> -> vector<2x256xf32>
    %1366 = vector.broadcast %9 : vector<1x256xf32> to vector<2x256xf32>
    %1367 = arith.mulf %1365, %1366 : vector<2x256xf32>
    %c43_270 = arith.constant 43 : index
    %1368 = memref.load %arg7[%c43_270] : memref<57xf32, #tpu.memory_space<smem>>
    %1369 = vector.extract_strided_slice %1367 {offsets = [0, 0], sizes = [1, 256], strides = [1, 1]} : vector<2x256xf32> to vector<1x256xf32>
    %1370 = vector.broadcast %1368 : f32 to vector<1x256xf32>
    %1371 = arith.mulf %1370, %1369 : vector<1x256xf32>
    %c52_271 = arith.constant 52 : index
    %1372 = memref.load %arg7[%c52_271] : memref<57xf32, #tpu.memory_space<smem>>
    %1373 = vector.extract_strided_slice %1367 {offsets = [1, 0], sizes = [1, 256], strides = [1, 1]} : vector<2x256xf32> to vector<1x256xf32>
    %1374 = vector.broadcast %1372 : f32 to vector<1x256xf32>
    %1375 = arith.mulf %1374, %1373 : vector<1x256xf32>
    %1376 = arith.addf %1371, %1375 : vector<1x256xf32>
    %1377 = arith.addf %1362, %1376 : vector<1x256xf32>
    %1378 = vector.extract_strided_slice %1295 {offsets = [0, 16], sizes = [2, 240], strides = [1, 1]} : vector<2x256xf32> to vector<2x240xf32>
    %cst_272 = arith.constant 0.000000e+00 : f32
    %1379 = vector.broadcast %cst_272 : f32 to vector<2x16xf32>
    %1380 = tpu.concatenate %1378, %1379 in 1 : vector<2x240xf32>, vector<2x16xf32> -> vector<2x256xf32>
    %cst_273 = arith.constant 0.000000e+00 : f32
    %1381 = vector.broadcast %cst_273 : f32 to vector<2x1xf32>
    %1382 = vector.extract_strided_slice %1380 {offsets = [0, 0], sizes = [2, 255], strides = [1, 1]} : vector<2x256xf32> to vector<2x255xf32>
    %1383 = tpu.concatenate %1381, %1382 in 1 : vector<2x1xf32>, vector<2x255xf32> -> vector<2x256xf32>
    %1384 = vector.broadcast %8 : vector<1x256xf32> to vector<2x256xf32>
    %1385 = arith.mulf %1383, %1384 : vector<2x256xf32>
    %c44_274 = arith.constant 44 : index
    %1386 = memref.load %arg7[%c44_274] : memref<57xf32, #tpu.memory_space<smem>>
    %1387 = vector.extract_strided_slice %1385 {offsets = [0, 0], sizes = [1, 256], strides = [1, 1]} : vector<2x256xf32> to vector<1x256xf32>
    %1388 = vector.broadcast %1386 : f32 to vector<1x256xf32>
    %1389 = arith.mulf %1388, %1387 : vector<1x256xf32>
    %c53_275 = arith.constant 53 : index
    %1390 = memref.load %arg7[%c53_275] : memref<57xf32, #tpu.memory_space<smem>>
    %1391 = vector.extract_strided_slice %1385 {offsets = [1, 0], sizes = [1, 256], strides = [1, 1]} : vector<2x256xf32> to vector<1x256xf32>
    %1392 = vector.broadcast %1390 : f32 to vector<1x256xf32>
    %1393 = arith.mulf %1392, %1391 : vector<1x256xf32>
    %1394 = arith.addf %1389, %1393 : vector<1x256xf32>
    %1395 = arith.addf %1377, %1394 : vector<1x256xf32>
    %c45_276 = arith.constant 45 : index
    %1396 = memref.load %arg7[%c45_276] : memref<57xf32, #tpu.memory_space<smem>>
    %1397 = vector.extract_strided_slice %1380 {offsets = [0, 0], sizes = [1, 256], strides = [1, 1]} : vector<2x256xf32> to vector<1x256xf32>
    %1398 = vector.broadcast %1396 : f32 to vector<1x256xf32>
    %1399 = arith.mulf %1398, %1397 : vector<1x256xf32>
    %c54_277 = arith.constant 54 : index
    %1400 = memref.load %arg7[%c54_277] : memref<57xf32, #tpu.memory_space<smem>>
    %1401 = vector.extract_strided_slice %1380 {offsets = [1, 0], sizes = [1, 256], strides = [1, 1]} : vector<2x256xf32> to vector<1x256xf32>
    %1402 = vector.broadcast %1400 : f32 to vector<1x256xf32>
    %1403 = arith.mulf %1402, %1401 : vector<1x256xf32>
    %1404 = arith.addf %1399, %1403 : vector<1x256xf32>
    %1405 = arith.addf %1395, %1404 : vector<1x256xf32>
    %1406 = vector.extract_strided_slice %1380 {offsets = [0, 1], sizes = [2, 255], strides = [1, 1]} : vector<2x256xf32> to vector<2x255xf32>
    %cst_278 = arith.constant 0.000000e+00 : f32
    %1407 = vector.broadcast %cst_278 : f32 to vector<2x1xf32>
    %1408 = tpu.concatenate %1406, %1407 in 1 : vector<2x255xf32>, vector<2x1xf32> -> vector<2x256xf32>
    %1409 = vector.broadcast %9 : vector<1x256xf32> to vector<2x256xf32>
    %1410 = arith.mulf %1408, %1409 : vector<2x256xf32>
    %c46_279 = arith.constant 46 : index
    %1411 = memref.load %arg7[%c46_279] : memref<57xf32, #tpu.memory_space<smem>>
    %1412 = vector.extract_strided_slice %1410 {offsets = [0, 0], sizes = [1, 256], strides = [1, 1]} : vector<2x256xf32> to vector<1x256xf32>
    %1413 = vector.broadcast %1411 : f32 to vector<1x256xf32>
    %1414 = arith.mulf %1413, %1412 : vector<1x256xf32>
    %c55_280 = arith.constant 55 : index
    %1415 = memref.load %arg7[%c55_280] : memref<57xf32, #tpu.memory_space<smem>>
    %1416 = vector.extract_strided_slice %1410 {offsets = [1, 0], sizes = [1, 256], strides = [1, 1]} : vector<2x256xf32> to vector<1x256xf32>
    %1417 = vector.broadcast %1415 : f32 to vector<1x256xf32>
    %1418 = arith.mulf %1417, %1416 : vector<1x256xf32>
    %1419 = arith.addf %1414, %1418 : vector<1x256xf32>
    %1420 = arith.addf %1405, %1419 : vector<1x256xf32>
    %c56_281 = arith.constant 56 : index
    %1421 = memref.load %arg7[%c56_281] : memref<57xf32, #tpu.memory_space<smem>>
    %1422 = vector.broadcast %1421 : f32 to vector<1x256xf32>
    %1423 = arith.addf %1420, %1422 : vector<1x256xf32>
    %cst_282 = arith.constant 0.000000e+00 : f32
    %1424 = vector.broadcast %cst_282 : f32 to vector<1x256xf32>
    %1425 = arith.subf %1424, %1423 : vector<1x256xf32>
    %1426 = math.exp %1425 : vector<1x256xf32>
    %cst_283 = arith.constant 1.000000e+00 : f32
    %1427 = vector.broadcast %cst_283 : f32 to vector<1x256xf32>
    %1428 = arith.addf %1427, %1426 : vector<1x256xf32>
    %cst_284 = arith.constant 1.000000e+00 : f32
    %1429 = vector.broadcast %cst_284 : f32 to vector<1x256xf32>
    %1430 = arith.divf %1429, %1428 : vector<1x256xf32>
    %1431 = tpu.concatenate %1138, %1138, %1138, %1138, %1138, %1138, %1138, %1138, %1138, %1138, %1138, %1138, %1138, %1138, %1138, %1138 in 1 : vector<8x16xf32>, vector<8x16xf32>, vector<8x16xf32>, vector<8x16xf32>, vector<8x16xf32>, vector<8x16xf32>, vector<8x16xf32>, vector<8x16xf32>, vector<8x16xf32>, vector<8x16xf32>, vector<8x16xf32>, vector<8x16xf32>, vector<8x16xf32>, vector<8x16xf32>, vector<8x16xf32>, vector<8x16xf32> -> vector<8x256xf32>
    %1432 = vector.extract_strided_slice %1294 {offsets = [0, 0], sizes = [8, 1], strides = [1, 1]} : vector<8x16xf32> to vector<8x1xf32>
    %1433 = vector.shape_cast %1432 : vector<8x1xf32> to vector<8x1xf32>
    %1434 = vector.broadcast %1433 : vector<8x1xf32> to vector<8x16xf32>
    %1435 = vector.extract_strided_slice %1294 {offsets = [0, 1], sizes = [8, 1], strides = [1, 1]} : vector<8x16xf32> to vector<8x1xf32>
    %1436 = vector.shape_cast %1435 : vector<8x1xf32> to vector<8x1xf32>
    %1437 = vector.broadcast %1436 : vector<8x1xf32> to vector<8x16xf32>
    %1438 = vector.extract_strided_slice %1294 {offsets = [0, 2], sizes = [8, 1], strides = [1, 1]} : vector<8x16xf32> to vector<8x1xf32>
    %1439 = vector.shape_cast %1438 : vector<8x1xf32> to vector<8x1xf32>
    %1440 = vector.broadcast %1439 : vector<8x1xf32> to vector<8x16xf32>
    %1441 = vector.extract_strided_slice %1294 {offsets = [0, 3], sizes = [8, 1], strides = [1, 1]} : vector<8x16xf32> to vector<8x1xf32>
    %1442 = vector.shape_cast %1441 : vector<8x1xf32> to vector<8x1xf32>
    %1443 = vector.broadcast %1442 : vector<8x1xf32> to vector<8x16xf32>
    %1444 = vector.extract_strided_slice %1294 {offsets = [0, 4], sizes = [8, 1], strides = [1, 1]} : vector<8x16xf32> to vector<8x1xf32>
    %1445 = vector.shape_cast %1444 : vector<8x1xf32> to vector<8x1xf32>
    %1446 = vector.broadcast %1445 : vector<8x1xf32> to vector<8x16xf32>
    %1447 = vector.extract_strided_slice %1294 {offsets = [0, 5], sizes = [8, 1], strides = [1, 1]} : vector<8x16xf32> to vector<8x1xf32>
    %1448 = vector.shape_cast %1447 : vector<8x1xf32> to vector<8x1xf32>
    %1449 = vector.broadcast %1448 : vector<8x1xf32> to vector<8x16xf32>
    %1450 = vector.extract_strided_slice %1294 {offsets = [0, 6], sizes = [8, 1], strides = [1, 1]} : vector<8x16xf32> to vector<8x1xf32>
    %1451 = vector.shape_cast %1450 : vector<8x1xf32> to vector<8x1xf32>
    %1452 = vector.broadcast %1451 : vector<8x1xf32> to vector<8x16xf32>
    %1453 = vector.extract_strided_slice %1294 {offsets = [0, 7], sizes = [8, 1], strides = [1, 1]} : vector<8x16xf32> to vector<8x1xf32>
    %1454 = vector.shape_cast %1453 : vector<8x1xf32> to vector<8x1xf32>
    %1455 = vector.broadcast %1454 : vector<8x1xf32> to vector<8x16xf32>
    %1456 = vector.extract_strided_slice %1294 {offsets = [0, 8], sizes = [8, 1], strides = [1, 1]} : vector<8x16xf32> to vector<8x1xf32>
    %1457 = vector.shape_cast %1456 : vector<8x1xf32> to vector<8x1xf32>
    %1458 = vector.broadcast %1457 : vector<8x1xf32> to vector<8x16xf32>
    %1459 = vector.extract_strided_slice %1294 {offsets = [0, 9], sizes = [8, 1], strides = [1, 1]} : vector<8x16xf32> to vector<8x1xf32>
    %1460 = vector.shape_cast %1459 : vector<8x1xf32> to vector<8x1xf32>
    %1461 = vector.broadcast %1460 : vector<8x1xf32> to vector<8x16xf32>
    %1462 = vector.extract_strided_slice %1294 {offsets = [0, 10], sizes = [8, 1], strides = [1, 1]} : vector<8x16xf32> to vector<8x1xf32>
    %1463 = vector.shape_cast %1462 : vector<8x1xf32> to vector<8x1xf32>
    %1464 = vector.broadcast %1463 : vector<8x1xf32> to vector<8x16xf32>
    %1465 = vector.extract_strided_slice %1294 {offsets = [0, 11], sizes = [8, 1], strides = [1, 1]} : vector<8x16xf32> to vector<8x1xf32>
    %1466 = vector.shape_cast %1465 : vector<8x1xf32> to vector<8x1xf32>
    %1467 = vector.broadcast %1466 : vector<8x1xf32> to vector<8x16xf32>
    %1468 = vector.extract_strided_slice %1294 {offsets = [0, 12], sizes = [8, 1], strides = [1, 1]} : vector<8x16xf32> to vector<8x1xf32>
    %1469 = vector.shape_cast %1468 : vector<8x1xf32> to vector<8x1xf32>
    %1470 = vector.broadcast %1469 : vector<8x1xf32> to vector<8x16xf32>
    %1471 = vector.extract_strided_slice %1294 {offsets = [0, 13], sizes = [8, 1], strides = [1, 1]} : vector<8x16xf32> to vector<8x1xf32>
    %1472 = vector.shape_cast %1471 : vector<8x1xf32> to vector<8x1xf32>
    %1473 = vector.broadcast %1472 : vector<8x1xf32> to vector<8x16xf32>
    %1474 = vector.extract_strided_slice %1294 {offsets = [0, 14], sizes = [8, 1], strides = [1, 1]} : vector<8x16xf32> to vector<8x1xf32>
    %1475 = vector.shape_cast %1474 : vector<8x1xf32> to vector<8x1xf32>
    %1476 = vector.broadcast %1475 : vector<8x1xf32> to vector<8x16xf32>
    %1477 = vector.extract_strided_slice %1294 {offsets = [0, 15], sizes = [8, 1], strides = [1, 1]} : vector<8x16xf32> to vector<8x1xf32>
    %1478 = vector.shape_cast %1477 : vector<8x1xf32> to vector<8x1xf32>
    %1479 = vector.broadcast %1478 : vector<8x1xf32> to vector<8x16xf32>
    %1480 = tpu.concatenate %1434, %1437, %1440, %1443, %1446, %1449, %1452, %1455, %1458, %1461, %1464, %1467, %1470, %1473, %1476, %1479 in 1 : vector<8x16xf32>, vector<8x16xf32>, vector<8x16xf32>, vector<8x16xf32>, vector<8x16xf32>, vector<8x16xf32>, vector<8x16xf32>, vector<8x16xf32>, vector<8x16xf32>, vector<8x16xf32>, vector<8x16xf32>, vector<8x16xf32>, vector<8x16xf32>, vector<8x16xf32>, vector<8x16xf32>, vector<8x16xf32> -> vector<8x256xf32>
    %1481 = vector.broadcast %1430 : vector<1x256xf32> to vector<8x256xf32>
    %1482 = arith.addf %1481, %1431 : vector<8x256xf32>
    %1483 = arith.addf %1482, %1480 : vector<8x256xf32>
    %cst_285 = arith.constant 0.333333343 : f32
    %1484 = vector.broadcast %cst_285 : f32 to vector<8x256xf32>
    %1485 = arith.mulf %1483, %1484 : vector<8x256xf32>
    %1486 = arith.mulf %856, %1485 : vector<8x256xf32>
    %1487 = arith.addf %1486, %860 : vector<8x256xf32>
    %cst_286 = arith.constant 0.000000e+00 : f32
    %1488 = vector.broadcast %cst_286 : f32 to vector<8x256xf32>
    %1489 = arith.maximumf %1487, %1488 : vector<8x256xf32>
    %c1_287 = arith.constant 1 : index
    %c0_288 = arith.constant 0 : index
    %c0_289 = arith.constant 0 : index
    %1490 = vector.load %arg10[%c1_287, %c0_288, %c0_289] : memref<2x8x256xf32, #tpu.memory_space<vmem>>, vector<1x8x256xf32>
    %1491 = vector.shape_cast %1490 : vector<1x8x256xf32> to vector<8x256xf32>
    %1492 = vector.shape_cast %1489 : vector<8x256xf32> to vector<1x8x256xf32>
    tpu.vector_store %arg10[%c1_287, %c0_288, %c0_289], %1492 {strides = array<i32>} : memref<2x8x256xf32, #tpu.memory_space<vmem>>, vector<1x8x256xf32>,
    return
  }
  func.func @transform_0(%arg0: i32) -> (i32, i32, i32) {
    %c0_i32 = arith.constant 0 : i32
    %c0_i32_0 = arith.constant 0 : i32
    %c0_i32_1 = arith.constant 0 : i32
    return %arg0, %c0_i32, %c0_i32_0 : i32, i32, i32
  }
  func.func @transform_1(%arg0: i32) -> (i32, i32) {
    %c0_i32 = arith.constant 0 : i32
    %c0_i32_0 = arith.constant 0 : i32
    %c0_i32_1 = arith.constant 0 : i32
    return %c0_i32, %c0_i32_0 : i32, i32
  }
  func.func @transform_2(%arg0: i32) -> (i32, i32) {
    %c0_i32 = arith.constant 0 : i32
    %c0_i32_0 = arith.constant 0 : i32
    %c0_i32_1 = arith.constant 0 : i32
    return %c0_i32, %c0_i32_0 : i32, i32
  }
  func.func @transform_3(%arg0: i32) -> (i32, i32) {
    %c0_i32 = arith.constant 0 : i32
    %c0_i32_0 = arith.constant 0 : i32
    %c0_i32_1 = arith.constant 0 : i32
    return %c0_i32, %c0_i32_0 : i32, i32
  }
  func.func @transform_4(%arg0: i32) -> (i32, i32) {
    %c0_i32 = arith.constant 0 : i32
    %c0_i32_0 = arith.constant 0 : i32
    %c0_i32_1 = arith.constant 0 : i32
    return %c0_i32, %c0_i32_0 : i32, i32
  }
  func.func @transform_5(%arg0: i32) -> (i32, i32) {
    %c0_i32 = arith.constant 0 : i32
    %c0_i32_0 = arith.constant 0 : i32
    %c0_i32_1 = arith.constant 0 : i32
    return %c0_i32, %c0_i32_0 : i32, i32
  }
  func.func @transform_6(%arg0: i32) -> i32 {
    %c0_i32 = arith.constant 0 : i32
    %c0_i32_0 = arith.constant 0 : i32
    return %c0_i32 : i32
  }
  func.func @transform_7(%arg0: i32) -> (i32, i32) {
    %c0_i32 = arith.constant 0 : i32
    %c0_i32_0 = arith.constant 0 : i32
    %c0_i32_1 = arith.constant 0 : i32
    return %c0_i32, %c0_i32_0 : i32, i32
  }
  func.func @transform_8(%arg0: i32) -> (i32, i32) {
    %c0_i32 = arith.constant 0 : i32
    %c0_i32_0 = arith.constant 0 : i32
    %c0_i32_1 = arith.constant 0 : i32
    return %c0_i32, %c0_i32_0 : i32, i32
  }
  func.func @transform_9(%arg0: i32) -> (i32, i32, i32) {
    %c0_i32 = arith.constant 0 : i32
    %c0_i32_0 = arith.constant 0 : i32
    %c0_i32_1 = arith.constant 0 : i32
    return %arg0, %c0_i32, %c0_i32_0 : i32, i32, i32
  }
}

</mosaic_0001>

<bundles_post_ra>
// kernel: basic_block_forward.1
= control target key start
LH: loop header
LB: loop body
LE: loop exit
PB: predicated region body
PF: predicated region fallthrough
CT: control target
= control target key end

     0   :  { %14 = vsyncpa [#allocation3], 0  ;;  %s5452_s0 = inlined_call_operand.vmem [shape: f32[2,4,256], index: 0, kind: input, shape index: {}]   ;;  %s5453_s1 = inlined_call_operand.vmem [shape: f32[8,36], index: 1, kind: input, shape index: {}]   ;;  %s5454_s2 = inlined_call_operand.vmem [shape: f32[8,1], index: 2, kind: input, shape index: {}]   ;;  %s5455_s3 = inlined_call_operand.vmem [shape: f32[8,72], index: 3, kind: input, shape index: {}]   ;;  %s5456_s4 = inlined_call_operand.vmem [shape: f32[8,1], index: 4, kind: input, shape index: {}]   ;;  %s5457_s5 = inlined_call_operand.vmem [shape: f32[2,256], index: 5, kind: input, shape index: {}]   ;;  %s5458_s6 = inlined_call_operand.vmem [shape: f32[57], index: 6, kind: input, shape index: {}]   ;;  %s5459_s7 = inlined_call_operand.vmem [shape: f32[8,4], index: 7, kind: input, shape index: {}]   ;;  %s5460_s8 = inlined_call_operand.vmem [shape: f32[8,1], index: 8, kind: input, shape index: {}]   ;;  %s5461_s9 = inlined_call_operand.vmem [shape: f32[2,8,256], index: 9, kind: output, shape index: {}]  }
   0x1   :  { %s33_s11 = sshll.u32 %s5458_s6, 4  ;;  %s34_s11 = int_to_ptr.vmem [resolvable:$true] %s33_s11 }
   0x2   :  { %s3108_s12 = scalar_lea.vmem %s34_s11, 16  ;;  %p3113_p1 = scmp.lt.s32.totalorder %s34_s11, %s34_s11 }
   0x3   :  { %p3109_p0 = scmp.ne.s32.totalorder %s34_s11, %s3108_s12  ;;  %p3114_p2 = scmp.lt.s32.totalorder %s3108_s12, %s3108_s12 }
   0x5   :  { %p3115_p3 = por %p3114_p2, %p3113_p1 }
   0x7   :  { %p3116_p4 = pnand %p3115_p3, %p3109_p0 }
   0x9   :  { %3119 = shalt.err (!%p3116_p4)
}
   0xa   :  { %s3122_s13 = smov [#allocation2]  }
   0xb   :  { %36 = dma.vmem_to_smem %s34_s11, 16, %s3122_s13, [#allocation3]  }
   0xc   :  { %3120 = dma.done.wait [#allocation3], 16  }
   0xd   :  { %3121 = vsyncadd [#allocation3], 4294967280 }
   0xe   :  { %44 = sfence }
   0xf   :  { %v3204_v0 = vld [vmem:[%s5452_s0] sm:$0xff]  ;;  %s3123_s16 = smov 16   ;;  %v5462_v2 = vmov 0   ;;  %s3125_s6 = smov 1   ;;  %v3234_v4 = vld [vmem:[%s5452_s0 + $0x8] sm:$0xff]  ;;  %vm5486_vm0 = vcmask 130048   ;;  %v81_v31 = vlaneseq }
  0x10   :  { %61 = vrot.lane.b32.xlu0 %v3204_v0, %s3123_s16  ;;  %v3210_v1 = vcombine.high %v3204_v0, %v3204_v0  ;;  %3041 = vset.pattern.permute.xlu1 %v5462_v2  ;;  %s3126_s17 = smov 127   ;;  %s3127_s18 = smov 112   ;;  %v57_v3 = vld [vmem:[%s5460_s8] sm:$0xff]  ;;  %v3245_v6 = vcombine.high %v3234_v4, %v3234_v4  ;;  %vm5484_vm1 = vcmask 916480   ;;  %vm5485_vm2 = vcmask 1039360  }
  0x11   :  { %3040 = vset.pattern.permute.xlu0 %v5462_v2  ;;  %290 = vmatprep.mubr.bf16.mxu0 %v5462_v2  ;;  %v50_v5 = vld [vmem:[%s5454_s2] sm:$0xff]  ;;  %v82_v32 = vshrl.u32 %v81_v31, 7  ;;  %vm75_vm3 = vcmask 7168   ;;  %vm208_vm4 = vcmask 1041408   ;;  %v3364_v61 = vpack.c.bf16 %v3204_v0, %v3204_v0  ;;  %s3129_s30 = smov 48   ;;  %s3130_s10 = smov 80  }
  0x12   :  { %123 = vrot.lane.b32.xlu1 %v3210_v1, %s3125_s6  ;;  %494 = vmatprep.mubr.bf16.mxu1 %v5462_v2  ;;  %v51_v7 = vld [vmem:[%s5456_s4] sm:$0xff]  ;;  %vm215_vm5 = vcmask 1043456   ;;  %vm220_vm6 = vcmask 1045504   ;;  %vm248_vm7 = vcmask 293888   ;;  %vm510_vm8 = vcmask 31744   ;;  %s5517_s11 = smov 64  }
  0x13   :  { %v3326_v33 = vsub.s32 0, %v82_v32  ;;  %v2886_v34 = vld [vmem:[%s5457_s5 + $0x1] ss:$2 sm:$0x3]  ;;  %v87_v37 = vsub.s32 1, %v82_v32  ;;  %vm452_vm9 = vcmask 588800  }
  0x14   :  { %63 = vrot.lane.b32.xlu0 %v3210_v1, %s3123_s16  ;;  %v52_v40 = vld [vmem:[%s5457_s5] ss:$2 sm:$0x3]  ;;  %s5521_s12 = smov 32   ;;  %vm621_vm10 = vcmask 392448   ;;  %vm617_vm11 = vcmask 261248  }
  0x15   :  { %5527 = vst [vmem:[#allocation6_spill] sm:$0xff] %v3326_v33  ;;  %v3332_v36 = vrot.slane %v2886_v34, %v3326_v33  ;;  %v3339_v42 = vrot.slane %v2886_v34, %v87_v37  ;;  %v3342_v43 = vrot.slane %v52_v40, %v3326_v33  ;;  %v3349_v47 = vrot.slane %v52_v40, %v87_v37  ;;  %s4396_s13 = sld [smem:[#allocation2 + $0x33]]  ;;  %s4398_s14 = sld [smem:[#allocation2 + $0x2a]] }
  0x16   :  { %138 = vrot.lane.b32.xlu1 %v3210_v1, %s3126_s17  ;;  %vm625_vm12 = vcmask 523648   ;;  %vm629_vm13 = vcmask 654848   ;;  %vm633_vm14 = vcmask 786048   ;;  %vm637_vm15 = vcmask 917248   ;;  %s2933_s15 = sld [smem:[#allocation2 + $0x30]]  ;;  %s2932_s19 = sld [smem:[#allocation2 + $0x27]] }
  0x17   :  { %s2934_s20 = sld [smem:[#allocation2 + $0x28]]  ;;  %s2931_s21 = sld [smem:[#allocation2 + $0x2f]] }
  0x18   :  { %121 = vrot.lane.b32.xlu0 %v3204_v0, %s3125_s6  ;;  %s2935_s22 = sld [smem:[#allocation2 + $0x31]]  ;;  %s2930_s23 = sld [smem:[#allocation2 + $0x26]] }
  0x19   :  { %s4417_s24 = sld [smem:[#allocation2 + $0x32]]  ;;  %s4445_s8 = sld [smem:[#allocation2 + $0x29]] }
  0x1a   :  { %150 = vrot.lane.b32.xlu1 %v3210_v1, %s3127_s18  ;;  %s4453_s25 = sld [smem:[#allocation2 + $0x34]]  ;;  %s4461_s0 = sld [smem:[#allocation2 + $0x2b]] }
  0x1b   :  { %s3008_s2 = sld [smem:[#allocation2 + $0x36]]  ;;  %s2942_s4 = sld [smem:[#allocation2 + $0x2c]] }
  0x1c   :  { %136 = vrot.lane.b32.xlu0 %v3204_v0, %s3126_s17  ;;  %s2943_s26 = sld [smem:[#allocation2 + $0x35]]  ;;  %s4672_s27 = sld [smem:[#allocation2 + $0x37]] }
  0x1d   :  { %s4668_s5 = sld [smem:[#allocation2 + $0x2d]]  ;;  %s4719_s29 = sld [smem:[#allocation2 + $0x1]] }
  0x1e   :  { %507 = vperm.xlu1 %3041, %v57_v3   ;;  %s4714_s28 = sld [smem:[#allocation2 + $0x1d]] }
  0x20   :  { %148 = vrot.lane.b32.xlu0 %v3204_v0, %s3127_s18 }
  0x22   :  { %1514 = vrot.lane.b32.xlu1 %v3234_v4, %s3123_s16 }
  0x24   :  { %245 = vperm.xlu0 %3040, %v50_v5  }
  0x26   :  { %1516 = vrot.lane.b32.xlu1 %v3245_v6, %s3123_s16 }
  0x28   :  { %449 = vperm.xlu0 %3040, %v51_v7  }
  0x2a   :  { %1576 = vrot.lane.b32.xlu1 %v3234_v4, %s3127_s18 }
  0x2c   :  { %1578 = vrot.lane.b32.xlu0 %v3245_v6, %s3127_s18 }
  0x82   :  { %v62_v8 = vpop.permute.xlu0 %61 }
  0x83   :  { %v3257_v9 = vsel %vm5486_vm0, 0.0, %v62_v8 }
  0x84   :  { %71 = vrot.lane.b32.xlu1 %v3257_v9, %s3125_s6  ;;  %97 = vrot.lane.b32.xlu0 %v3257_v9, %s3126_s17  ;;  %v124_v10 = vpop.permute.xlu1 %123  ;;  %v95_v59 = vpack.c.bf16 %v3257_v9, %v3257_v9 }
  0x86   :  { %v64_v11 = vpop.permute.xlu0 %63 }
  0x87   :  { %v3273_v20 = vsel %vm5486_vm0, %v62_v8, %v64_v11 }
  0x88   :  { %v139_v12 = vpop.permute.xlu1 %138  ;;  %v96_v9 = vpack.c.bf16 %v3273_v20, %v3273_v20 }
  0x89   :  { %v143_v46 = vsel %vm5485_vm2, %v139_v12, 0.0 }
  0x8a   :  { %v122_v13 = vpop.permute.xlu0 %121  ;;  %v145_v51 = vmul.f32 %v143_v46, %v3339_v42 }
  0x8b   :  { %v128_v48 = vsel %vm75_vm3, 0.0, %v122_v13  ;;  %v125_v49 = vsel %vm75_vm3, %v122_v13, %v124_v10 }
  0x8c   :  { %v151_v14 = vpop.permute.xlu1 %150  ;;  %v129_v52 = vmul.f32 %v128_v48, %v3342_v43  ;;  %v130_v56 = vmul.f32 %v125_v49, %v3349_v47  ;;  %v147_v7 = vpack.c.bf16 %v145_v51, %v145_v51 }
  0x8d   :  { %v3289_v23 = vsel %vm5484_vm1, %v151_v14, 0.0 }
  0x8e   :  { %v137_v15 = vpop.permute.xlu0 %136  ;;  %v131_v8 = vpack.c.bf16 %v129_v52, %v129_v52  ;;  %v199_v46 = vrot.slane %v147_v7, 6 }
  0x8f   :  { %v140_v38 = vsel %vm5485_vm2, %v137_v15, %v139_v12 }
  0x90   :  { %v144_v41 = vmul.f32 %v140_v38, %v3332_v36  ;;  %v186_v38 = vrot.slane %v95_v59, 6 }
  0x92   :  { %v149_v19 = vpop.permute.xlu0 %148  ;;  %v146_v50 = vpack.c.bf16 %v144_v41, %v144_v41 }
  0x93   :  { %v3276_v21 = vsel %vm5484_vm1, %v149_v19, %v151_v14  ;;  %v132_v14 = vpack.c.bf16 %v130_v56, %v130_v56 }
  0x94   :  { %v198_v62 = vrot.slane %v146_v50, 6  ;;  %v170_v63 = vpack.c.bf16 %v3276_v21, %v3276_v21 }
  0x95   :  { %v195_v51 = vrot.slane %v132_v14, 2 }
  0x9d   :  { %v3263_v16 = vpop.permute.xlu1 %507 }
  0x9e   :  { %5526 = vst [vmem:[#allocation5_spill] sm:$0xff] %v3263_v16 }
  0xa1   :  { %v1515_v17 = vpop.permute.xlu1 %1514 }
  0xa2   :  { %v3266_v18 = vsel %vm5486_vm0, 0.0, %v1515_v17 }
  0xa3   :  { %1523 = vrot.lane.b32.xlu1 %v3266_v18, %s3125_s6  ;;  %1537 = vrot.lane.b32.xlu0 %v3266_v18, %s3126_s17  ;;  %v3282_v22 = vpop.permute.xlu0 %245 }
  0xa5   :  { %v1517_v25 = vpop.permute.xlu1 %1516 }
  0xa6   :  { %v3302_v27 = vsel %vm5486_vm0, %v1515_v17, %v1517_v25 }
  0xa7   :  { %73 = vrot.lane.b32.xlu1 %v3273_v20, %s3125_s6  ;;  %158 = vrot.lane.b32.xlu0 %v3276_v21, %s3125_s6  ;;  %v3295_v24 = vpop.permute.xlu0 %449 }
  0xa9   :  { %v1577_v29 = vpop.permute.xlu1 %1576 }
  0xab   :  { %99 = vrot.lane.b32.xlu1 %v3273_v20, %s3126_s17  ;;  %1551 = vrot.lane.b32.xlu0 %v3245_v6, %s3125_s6  ;;  %v1579_v26 = vpop.permute.xlu0 %1578  ;;  %v229_v20 = vsel %vm208_vm4, %v3364_v61, %v198_v62 }
  0xac   :  { %v3309_v28 = vsel %vm5484_vm1, %v1579_v26, 0.0  ;;  %v3320_v30 = vsel %vm5484_vm1, %v1577_v29, %v1579_v26 }
  0xaf   :  { %160 = vrot.lane.b32.xlu1 %v3289_v23, %s3125_s6  ;;  %172 = vrot.lane.b32.xlu0 %v3276_v21, %s3126_s17  ;;  %v206_v21 = vrot.slane %v170_v63, 2 }
  0xb3   :  { %1549 = vrot.lane.b32.xlu1 %v3234_v4, %s3125_s6  ;;  %1564 = vrot.lane.b32.xlu0 %v3234_v4, %s3126_s17 }
  0xb7   :  { %174 = vrot.lane.b32.xlu1 %v3289_v23, %s3126_s17  ;;  %1539 = vrot.lane.b32.xlu0 %v3302_v27, %s3126_s17 }
  0xbb   :  { %1566 = vrot.lane.b32.xlu1 %v3245_v6, %s3126_s17  ;;  %1587 = vrot.lane.b32.xlu0 %v3309_v28, %s3125_s6 }
  0xbf   :  { %1525 = vrot.lane.b32.xlu1 %v3302_v27, %s3125_s6  ;;  %1601 = vrot.lane.b32.xlu0 %v3309_v28, %s3126_s17 }
  0xc3   :  { %1585 = vrot.lane.b32.xlu1 %v3320_v30, %s3125_s6 }
  0xc7   :  { %1599 = vrot.lane.b32.xlu1 %v3320_v30, %s3126_s17 }
  0xf6   :  { %v98_v35 = vpop.permute.xlu0 %97  ;;  %v72_v39 = vpop.permute.xlu1 %71 }
  0xf7   :  { %v79_v53 = vsel %vm75_vm3, 0.0, %v72_v39 }
  0xf8   :  { %v91_v3 = vmul.f32 %v3342_v43, %v79_v53  ;;  %v194_v53 = vrot.slane %v131_v8, 2 }
  0xfa   :  { %v93_v25 = vpack.c.bf16 %v91_v3, %v91_v3 }
 0x115   :  { %v3344_v44 = vpop.permute.xlu1 %1523  ;;  %v3346_v45 = vpop.permute.xlu0 %1537 }
 0x119   :  { %v74_v54 = vpop.permute.xlu1 %73  ;;  %v159_v55 = vpop.permute.xlu0 %158 }
 0x11a   :  { %v76_v57 = vsel %vm75_vm3, %v72_v39, %v74_v54  ;;  %v165_v58 = vsel %vm75_vm3, 0.0, %v159_v55  ;;  %v187_v39 = vrot.slane %v96_v9, 6  ;;  %v171_v54 = vpack.c.bf16 %v3289_v23, %v3289_v23 }
 0x11b   :  { %v166_v60 = vmul.f32 %v165_v58, %v3342_v43  ;;  %v92_v5 = vmul.f32 %v3349_v47, %v76_v57 }
 0x11d   :  { %v168_v10 = vpack.c.bf16 %v166_v60, %v166_v60  ;;  %v100_v11 = vpop.permute.xlu1 %99  ;;  %v1552_v12 = vpop.permute.xlu0 %1551  ;;  %v94_v26 = vpack.c.bf16 %v92_v5, %v92_v5  ;;  %v207_v5 = vrot.slane %v171_v54, 2  ;;  %v55_v54 = vld [vmem:[%s5459_s7] sm:$0xff]  ;;  %s4717_s7 = sld [smem:[#allocation2 + $0xd]] }
 0x11e   :  { %v102_v13 = vsel %vm5485_vm2, %v98_v35, %v100_v11  ;;  %v105_v0 = vsel %vm5485_vm2, %v100_v11, 0.0  ;;  %v3380_v35 = vpack.c.bf16 %v3210_v1, %v3210_v1  ;;  %v211_v1 = vsel %vm208_vm4, %v93_v25, %v186_v38 }
 0x11f   :  { %v202_v15 = vrot.slane %v168_v10, 4  ;;  %v117_v17 = vmul.f32 %v3332_v36, %v102_v13  ;;  %v118_v19 = vmul.f32 %v3339_v42, %v105_v0  ;;  %v214_v52 = vsel %vm208_vm4, %v94_v26, %v187_v39 }
 0x120   :  { %v232_v3 = vsel %vm208_vm4, %v3380_v35, %v199_v46  ;;  %v1535_v0 = vpack.c.bf16 %v3266_v18, %v3266_v18  ;;  %v1530_v25 = vsel %vm75_vm3, 0.0, %v3344_v44 }
 0x121   :  { %v119_v29 = vpack.c.bf16 %v117_v17, %v117_v17  ;;  %v120_v31 = vpack.c.bf16 %v118_v19, %v118_v19  ;;  %v161_v32 = vpop.permute.xlu1 %160  ;;  %v173_v34 = vpop.permute.xlu0 %172  ;;  %v234_v37 = vsel %vm215_vm5, %v229_v20, %v202_v15  ;;  %v1536_v15 = vpack.c.bf16 %v3302_v27, %v3302_v27 }
 0x122   :  { %v162_v40 = vsel %vm75_vm3, %v159_v55, %v161_v32  ;;  %v238_v41 = vsel %vm220_vm6, %v234_v37, %v206_v21  ;;  %v46_v32 = vld [vmem:[%s5453_s1] sm:$0xff]  ;;  %v1531_v46 = vmul.f32 %v1530_v25, %v3342_v43  ;;  %s4677_s1 = sld [smem:[#allocation2 + $0x2e]] }
 0x123   :  { %v190_v48 = vrot.slane %v119_v29, 4  ;;  %v191_v49 = vrot.slane %v120_v31, 4  ;;  %v167_v50 = vmul.f32 %v162_v40, %v3349_v47  ;;  %v1614_v40 = vrot.slane %v1536_v15, 6 }
 0x125   :  { %v169_v56 = vpack.c.bf16 %v167_v50, %v167_v50  ;;  %v1550_v57 = vpop.permute.xlu1 %1549  ;;  %v1565_v58 = vpop.permute.xlu0 %1564  ;;  %v219_v55 = vsel %vm215_vm5, %v214_v52, %v191_v49  ;;  %v217_v59 = vsel %vm215_vm5, %v211_v1, %v190_v48 }
 0x126   :  { %v225_v60 = vsel %vm220_vm6, %v219_v55, %v195_v51  ;;  %v222_v62 = vsel %vm220_vm6, %v217_v59, %v194_v53  ;;  %v1553_v17 = vsel %vm75_vm3, %v1550_v57, %v1552_v12  ;;  %v1556_v29 = vsel %vm75_vm3, 0.0, %v1550_v57 }
 0x127   :  { %v203_v63 = vrot.slane %v169_v56, 4  ;;  %258 = vmatprep.subr.bf16.mxu0 %v225_v60  ;;  %v1558_v37 = vmul.f32 %v1553_v17, %v3349_v47  ;;  %v1557_v49 = vmul.f32 %v1556_v29, %v3342_v43  ;;  %v3429_v53 = vpack.c.bf16 %v46_v32, %v46_v32 }
 0x128   :  { %259 = vmatpush1.bf16.msra.mxu0 %v222_v62  ;;  %v514_v60 = vsel %vm208_vm4, %v3364_v61, 0  ;;  %v1533_v62 = vpack.c.bf16 %v1531_v46, %v1531_v46 }
 0x129   :  { %v175_v7 = vpop.permute.xlu1 %174  ;;  %v1540_v23 = vpop.permute.xlu0 %1539  ;;  %v236_v8 = vsel %vm215_vm5, %v232_v3, %v203_v63  ;;  %v1560_v55 = vpack.c.bf16 %v1558_v37, %v1558_v37  ;;  %v56_v63 = vpack.c.bf16 %v55_v54, %v55_v54  ;;  %v1563_v3 = vpack.c.bf16 %v3245_v6, %v3245_v6 }
 0x12a   :  { %v176_v9 = vsel %vm5485_vm2, %v173_v34, %v175_v7  ;;  %v179_v10 = vsel %vm5485_vm2, %v175_v7, 0.0  ;;  %v1541_v11 = vsel %vm5485_vm2, %v3346_v45, %v1540_v23  ;;  %v1544_v13 = vsel %vm5485_vm2, %v1540_v23, 0.0 }
 0x12b   :  { %v181_v14 = vmul.f32 %v179_v10, %v3339_v42  ;;  %v241_v19 = vsel %vm220_vm6, %v236_v8, %v207_v5  ;;  %v180_v21 = vmul.f32 %v176_v9, %v3332_v36  ;;  %v1545_v26 = vmul.f32 %v1541_v11, %v3332_v36 }
 0x12c   :  { %v1546_v20 = vmul.f32 %v1544_v13, %v3339_v42  ;;  %260 = vmatprep.subr.bf16.mxu0 %v241_v19  ;;  %v1613_v34 = vrot.slane %v1535_v0, 6  ;;  %v1559_v5 = vpack.c.bf16 %v1557_v49, %v1557_v49  ;;  %v1622_v6 = vrot.slane %v1560_v55, 2 }
 0x12d   :  { %v183_v45 = vpack.c.bf16 %v181_v14, %v181_v14  ;;  %v1567_v18 = vpop.permute.xlu1 %1566  ;;  %261 = vmatpush1.bf16.msra.mxu0 %v238_v41  ;;  %v182_v31 = vpack.c.bf16 %v180_v21, %v180_v21  ;;  %v1598_v41 = vpack.c.bf16 %v3309_v28, %v3309_v28  ;;  %v1547_v50 = vpack.c.bf16 %v1545_v26, %v1545_v26  ;;  %v1588_v1 = vpop.permute.xlu0 %1587 }
 0x12e   :  { %v1568_v27 = vsel %vm5485_vm2, %v1565_v58, %v1567_v18  ;;  %v1571_v12 = vsel %vm5485_vm2, %v1567_v18, 0.0  ;;  %v1548_v51 = vpack.c.bf16 %v1546_v20, %v1546_v20  ;;  %v1597_v58 = vpack.c.bf16 %v3320_v30, %v3320_v30 }
 0x12f   :  { %v1572_v38 = vmul.f32 %v1568_v27, %v3332_v36  ;;  %v1573_v39 = vmul.f32 %v1571_v12, %v3339_v42  ;;  %2887 = vmatprep.subr.msk.bf16.mxu0 %vm208_vm4, %v183_v45  ;;  %v253_v48 = vsel %vm208_vm4, %v182_v31, 0  ;;  %v1617_v7 = vrot.slane %v1547_v50, 4 }
 0x130   :  { %v1618_v30 = vrot.slane %v1548_v51, 4  ;;  %v1637_v15 = vsel %vm208_vm4, %v1533_v62, %v1613_v34  ;;  %v1621_v19 = vrot.slane %v1559_v5, 2  ;;  %v1634_v37 = vrot.slane %v1598_v41, 2 }
 0x131   :  { %v1526_v52 = vpop.permute.xlu1 %1525  ;;  %v1574_v56 = vpack.c.bf16 %v1572_v38, %v1572_v38  ;;  %v1575_v57 = vpack.c.bf16 %v1573_v39, %v1573_v39  ;;  %263 = vmatpush1.bf16.msra.mxu0 %v253_v48  ;;  %v1642_v20 = vsel %vm215_vm5, %v1637_v15, %v1617_v7  ;;  %v1633_v38 = vrot.slane %v1597_v58, 2 }
 0x132   :  { %v1527_v28 = vsel %vm75_vm3, %v3344_v44, %v1526_v52  ;;  %2891 = vmatprep.subr.msk.bf16.mxu0 %vm208_vm4, %v3380_v35  ;;  %v1562_v44 = vpack.c.bf16 %v3234_v4, %v3234_v4  ;;  %v1602_v35 = vpop.permute.xlu0 %1601  ;;  %v1646_v39 = vsel %vm220_vm6, %v1642_v20, %v1621_v19 }
 0x133   :  { %v1532_v59 = vmul.f32 %v1527_v28, %v3349_v47  ;;  %v1625_v9 = vrot.slane %v1574_v56, 6  ;;  %v1626_v10 = vrot.slane %v1575_v57, 6  ;;  %v1606_v17 = vsel %vm5485_vm2, %v1602_v35, 0.0 }
 0x134   :  { %2888 = vmatmul.mubr.msk.bf16.vlgmr.msra.gmra.mrb[0].mxu0 %vm248_vm7, %v3429_v53  ;;  %v1608_v34 = vmul.f32 %v1606_v17, %v3339_v42  ;;  %v1911_v52 = vsel %vm208_vm4, %v1562_v44, 0 }
 0x135   :  { %v1534_v23 = vpack.c.bf16 %v1532_v59, %v1532_v59  ;;  %v1586_v8 = vpop.permute.xlu1 %1585  ;;  %519 = vmatpush1.bf16.msra.mxu0 %v514_v60  ;;  %550 = vmatprep.mubr.bf16.mxu0 %v5462_v2  ;;  %v1656_v29 = vsel %vm208_vm4, %v1563_v3, %v1626_v10  ;;  %v1653_v27 = vsel %vm208_vm4, %v1562_v44, %v1625_v9 }
 0x136   :  { %v1592_v61 = vsel %vm75_vm3, 0.0, %v1586_v8  ;;  %v1589_v11 = vsel %vm75_vm3, %v1586_v8, %v1588_v1  ;;  %v1610_v50 = vpack.c.bf16 %v1608_v34, %v1608_v34 }
 0x137   :  { %v1593_v4 = vmul.f32 %v1592_v61, %v3342_v43  ;;  %v1594_v13 = vmul.f32 %v1589_v11, %v3349_v47  ;;  %v1640_v0 = vsel %vm208_vm4, %v1534_v23, %v1614_v40 }
 0x138   :  { %v1644_v14 = vsel %vm215_vm5, %v1640_v0, %v1618_v30 }
 0x139   :  { %v1595_v21 = vpack.c.bf16 %v1593_v4, %v1593_v4  ;;  %v1596_v25 = vpack.c.bf16 %v1594_v13, %v1594_v13  ;;  %v1649_v45 = vsel %vm220_vm6, %v1644_v14, %v1622_v6  ;;  %v1600_v26 = vpop.permute.xlu1 %1599 }
 0x13a   :  { %1673 = vmatprep.subr.bf16.mxu0 %v1649_v45  ;;  %v1603_v18 = vsel %vm5485_vm2, %v1600_v26, %v1602_v35 }
 0x13b   :  { %v1629_v12 = vrot.slane %v1595_v21, 4  ;;  %v1630_v31 = vrot.slane %v1596_v25, 4  ;;  %v1607_v32 = vmul.f32 %v1603_v18, %v3332_v36 }
 0x13c   :  { %2892 = vmatmul.mubr.msk.bf16.vlgmr.msra.gmra.mrb[4].mxu0 %vm510_vm8, %v56_v63 }
 0x13d   :  { %v1660_v40 = vsel %vm215_vm5, %v1656_v29, %v1630_v31  ;;  %v1658_v46 = vsel %vm215_vm5, %v1653_v27, %v1629_v12  ;;  %1674 = vmatpush1.bf16.msra.mxu0 %v1646_v39  ;;  %1705 = vmatprep.mubr.bf16.mxu0 %v5462_v2  ;;  %v1609_v49 = vpack.c.bf16 %v1607_v32, %v1607_v32 }
 0x13e   :  { %v1665_v48 = vsel %vm220_vm6, %v1660_v40, %v1634_v37  ;;  %v1662_v51 = vsel %vm220_vm6, %v1658_v46, %v1633_v38  ;;  %vm670_vm6 = vcmask 15360  }
 0x13f   :  { %1675 = vmatprep.subr.bf16.mxu0 %v1665_v48  ;;  %v1668_v41 = vsel %vm208_vm4, %v1609_v49, 0 }
 0x141   :  { %1676 = vmatpush1.bf16.msra.mxu0 %v1662_v51 }
 0x142   :  { %2950 = vmatprep.subr.msk.bf16.mxu0 %vm208_vm4, %v1610_v50 }
 0x145   :  { %1678 = vmatpush1.bf16.msra.mxu0 %v1668_v41 }
 0x146   :  { %2954 = vmatprep.subr.msk.bf16.mxu0 %vm208_vm4, %v1563_v3  ;;  %vm641_vm4 = vcmask 1048448  }
 0x148   :  { %2951 = vmatmul.mubr.msk.bf16.vlgmr.msra.gmra.mrb[8].mxu0 %vm248_vm7, %v3429_v53  ;;  %vm672_vm7 = vcmask 23552  }
 0x149   :  { %1916 = vmatpush1.bf16.msra.mxu0 %v1911_v52  ;;  %1947 = vmatprep.mubr.bf16.mxu0 %v5462_v2 }
 0x150   :  { %2955 = vmatmul.mubr.msk.bf16.vlgmr.msra.gmra.mrb[12].mxu0 %vm510_vm8, %v56_v63 }
 0x207   :  { %v292_v1 = vpop.f32.mrb[0].mxu0 }
 0x208   :  { %v293_v54 = vadd.f32 %v292_v1, %v3282_v22  ;;  %v294_v56 = vpop.f32.mrb[1].mxu0 }
 0x209   :  { %v296_v57 = vpop.f32.mrb[2].mxu0  ;;  %v295_v58 = vadd.f32 %v294_v56, %v3282_v22 }
 0x20a   :  { %v3481_v28 = vmax.f32 %v293_v54, 0.0  ;;  %v297_v55 = vpop.f32.mrb[3].mxu0 }
 0x20b   :  { %v3488_v53 = vmax.f32 %v295_v58, 0.0 }
 0x20c   :  { %338 = vrot.lane.b32.xlu0 %v3481_v28, %s3125_s6  ;;  %303 = vrot.lane.b32.xlu1 %v3481_v28, %s3123_s16 }
 0x20f   :  { %v3490_v59 = vpop.f32.mrb[4].mxu0 }
 0x210   :  { %5528 = vst [vmem:[#allocation7_spill] sm:$0xff] %v3490_v59  ;;  %v3492_v60 = vpop.f32.mrb[5].mxu0  ;;  %352 = vrot.lane.b32.xlu0 %v3481_v28, %s3126_s17  ;;  %305 = vrot.lane.b32.xlu1 %v3488_v53, %s3123_s16 }
 0x211   :  { %5529 = vst [vmem:[#allocation8_spill] sm:$0xff] %v3492_v60  ;;  %v556_v62 = vpop.f32.mrb[6].mxu0 }
 0x212   :  { %v557_v63 = vpop.f32.mrb[7].mxu0 }
 0x214   :  { %364 = vrot.lane.b32.xlu0 %v3481_v28, %s3127_s18  ;;  %340 = vrot.lane.b32.xlu1 %v3488_v53, %s3125_s6 }
 0x218   :  { %354 = vrot.lane.b32.xlu1 %v3488_v53, %s3126_s17 }
 0x21b   :  { %v1707_v3 = vpop.f32.mrb[8].mxu0 }
 0x21c   :  { %v1708_v44 = vadd.f32 %v1707_v3, %v3282_v22  ;;  %v1709_v5 = vpop.f32.mrb[9].mxu0  ;;  %366 = vrot.lane.b32.xlu1 %v3488_v53, %s3127_s18 }
 0x21d   :  { %v1711_v7 = vpop.f32.mrb[10].mxu0  ;;  %v1710_v23 = vadd.f32 %v1709_v5, %v3282_v22 }
 0x21e   :  { %v3507_v30 = vmax.f32 %v1708_v44, 0.0  ;;  %v1712_v8 = vpop.f32.mrb[11].mxu0 }
 0x21f   :  { %v3514_v35 = vmax.f32 %v1710_v23, 0.0 }
 0x220   :  { %1767 = vrot.lane.b32.xlu0 %v3507_v30, %s3126_s17  ;;  %1718 = vrot.lane.b32.xlu1 %v3507_v30, %s3123_s16 }
 0x223   :  { %v3516_v9 = vpop.f32.mrb[12].mxu0 }
 0x224   :  { %5530 = vst [vmem:[#allocation9_spill] sm:$0xff] %v3516_v9  ;;  %v3518_v10 = vpop.f32.mrb[13].mxu0  ;;  %1720 = vrot.lane.b32.xlu0 %v3514_v35, %s3123_s16  ;;  %1779 = vrot.lane.b32.xlu1 %v3507_v30, %s3127_s18 }
 0x225   :  { %5531 = vst [vmem:[#allocation10_spill] sm:$0xff] %v3518_v10  ;;  %v1953_v22 = vpop.f32.mrb[14].mxu0 }
 0x226   :  { %v1954_v61 = vpop.f32.mrb[15].mxu0 }
 0x228   :  { %1781 = vrot.lane.b32.xlu0 %v3514_v35, %s3127_s18  ;;  %1753 = vrot.lane.b32.xlu1 %v3507_v30, %s3125_s6 }
 0x22c   :  { %1755 = vrot.lane.b32.xlu0 %v3514_v35, %s3125_s6  ;;  %1769 = vrot.lane.b32.xlu1 %v3514_v35, %s3126_s17 }
 0x27e   :  { %v304_v11 = vpop.permute.xlu1 %303  ;;  %v339_v4 = vpop.permute.xlu0 %338 }
 0x27f   :  { %v3533_v6 = vsel %vm5486_vm0, 0.0, %v304_v11  ;;  %v345_v39 = vsel %vm75_vm3, 0.0, %v339_v4 }
 0x280   :  { %312 = vrot.lane.b32.xlu0 %v3533_v6, %s3125_s6  ;;  %v346_v51 = vmul.f32 %v345_v39, %v3342_v43  ;;  %v324_v58 = vpack.c.bf16 %v3533_v6, %v3533_v6 }
 0x282   :  { %v306_v13 = vpop.permute.xlu1 %305  ;;  %v353_v15 = vpop.permute.xlu0 %352  ;;  %v348_v63 = vpack.c.bf16 %v346_v51, %v346_v51 }
 0x283   :  { %v307_v0 = vsel %vm5486_vm0, %v304_v11, %v306_v13  ;;  %v401_v11 = vrot.slane %v324_v58, 4 }
 0x284   :  { %326 = vrot.lane.b32.xlu0 %v3533_v6, %s3126_s17  ;;  %314 = vrot.lane.b32.xlu1 %v307_v0, %s3125_s6  ;;  %v325_v52 = vpack.c.bf16 %v307_v0, %v307_v0 }
 0x286   :  { %v341_v14 = vpop.permute.xlu1 %340  ;;  %v365_v19 = vpop.permute.xlu0 %364  ;;  %v402_v61 = vrot.slane %v325_v52, 4 }
 0x287   :  { %v342_v48 = vsel %vm75_vm3, %v339_v4, %v341_v14 }
 0x288   :  { %328 = vrot.lane.b32.xlu1 %v307_v0, %s3126_s17  ;;  %v347_v1 = vmul.f32 %v342_v48, %v3349_v47 }
 0x28a   :  { %v355_v17 = vpop.permute.xlu1 %354  ;;  %v349_v5 = vpack.c.bf16 %v347_v1, %v347_v1 }
 0x28b   :  { %v359_v49 = vsel %vm5485_vm2, %v355_v17, 0.0  ;;  %v356_v54 = vsel %vm5485_vm2, %v353_v15, %v355_v17  ;;  %v405_v15 = vrot.slane %v348_v63, 4 }
 0x28c   :  { %v361_v56 = vmul.f32 %v359_v49, %v3339_v42  ;;  %v360_v3 = vmul.f32 %v356_v54, %v3332_v36 }
 0x28e   :  { %v367_v21 = vpop.permute.xlu1 %366  ;;  %v363_v7 = vpack.c.bf16 %v361_v56, %v361_v56  ;;  %v362_v17 = vpack.c.bf16 %v360_v3, %v360_v3 }
 0x28f   :  { %v3543_v25 = vsel %vm5484_vm1, %v367_v21, 0.0  ;;  %v3546_v45 = vsel %vm5484_vm1, %v365_v19, %v367_v21  ;;  %v406_v21 = vrot.slane %v349_v5, 4 }
 0x290   :  { %375 = vrot.lane.b32.xlu1 %v3543_v25, %s3125_s6  ;;  %373 = vrot.lane.b32.xlu0 %v3546_v45, %s3125_s6  ;;  %v409_v48 = vrot.slane %v362_v17, 4  ;;  %v386_v49 = vpack.c.bf16 %v3543_v25, %v3543_v25 }
 0x292   :  { %v3552_v26 = vpop.permute.xlu0 %1767  ;;  %v1719_v20 = vpop.permute.xlu1 %1718 }
 0x293   :  { %v3559_v29 = vsel %vm5486_vm0, 0.0, %v1719_v20 }
 0x294   :  { %389 = vrot.lane.b32.xlu1 %v3543_v25, %s3126_s17  ;;  %387 = vrot.lane.b32.xlu0 %v3546_v45, %s3126_s17 }
 0x296   :  { %v1721_v18 = vpop.permute.xlu0 %1720  ;;  %v1780_v31 = vpop.permute.xlu1 %1779 }
 0x297   :  { %v3566_v27 = vsel %vm5486_vm0, %v1719_v20, %v1721_v18  ;;  %v410_v20 = vrot.slane %v363_v7, 4 }
 0x298   :  { %1741 = vrot.lane.b32.xlu0 %v3559_v29, %s3126_s17  ;;  %1727 = vrot.lane.b32.xlu1 %v3559_v29, %s3125_s6 }
 0x29a   :  { %v1782_v12 = vpop.permute.xlu0 %1781  ;;  %v3586_v37 = vpop.permute.xlu1 %1753 }
 0x29b   :  { %v3573_v32 = vsel %vm5484_vm1, %v1782_v12, 0.0  ;;  %v3576_v34 = vsel %vm5484_vm1, %v1780_v31, %v1782_v12 }
 0x29c   :  { %1743 = vrot.lane.b32.xlu1 %v3566_v27, %s3126_s17  ;;  %1729 = vrot.lane.b32.xlu0 %v3566_v27, %s3125_s6 }
 0x29e   :  { %v3588_v38 = vpop.permute.xlu0 %1755  ;;  %v3591_v40 = vpop.permute.xlu1 %1769 }
 0x2a0   :  { %1790 = vrot.lane.b32.xlu0 %v3573_v32, %s3125_s6  ;;  %1788 = vrot.lane.b32.xlu1 %v3576_v34, %s3125_s6 }
 0x2a4   :  { %1804 = vrot.lane.b32.xlu0 %v3573_v32, %s3126_s17  ;;  %1802 = vrot.lane.b32.xlu1 %v3576_v34, %s3126_s17 }
 0x2f2   :  { %v313_v46 = vpop.permute.xlu0 %312 }
 0x2f3   :  { %v319_v50 = vsel %vm75_vm3, 0.0, %v313_v46 }
 0x2f4   :  { %v320_v41 = vmul.f32 %v319_v50, %v3342_v43  ;;  %v385_v50 = vpack.c.bf16 %v3546_v45, %v3546_v45  ;;  %v414_v45 = vrot.slane %v386_v49, 4 }
 0x2f6   :  { %v315_v57 = vpop.permute.xlu1 %314  ;;  %v322_v44 = vpack.c.bf16 %v320_v41, %v320_v41  ;;  %v327_v23 = vpop.permute.xlu0 %326  ;;  %v413_v58 = vrot.slane %v385_v50, 4 }
 0x2f7   :  { %v316_v55 = vsel %vm75_vm3, %v313_v46, %v315_v57  ;;  %v351_v46 = vpack.c.bf16 %v3488_v53, %v3488_v53  ;;  %v350_v53 = vpack.c.bf16 %v3481_v28, %v3481_v28 }
 0x2f8   :  { %v321_v62 = vmul.f32 %v316_v55, %v3349_v47  ;;  %v417_v19 = vsel %vm215_vm5, %v322_v44, %v401_v11 }
 0x2f9   :  { %v437_v52 = vsel %vm215_vm5, %v351_v46, %v410_v20  ;;  %v433_v57 = vsel %vm215_vm5, %v350_v53, %v409_v48  ;;  %v1739_v20 = vpack.c.bf16 %v3559_v29, %v3559_v29 }
 0x2fa   :  { %v323_v8 = vpack.c.bf16 %v321_v62, %v321_v62  ;;  %v329_v22 = vpop.permute.xlu1 %328 }
 0x2fb   :  { %v330_v4 = vsel %vm5485_vm2, %v327_v23, %v329_v22  ;;  %v333_v13 = vsel %vm5485_vm2, %v329_v22, 0.0  ;;  %v1757_v22 = vsel %vm75_vm3, %v3586_v37, %v3588_v38 }
 0x2fc   :  { %v334_v6 = vmul.f32 %v330_v4, %v3332_v36  ;;  %v335_v0 = vmul.f32 %v333_v13, %v3339_v42  ;;  %v421_v14 = vsel %vm215_vm5, %v323_v8, %v402_v61  ;;  %v1762_v38 = vmul.f32 %v1757_v22, %v3349_v47 }
 0x2fd   :  { %462 = vmatprep.subr.bf16.mxu1 %v421_v14 }
 0x2fe   :  { %v336_v18 = vpack.c.bf16 %v334_v6, %v334_v6  ;;  %v337_v12 = vpack.c.bf16 %v335_v0, %v335_v0  ;;  %463 = vmatpush1.bf16.msra.mxu1 %v417_v19  ;;  %v48_v6 = vld [vmem:[%s5455_s3] sm:$0xff]  ;;  %v1774_v0 = vsel %vm5485_vm2, %v3591_v40, 0.0  ;;  %v1764_v50 = vpack.c.bf16 %v1762_v38, %v1762_v38  ;;  %s5515_s3 = smov 96  }
 0x300   :  { %v429_v31 = vsel %vm215_vm5, %v337_v12, %v406_v21  ;;  %v425_v39 = vsel %vm215_vm5, %v336_v18, %v405_v15  ;;  %v1760_v15 = vsel %vm75_vm3, 0.0, %v3586_v37  ;;  %v3649_v21 = vpack.c.bf16 %v48_v6, %v48_v6 }
 0x301   :  { %464 = vmatprep.subr.bf16.mxu1 %v429_v31  ;;  %v1740_v18 = vpack.c.bf16 %v3566_v27, %v3566_v27  ;;  %v1771_v37 = vsel %vm5485_vm2, %v3552_v26, %v3591_v40  ;;  %v1776_v12 = vmul.f32 %v1774_v0, %v3339_v42  ;;  %v1761_v46 = vmul.f32 %v1760_v15, %v3342_v43 }
 0x302   :  { %v374_v51 = vpop.permute.xlu0 %373  ;;  %465 = vmatpush1.bf16.msra.mxu1 %v425_v39  ;;  %v376_v41 = vpop.permute.xlu1 %375  ;;  %v1775_v26 = vmul.f32 %v1771_v37, %v3332_v36 }
 0x303   :  { %v380_v1 = vsel %vm75_vm3, 0.0, %v374_v51  ;;  %v377_v54 = vsel %vm75_vm3, %v374_v51, %v376_v41  ;;  %466 = vmatprep.subr.bf16.mxu1 %v437_v52  ;;  %v1817_v52 = vrot.slane %v1740_v18, 4 }
 0x304   :  { %v381_v56 = vmul.f32 %v380_v1, %v3342_v43  ;;  %v382_v25 = vmul.f32 %v377_v54, %v3349_v47  ;;  %v1778_v1 = vpack.c.bf16 %v1776_v12, %v1776_v12 }
 0x306   :  { %v383_v55 = vpack.c.bf16 %v381_v56, %v381_v56  ;;  %v384_v62 = vpack.c.bf16 %v382_v25, %v382_v25  ;;  %v388_v63 = vpop.permute.xlu0 %387  ;;  %v390_v3 = vpop.permute.xlu1 %389  ;;  %467 = vmatpush1.bf16.msra.mxu1 %v433_v57  ;;  %v1816_v57 = vrot.slane %v1739_v20, 4 }
 0x307   :  { %v391_v44 = vsel %vm5485_vm2, %v388_v63, %v390_v3  ;;  %v394_v5 = vsel %vm5485_vm2, %v390_v3, 0.0  ;;  %v1777_v63 = vpack.c.bf16 %v1775_v26, %v1775_v26 }
 0x308   :  { %v396_v7 = vmul.f32 %v394_v5, %v3339_v42  ;;  %v445_v28 = vsel %vm215_vm5, %v384_v62, %v414_v45  ;;  %v441_v23 = vsel %vm215_vm5, %v383_v55, %v413_v58  ;;  %v395_v8 = vmul.f32 %v391_v44, %v3332_v36 }
 0x309   :  { %468 = vmatprep.subr.bf16.mxu1 %v445_v28  ;;  %v1763_v45 = vpack.c.bf16 %v1761_v46, %v1761_v46  ;;  %v1821_v55 = vrot.slane %v1764_v50, 4  ;;  %v1825_v5 = vrot.slane %v1778_v1, 4 }
 0x30a   :  { %v398_v61 = vpack.c.bf16 %v396_v7, %v396_v7  ;;  %v1742_v11 = vpop.permute.xlu0 %1741  ;;  %v1728_v4 = vpop.permute.xlu1 %1727  ;;  %469 = vmatpush1.bf16.msra.mxu1 %v441_v23  ;;  %v397_v13 = vpack.c.bf16 %v395_v8, %v395_v8 }
 0x30b   :  { %v1734_v14 = vsel %vm75_vm3, 0.0, %v1728_v4  ;;  %v1820_v8 = vrot.slane %v1763_v45, 4 }
 0x30c   :  { %2889 = vmatprep.subr.msk.bf16.mxu1 %vm215_vm5, %v398_v61  ;;  %v457_v17 = vsel %vm215_vm5, %v397_v13, 0  ;;  %v1735_v19 = vmul.f32 %v1734_v14, %v3342_v43  ;;  %v1824_v13 = vrot.slane %v1777_v63, 4 }
 0x30e   :  { %v1730_v31 = vpop.permute.xlu0 %1729  ;;  %v1744_v39 = vpop.permute.xlu1 %1743  ;;  %471 = vmatpush1.bf16.msra.mxu1 %v457_v17  ;;  %v1737_v40 = vpack.c.bf16 %v1735_v19, %v1735_v19  ;;  %v1800_v19 = vpack.c.bf16 %v3576_v34, %v3576_v34 }
 0x30f   :  { %v1731_v48 = vsel %vm75_vm3, %v1728_v4, %v1730_v31  ;;  %v1745_v49 = vsel %vm5485_vm2, %v1742_v11, %v1744_v39  ;;  %v1748_v29 = vsel %vm5485_vm2, %v1744_v39, 0.0  ;;  %v1801_v11 = vpack.c.bf16 %v3573_v32, %v3573_v32 }
 0x310   :  { %v1736_v27 = vmul.f32 %v1731_v48, %v3349_v47  ;;  %v1750_v51 = vmul.f32 %v1748_v29, %v3339_v42  ;;  %v1749_v41 = vmul.f32 %v1745_v49, %v3332_v36  ;;  %v1832_v44 = vsel %vm215_vm5, %v1737_v40, %v1816_v57 }
 0x311   :  { %2890 = vmatmul.mubr.msk.bf16.vlgmr.msra.gmra.mrb[0].mxu1 %vm452_vm9, %v3649_v21  ;;  %v1766_v4 = vpack.c.bf16 %v3514_v35, %v3514_v35  ;;  %v1765_v35 = vpack.c.bf16 %v3507_v30, %v3507_v30  ;;  %v1829_v32 = vrot.slane %v1801_v11, 4  ;;  %v1828_v39 = vrot.slane %v1800_v19, 4 }
 0x312   :  { %v1738_v54 = vpack.c.bf16 %v1736_v27, %v1736_v27  ;;  %v1752_v53 = vpack.c.bf16 %v1750_v51, %v1750_v51  ;;  %v1791_v56 = vpop.permute.xlu0 %1790  ;;  %v1789_v25 = vpop.permute.xlu1 %1788  ;;  %1900 = vmatprep.mubr.bf16.mxu1 %v5462_v2  ;;  %v1751_v3 = vpack.c.bf16 %v1749_v41, %v1749_v41 }
 0x313   :  { %v1792_v58 = vsel %vm75_vm3, %v1789_v25, %v1791_v56  ;;  %v1795_v7 = vsel %vm75_vm3, 0.0, %v1789_v25  ;;  %v1852_v17 = vsel %vm215_vm5, %v1766_v4, %v1825_v5  ;;  %v1848_v12 = vsel %vm215_vm5, %v1765_v35, %v1824_v13 }
 0x314   :  { %v1836_v62 = vsel %vm215_vm5, %v1738_v54, %v1817_v52  ;;  %v1797_v28 = vmul.f32 %v1792_v58, %v3349_v47  ;;  %v1844_v23 = vsel %vm215_vm5, %v1752_v53, %v1821_v55  ;;  %v1796_v6 = vmul.f32 %v1795_v7, %v3342_v43 }
 0x315   :  { %1868 = vmatprep.subr.bf16.mxu1 %v1836_v62  ;;  %v1840_v0 = vsel %vm215_vm5, %v1751_v3, %v1820_v8 }
 0x316   :  { %1869 = vmatpush1.bf16.msra.mxu1 %v1832_v44  ;;  %v1805_v22 = vpop.permute.xlu0 %1804  ;;  %v1803_v61 = vpop.permute.xlu1 %1802  ;;  %v1799_v14 = vpack.c.bf16 %v1797_v28, %v1797_v28  ;;  %v1798_v20 = vpack.c.bf16 %v1796_v6, %v1796_v6 }
 0x317   :  { %1870 = vmatprep.subr.bf16.mxu1 %v1844_v23  ;;  %v1809_v15 = vsel %vm5485_vm2, %v1805_v22, 0.0  ;;  %v1806_v38 = vsel %vm5485_vm2, %v1803_v61, %v1805_v22  ;;  %vm693_vm2 = vcmask 113664  }
 0x318   :  { %v1811_v18 = vmul.f32 %v1809_v15, %v3339_v42  ;;  %v1810_v37 = vmul.f32 %v1806_v38, %v3332_v36  ;;  %v1860_v31 = vsel %vm215_vm5, %v1799_v14, %v1829_v32  ;;  %v1856_v34 = vsel %vm215_vm5, %v1798_v20, %v1828_v39 }
 0x31a   :  { %1871 = vmatpush1.bf16.msra.mxu1 %v1840_v0  ;;  %v1813_v46 = vpack.c.bf16 %v1811_v18, %v1811_v18  ;;  %v1812_v48 = vpack.c.bf16 %v1810_v37, %v1810_v37 }
 0x31b   :  { %1872 = vmatprep.subr.bf16.mxu1 %v1852_v17 }
 0x31c   :  { %v1863_v30 = vsel %vm215_vm5, %v1812_v48, 0 }
 0x31e   :  { %1873 = vmatpush1.bf16.msra.mxu1 %v1848_v12 }
 0x31f   :  { %1874 = vmatprep.subr.bf16.mxu1 %v1860_v31 }
 0x322   :  { %1875 = vmatpush1.bf16.msra.mxu1 %v1856_v34 }
 0x323   :  { %2952 = vmatprep.subr.msk.bf16.mxu1 %vm215_vm5, %v1813_v46  ;;  %vm829_vm5 = vcmask 1040384  }
 0x326   :  { %1877 = vmatpush1.bf16.msra.mxu1 %v1863_v30 }
 0x329   :  { %2953 = vmatmul.mubr.msk.bf16.vlgmr.msra.gmra.mrb[4].mxu1 %vm452_vm9, %v3649_v21  ;;  %vm5508_vm9 = vcmask 39936  }
 0x3e4   :  { %v496_v49 = vpop.f32.mrb[0].mxu1 }
 0x3e5   :  { %v497_v29 = vadd.f32 %v496_v49, %v3295_v24  ;;  %v498_v50 = vpop.f32.mrb[1].mxu1 }
 0x3e6   :  { %v500_v27 = vpop.f32.mrb[2].mxu1  ;;  %v499_v21 = vadd.f32 %v498_v50, %v3295_v24 }
 0x3e7   :  { %v3699_v51 = vmax.f32 %v497_v29, 0.0  ;;  %v501_v26 = vpop.f32.mrb[3].mxu1 }
 0x3e8   :  { %v3714_v40 = vmax.f32 %v499_v21, 0.0 }
 0x3e9   :  { %5532 = vst [vmem:[#allocation11_spill] sm:$0xff] %v3699_v51  ;;  %703 = vrot.lane.b32.xlu1 %v3699_v51, %s5515_s3  ;;  %560 = vrot.lane.b32.xlu0 %v3699_v51, %s3127_s18  ;;  %v614_v53 = vsel %vm5486_vm0, %v3699_v51, -inf  ;;  %v622_v56 = vsel %vm621_vm10, %v3699_v51, -inf  ;;  %v618_v25 = vsel %vm617_vm11, %v3699_v51, -inf  ;;  %v626_v57 = vsel %vm625_vm12, %v3699_v51, -inf }
 0x3ea   :  { %5533 = vst [vmem:[#allocation12_spill] sm:$0xff] %v3714_v40  ;;  %v630_v45 = vsel %vm629_vm13, %v3699_v51, -inf  ;;  %v634_v58 = vsel %vm633_vm14, %v3699_v51, -inf  ;;  %v638_v55 = vsel %vm637_vm15, %v3699_v51, -inf  ;;  %v642_v62 = vsel %vm641_vm4, %v3699_v51, -inf }
 0x3eb   :  { %v697_v63 = vsel %vm5486_vm0, %v3699_v51, 0.0  ;;  %v645_v3 = vsel %vm5486_vm0, %v3714_v40, -inf  ;;  %v803_v44 = vrot.slane %v3714_v40, 4  ;;  %v651_v5 = vsel %vm621_vm10, %v3714_v40, -inf }
 0x3ec   :  { %v648_v28 = vsel %vm617_vm11, %v3714_v40, -inf  ;;  %v657_v23 = vsel %vm629_vm13, %v3714_v40, -inf  ;;  %v654_v22 = vsel %vm625_vm12, %v3714_v40, -inf  ;;  %v663_v11 = vsel %vm637_vm15, %v3714_v40, -inf }
 0x3ed   :  { %721 = vrot.lane.b32.xlu1 %v3699_v51, %s3129_s30  ;;  %709 = vrot.lane.b32.xlu0 %v3699_v51, %s3130_s10  ;;  %v816_v7 = vadd.f32 %v803_v44, %v3714_v40  ;;  %v804_v61 = vmax.f32 %v3714_v40, %v803_v44  ;;  %v660_v13 = vsel %vm633_vm14, %v3714_v40, -inf  ;;  %v797_v14 = vrot.slane %v3699_v51, 4 }
 0x3ee   :  { %v666_v15 = vsel %vm641_vm4, %v3714_v40, -inf  ;;  %v739_v35 = vsel %vm5486_vm0, %v3714_v40, 0.0 }
 0x3ef   :  { %v817_v8 = vrot.slane %v816_v7, 2  ;;  %v805_v6 = vrot.slane %v804_v61, 2  ;;  %v810_v19 = vadd.f32 %v797_v14, %v3699_v51  ;;  %v798_v12 = vmax.f32 %v3699_v51, %v797_v14 }
 0x3f1   :  { %733 = vrot.lane.b32.xlu1 %v3699_v51, %s3123_s16  ;;  %715 = vrot.lane.b32.xlu0 %v3699_v51, %s5517_s11  ;;  %v818_v4 = vadd.f32 %v817_v8, %v816_v7  ;;  %v806_v38 = vmax.f32 %v804_v61, %v805_v6  ;;  %v811_v18 = vrot.slane %v810_v19, 2  ;;  %v799_v46 = vrot.slane %v798_v12, 2 }
 0x3f3   :  { %v819_v0 = vrot.slane %v818_v4, 1  ;;  %v807_v32 = vrot.slane %v806_v38, 1  ;;  %v812_v39 = vadd.f32 %v811_v18, %v810_v19  ;;  %v800_v34 = vmax.f32 %v798_v12, %v799_v46 }
 0x3f5   :  { %565 = vrot.lane.b32.xlu1 %v3714_v40, %s3127_s18  ;;  %727 = vrot.lane.b32.xlu0 %v3699_v51, %s5521_s12  ;;  %v820_v17 = vadd.f32 %v819_v0, %v818_v4  ;;  %v808_v37 = vmax.f32 %v806_v38, %v807_v32  ;;  %v813_v48 = vrot.slane %v812_v39, 1  ;;  %v801_v49 = vrot.slane %v800_v34, 1 }
 0x3f7   :  { %v822_v20 = vmul.f32 0.125, %v820_v17  ;;  %v814_v30 = vadd.f32 %v813_v48, %v812_v39  ;;  %v802_v27 = vmax.f32 %v800_v34, %v801_v49 }
 0x3f9   :  { %v3779_v31 = vsel %vm829_vm5, %v808_v37, %v822_v20  ;;  %v821_v50 = vmul.f32 0.125, %v814_v30 }
 0x3fa   :  { %5534 = vst [vmem:[#allocation13_spill] sm:$0xff] %v3779_v31 }
 0x3fb   :  { %v3794_v21 = vsel %vm829_vm5, %v802_v27, %v821_v50 }
 0x3fc   :  { %v3720_v41 = vpop.f32.mrb[4].mxu1  ;;  %5536 = vst [vmem:[#allocation15_spill] sm:$0xff] %v3794_v21 }
 0x3fd   :  { %v3722_v52 = vpop.f32.mrb[5].mxu1  ;;  %v1903_v29 = vadd.f32 %v3720_v41, %v3295_v24 }
 0x3fe   :  { %v1906_v1 = vpop.f32.mrb[6].mxu1 }
 0x3ff   :  { %v1907_v54 = vpop.f32.mrb[7].mxu1  ;;  %v3791_v26 = vmax.f32 %v1903_v29, 0.0  ;;  %v1905_v1 = vadd.f32 %v3722_v52, %v3295_v24 }
 0x401   :  { %5535 = vst [vmem:[#allocation14_spill] sm:$0xff] %v3791_v26  ;;  %v3806_v41 = vmax.f32 %v1905_v1, 0.0  ;;  %v2014_v24 = vsel %vm617_vm11, %v3791_v26, -inf  ;;  %v2023_v52 = vsel %vm629_vm13, %v3791_v26, -inf  ;;  %v2029_v54 = vsel %vm637_vm15, %v3791_v26, -inf }
 0x402   :  { %v2032_v44 = vsel %vm641_vm4, %v3791_v26, -inf }
 0x403   :  { %5537 = vst [vmem:[#allocation16_spill] sm:$0xff] %v3806_v41  ;;  %v2035_v17 = vsel %vm5486_vm0, %v3806_v41, -inf  ;;  %v2038_v18 = vsel %vm617_vm11, %v3806_v41, -inf  ;;  %v2047_v37 = vsel %vm629_vm13, %v3806_v41, -inf  ;;  %v2044_v12 = vsel %vm625_vm12, %v3806_v41, -inf }
 0x404   :  { %v2053_v48 = vsel %vm637_vm15, %v3806_v41, -inf  ;;  %v2050_v34 = vsel %vm633_vm14, %v3806_v41, -inf  ;;  %v2116_v49 = vsel %vm5486_vm0, %v3806_v41, 0.0  ;;  %v2056_v50 = vsel %vm641_vm4, %v3806_v41, -inf }
 0x405   :  { %vm679_vm11 = vcmask 56320   ;;  %vm683_vm13 = vcmask 72704   ;;  %vm687_vm15 = vcmask 89088   ;;  %vm689_vm4 = vcmask 97280  }
 0x414   :  { %615 = vmax.xlane.f32.xlu0 %v614_v53  ;;  %v2074_v53 = vsel %vm5486_vm0, %v3791_v26, 0.0 }
 0x418   :  { %623 = vmax.xlane.f32.xlu0 %v622_v56 }
 0x419   :  { %619 = vmax.xlane.f32.xlu1 %v618_v25 }
 0x41c   :  { %627 = vmax.xlane.f32.xlu0 %v626_v57  ;;  %v2011_v57 = vsel %vm5486_vm0, %v3791_v26, -inf }
 0x41d   :  { %631 = vmax.xlane.f32.xlu1 %v630_v45  ;;  %v2017_v45 = vsel %vm621_vm10, %v3791_v26, -inf }
 0x420   :  { %635 = vmax.xlane.f32.xlu0 %v634_v58 }
 0x421   :  { %639 = vmax.xlane.f32.xlu1 %v638_v55  ;;  %v2020_v55 = vsel %vm625_vm12, %v3791_v26, -inf  ;;  %vm681_vm12 = vcmask 64512  }
 0x424   :  { %643 = vmax.xlane.f32.xlu0 %v642_v62 }
 0x425   :  { %698 = vadd.xlane.f32.xlu1 %v697_v63  ;;  %v2026_v63 = vsel %vm633_vm14, %v3791_v26, -inf  ;;  %vm685_vm14 = vcmask 80896  }
 0x436   :  { %757 = vrot.lane.b32.xlu1 %v3714_v40, %s5517_s11 }
 0x43a   :  { %769 = vrot.lane.b32.xlu1 %v3714_v40, %s5521_s12  ;;  %745 = vrot.lane.b32.xlu0 %v3714_v40, %s5515_s3 }
 0x43e   :  { %751 = vrot.lane.b32.xlu0 %v3714_v40, %s3130_s10 }
 0x442   :  { %763 = vrot.lane.b32.xlu0 %v3714_v40, %s3129_s30 }
 0x446   :  { %775 = vrot.lane.b32.xlu0 %v3714_v40, %s3123_s16 }
 0x45b   :  { %v3832_v56 = vpop.permute.xlu0 %560 }
 0x45e   :  { %646 = vmax.xlane.f32.xlu1 %v645_v3 }
 0x45f   :  { %v710_v25 = vpop.permute.xlu0 %709 }
 0x460   :  { %v712_v27 = vsel %vm5486_vm0, %v710_v25, 0.0 }
 0x462   :  { %652 = vmax.xlane.f32.xlu1 %v651_v5  ;;  %v704_v5 = vpop.permute.xlu1 %703 }
 0x463   :  { %v3838_v58 = vpop.permute.xlu0 %715 }
 0x465   :  { %649 = vmax.xlane.f32.xlu0 %v648_v28 }
 0x466   :  { %658 = vmax.xlane.f32.xlu1 %v657_v23  ;;  %v722_v28 = vpop.permute.xlu1 %721 }
 0x467   :  { %v3844_v62 = vpop.permute.xlu0 %727 }
 0x469   :  { %655 = vmax.xlane.f32.xlu0 %v654_v22 }
 0x46a   :  { %664 = vmax.xlane.f32.xlu1 %v663_v11  ;;  %v734_v8 = vpop.permute.xlu1 %733 }
 0x46d   :  { %661 = vmax.xlane.f32.xlu0 %v660_v13 }
 0x46e   :  { %v3868_v61 = vpop.permute.xlu1 %565 }
 0x46f   :  { %v742_v10 = vsel %vm5486_vm0, %v3868_v61, 0.0 }
 0x471   :  { %667 = vmax.xlane.f32.xlu0 %v666_v15 }
 0x475   :  { %740 = vadd.xlane.f32.xlu0 %v739_v35  ;;  %v2041_v35 = vsel %vm621_vm10, %v3806_v41, -inf  ;;  %vm5487_vm10 = vcmask 48128  }
 0x47b   :  { %1123 = vrot.lane.b32.xlu1 %v3779_v31, %s3123_s16 }
 0x47f   :  { %1204 = vrot.lane.b32.xlu1 %v3779_v31, %s3125_s6 }
 0x483   :  { %1250 = vrot.lane.b32.xlu1 %v3779_v31, %s3126_s17 }
 0x487   :  { %1278 = vrot.lane.b32.xlu1 %v3779_v31, %s3127_s18 }
 0x48b   :  { %2080 = vrot.lane.b32.xlu1 %v3791_v26, %s5515_s3  ;;  %1121 = vrot.lane.b32.xlu0 %v3794_v21, %s3123_s16 }
 0x48f   :  { %2098 = vrot.lane.b32.xlu1 %v3791_v26, %s3129_s30  ;;  %1202 = vrot.lane.b32.xlu0 %v3794_v21, %s3125_s6 }
 0x493   :  { %1962 = vrot.lane.b32.xlu1 %v3806_v41, %s3127_s18  ;;  %1248 = vrot.lane.b32.xlu0 %v3794_v21, %s3126_s17 }
 0x497   :  { %1276 = vrot.lane.b32.xlu0 %v3794_v21, %s3127_s18 }
 0x49b   :  { %1957 = vrot.lane.b32.xlu0 %v3791_v26, %s3127_s18 }
 0x49f   :  { %2086 = vrot.lane.b32.xlu0 %v3791_v26, %s3130_s10 }
 0x4a1   :  { %v3850_v3 = vpop.xlane.xlu0 %615 }
 0x4a3   :  { %2092 = vrot.lane.b32.xlu0 %v3791_v26, %s5517_s11 }
 0x4a5   :  { %v3856_v7 = vpop.xlane.xlu0 %623 }
 0x4a6   :  { %v3872_v4 = vpop.xlane.xlu1 %619 }
 0x4a7   :  { %2104 = vrot.lane.b32.xlu0 %v3791_v26, %s5521_s12 }
 0x4a9   :  { %v3862_v23 = vpop.xlane.xlu0 %627 }
 0x4aa   :  { %v3874_v6 = vpop.xlane.xlu1 %631 }
 0x4ab   :  { %2110 = vrot.lane.b32.xlu0 %v3791_v26, %s3123_s16 }
 0x4ad   :  { %v3864_v22 = vpop.xlane.xlu0 %635 }
 0x4ae   :  { %v3878_v14 = vpop.xlane.xlu1 %639 }
 0x4b1   :  { %v3870_v11 = vpop.xlane.xlu0 %643 }
 0x4b2   :  { %v3882_v38 = vpop.xlane.xlu1 %698 }
 0x4b5   :  { %v746_v13 = vpop.permute.xlu0 %745 }
 0x4b6   :  { %v758_v32 = vpop.permute.xlu1 %757 }
 0x4b7   :  { %2015 = vmax.xlane.f32.xlu1 %v2014_v24  ;;  %v700_v24 = vsel %vm5486_vm0, %v3832_v56, 0.0 }
 0x4b9   :  { %v3876_v0 = vpop.permute.xlu0 %751 }
 0x4ba   :  { %v770_v39 = vpop.permute.xlu1 %769 }
 0x4bb   :  { %2024 = vmax.xlane.f32.xlu1 %v2023_v52 }
 0x4bd   :  { %v3880_v15 = vpop.permute.xlu0 %763 }
 0x4be   :  { %v766_v59 = vsel %vm5486_vm0, %v3880_v15, 0.0 }
 0x4bf   :  { %2030 = vmax.xlane.f32.xlu1 %v2029_v54  ;;  %v724_v54 = vsel %vm5486_vm0, %v722_v28, 0.0 }
 0x4c1   :  { %v3886_v19 = vpop.permute.xlu0 %775 }
 0x4c2   :  { %v778_v33 = vsel %vm5486_vm0, %v3886_v19, 0.0 }
 0x4c3   :  { %2075 = vadd.xlane.f32.xlu1 %v2074_v53  ;;  %v706_v53 = vsel %vm5486_vm0, %v704_v5, 0.0  ;;  %v730_v5 = vsel %vm5486_vm0, %v3844_v62, 0.0 }
 0x4ca   :  { %2012 = vmax.xlane.f32.xlu0 %v2011_v57 }
 0x4ce   :  { %2018 = vmax.xlane.f32.xlu0 %v2017_v45  ;;  %v748_v45 = vsel %vm5486_vm0, %v746_v13, 0.0  ;;  %v772_v13 = vsel %vm5486_vm0, %v770_v39, 0.0 }
 0x4d2   :  { %2021 = vmax.xlane.f32.xlu0 %v2020_v55  ;;  %v718_v55 = vsel %vm5486_vm0, %v3838_v58, 0.0 }
 0x4d4   :  { %2122 = vrot.lane.b32.xlu1 %v3806_v41, %s5515_s3 }
 0x4d6   :  { %2027 = vmax.xlane.f32.xlu0 %v2026_v63  ;;  %v760_v63 = vsel %vm5486_vm0, %v758_v32, 0.0 }
 0x4d8   :  { %2128 = vrot.lane.b32.xlu1 %v3806_v41, %s3130_s10 }
 0x4da   :  { %2033 = vmax.xlane.f32.xlu0 %v2032_v44 }
 0x4dc   :  { %2140 = vrot.lane.b32.xlu1 %v3806_v41, %s3129_s30 }
 0x4e0   :  { %2146 = vrot.lane.b32.xlu1 %v3806_v41, %s5521_s12  ;;  %s4882_s12 = sld [smem:[#allocation2 + $0x25]] }
 0x4e4   :  { %2152 = vrot.lane.b32.xlu1 %v3806_v41, %s3123_s16 }
 0x4eb   :  { %v3904_v30 = vpop.xlane.xlu1 %646 }
 0x4ef   :  { %v3913_v1 = vpop.xlane.xlu1 %652 }
 0x4f0   :  { %2134 = vrot.lane.b32.xlu0 %v3806_v41, %s5517_s11 }
 0x4f2   :  { %v3890_v20 = vpop.xlane.xlu0 %649 }
 0x4f3   :  { %v3921_v57 = vpop.xlane.xlu1 %658 }
 0x4f6   :  { %v3898_v46 = vpop.xlane.xlu0 %655 }
 0x4f7   :  { %v3929_v44 = vpop.xlane.xlu1 %664 }
 0x4fa   :  { %v3908_v29 = vpop.xlane.xlu0 %661 }
 0x4fe   :  { %v3917_v52 = vpop.xlane.xlu0 %667 }
 0x502   :  { %v3924_v25 = vpop.xlane.xlu0 %740 }
 0x503   :  { %5538 = vst [vmem:[#allocation17_spill] sm:$0xff] %v3924_v25 }
 0x506   :  { %v3933_v28 = vpop.permute.xlu0 %1121 }
 0x508   :  { %2036 = vmax.xlane.f32.xlu1 %v2035_v17  ;;  %v736_v17 = vsel %vm5486_vm0, %v734_v8, 0.0  ;;  %v3953_v8 = vadd.f32 %v3868_v61, %v3714_v40 }
 0x50a   :  { %v3937_v58 = vpop.permute.xlu0 %1202 }
 0x50b   :  { %5539 = vst [vmem:[#allocation18_spill] sm:$0xff] %v3937_v58 }
 0x50c   :  { %2042 = vmax.xlane.f32.xlu1 %v2041_v35  ;;  %v1124_v35 = vpop.permute.xlu1 %1123 }
 0x50e   :  { %v3941_v32 = vpop.permute.xlu0 %1248 }
 0x50f   :  { %2039 = vmax.xlane.f32.xlu0 %v2038_v18  ;;  %5541 = vst [vmem:[#allocation20_spill] sm:$0xff] %v3941_v32 }
 0x510   :  { %2048 = vmax.xlane.f32.xlu1 %v2047_v37  ;;  %v3939_v18 = vpop.permute.xlu1 %1204  ;;  %v3945_v37 = vmax.f32 %v3714_v40, %v3868_v61 }
 0x511   :  { %5540 = vst [vmem:[#allocation19_spill] sm:$0xff] %v3939_v18 }
 0x513   :  { %2045 = vmax.xlane.f32.xlu0 %v2044_v12  ;;  %v1277_v12 = vpop.permute.xlu0 %1276 }
 0x514   :  { %2054 = vmax.xlane.f32.xlu1 %v2053_v48  ;;  %v3947_v62 = vpop.permute.xlu1 %1250  ;;  %v3959_v48 = vmax.f32 %v3699_v51, %v3832_v56 }
 0x515   :  { %5542 = vst [vmem:[#allocation21_spill] sm:$0xff] %v3947_v62 }
 0x517   :  { %2051 = vmax.xlane.f32.xlu0 %v2050_v34  ;;  %v3961_v34 = vpop.permute.xlu0 %1957 }
 0x518   :  { %2117 = vadd.xlane.f32.xlu1 %v2116_v49  ;;  %v1279_v39 = vpop.permute.xlu1 %1278  ;;  %v3965_v49 = vsel %vm5486_vm0, %v3933_v28, %v1124_v35  ;;  %v2077_v62 = vsel %vm5486_vm0, %v3961_v34, 0.0 }
 0x519   :  { %5543 = vst [vmem:[#allocation22_spill] sm:$0xff] %v3965_v49 }
 0x51b   :  { %2057 = vmax.xlane.f32.xlu0 %v2056_v50  ;;  %v3973_v50 = vadd.f32 %v3832_v56, %v3699_v51  ;;  %v754_v51 = vsel %vm5486_vm0, %v3876_v0, 0.0 }
 0x51c   :  { %713 = vadd.xlane.f32.xlu1 %v712_v27  ;;  %v3975_v27 = vpop.permute.xlu1 %2080 }
 0x51f   :  { %701 = vadd.xlane.f32.xlu0 %v700_v24  ;;  %v2087_v24 = vpop.permute.xlu0 %2086 }
 0x520   :  { %725 = vadd.xlane.f32.xlu1 %v724_v54  ;;  %v3982_v54 = vsel %vm5484_vm1, %v1279_v39, 0.0 }
 0x521   :  { %5544 = vst [vmem:[#allocation23_spill] sm:$0xff] %v3982_v54 }
 0x523   :  { %707 = vadd.xlane.f32.xlu0 %v706_v53  ;;  %v3984_v53 = vpop.permute.xlu1 %2098 }
 0x524   :  { %749 = vadd.xlane.f32.xlu1 %v748_v45  ;;  %v3988_v45 = vpop.permute.xlu0 %2092 }
 0x527   :  { %719 = vadd.xlane.f32.xlu0 %v718_v55  ;;  %v3992_v56 = vpop.permute.xlu1 %1962 }
 0x528   :  { %761 = vadd.xlane.f32.xlu1 %v760_v63  ;;  %v2105_v55 = vpop.permute.xlu0 %2104 }
 0x52b   :  { %731 = vadd.xlane.f32.xlu0 %v730_v5 }
 0x52c   :  { %773 = vadd.xlane.f32.xlu1 %v772_v13  ;;  %v3996_v5 = vpop.permute.xlu0 %2110 }
 0x52f   :  { %737 = vadd.xlane.f32.xlu0 %v736_v17 }
 0x53d   :  { %575 = vrot.lane.b32.xlu1 %v3945_v37, %s5515_s3 }
 0x541   :  { %598 = vrot.lane.b32.xlu1 %v3953_v8, %s5515_s3 }
 0x544   :  { %v3994_v63 = vpop.xlane.xlu1 %2015 }
 0x545   :  { %570 = vrot.lane.b32.xlu0 %v3959_v48, %s5515_s3  ;;  %1132 = vrot.lane.b32.xlu1 %v3965_v49, %s3125_s6 }
 0x548   :  { %v3998_v13 = vpop.xlane.xlu1 %2024 }
 0x549   :  { %593 = vrot.lane.b32.xlu0 %v3973_v50, %s5515_s3  ;;  %1176 = vrot.lane.b32.xlu1 %v3965_v49, %s3126_s17  ;;  %v2083_v49 = vsel %vm5486_vm0, %v3975_v27, 0.0 }
 0x54c   :  { %v4002_v35 = vpop.xlane.xlu1 %2030 }
 0x54d   :  { %1287 = vrot.lane.b32.xlu1 %v3982_v54, %s3125_s6 }
 0x550   :  { %v4008_v9 = vpop.xlane.xlu1 %2075 }
 0x551   :  { %1333 = vrot.lane.b32.xlu1 %v3982_v54, %s3126_s17  ;;  %5545 = vst [vmem:[#allocation24_spill] sm:$0xff] %v4008_v9 }
 0x554   :  { %v2123_v60 = vpop.permute.xlu1 %2122 }
 0x557   :  { %v4000_v17 = vpop.xlane.xlu0 %2012 }
 0x558   :  { %v4021_v61 = vpop.permute.xlu1 %2128 }
 0x55b   :  { %v4004_v2 = vpop.xlane.xlu0 %2018 }
 0x55c   :  { %v4026_v0 = vpop.permute.xlu1 %2140 }
 0x55f   :  { %v4010_v40 = vpop.xlane.xlu0 %2021 }
 0x560   :  { %v2147_v19 = vpop.permute.xlu1 %2146 }
 0x563   :  { %v4016_v16 = vpop.xlane.xlu0 %2027 }
 0x567   :  { %v4023_v54 = vpop.xlane.xlu0 %2033 }
 0x568   :  { %743 = vadd.xlane.f32.xlu0 %v742_v10  ;;  %v2089_v10 = vsel %vm5486_vm0, %v2087_v24, 0.0  ;;  %v4033_v24 = vsel %vm5486_vm0, 0.0, %v3933_v28 }
 0x569   :  { %5546 = vst [vmem:[#allocation25_spill] sm:$0xff] %v4033_v24 }
 0x56b   :  { %v2135_v15 = vpop.permute.xlu0 %2134 }
 0x56c   :  { %755 = vadd.xlane.f32.xlu0 %v754_v51  ;;  %v2107_v51 = vsel %vm5486_vm0, %v2105_v55, 0.0  ;;  %v2137_v21 = vsel %vm5486_vm0, %v2135_v15, 0.0  ;;  %v4042_v55 = vpop.permute.xlu1 %2152 }
 0x570   :  { %767 = vadd.xlane.f32.xlu0 %v766_v59  ;;  %v2125_v59 = vsel %vm5486_vm0, %v2123_v60, 0.0  ;;  %v4040_v60 = vsel %vm5484_vm1, %v1277_v12, %v1279_v39  ;;  %v4058_v12 = vadd.f32 %v3992_v56, %v3806_v41  ;;  %vm691_vm1 = vcmask 105472  }
 0x571   :  { %5547 = vst [vmem:[#allocation26_spill] sm:$0xff] %v4040_v60 }
 0x572   :  { %5549 = vst [vmem:[#allocation28_spill] sm:$0xff] %v4058_v12 }
 0x574   :  { %779 = vadd.xlane.f32.xlu0 %v778_v33  ;;  %v2149_v33 = vsel %vm5486_vm0, %v2147_v19, 0.0  ;;  %v2180_v19 = vrot.slane %v3806_v41, 4 }
 0x575   :  { %2090 = vadd.xlane.f32.xlu1 %v2089_v10 }
 0x576   :  { %v2181_v58 = vmax.f32 %v3806_v41, %v2180_v19 }
 0x579   :  { %2108 = vadd.xlane.f32.xlu1 %v2107_v51 }
 0x57d   :  { %2126 = vadd.xlane.f32.xlu1 %v2125_v59 }
 0x581   :  { %2138 = vadd.xlane.f32.xlu1 %v2137_v21  ;;  %v4048_v21 = vmax.f32 %v3806_v41, %v3992_v56 }
 0x583   :  { %5548 = vst [vmem:[#allocation27_spill] sm:$0xff] %v4048_v21 }
 0x585   :  { %2150 = vadd.xlane.f32.xlu1 %v2149_v33 }
 0x58a   :  { %1130 = vrot.lane.b32.xlu0 %v4033_v24, %s3125_s6 }
 0x58e   :  { %1174 = vrot.lane.b32.xlu0 %v4033_v24, %s3126_s17 }
 0x592   :  { %1285 = vrot.lane.b32.xlu0 %v4040_v60, %s3125_s6 }
 0x595   :  { %v4050_v28 = vpop.xlane.xlu1 %2036 }
 0x596   :  { %1331 = vrot.lane.b32.xlu0 %v4040_v60, %s3126_s17  ;;  %1972 = vrot.lane.b32.xlu1 %v4048_v21, %s5515_s3  ;;  %v2193_v60 = vadd.f32 %v2180_v19, %v3806_v41  ;;  %v2095_v21 = vsel %vm5486_vm0, %v3988_v45, 0.0 }
 0x598   :  { %v2194_v31 = vrot.slane %v2193_v60, 2 }
 0x599   :  { %v4060_v39 = vpop.xlane.xlu1 %2042 }
 0x59a   :  { %1995 = vrot.lane.b32.xlu1 %v4058_v12, %s5515_s3  ;;  %v2195_v18 = vadd.f32 %v2194_v31, %v2193_v60  ;;  %v2182_v12 = vrot.slane %v2181_v58, 2  ;;  %v2101_v31 = vsel %vm5486_vm0, %v3984_v53, 0.0 }
 0x59c   :  { %v2196_v9 = vrot.slane %v2195_v18, 1  ;;  %v2183_v25 = vmax.f32 %v2181_v58, %v2182_v12  ;;  %v2113_v58 = vsel %vm5486_vm0, %v3996_v5, 0.0 }
 0x59d   :  { %v4064_v10 = vpop.xlane.xlu1 %2048 }
 0x5a1   :  { %v4066_v51 = vpop.xlane.xlu1 %2054 }
 0x5a5   :  { %v4068_v59 = vpop.xlane.xlu1 %2117 }
 0x5a6   :  { %5550 = vst [vmem:[#allocation29_spill] sm:$0xff] %v4068_v59 }
 0x5a9   :  { %v4070_v15 = vpop.xlane.xlu1 %713 }
 0x5ad   :  { %v4073_v33 = vpop.xlane.xlu1 %725 }
 0x5b1   :  { %v4076_v32 = vpop.xlane.xlu1 %749 }
 0x5b2   :  { %5551 = vst [vmem:[#allocation30_spill] sm:$0xff] %v4076_v32 }
 0x5b5   :  { %v4080_v24 = vpop.xlane.xlu1 %761  ;;  %2078 = vadd.xlane.f32.xlu0 %v2077_v62  ;;  %v2197_v62 = vadd.f32 %v2196_v9, %v2195_v18 }
 0x5b6   :  { %5552 = vst [vmem:[#allocation31_spill] sm:$0xff] %v4080_v24 }
 0x5b7   :  { %v2199_v45 = vmul.f32 0.125, %v2197_v62  ;;  %v2119_v62 = vsel %vm5486_vm0, %v3992_v56, 0.0 }
 0x5b9   :  { %v4085_v59 = vpop.xlane.xlu1 %773  ;;  %2084 = vadd.xlane.f32.xlu0 %v2083_v49  ;;  %v2184_v49 = vrot.slane %v2183_v25, 1 }
 0x5bb   :  { %v2185_v9 = vmax.f32 %v2183_v25, %v2184_v49  ;;  %v4120_v25 = vadd.f32 %v3961_v34, %v3791_v26 }
 0x5bd   :  { %v576_v32 = vpop.permute.xlu1 %575  ;;  %2096 = vadd.xlane.f32.xlu0 %v2095_v21  ;;  %v4104_v18 = vsel %vm829_vm5, %v2185_v9, %v2199_v45  ;;  %v2143_v45 = vsel %vm5486_vm0, %v4026_v0, 0.0 }
 0x5be   :  { %v4090_v24 = vmax.f32 %v3945_v37, %v576_v32  ;;  %v4108_v32 = vpop.xlane.xlu0 %2039  ;;  %v4112_v37 = vmax.f32 %v3791_v26, %v3961_v34  ;;  %v2131_v34 = vsel %vm5486_vm0, %v4021_v61, 0.0  ;;  %v2155_v61 = vsel %vm5486_vm0, %v4042_v55, 0.0 }
 0x5bf   :  { %vm5497_vm0 = vcmask 121856  }
 0x5c0   :  { %585 = vrot.lane.b32.xlu1 %v4090_v24, %s5517_s11 }
 0x5c1   :  { %v599_v27 = vpop.permute.xlu1 %598  ;;  %2102 = vadd.xlane.f32.xlu0 %v2101_v31 }
 0x5c2   :  { %v4097_v60 = vadd.f32 %v599_v27, %v3953_v8  ;;  %v4114_v8 = vpop.xlane.xlu0 %2045  ;;  %v669_v27 = vsel %vm75_vm3, %v3850_v3, %v3872_v4 }
 0x5c3   :  { %v671_v56 = vsel %vm670_vm6, %v669_v27, %v3856_v7 }
 0x5c4   :  { %608 = vrot.lane.b32.xlu1 %v4097_v60, %s5517_s11 }
 0x5c5   :  { %2114 = vadd.xlane.f32.xlu0 %v2113_v58  ;;  %v673_v58 = vsel %vm672_vm7, %v671_v56, %v3862_v23 }
 0x5c6   :  { %v4124_v53 = vpop.xlane.xlu0 %2051  ;;  %v674_v3 = vsel %vm510_vm8, %v673_v58, %v3874_v6 }
 0x5c7   :  { %v676_v4 = vsel %vm5508_vm9, %v674_v3, %v3864_v22 }
 0x5c8   :  { %2498 = vrot.lane.b32.xlu1 %v4104_v18, %s3123_s16  ;;  %v678_v7 = vsel %vm5487_vm10, %v676_v4, %v3878_v14 }
 0x5c9   :  { %v680_v0 = vsel %vm679_vm11, %v678_v7, %v3870_v11 }
 0x5ca   :  { %v4126_v5 = vpop.xlane.xlu0 %2057  ;;  %v682_v55 = vsel %vm681_vm12, %v680_v0, %v3904_v30 }
 0x5cb   :  { %v684_v6 = vsel %vm683_vm13, %v682_v55, %v3890_v20 }
 0x5ce   :  { %v4128_v21 = vpop.xlane.xlu0 %701 }
 0x5d2   :  { %v4130_v12 = vpop.xlane.xlu0 %707 }
 0x5d6   :  { %v4132_v19 = vpop.xlane.xlu0 %719 }
 0x5da   :  { %v4136_v31 = vpop.xlane.xlu0 %731 }
 0x5db   :  { %1967 = vrot.lane.b32.xlu0 %v4112_v37, %s5515_s3 }
 0x5de   :  { %v4143_v49 = vpop.xlane.xlu0 %737 }
 0x5df   :  { %1990 = vrot.lane.b32.xlu0 %v4120_v25, %s5515_s3  ;;  %s4834_s3 = sld [smem:[#allocation2 + $0x1a]] }
 0x5e2   :  { %v4153_v9 = vpop.permute.xlu0 %570 }
 0x5e6   :  { %v4161_v23 = vpop.permute.xlu0 %593 }
 0x5f5   :  { %v4169_v22 = vpop.xlane.xlu0 %743 }
 0x5fe   :  { %2120 = vadd.xlane.f32.xlu0 %v2119_v62  ;;  %v686_v62 = vsel %vm685_vm14, %v684_v6, %v3913_v1  ;;  %v2174_v6 = vrot.slane %v3791_v26, 4 }
 0x5ff   :  { %v688_v14 = vsel %vm687_vm15, %v686_v62, %v3898_v46  ;;  %v2059_v46 = vsel %vm75_vm3, %v4000_v17, %v3994_v63  ;;  %v4277_v62 = vmax.f32 %v3959_v48, %v4153_v9 }
 0x600   :  { %v690_v11 = vsel %vm689_vm4, %v688_v14, %v3921_v57  ;;  %v2060_v57 = vsel %vm670_vm6, %v2059_v46, %v4004_v2  ;;  %v2175_v48 = vmax.f32 %v3791_v26, %v2174_v6 }
 0x601   :  { %v692_v20 = vsel %vm691_vm1, %v690_v11, %v3908_v29  ;;  %v2061_v29 = vsel %vm672_vm7, %v2060_v57, %v4010_v40  ;;  %v2187_v11 = vadd.f32 %v2174_v6, %v3791_v26 }
 0x602   :  { %2132 = vadd.xlane.f32.xlu0 %v2131_v34  ;;  %v4177_v34 = vpop.xlane.xlu0 %755  ;;  %v694_v30 = vsel %vm693_vm2, %v692_v20, %v3929_v44  ;;  %v4286_v20 = vadd.f32 %v4161_v23, %v3973_v50 }
 0x603   :  { %v4185_v1 = vsel %vm5497_vm0, %v694_v30, %v3917_v52  ;;  %v2062_v52 = vsel %vm510_vm8, %v2061_v29, %v3998_v13  ;;  %v2188_v46 = vrot.slane %v2187_v11, 2 }
 0x604   :  { %5553 = vst [vmem:[#allocation32_spill] sm:$0xff] %v4185_v1  ;;  %v973_v44 = vrot.slane %v4185_v1, 7  ;;  %v2063_v63 = vsel %vm5508_vm9, %v2062_v52, %v4016_v16  ;;  %v1060_v56 = vrot.slane %v4185_v1, 1 }
 0x605   :  { %v2189_v9 = vadd.f32 %v2188_v46, %v2187_v11 }
 0x606   :  { %2144 = vadd.xlane.f32.xlu0 %v2143_v45  ;;  %v4192_v27 = vpop.xlane.xlu0 %767  ;;  %v4208_v17 = vsel %vm829_vm5, 0.0, %v973_v44  ;;  %v2064_v45 = vsel %vm5487_vm10, %v2063_v63, %v4002_v35  ;;  %vm5496_vm10 = vcmask 1046528   ;;  %v2176_v44 = vrot.slane %v2175_v48, 2 }
 0x607   :  { %5554 = vst [vmem:[#allocation33_spill] sm:$0xff] %v4208_v17  ;;  %v2065_v40 = vsel %vm679_vm11, %v2064_v45, %v4023_v54  ;;  %v2190_v63 = vrot.slane %v2189_v9, 1 }
 0x608   :  { %v2066_v13 = vsel %vm681_vm12, %v2065_v40, %v4050_v28  ;;  %v2177_v23 = vmax.f32 %v2175_v48, %v2176_v44 }
 0x609   :  { %v2067_v16 = vsel %vm683_vm13, %v2066_v13, %v4108_v32  ;;  %v2191_v40 = vadd.f32 %v2190_v63, %v2189_v9 }
 0x60a   :  { %2156 = vadd.xlane.f32.xlu0 %v2155_v61  ;;  %v4205_v2 = vpop.xlane.xlu0 %779  ;;  %v2068_v35 = vsel %vm685_vm14, %v2067_v16, %v4060_v39  ;;  %v4230_v61 = vsel %vm5496_vm10, %v1060_v56, 0.0  ;;  %v2178_v13 = vrot.slane %v2177_v23, 1 }
 0x60b   :  { %v2069_v54 = vsel %vm687_vm15, %v2068_v35, %v4114_v8  ;;  %5556 = vst [vmem:[#allocation35_spill] sm:$0xff] %v4230_v61  ;;  %v2198_v16 = vmul.f32 0.125, %v2191_v40 }
 0x60c   :  { %v2070_v28 = vsel %vm689_vm4, %v2069_v54, %v4064_v10  ;;  %v4316_v54 = vpop.permute.xlu1 %1132 }
 0x60d   :  { %v2071_v3 = vsel %vm691_vm1, %v2070_v28, %v4124_v53  ;;  %5565 = vst [vmem:[#allocation44_spill] sm:$0xff] %v4316_v54 }
 0x60e   :  { %v4221_v58 = vpop.permute.xlu0 %1130  ;;  %v2072_v39 = vsel %vm693_vm2, %v2071_v3, %v4066_v51 }
 0x60f   :  { %5555 = vst [vmem:[#allocation34_spill] sm:$0xff] %v4221_v58  ;;  %v4246_v8 = vsel %vm5497_vm0, %v2072_v39, %v4126_v5 }
 0x610   :  { %5558 = vst [vmem:[#allocation37_spill] sm:$0xff] %v4246_v8  ;;  %v2348_v10 = vrot.slane %v4246_v8, 7  ;;  %v2435_v5 = vrot.slane %v4246_v8, 1  ;;  %v4320_v3 = vpop.permute.xlu1 %1176 }
 0x611   :  { %5566 = vst [vmem:[#allocation45_spill] sm:$0xff] %v4320_v3 }
 0x612   :  { %v4236_v32 = vpop.permute.xlu0 %1174  ;;  %v4258_v7 = vsel %vm829_vm5, 0.0, %v2348_v10  ;;  %v4270_v55 = vsel %vm5496_vm10, %v2435_v5, 0.0  ;;  %vm5583_vm10 = vcmask 130048  }
 0x613   :  { %5557 = vst [vmem:[#allocation36_spill] sm:$0xff] %v4236_v32  ;;  %5561 = vst [vmem:[#allocation40_spill] sm:$0xff] %v4258_v7 }
 0x614   :  { %5562 = vst [vmem:[#allocation41_spill] sm:$0xff] %v4270_v55  ;;  %v4326_v5 = vpop.permute.xlu1 %1287  ;;  %vm5584_vm0 = vmmov %vm5583_vm10 }
 0x615   :  { %5568 = vst [vmem:[#allocation47_spill] sm:$0xff] %v4326_v5 }
 0x616   :  { %v4248_v4 = vpop.permute.xlu0 %1285 }
 0x617   :  { %5559 = vst [vmem:[#allocation38_spill] sm:$0xff] %v4248_v4 }
 0x618   :  { %v4330_v11 = vpop.permute.xlu1 %1333 }
 0x619   :  { %5570 = vst [vmem:[#allocation49_spill] sm:$0xff] %v4330_v11 }
 0x61a   :  { %v4255_v53 = vpop.permute.xlu0 %1331 }
 0x61b   :  { %5560 = vst [vmem:[#allocation39_spill] sm:$0xff] %v4255_v53 }
 0x61c   :  { %v4334_v48 = vpop.xlane.xlu1 %2090 }
 0x620   :  { %1020 = vrot.lane.b32.xlu0 %v4185_v1, %s3125_s6  ;;  %v4340_v44 = vpop.xlane.xlu1 %2108 }
 0x624   :  { %1044 = vrot.lane.b32.xlu0 %v4185_v1, %s3126_s17  ;;  %v4428_v1 = vstv %s2932_s19  ;;  %s4732_s19 = sld [smem:[#allocation2 + $0x10]] }
 0x625   :  { %5586 = vst [vmem:[#allocation63_spill] sm:$0xff] %v4428_v1 }
 0x628   :  { %981 = vrot.lane.b32.xlu0 %v4208_v17, %s3125_s6 }
 0x62c   :  { %1004 = vrot.lane.b32.xlu0 %v4208_v17, %s3126_s17 }
 0x630   :  { %1068 = vrot.lane.b32.xlu0 %v4230_v61, %s3125_s6 }
 0x634   :  { %1092 = vrot.lane.b32.xlu0 %v4230_v61, %s3126_s17 }
 0x638   :  { %2395 = vrot.lane.b32.xlu0 %v4246_v8, %s3125_s6 }
 0x63c   :  { %2419 = vrot.lane.b32.xlu0 %v4246_v8, %s3126_s17 }
 0x640   :  { %2356 = vrot.lane.b32.xlu0 %v4258_v7, %s3125_s6 }
 0x642   :  { %v4262_v51 = vpop.xlane.xlu0 %2078 }
 0x644   :  { %2379 = vrot.lane.b32.xlu0 %v4258_v7, %s3126_s17 }
 0x646   :  { %v4267_v0 = vpop.xlane.xlu0 %2084 }
 0x648   :  { %2443 = vrot.lane.b32.xlu0 %v4270_v55, %s3125_s6 }
 0x64a   :  { %v4279_v14 = vpop.xlane.xlu0 %2096 }
 0x64c   :  { %580 = vrot.lane.b32.xlu0 %v4277_v62, %s5517_s11 }
 0x64e   :  { %v4288_v30 = vpop.xlane.xlu0 %2102 }
 0x650   :  { %603 = vrot.lane.b32.xlu0 %v4286_v20, %s5517_s11 }
 0x652   :  { %v4292_v57 = vpop.xlane.xlu0 %2114 }
 0x656   :  { %v1968_v29 = vpop.permute.xlu0 %1967 }
 0x657   :  { %v4296_v52 = vmax.f32 %v4112_v37, %v1968_v29  ;;  %v2179_v37 = vmax.f32 %v2177_v23, %v2178_v13 }
 0x659   :  { %5563 = vst [vmem:[#allocation42_spill] sm:$0xff] %v4296_v52  ;;  %1977 = vrot.lane.b32.xlu0 %v4296_v52, %s5517_s11  ;;  %v4308_v56 = vsel %vm829_vm5, %v2179_v37, %v2198_v16 }
 0x65a   :  { %v1991_v50 = vpop.permute.xlu0 %1990 }
 0x65b   :  { %v4301_v45 = vadd.f32 %v1991_v50, %v4120_v25  ;;  %v4344_v50 = vpop.xlane.xlu1 %2126 }
 0x65d   :  { %5564 = vst [vmem:[#allocation43_spill] sm:$0xff] %v4301_v45  ;;  %2000 = vrot.lane.b32.xlu0 %v4301_v45, %s5517_s11 }
 0x65f   :  { %v4350_v13 = vpop.xlane.xlu1 %2138 }
 0x661   :  { %2467 = vrot.lane.b32.xlu0 %v4270_v55, %s3126_s17 }
 0x663   :  { %v4354_v37 = vpop.xlane.xlu1 %2150 }
 0x665   :  { %2496 = vrot.lane.b32.xlu0 %v4308_v56, %s3123_s16 }
 0x667   :  { %v4360_v53 = vpop.permute.xlu1 %1972 }
 0x66b   :  { %v4364_v4 = vpop.permute.xlu1 %1995 }
 0x66f   :  { %v4368_v32 = vpop.permute.xlu1 %585 }
 0x673   :  { %v4374_v54 = vpop.permute.xlu1 %608 }
 0x677   :  { %v2499_v8 = vpop.permute.xlu1 %2498 }
 0x68b   :  { %v4312_v35 = vpop.xlane.xlu0 %2120 }
 0x68f   :  { %v4314_v25 = vpop.xlane.xlu0 %2132 }
 0x693   :  { %v4318_v28 = vpop.xlane.xlu0 %2144 }
 0x697   :  { %v4322_v39 = vpop.xlane.xlu0 %2156 }
 0x69b   :  { %v4324_v10 = vpop.permute.xlu0 %1020 }
 0x69c   :  { %5567 = vst [vmem:[#allocation46_spill] sm:$0xff] %v4324_v10  ;;  %v4433_v10 = vstv %s2931_s21  ;;  %s4740_s21 = sld [smem:[#allocation2 + $0x1c]] }
 0x69d   :  { %5587 = vst [vmem:[#allocation64_spill] sm:$0xff] %v4433_v10 }
 0x69f   :  { %v4328_v6 = vpop.permute.xlu0 %1044 }
 0x6a0   :  { %5569 = vst [vmem:[#allocation48_spill] sm:$0xff] %v4328_v6 }
 0x6a3   :  { %v4332_v46 = vpop.permute.xlu0 %981 }
 0x6a4   :  { %5571 = vst [vmem:[#allocation50_spill] sm:$0xff] %v4332_v46 }
 0x6a7   :  { %v4336_v9 = vpop.permute.xlu0 %1004 }
 0x6a8   :  { %5572 = vst [vmem:[#allocation51_spill] sm:$0xff] %v4336_v9 }
 0x6ab   :  { %v4338_v29 = vpop.permute.xlu0 %1068 }
 0x6ac   :  { %5573 = vst [vmem:[#allocation52_spill] sm:$0xff] %v4338_v29 }
 0x6af   :  { %v4342_v63 = vpop.permute.xlu0 %1092 }
 0x6b0   :  { %5574 = vst [vmem:[#allocation53_spill] sm:$0xff] %v4342_v63 }
 0x6b3   :  { %v4346_v23 = vpop.permute.xlu0 %2395 }
 0x6b4   :  { %5575 = vst [vmem:[#allocation54_spill] sm:$0xff] %v4346_v23 }
 0x6b7   :  { %v4348_v40 = vpop.permute.xlu0 %2419 }
 0x6b8   :  { %5576 = vst [vmem:[#allocation55_spill] sm:$0xff] %v4348_v40 }
 0x6bb   :  { %v4352_v16 = vpop.permute.xlu0 %2356 }
 0x6bc   :  { %5577 = vst [vmem:[#allocation56_spill] sm:$0xff] %v4352_v16  ;;  %v4412_v16 = vstv %s2933_s15  ;;  %s4726_s15 = sld [smem:[#allocation2 + $0xa]] }
 0x6bd   :  { %5585 = vst [vmem:[#allocation62_spill] sm:$0xff] %v4412_v16 }
 0x6bf   :  { %v4356_v41 = vpop.permute.xlu0 %2379 }
 0x6c0   :  { %5578 = vst [vmem:[#allocation57_spill] sm:$0xff] %v4356_v41  ;;  %v5504_v41 = vstv %s4398_s14 }
 0x6c3   :  { %v4358_v26 = vpop.permute.xlu0 %2443 }
 0x6c4   :  { %5579 = vst [vmem:[#allocation58_spill] sm:$0xff] %v4358_v26 }
 0x6c7   :  { %v4362_v11 = vpop.permute.xlu0 %580 }
 0x6cb   :  { %v4366_v5 = vpop.permute.xlu0 %603 }
 0x6cf   :  { %v4370_v3 = vpop.permute.xlu0 %1977 }
 0x6d0   :  { %5580 = vst [vmem:[#allocation59_spill] sm:$0xff] %v4370_v3 }
 0x6d3   :  { %v4372_v58 = vpop.permute.xlu0 %2000 }
 0x6d4   :  { %5581 = vst [vmem:[#allocation60_spill] sm:$0xff] %v4372_v58 }
 0x6d7   :  { %v4376_v55 = vpop.permute.xlu0 %2467 }
 0x6d8   :  { %5582 = vst [vmem:[#allocation61_spill] sm:$0xff] %v4376_v55 }
 0x6db   :  { %v2497_v26 = vpop.permute.xlu0 %2496 }
 0x6dc   :  { %v2500_v40 = vsel %vm5583_vm10, %v2497_v26, %v2499_v8  ;;  %v2503_v23 = vsel %vm5584_vm0, 0.0, %v2497_v26  ;;  %v5500_v26 = vstv %s4396_s13  ;;  %v781_v8 = vsel %vm75_vm3, %v3882_v38, %v4128_v21 }
 0x6dd   :  { %2505 = vrot.lane.b32.xlu0 %v2503_v23, %s3125_s6  ;;  %2507 = vrot.lane.b32.xlu1 %v2500_v40, %s3125_s6  ;;  %v782_v55 = vsel %vm670_vm6, %v781_v8, %v4130_v12  ;;  %v4410_v7 = vmul.f32 %v5500_v26, %v4308_v56  ;;  %v2537_v63 = vmul.f32 %v2503_v23, %v4412_v16  ;;  %vm5589_vm0 = vcmask 1039360  }
 0x6de   :  { %v783_v61 = vsel %vm672_vm7, %v782_v55, %v4070_v15  ;;  %v2538_v21 = vmul.f32 %v2500_v40, %v4412_v16  ;;  %v4426_v26 = vmul.f32 %v5504_v41, %v4308_v56  ;;  %v4442_v41 = vstv %s2930_s23  ;;  %vm5590_vm10 = vmmov %vm5589_vm0  ;;  %s4745_s23 = sld [smem:[#allocation2 + $0x15]] }
 0x6df   :  { %v784_v38 = vsel %vm510_vm8, %v783_v61, %v4132_v19  ;;  %v4435_v19 = vstv %s2934_s20  ;;  %v4437_v61 = vstv %s2935_s22  ;;  %5588 = vst [vmem:[#allocation65_spill] sm:$0xff] %v4442_v41  ;;  %v2541_v17 = vrot.slane %v2537_v63, 1  ;;  %s4736_s20 = sld [smem:[#allocation2 + $0x13]]  ;;  %s4742_s22 = sld [smem:[#allocation2 + $0x14]] }
 0x6e0   :  { %v2542_v6 = vrot.slane %v2538_v21, 1 }
 0x6e1   :  { %2549 = vrot.lane.b32.xlu0 %v2503_v23, %s3126_s17  ;;  %2551 = vrot.lane.b32.xlu1 %v2500_v40, %s3126_s17 }
 0x6e5   :  { %2577 = vrot.lane.b32.xlu0 %v4308_v56, %s3125_s6  ;;  %2579 = vrot.lane.b32.xlu1 %v4104_v18, %s3125_s6 }
 0x6e9   :  { %2623 = vrot.lane.b32.xlu0 %v4308_v56, %s3126_s17  ;;  %2625 = vrot.lane.b32.xlu1 %v4104_v18, %s3126_s17 }
 0x6ed   :  { %2651 = vrot.lane.b32.xlu0 %v4308_v56, %s3127_s18  ;;  %2653 = vrot.lane.b32.xlu1 %v4104_v18, %s3127_s18  ;;  %v785_v56 = vsel %vm5508_vm9, %v784_v38, %v4073_v33  ;;  %vm5591_vm9 = vcmask 48128  }
 0x6ee   :  { %v786_v21 = vsel %vm5591_vm9, %v785_v56, %v4136_v31  ;;  %vm5592_vm9 = vmmov %vm5589_vm0 }
 0x74f   :  { %v2506_v29 = vpop.permute.xlu0 %2505  ;;  %v2508_v8 = vpop.permute.xlu1 %2507 }
 0x750   :  { %v2512_v12 = vsel %vm75_vm3, 0.0, %v2506_v29  ;;  %v2509_v55 = vsel %vm75_vm3, %v2506_v29, %v2508_v8  ;;  %v2533_v29 = vmul.f32 %v2503_v23, %v4428_v1  ;;  %v2534_v8 = vmul.f32 %v2500_v40, %v4428_v1 }
 0x751   :  { %v2513_v15 = vmul.f32 %v2512_v12, %v3342_v43  ;;  %v2514_v16 = vmul.f32 %v2509_v55, %v3349_v47 }
 0x752   :  { %v2545_v1 = vadd.f32 %v2541_v17, %v2533_v29 }
 0x753   :  { %v2521_v12 = vmul.f32 %v2513_v15, %v4433_v10  ;;  %v2550_v9 = vpop.permute.xlu0 %2549  ;;  %v2522_v46 = vmul.f32 %v2514_v16, %v4433_v10  ;;  %v2552_v55 = vpop.permute.xlu1 %2551  ;;  %v2517_v58 = vmul.f32 %v2513_v15, %v4442_v41  ;;  %v2518_v45 = vmul.f32 %v2514_v16, %v4442_v41 }
 0x754   :  { %v2553_v38 = vsel %vm5589_vm0, %v2550_v9, %v2552_v55  ;;  %v2556_v63 = vsel %vm5590_vm10, %v2552_v55, 0.0  ;;  %v2592_v15 = vstv %s4417_s24  ;;  %v2546_v9 = vadd.f32 %v2542_v6, %v2534_v8  ;;  %s4748_s24 = sld [smem:[#allocation2 + $0x1f]] }
 0x755   :  { %v2525_v33 = vrot.slane %v2521_v12, 1  ;;  %v2526_v52 = vrot.slane %v2522_v46, 1  ;;  %v2557_v23 = vmul.f32 %v2553_v38, %v3332_v36  ;;  %v2558_v40 = vmul.f32 %v2556_v63, %v3339_v42 }
 0x756   :  { %v588_v8 = vmax.f32 %v4090_v24, %v4368_v32  ;;  %v5593_v32 = vld [vmem:[#allocation17_spill] sm:$0xff]  ;;  %vm5594_vm0 = vcmask 916480  }
 0x757   :  { %v2529_v10 = vadd.f32 %v2525_v33, %v2517_v58  ;;  %v2578_v12 = vpop.permute.xlu0 %2577  ;;  %v2530_v55 = vadd.f32 %v2526_v52, %v2518_v45  ;;  %v2561_v3 = vmul.f32 %v2557_v23, %v4435_v19  ;;  %v2565_v46 = vmul.f32 %v2557_v23, %v4437_v61  ;;  %v2580_v16 = vpop.permute.xlu1 %2579  ;;  %vm5595_vm10 = vmmov %vm5594_vm0 }
 0x758   :  { %v2566_v63 = vmul.f32 %v2558_v40, %v4437_v61  ;;  %v2584_v41 = vsel %vm75_vm3, 0.0, %v2578_v12  ;;  %v2581_v31 = vsel %vm75_vm3, %v2578_v12, %v2580_v16  ;;  %v787_v52 = vsel %vm679_vm11, %v786_v21, %v4143_v49 }
 0x759   :  { %v2547_v38 = vadd.f32 %v2545_v1, %v2529_v10  ;;  %v2548_v17 = vadd.f32 %v2546_v9, %v2530_v55  ;;  %v2569_v58 = vrot.slane %v2565_v46, 1  ;;  %v2585_v56 = vmul.f32 %v2584_v41, %v3342_v43 }
 0x75a   :  { %v2586_v6 = vmul.f32 %v2581_v31, %v3349_v47  ;;  %v2562_v45 = vmul.f32 %v2558_v40, %v4435_v19  ;;  %v2570_v29 = vrot.slane %v2566_v63, 1  ;;  %v2588_v1 = vstv %s4445_s8  ;;  %s4756_s8 = sld [smem:[#allocation2 + $0x1e]] }
 0x75b   :  { %v2624_v10 = vpop.permute.xlu0 %2623  ;;  %v583_v33 = vmax.f32 %v4277_v62, %v4362_v11  ;;  %v2573_v23 = vadd.f32 %v2569_v58, %v2561_v3  ;;  %v2593_v12 = vmul.f32 %v2592_v15, %v2585_v56  ;;  %v4478_v41 = vpop.permute.xlu1 %2625  ;;  %v2638_v49 = vstv %s4453_s25  ;;  %s4764_s25 = sld [smem:[#allocation2 + $0x20]] }
 0x75c   :  { %v2574_v9 = vadd.f32 %v2570_v29, %v2562_v45  ;;  %v2594_v55 = vmul.f32 %v2592_v15, %v2586_v6  ;;  %v2627_v40 = vsel %vm5592_vm9, %v2624_v10, %v4478_v41  ;;  %v2589_v46 = vmul.f32 %v2588_v1, %v2585_v56 }
 0x75d   :  { %v2575_v21 = vadd.f32 %v2573_v23, %v2547_v38  ;;  %v2597_v16 = vrot.slane %v2593_v12, 1  ;;  %v2631_v24 = vmul.f32 %v2627_v40, %v3332_v36  ;;  %v788_v63 = vsel %vm681_vm12, %v787_v52, %v5593_v32 }
 0x75e   :  { %v2590_v62 = vmul.f32 %v2588_v1, %v2586_v6  ;;  %v2598_v3 = vrot.slane %v2594_v55, 1  ;;  %v2634_v11 = vstv %s4461_s0  ;;  %v789_v15 = vsel %vm683_vm13, %v788_v63, %v4169_v22  ;;  %s4766_s0 = sld [smem:[#allocation2 + $0x16]] }
 0x75f   :  { %v2652_v31 = vpop.permute.xlu0 %2651  ;;  %v4489_v58 = vmax.f32 %v583_v33, %v588_v8  ;;  %v2601_v45 = vadd.f32 %v2597_v16, %v2589_v46  ;;  %v2639_v38 = vmul.f32 %v2638_v49, %v2631_v24  ;;  %v2654_v56 = vpop.permute.xlu1 %2653  ;;  %v2576_v29 = vadd.f32 %v2574_v9, %v2548_v17  ;;  %v5597_v33 = vld [vmem:[#allocation30_spill] sm:$0xff]  ;;  %v5598_v46 = vld [vmem:[#allocation31_spill] sm:$0xff] }
 0x760   :  { %v2602_v10 = vadd.f32 %v2598_v3, %v2590_v62  ;;  %v4494_v23 = vsel %vm5594_vm0, %v2654_v56, 0.0  ;;  %v4497_v52 = vsel %vm5595_vm10, %v2652_v31, %v2654_v56  ;;  %v5596_v6 = vrot.slane %v4410_v7, 1  ;;  %v5600_v3 = vld [vmem:[#allocation24_spill] sm:$0xff] }
 0x761   :  { %v2603_v12 = vadd.f32 %v2601_v45, %v2575_v21  ;;  %v2635_v22 = vmul.f32 %v2634_v11, %v2631_v24  ;;  %v2643_v8 = vrot.slane %v2639_v38, 1  ;;  %2662 = vrot.lane.b32.xlu1 %v4494_v23, %s3125_s6  ;;  %2660 = vrot.lane.b32.xlu0 %v4497_v52, %s3125_s6  ;;  %v790_v9 = vsel %vm685_vm14, %v789_v15, %v5597_v33  ;;  %v5599_v24 = vld [vmem:[#allocation27_spill] sm:$0xff]  ;;  %v5601_v15 = vld [vmem:[#allocation28_spill] sm:$0xff] }
 0x762   :  { %v2619_v1 = vadd.f32 %v5596_v6, %v4426_v26  ;;  %v4508_v17 = vadd.f32 %v2602_v10, %v2576_v29  ;;  %v791_v7 = vsel %vm687_vm15, %v790_v9, %v4177_v34  ;;  %v825_v26 = vrot.slane %v4489_v58, 7 }
 0x763   :  { %v2647_v40 = vadd.f32 %v2643_v8, %v2635_v22  ;;  %v792_v16 = vsel %vm689_vm4, %v791_v7, %v5598_v46  ;;  %v4525_v32 = vmax.f32 %v5599_v24, %v4360_v53  ;;  %v913_v62 = vrot.slane %v4489_v58, 1 }
 0x764   :  { %v2621_v55 = vadd.f32 %v2619_v1, %v2603_v12  ;;  %v793_v34 = vsel %vm691_vm1, %v792_v16, %v4192_v27  ;;  %v4530_v63 = vsel %vm829_vm5, 0.0, %v825_v26  ;;  %v2158_v31 = vsel %vm75_vm3, %v5600_v3, %v4262_v51 }
 0x765   :  { %2708 = vrot.lane.b32.xlu1 %v4494_v23, %s3126_s17  ;;  %2706 = vrot.lane.b32.xlu0 %v4497_v52, %s3126_s17  ;;  %v794_v53 = vsel %vm693_vm2, %v793_v34, %v4085_v59  ;;  %v4544_v27 = vadd.f32 %v4364_v4, %v5601_v15  ;;  %v2159_v45 = vsel %vm670_vm6, %v2158_v31, %v4267_v0  ;;  %vm5602_vm9 = vcmask 121856  }
 0x766   :  { %v4515_v21 = vadd.f32 %v2647_v40, %v2621_v55  ;;  %v795_v38 = vsel %vm5602_vm9, %v794_v53, %v4205_v2  ;;  %vm5603_vm0 = vcmask 1046528   ;;  %v2160_v59 = vsel %vm672_vm7, %v2159_v45, %v4334_v48  ;;  %vm5608_vm7 = vmmov %vm5602_vm9 }
 0x767   :  { %v4551_v56 = vsel %vm5603_vm0, %v913_v62, 0.0  ;;  %v4559_v4 = vmul.f32 0.0625, %v795_v38  ;;  %v2161_v51 = vsel %vm510_vm8, %v2160_v59, %v4279_v14  ;;  %vm5604_vm6 = vcmask 39936   ;;  %v5606_v14 = vld [vmem:[#allocation29_spill] sm:$0xff]  ;;  %vm5607_vm8 = vmmov %vm5603_vm0 }
 0x768   :  { %v2162_v2 = vsel %vm5604_vm6, %v2161_v51, %v4288_v30  ;;  %vm5605_vm10 = vcmask 48128   ;;  %v606_v33 = vadd.f32 %v4366_v5, %v4286_v20  ;;  %v611_v9 = vadd.f32 %v4374_v54, %v4097_v60 }
 0x769   :  { %1982 = vrot.lane.b32.xlu1 %v4525_v32, %s5517_s11  ;;  %857 = vrot.lane.b32.xlu0 %v4530_v63, %s3126_s17  ;;  %v2163_v0 = vsel %vm5605_vm10, %v2162_v2, %v4340_v44  ;;  %v974_v29 = vrot.slane %v4559_v4, 7  ;;  %v1061_v1 = vrot.slane %v4559_v4, 1  ;;  %v5519_v40 = vmov 1  }
 0x76a   :  { %v2164_v48 = vsel %vm679_vm11, %v2163_v0, %v4292_v57  ;;  %v612_v55 = vadd.f32 %v611_v9, %v606_v33  ;;  %3042 = vset.pattern.permute.xlu0 %v5519_v40  ;;  %vm5611_vm11 = vcmask 1039360   ;;  %v5612_v16 = vstv %s4396_s13  ;;  %s4722_s13 = sld [smem:[#allocation2 + $0x4]] }
 0x76b   :  { %v2165_v30 = vsel %vm681_vm12, %v2164_v48, %v5606_v14  ;;  %v4581_v6 = vsel %vm829_vm5, 0.0, %v974_v29  ;;  %v4597_v22 = vsel %vm5607_vm8, %v1061_v1, 0.0  ;;  %v2630_v26 = vsel %vm5611_vm11, %v4478_v41, 0.0  ;;  %vm5614_vm12 = vmmov %vm5611_vm11 }
 0x76c   :  { %v2166_v10 = vsel %vm683_vm13, %v2165_v30, %v4312_v35  ;;  %v4638_v7 = vmul.f32 0.0625, %v612_v55  ;;  %v2632_v46 = vmul.f32 %v2630_v26, %v3339_v42  ;;  %v2612_v24 = vmul.f32 %v5612_v16, %v4104_v18  ;;  %vm5619_vm13 = vmmov %vm5603_vm0 }
 0x76d   :  { %2005 = vrot.lane.b32.xlu1 %v4544_v27, %s5517_s11  ;;  %922 = vrot.lane.b32.xlu0 %v4551_v56, %s3125_s6  ;;  %v2167_v57 = vsel %vm685_vm14, %v2166_v10, %v4344_v50  ;;  %v2693_v3 = vstv %s3008_s2  ;;  %v5613_v31 = vstv %s4398_s14  ;;  %s4724_s14 = sld [smem:[#allocation2 + $0x7]]  ;;  %vm5620_vm14 = vmmov %vm5603_vm0  ;;  %s4842_s11 = sld [smem:[#allocation2 + $0x24]] }
 0x76e   :  { %v2168_v44 = vsel %vm687_vm15, %v2167_v57, %v4314_v25  ;;  %v826_v60 = vrot.slane %v4638_v7, 7  ;;  %v914_v54 = vrot.slane %v4638_v7, 1  ;;  %v2640_v34 = vmul.f32 %v2638_v49, %v2632_v46  ;;  %s4789_s2 = sld [smem:[#allocation2 + $0x17]] }
 0x76f   :  { %v2169_v35 = vsel %vm689_vm4, %v2168_v44, %v4350_v13  ;;  %v2616_v62 = vrot.slane %v2612_v24, 1  ;;  %v2608_v41 = vmul.f32 %v5613_v31, %v4104_v18  ;;  %v2695_v38 = vmul.f32 %v2693_v3, %v4494_v23 }
 0x770   :  { %v2170_v12 = vsel %vm691_vm1, %v2169_v35, %v4318_v28  ;;  %vm5609_vm1 = vmmov %vm5603_vm0  ;;  %v4648_v20 = vsel %vm829_vm5, 0.0, %v826_v60  ;;  %v2644_v53 = vrot.slane %v2640_v34, 1  ;;  %v2694_v59 = vmul.f32 %v2693_v3, %v4497_v52  ;;  %v5616_v3 = vld [vmem:[#allocation42_spill] sm:$0xff] }
 0x771   :  { %1022 = vrot.lane.b32.xlu1 %v4559_v4, %s3125_s6  ;;  %946 = vrot.lane.b32.xlu0 %v4551_v56, %s3126_s17  ;;  %v2171_v25 = vsel %vm693_vm2, %v2170_v12, %v4354_v37  ;;  %vm5610_vm2 = vmmov %vm5603_vm0  ;;  %v2620_v2 = vadd.f32 %v2616_v62, %v2608_v41  ;;  %v2636_v0 = vmul.f32 %v2634_v11, %v2632_v46  ;;  %v4687_v29 = vstv %s2942_s4  ;;  %v5615_v62 = vld [vmem:[#allocation59_spill] sm:$0xff]  ;;  %s4794_s4 = sld [smem:[#allocation2 + $0x21]] }
 0x772   :  { %v2172_v50 = vsel %vm5608_vm7, %v2171_v25, %v4322_v39  ;;  %v4656_v5 = vsel %vm5610_vm2, %v914_v54, 0.0  ;;  %v4689_v14 = vstv %s2943_s26  ;;  %v2689_v30 = vstv %s4668_s5  ;;  %s4805_s26 = sld [smem:[#allocation2 + $0x18]]  ;;  %s4809_s5 = sld [smem:[#allocation2 + $0x22]] }
 0x773   :  { %v4607_v8 = vmul.f32 0.0625, %v2172_v50  ;;  %v2622_v10 = vadd.f32 %v2620_v2, %v4508_v17  ;;  %v2648_v57 = vadd.f32 %v2644_v53, %v2636_v0  ;;  %v2699_v12 = vrot.slane %v2695_v38, 1  ;;  %v5618_v0 = vld [vmem:[#allocation60_spill] sm:$0xff] }
 0x774   :  { %v2698_v25 = vrot.slane %v2694_v59, 1  ;;  %v4703_v55 = vstv %s4672_s27  ;;  %v2691_v60 = vmul.f32 %v2689_v30, %v4494_v23  ;;  %v2690_v26 = vmul.f32 %v2689_v30, %v4497_v52  ;;  %s4821_s27 = sld [smem:[#allocation2 + $0x19]] }
 0x775   :  { %1046 = vrot.lane.b32.xlu1 %v4559_v4, %s3126_s17  ;;  %v2349_v28 = vrot.slane %v4607_v8, 7  ;;  %v2436_v39 = vrot.slane %v4607_v8, 1  ;;  %v2650_v54 = vadd.f32 %v2648_v57, %v2622_v10  ;;  %v4708_v34 = vstv %s4677_s1  ;;  %s4823_s1 = sld [smem:[#allocation2 + $0x23]] }
 0x776   :  { %v1980_v31 = vmax.f32 %v5616_v3, %v5615_v62 }
 0x777   :  { %v4615_v13 = vsel %vm829_vm5, 0.0, %v2349_v28  ;;  %v4623_v37 = vsel %vm5609_vm1, %v2436_v39, 0.0 }
 0x778   :  { %v1080_v40 = vstv %s4809_s5 }
 0x779   :  { %983 = vrot.lane.b32.xlu1 %v4581_v6, %s3125_s6 }
 0x77d   :  { %1006 = vrot.lane.b32.xlu1 %v4581_v6, %s3126_s17 }
 0x781   :  { %1070 = vrot.lane.b32.xlu1 %v4597_v22, %s3125_s6 }
 0x785   :  { %1094 = vrot.lane.b32.xlu1 %v4597_v22, %s3126_s17 }
 0x789   :  { %2397 = vrot.lane.b32.xlu1 %v4607_v8, %s3125_s6 }
 0x78d   :  { %2421 = vrot.lane.b32.xlu1 %v4607_v8, %s3126_s17 }
 0x791   :  { %2358 = vrot.lane.b32.xlu1 %v4615_v13, %s3125_s6 }
 0x795   :  { %2381 = vrot.lane.b32.xlu1 %v4615_v13, %s3126_s17 }
 0x799   :  { %2445 = vrot.lane.b32.xlu1 %v4623_v37, %s3125_s6 }
 0x79d   :  { %2469 = vrot.lane.b32.xlu1 %v4623_v37, %s3126_s17 }
 0x7a1   :  { %873 = vrot.lane.b32.xlu1 %v4489_v58, %s3125_s6 }
 0x7a5   :  { %897 = vrot.lane.b32.xlu1 %v4489_v58, %s3126_s17 }
 0x7a9   :  { %875 = vrot.lane.b32.xlu1 %v4638_v7, %s3125_s6 }
 0x7ad   :  { %899 = vrot.lane.b32.xlu1 %v4638_v7, %s3126_s17 }
 0x7b1   :  { %834 = vrot.lane.b32.xlu1 %v4530_v63, %s3125_s6 }
 0x7b5   :  { %836 = vrot.lane.b32.xlu1 %v4648_v20, %s3125_s6 }
 0x7b9   :  { %859 = vrot.lane.b32.xlu1 %v4648_v20, %s3126_s17 }
 0x7bd   :  { %924 = vrot.lane.b32.xlu1 %v4656_v5, %s3125_s6 }
 0x7c1   :  { %948 = vrot.lane.b32.xlu1 %v4656_v5, %s3126_s17 }
 0x7d3   :  { %v2663_v15 = vpop.permute.xlu1 %2662  ;;  %v2661_v45 = vpop.permute.xlu0 %2660 }
 0x7d4   :  { %v2664_v51 = vsel %vm75_vm3, %v2661_v45, %v2663_v15  ;;  %v2667_v49 = vsel %vm75_vm3, 0.0, %v2661_v45  ;;  %v2703_v15 = vadd.f32 %v2699_v12, %v2691_v60  ;;  %v2702_v45 = vadd.f32 %v2698_v25, %v2690_v26 }
 0x7d5   :  { %v2668_v48 = vmul.f32 %v2667_v49, %v3342_v43  ;;  %v2669_v18 = vmul.f32 %v2664_v51, %v3349_v47  ;;  %v1000_v12 = vstv %s4714_s28  ;;  %v5520_v60 = vstv %s4724_s14  ;;  %s4983_s28 = sld [smem:[#allocation2 + $0xb]] }
 0x7d7   :  { %v2676_v44 = vmul.f32 %v2668_v48, %v4689_v14  ;;  %v2677_v1 = vmul.f32 %v2669_v18, %v4689_v14  ;;  %v4695_v35 = vpop.permute.xlu1 %2708  ;;  %v2707_v11 = vpop.permute.xlu0 %2706  ;;  %v2672_v50 = vmul.f32 %v2668_v48, %v4687_v29  ;;  %v2673_v39 = vmul.f32 %v2669_v18, %v4687_v29 }
 0x7d8   :  { %v2710_v28 = vsel %vm5614_vm12, %v2707_v11, %v4695_v35 }
 0x7d9   :  { %v2680_v33 = vrot.slane %v2676_v44, 1  ;;  %v2681_v17 = vrot.slane %v2677_v1, 1  ;;  %v2714_v9 = vmul.f32 %v2710_v28, %v3332_v36 }
 0x7db   :  { %v2684_v46 = vadd.f32 %v2680_v33, %v2672_v50  ;;  %v2685_v16 = vadd.f32 %v2681_v17, %v2673_v39  ;;  %v1983_v24 = vpop.permute.xlu1 %1982  ;;  %v2722_v41 = vmul.f32 %v2714_v9, %v4703_v55  ;;  %v2718_v52 = vmul.f32 %v2714_v9, %v4708_v34 }
 0x7dc   :  { %v1985_v53 = vmax.f32 %v4525_v32, %v1983_v24  ;;  %v5524_v50 = vstv %s4717_s7  ;;  %v5525_v9 = vstv %s4719_s29 }
 0x7dd   :  { %v2686_v23 = vadd.f32 %v2684_v46, %v4515_v21  ;;  %v2687_v38 = vadd.f32 %v2685_v16, %v2650_v54  ;;  %v2726_v59 = vrot.slane %v2722_v41, 1  ;;  %v5617_v21 = vld [vmem:[#allocation43_spill] sm:$0xff]  ;;  %v853_v54 = vstv %s4726_s15  ;;  %s5669_s15 = smov 64  }
 0x7de   :  { %v1986_v51 = vmax.f32 %v1980_v31, %v1985_v53  ;;  %v2003_v48 = vadd.f32 %v5618_v0, %v5617_v21  ;;  %v890_v46 = vstv %s4722_s13  ;;  %v5523_v16 = vstv %s4732_s19  ;;  %s5029_s13 = sld [smem:[#allocation2 + $0x11]] }
 0x7df   :  { %v4728_v32 = vadd.f32 %v2703_v15, %v2687_v38  ;;  %v2704_v49 = vadd.f32 %v2702_v45, %v2686_v23  ;;  %v2006_v2 = vpop.permute.xlu1 %2005  ;;  %v2730_v18 = vadd.f32 %v2726_v59, %v2718_v52  ;;  %v990_v45 = vstv %s4736_s20  ;;  %v5621_v23 = vld [vmem:[#allocation50_spill] sm:$0xff]  ;;  %s4985_s20 = sld [smem:[#allocation2 + $0x3]] }
 0x7e0   :  { %v2008_v30 = vadd.f32 %v2006_v2, %v4544_v27  ;;  %2249 = vrot.lane.b32.xlu0 %v1986_v51, %s3125_s6  ;;  %v2289_v10 = vrot.slane %v1986_v51, 1  ;;  %v2202_v1 = vrot.slane %v1986_v51, 7  ;;  %v2267_v3 = vmul.f32 %v1986_v51, %v890_v46 }
 0x7e1   :  { %v4738_v57 = vadd.f32 %v2730_v18, %v2704_v49  ;;  %v987_v38 = vsel %vm75_vm3, 0.0, %v5621_v23  ;;  %v993_v52 = vstv %s4740_s21  ;;  %v997_v21 = vstv %s4742_s22  ;;  %s4989_s21 = sld [smem:[#allocation2 + $0xe]]  ;;  %s4996_s22 = sld [smem:[#allocation2 + $0x5]] }
 0x7e2   :  { %v2009_v44 = vadd.f32 %v2008_v30, %v2003_v48  ;;  %v2293_v25 = vsel %vm5619_vm13, %v2289_v10, 0.0  ;;  %v4754_v28 = vsel %vm829_vm5, 0.0, %v2202_v1  ;;  %v991_v48 = vmul.f32 %v990_v45, %v987_v38 }
 0x7e3   :  { %v1023_v11 = vpop.permute.xlu1 %1022  ;;  %v2315_v31 = vmul.f32 %v2293_v25, %v5520_v60  ;;  %v2227_v41 = vmul.f32 %v4754_v28, %v5525_v9  ;;  %v1013_v18 = vstv %s4745_s23  ;;  %v1001_v30 = vmul.f32 %v1000_v12, %v4581_v6  ;;  %s5002_s23 = sld [smem:[#allocation2 + $0xf]] }
 0x7e4   :  { %v2010_v27 = vmul.f32 0.0625, %v2009_v44  ;;  %2273 = vrot.lane.b32.xlu0 %v1986_v51, %s3126_s17  ;;  %v5622_v44 = vld [vmem:[#allocation51_spill] sm:$0xff]  ;;  %v1016_v6 = vstv %s4756_s8  ;;  %v1109_v9 = vstv %s4882_s12  ;;  %s4981_s12 = sld [smem:[#allocation2 + $0xc]]  ;;  %s5257_s8 = sld [smem:[#allocation2 + $0x2a]] }
 0x7e6   :  { %2251 = vrot.lane.b32.xlu1 %v2010_v27, %s3125_s6  ;;  %v2203_v39 = vrot.slane %v2010_v27, 7  ;;  %v2290_v33 = vrot.slane %v2010_v27, 1  ;;  %v2270_v17 = vmul.f32 %v2010_v27, %v5524_v50 }
 0x7e7   :  { %v1047_v26 = vpop.permute.xlu1 %1046 }
 0x7e8   :  { %2297 = vrot.lane.b32.xlu0 %v2293_v25, %s3125_s6  ;;  %v4771_v24 = vsel %vm829_vm5, 0.0, %v2203_v39  ;;  %v4774_v62 = vsel %vm5620_vm14, %v2290_v33, 0.0  ;;  %v4798_v59 = vadd.f32 %v2270_v17, %v2267_v3  ;;  %vm5623_vm5 = vmmov %vm5608_vm7  ;;  %v5624_v39 = vld [vmem:[#allocation33_spill] sm:$0xff] }
 0x7e9   :  { %v2230_v53 = vmul.f32 %v4771_v24, %v853_v54  ;;  %v2318_v15 = vmul.f32 %v4774_v62, %v5523_v16  ;;  %v1010_v1 = vsel %vm5623_vm5, %v5622_v44, 0.0  ;;  %v998_v33 = vmul.f32 %v997_v21, %v5624_v39  ;;  %vm5626_vm15 = vmmov %vm5623_vm5 }
 0x7ea   :  { %2275 = vrot.lane.b32.xlu1 %v2010_v27, %s3126_s17  ;;  %v1032_v27 = vstv %s4748_s24  ;;  %v1014_v23 = vmul.f32 %v1013_v18, %v1010_v1  ;;  %vm5627_vm4 = vmmov %vm5623_vm5  ;;  %s5013_s24 = sld [smem:[#allocation2 + $0x6]] }
 0x7eb   :  { %v984_v51 = vpop.permute.xlu1 %983  ;;  %v4800_v49 = vadd.f32 %v2318_v15, %v2315_v31  ;;  %v4802_v2 = vadd.f32 %v2230_v53, %v2227_v41  ;;  %v1040_v31 = vstv %s4764_s25  ;;  %v1029_v41 = vstv %s4766_s0  ;;  %v5625_v53 = vld [vmem:[#allocation46_spill] sm:$0xff]  ;;  %s4851_s25 = sld [smem:[#allocation2 + $0x1b]]  ;;  %vm5629_vm9 = vmmov %vm5627_vm4 }
 0x7ec   :  { %v988_v0 = vsel %vm75_vm3, 0.0, %v984_v51  ;;  %2321 = vrot.lane.b32.xlu0 %v2293_v25, %s3126_s17  ;;  %v1027_v25 = vsel %vm75_vm3, 0.0, %v1023_v11  ;;  %v1026_v11 = vsel %vm75_vm3, 0.0, %v5625_v53  ;;  %v1002_v38 = vadd.f32 %v1001_v30, %v998_v33  ;;  %v5628_v53 = vld [vmem:[#allocation48_spill] sm:$0xff]  ;;  %vm5632_vm0 = vmmov %vm5627_vm4  ;;  %s5274_s0 = sld [smem:[#allocation2 + $0x2b]] }
 0x7ed   :  { %v994_v10 = vmul.f32 %v993_v52, %v988_v0  ;;  %v1033_v51 = vmul.f32 %v1032_v27, %v1027_v25  ;;  %v1051_v44 = vsel %vm5627_vm4, %v1047_v26, 0.0  ;;  %v1041_v1 = vmul.f32 %v1040_v31, %v4559_v4  ;;  %vm5634_vm6 = vmmov %vm5632_vm0 }
 0x7ee   :  { %2210 = vrot.lane.b32.xlu1 %v4754_v28, %s3125_s6  ;;  %v1030_v30 = vmul.f32 %v1029_v41, %v1026_v11  ;;  %v1077_v11 = vstv %s4821_s27  ;;  %vm5639_vm10 = vmmov %vm5632_vm0 }
 0x7ef   :  { %v995_v17 = vadd.f32 %v994_v10, %v991_v48  ;;  %v1007_v3 = vpop.permute.xlu1 %1006  ;;  %v1037_v48 = vstv %s4789_s2  ;;  %v1056_v10 = vstv %s4794_s4  ;;  %vm5641_vm8 = vmmov %vm5632_vm0  ;;  %s5282_s2 = sld [smem:[#allocation2 + $0x36]]  ;;  %s5297_s4 = sld [smem:[#allocation2 + $0x2d]] }
 0x7f0   :  { %v1011_v15 = vsel %vm5626_vm15, %v1007_v3, 0.0  ;;  %2212 = vrot.lane.b32.xlu0 %v4771_v24, %s3125_s6  ;;  %v1053_v3 = vstv %s4805_s26  ;;  %v1034_v4 = vadd.f32 %v1033_v51, %v1030_v30  ;;  %v1057_v31 = vmul.f32 %v1056_v10, %v1051_v44  ;;  %vm5642_vm7 = vmmov %vm5632_vm0  ;;  %s2948_s26 = sld [smem:[#allocation2 + $0x38]] }
 0x7f1   :  { %v1017_v0 = vmul.f32 %v1016_v6, %v1011_v15  ;;  %v1003_v25 = vadd.f32 %v1002_v38, %v995_v17  ;;  %v1050_v15 = vsel %vm5629_vm9, %v5628_v53, 0.0  ;;  %v1085_v30 = vstv %s4834_s3  ;;  %vm5644_vm1 = vmmov %vm5632_vm0  ;;  %s4973_s3 = sld [smem:[#allocation2 + $0x9]] }
 0x7f2   :  { %2233 = vrot.lane.b32.xlu1 %v4754_v28, %s3126_s17  ;;  %v5630_v28 = vld [vmem:[#allocation32_spill] sm:$0xff]  ;;  %vm5647_vm2 = vmmov %vm5632_vm0 }
 0x7f3   :  { %v1018_v39 = vadd.f32 %v1017_v0, %v1014_v23  ;;  %v1071_v33 = vpop.permute.xlu1 %1070  ;;  %v1038_v60 = vmul.f32 %v1037_v48, %v5630_v28  ;;  %v5631_v23 = vld [vmem:[#allocation52_spill] sm:$0xff]  ;;  %v1088_v0 = vstv %s4823_s1  ;;  %vm5649_vm11 = vmmov %vm5632_vm0 }
 0x7f4   :  { %v1075_v26 = vsel %vm75_vm3, 0.0, %v1071_v33  ;;  %v1074_v38 = vsel %vm75_vm3, 0.0, %v5631_v23  ;;  %v1054_v33 = vmul.f32 %v1053_v3, %v1050_v15  ;;  %vm5651_vm12 = vmmov %vm5632_vm0 }
 0x7f5   :  { %v1019_v17 = vadd.f32 %v1018_v39, %v1003_v25  ;;  %v1042_v28 = vadd.f32 %v1041_v1, %v1038_v60  ;;  %v1081_v51 = vmul.f32 %v1080_v40, %v1075_v26  ;;  %v1104_v25 = vstv %s4842_s11  ;;  %v5633_v1 = vld [vmem:[#allocation53_spill] sm:$0xff]  ;;  %s4977_s11 = sld [smem:[#allocation2 + $0x2]]  ;;  %vm5653_vm13 = vmmov %vm5632_vm0 }
 0x7f6   :  { %2235 = vrot.lane.b32.xlu1 %v4771_v24, %s3126_s17  ;;  %v1078_v23 = vmul.f32 %v1077_v11, %v1074_v38  ;;  %v1089_v24 = vmul.f32 %v1088_v0, %v4597_v22  ;;  %v1058_v15 = vadd.f32 %v1057_v31, %v1054_v33  ;;  %v1101_v60 = vstv %s4851_s25  ;;  %vm5654_vm14 = vmmov %vm5632_vm0 }
 0x7f7   :  { %v1035_v53 = vadd.f32 %v1034_v4, %v1019_v17  ;;  %v1095_v44 = vpop.permute.xlu1 %1094  ;;  %v1098_v26 = vsel %vm5634_vm6, %v5633_v1, 0.0  ;;  %v5635_v4 = vld [vmem:[#allocation35_spill] sm:$0xff]  ;;  %vm5656_vm5 = vmmov %vm5632_vm0 }
 0x7f8   :  { %v1099_v39 = vsel %vm5632_vm0, %v1095_v44, 0.0  ;;  %v1086_v17 = vmul.f32 %v1085_v30, %v5635_v4  ;;  %v1082_v50 = vadd.f32 %v1081_v51, %v1078_v23  ;;  %v1102_v31 = vmul.f32 %v1101_v60, %v1098_v26  ;;  %v5636_v51 = vld [vmem:[#allocation56_spill] sm:$0xff]  ;;  %vm5658_vm15 = vmmov %vm5632_vm0 }
 0x7f9   :  { %v1043_v16 = vadd.f32 %v1042_v28, %v1035_v53  ;;  %v1105_v38 = vmul.f32 %v1104_v25, %v1099_v39  ;;  %v2362_v39 = vsel %vm75_vm3, 0.0, %v5636_v51  ;;  %vm5659_vm4 = vmmov %vm5632_vm0 }
 0x7fa   :  { %2299 = vrot.lane.b32.xlu1 %v4774_v62, %s3125_s6  ;;  %v1090_v33 = vadd.f32 %v1089_v24, %v1086_v17  ;;  %s2983_s6 = sld [smem:[#allocation2 + $0x20]]  ;;  %vm5663_vm9 = vmmov %vm5632_vm0 }
 0x7fb   :  { %v1059_v44 = vadd.f32 %v1058_v15, %v1043_v16  ;;  %v2398_v22 = vpop.permute.xlu1 %2397  ;;  %v1106_v1 = vadd.f32 %v1105_v38, %v1102_v31  ;;  %v5638_v31 = vld [vmem:[#allocation57_spill] sm:$0xff]  ;;  %vm5664_vm6 = vmmov %vm5632_vm0 }
 0x7fd   :  { %v1083_v53 = vadd.f32 %v1082_v50, %v1059_v44  ;;  %v2376_v50 = vmul.f32 %v4615_v13, %v1000_v12  ;;  %v5637_v44 = vld [vmem:[#allocation40_spill] sm:$0xff] }
 0x7fe   :  { %2323 = vrot.lane.b32.xlu1 %v4774_v62, %s3126_s17  ;;  %v2366_v62 = vmul.f32 %v2362_v39, %v990_v45  ;;  %v2373_v38 = vmul.f32 %v5637_v44, %v997_v21  ;;  %s4971_s17 = sld [smem:[#allocation2]] }
 0x7ff   :  { %v1091_v28 = vadd.f32 %v1090_v33, %v1083_v53  ;;  %v2422_v4 = vpop.permute.xlu1 %2421  ;;  %v2385_v33 = vsel %vm5639_vm10, %v5638_v31, 0.0  ;;  %v2402_v53 = vsel %vm75_vm3, 0.0, %v2398_v22  ;;  %v5646_v31 = vld [vmem:[#allocation58_spill] sm:$0xff]  ;;  %vm5665_vm10 = vmmov %vm5632_vm0 }
 0x800   :  { %v2377_v45 = vadd.f32 %v2376_v50, %v2373_v38  ;;  %v2389_v39 = vmul.f32 %v2385_v33, %v1013_v18  ;;  %v2408_v21 = vmul.f32 %v2402_v53, %v1032_v27  ;;  %v5645_v27 = vld [vmem:[#allocation37_spill] sm:$0xff]  ;;  %v2449_v33 = vsel %vm75_vm3, 0.0, %v5646_v31 }
 0x801   :  { %v1107_v16 = vadd.f32 %v1106_v1, %v1091_v28  ;;  %v5640_v1 = vld [vmem:[#allocation54_spill] sm:$0xff]  ;;  %v846_v31 = vstv %s4973_s3 }
 0x803   :  { %v1110_v23 = vadd.f32 %v1109_v9, %v1107_v16  ;;  %v2359_v15 = vpop.permute.xlu1 %2358  ;;  %v2401_v16 = vsel %vm75_vm3, 0.0, %v5640_v1 }
 0x804   :  { %v2363_v24 = vsel %vm75_vm3, 0.0, %v2359_v15  ;;  %v2405_v15 = vmul.f32 %v2401_v16, %v1029_v41 }
 0x805   :  { %v1111_v26 = vsub.f32 0.0, %v1110_v23  ;;  %v2369_v17 = vmul.f32 %v2363_v24, %v993_v52  ;;  %v2415_v52 = vstv %s2983_s6  ;;  %v2426_v23 = vsel %vm5642_vm7, %v2422_v4, 0.0  ;;  %vm5667_vm7 = vmmov %vm5632_vm0 }
 0x806   :  { %v2416_v50 = vmul.f32 %v2415_v52, %v4607_v8  ;;  %v2409_v38 = vadd.f32 %v2408_v21, %v2405_v15  ;;  %v2432_v4 = vmul.f32 %v2426_v23, %v1056_v10  ;;  %v2464_v10 = vmul.f32 %v4623_v37, %v1088_v0 }
 0x807   :  { %v1112_v28 = vmul.f32 1.442695, %v1111_v26  ;;  %v2370_v13 = vadd.f32 %v2369_v17, %v2366_v62  ;;  %v2382_v12 = vpop.permute.xlu1 %2381  ;;  %v5643_v17 = vld [vmem:[#allocation55_spill] sm:$0xff] }
 0x808   :  { %v2386_v51 = vsel %vm5641_vm8, %v2382_v12, 0.0  ;;  %v2425_v18 = vsel %vm5644_vm1, %v5643_v17, 0.0  ;;  %vm5666_vm8 = vmmov %vm5632_vm0  ;;  %vm1398_vm1 = vcmask 261120  }
 0x809   :  { %3076 = vpow2.f32 %v1112_v28  ;;  %v2392_v22 = vmul.f32 %v2386_v51, %v1016_v6  ;;  %v2378_v24 = vadd.f32 %v2377_v45, %v2370_v13  ;;  %v2413_v6 = vmul.f32 %v5645_v27, %v1037_v48  ;;  %v5648_v51 = vld [vmem:[#allocation61_spill] sm:$0xff] }
 0x80a   :  { %v2429_v8 = vmul.f32 %v2425_v18, %v1053_v3  ;;  %v2453_v48 = vmul.f32 %v2449_v33, %v1077_v11  ;;  %v2473_v52 = vsel %vm5649_vm11, %v5648_v51, 0.0  ;;  %v858_v33 = vpop.permute.xlu0 %857  ;;  %v5652_v51 = vstv %s4719_s29  ;;  %s5037_s29 = sld [smem:[#allocation2 + $0x8]] }
 0x80b   :  { %v2393_v62 = vadd.f32 %v2392_v22, %v2389_v39  ;;  %v2446_v26 = vpop.permute.xlu1 %2445  ;;  %v2417_v28 = vadd.f32 %v2416_v50, %v2413_v6  ;;  %v5650_v39 = vld [vmem:[#allocation41_spill] sm:$0xff]  ;;  %v3134_v6 = vmov 2   ;;  %vm1400_vm11 = vcmask 392192  }
 0x80c   :  { %v2450_v44 = vsel %vm75_vm3, 0.0, %v2446_v26  ;;  %v2433_v16 = vadd.f32 %v2432_v4, %v2429_v8  ;;  %v2461_v21 = vmul.f32 %v5650_v39, %v1085_v30  ;;  %v843_v4 = vstv %s4971_s17 }
 0x80d   :  { %v2394_v41 = vadd.f32 %v2393_v62, %v2378_v24  ;;  %v2456_v13 = vmul.f32 %v2450_v44, %v1080_v40  ;;  %v2477_v24 = vmul.f32 %v2473_v52, %v1101_v60  ;;  %v851_v52 = vmul.f32 %v5652_v51, %v4530_v63 }
 0x80e   :  { %v2465_v37 = vadd.f32 %v2464_v10, %v2461_v21  ;;  %v863_v10 = vsel %vm5651_vm12, %v858_v33, 0.0  ;;  %v3139_v33 = vmov 10   ;;  %vm1402_vm12 = vcmask 523264  }
 0x80f   :  { %v2410_v53 = vadd.f32 %v2409_v38, %v2394_v41  ;;  %v2470_v12 = vpop.permute.xlu1 %2469  ;;  %v2457_v40 = vadd.f32 %v2456_v13, %v2453_v48  ;;  %v3135_v38 = vmov 4   ;;  %v854_v13 = vmul.f32 %v853_v54, %v4648_v20 }
 0x810   :  { %v2474_v1 = vsel %vm5647_vm2, %v2470_v12, 0.0  ;;  %v866_v12 = vstv %s4977_s11  ;;  %v869_v20 = vstv %s4983_s28  ;;  %vm5671_vm2 = vcmask 130048  }
 0x811   :  { %v2418_v45 = vadd.f32 %v2417_v28, %v2410_v53  ;;  %v2480_v23 = vmul.f32 %v2474_v1, %v1104_v25  ;;  %v891_v28 = vmul.f32 %v890_v46, %v4489_v58  ;;  %v3136_v58 = vmov 3  }
 0x812   :  { %v3137_v46 = vmov 7   ;;  %v867_v63 = vmul.f32 %v866_v12, %v863_v10 }
 0x813   :  { %v3077_v3 = vpop.eup %3076  ;;  %v2434_v22 = vadd.f32 %v2433_v16, %v2418_v45  ;;  %v4963_v15 = vpop.permute.xlu1 %873  ;;  %v2481_v50 = vadd.f32 %v2480_v23, %v2477_v24  ;;  %v885_v16 = vstv %s4981_s12 }
 0x814   :  { %v1114_v11 = vadd.f32 1.0, %v3077_v3  ;;  %v882_v3 = vstv %s4985_s20 }
 0x815   :  { %v2458_v0 = vadd.f32 %v2457_v40, %v2434_v22  ;;  %v879_v40 = vsel %vm75_vm3, 0.0, %v4963_v15  ;;  %v5655_v15 = vstv %s4717_s7  ;;  %s5067_s7 = sld [smem:[#allocation2 + $0x12]] }
 0x816   :  { %3078 = vrcp.f32 %v1114_v11  ;;  %v923_v11 = vpop.permute.xlu0 %922 }
 0x817   :  { %v2466_v62 = vadd.f32 %v2465_v37, %v2458_v0  ;;  %v4967_v26 = vpop.permute.xlu1 %897  ;;  %v855_v37 = vadd.f32 %v854_v13, %v851_v52  ;;  %v928_v10 = vsel %vm75_vm3, 0.0, %v923_v11  ;;  %v3141_v11 = vmov 13  }
 0x819   :  { %v2482_v17 = vadd.f32 %v2481_v50, %v2466_v62  ;;  %v909_v62 = vstv %s4989_s21 }
 0x81b   :  { %v2485_v18 = vadd.f32 %v2482_v17, %v1109_v9  ;;  %v876_v30 = vpop.permute.xlu1 %875  ;;  %v894_v17 = vmul.f32 %v5655_v15, %v4638_v7  ;;  %v934_v7 = vstv %s5002_s23 }
 0x81c   :  { %v880_v45 = vsel %vm75_vm3, 0.0, %v876_v30  ;;  %v906_v30 = vstv %s4996_s22 }
 0x81d   :  { %v2486_v44 = vsub.f32 0.0, %v2485_v18  ;;  %v886_v24 = vmul.f32 %v885_v16, %v880_v45  ;;  %v883_v18 = vmul.f32 %v882_v3, %v879_v40  ;;  %v947_v45 = vpop.permute.xlu0 %946  ;;  %v895_v51 = vadd.f32 %v894_v17, %v891_v28 }
 0x81e   :  { %v958_v40 = vstv %s5029_s13 }
 0x81f   :  { %v2487_v25 = vmul.f32 1.442695, %v2486_v44  ;;  %v900_v27 = vpop.permute.xlu1 %899 }
 0x820   :  { %v4975_v60 = vpop.eup %3078  ;;  %v904_v50 = vsel %vm5654_vm14, %v900_v27, 0.0  ;;  %v903_v27 = vsel %vm5656_vm5, %v4967_v26, 0.0  ;;  %vm1406_vm14 = vcmask 785408   ;;  %vm5676_vm5 = vcmask 1039360  }
 0x821   :  { %3080 = vpow2.f32 %v2487_v25  ;;  %1411 = vperm.xlu1 %3041, %v4975_v60   ;;  %1415 = vperm.xlu0 %3042, %v4975_v60   ;;  %v910_v13 = vmul.f32 %v909_v62, %v904_v50  ;;  %v907_v26 = vmul.f32 %v906_v30, %v903_v27  ;;  %v5660_v50 = vstv %s4724_s14  ;;  %s5668_s14 = smov 32  }
 0x822   :  { %v940_v15 = vmul.f32 %v5660_v50, %v4551_v56 }
 0x823   :  { %v835_v9 = vpop.permute.xlu1 %834 }
 0x824   :  { %v840_v41 = vsel %vm75_vm3, 0.0, %v835_v9  ;;  %v3138_v9 = vmov 5  }
 0x825   :  { %3043 = vset.pattern.permute.xlu1 %v3134_v6  ;;  %3045 = vset.pattern.permute.xlu0 %v3135_v38  ;;  %v844_v1 = vmul.f32 %v843_v4, %v840_v41 }
 0x826   :  { %1419 = vperm.xlu1 %3043, %v4975_v60   ;;  %1427 = vperm.xlu0 %3045, %v4975_v60  }
 0x827   :  { %v837_v8 = vpop.permute.xlu1 %836 }
 0x828   :  { %v841_v53 = vsel %vm75_vm3, 0.0, %v837_v8 }
 0x829   :  { %v847_v48 = vmul.f32 %v846_v31, %v841_v53  ;;  %v887_v53 = vadd.f32 %v886_v24, %v883_v18  ;;  %v911_v24 = vadd.f32 %v910_v13, %v907_v26  ;;  %v5661_v13 = vmov 1  }
 0x82a   :  { %3044 = vset.pattern.permute.xlu1 %v3136_v58  ;;  %3048 = vset.pattern.permute.xlu0 %v3137_v46  ;;  %v3143_v26 = vmov 9  }
 0x82b   :  { %v3081_v54 = vpop.eup %3080  ;;  %v848_v39 = vadd.f32 %v847_v48, %v844_v1  ;;  %1423 = vperm.xlu1 %3044, %v4975_v60   ;;  %v860_v21 = vpop.permute.xlu1 %859  ;;  %1439 = vperm.xlu0 %3048, %v4975_v60   ;;  %v931_v48 = vstv %s5013_s24 }
 0x82c   :  { %v2489_v22 = vadd.f32 1.0, %v3081_v54  ;;  %v864_v23 = vsel %vm5653_vm13, %v860_v21, 0.0  ;;  %v5657_v21 = vstv %s4732_s19  ;;  %v932_v28 = vmul.f32 %v931_v48, %v928_v10  ;;  %s5670_s19 = smov 96  }
 0x82d   :  { %v870_v0 = vmul.f32 %v869_v20, %v864_v23  ;;  %v856_v44 = vadd.f32 %v855_v37, %v848_v39  ;;  %v963_v10 = vstv %s5067_s7  ;;  %vm1404_vm13 = vcmask 654336  }
 0x82e   :  { %3082 = vrcp.f32 %v2489_v22  ;;  %v943_v22 = vmul.f32 %v5657_v21, %v4656_v5  ;;  %v955_v5 = vstv %s5037_s29  ;;  %v3145_v21 = vmov 12  }
 0x82f   :  { %v871_v25 = vadd.f32 %v870_v0, %v867_v63  ;;  %3046 = vset.pattern.permute.xlu1 %v3138_v9  ;;  %v925_v41 = vpop.permute.xlu1 %924  ;;  %3051 = vset.pattern.permute.xlu0 %v3139_v33  ;;  %v3140_v63 = vmov 6   ;;  %v952_v0 = vsel %vm5659_vm4, %v947_v45, 0.0  ;;  %vm5687_vm4 = vmmov %vm5676_vm5 }
 0x830   :  { %v929_v8 = vsel %vm75_vm3, 0.0, %v925_v41  ;;  %1431 = vperm.xlu1 %3046, %v4975_v60   ;;  %1451 = vperm.xlu0 %3051, %v4975_v60   ;;  %v944_v41 = vadd.f32 %v943_v22, %v940_v15  ;;  %v956_v27 = vmul.f32 %v955_v5, %v952_v0 }
 0x831   :  { %v872_v1 = vadd.f32 %v871_v25, %v856_v44  ;;  %v935_v52 = vmul.f32 %v934_v7, %v929_v8 }
 0x833   :  { %v888_v54 = vadd.f32 %v887_v53, %v872_v1  ;;  %v949_v39 = vpop.permute.xlu1 %948  ;;  %v936_v18 = vadd.f32 %v935_v52, %v932_v28  ;;  %v3142_v53 = vmov 8  }
 0x834   :  { %v953_v23 = vsel %vm5658_vm15, %v949_v39, 0.0  ;;  %3047 = vset.pattern.permute.xlu1 %v3140_v63  ;;  %3054 = vset.pattern.permute.xlu0 %v3141_v11  ;;  %v3144_v39 = vmov 11   ;;  %vm5677_vm15 = vmmov %vm5676_vm5 }
 0x835   :  { %v896_v37 = vadd.f32 %v895_v51, %v888_v54  ;;  %1435 = vperm.xlu1 %3047, %v4975_v60   ;;  %1463 = vperm.xlu0 %3054, %v4975_v60   ;;  %v959_v44 = vmul.f32 %v958_v40, %v953_v23  ;;  %v3147_v23 = vmov 15  }
 0x837   :  { %v912_v17 = vadd.f32 %v911_v24, %v896_v37  ;;  %v960_v1 = vadd.f32 %v959_v44, %v956_v27  ;;  %v5662_v24 = vmov 0  }
 0x838   :  { %v5082_v25 = vpop.eup %3082 }
 0x839   :  { %v937_v8 = vadd.f32 %v936_v18, %v912_v17  ;;  %3049 = vset.pattern.permute.xlu1 %v3142_v53  ;;  %3058 = vset.pattern.permute.xlu0 %v5661_v13 }
 0x83a   :  { %1443 = vperm.xlu1 %3049, %v4975_v60   ;;  %2785 = vperm.xlu0 %3058, %v5082_v25  }
 0x83b   :  { %v945_v56 = vadd.f32 %v944_v41, %v937_v8 }
 0x83d   :  { %v961_v45 = vadd.f32 %v960_v1, %v945_v56 }
 0x83e   :  { %3050 = vset.pattern.permute.xlu1 %v3143_v26  ;;  %3061 = vset.pattern.permute.xlu0 %v3135_v38  ;;  %v3146_v38 = vmov 14  }
 0x83f   :  { %v964_v54 = vadd.f32 %v963_v10, %v961_v45  ;;  %1447 = vperm.xlu1 %3050, %v4975_v60   ;;  %2797 = vperm.xlu0 %3061, %v5082_v25  }
 0x841   :  { %v965_v51 = vsub.f32 0.0, %v964_v54 }
 0x843   :  { %v966_v52 = vmul.f32 1.442695, %v965_v51  ;;  %3052 = vset.pattern.permute.xlu1 %v3144_v39  ;;  %3064 = vset.pattern.permute.xlu0 %v3137_v46 }
 0x844   :  { %1455 = vperm.xlu1 %3052, %v4975_v60   ;;  %2809 = vperm.xlu0 %3064, %v5082_v25  }
 0x845   :  { %3084 = vpow2.f32 %v966_v52 }
 0x848   :  { %3053 = vset.pattern.permute.xlu1 %v3145_v21  ;;  %3067 = vset.pattern.permute.xlu0 %v3139_v33 }
 0x849   :  { %1459 = vperm.xlu1 %3053, %v4975_v60   ;;  %2821 = vperm.xlu0 %3067, %v5082_v25  }
 0x84d   :  { %3055 = vset.pattern.permute.xlu1 %v3146_v38  ;;  %3070 = vset.pattern.permute.xlu0 %v3141_v11 }
 0x84e   :  { %1467 = vperm.xlu1 %3055, %v4975_v60  }
 0x84f   :  { %v3085_v46 = vpop.eup %3084 }
 0x850   :  { %v968_v22 = vadd.f32 1.0, %v3085_v46 }
 0x852   :  { %3086 = vrcp.f32 %v968_v22  ;;  %3056 = vset.pattern.permute.xlu1 %v3147_v23  ;;  %v2250_v28 = vpop.permute.xlu0 %2249 }
 0x853   :  { %1471 = vperm.xlu1 %3056, %v4975_v60   ;;  %v2255_v1 = vsel %vm75_vm3, 0.0, %v2250_v28 }
 0x854   :  { %v2259_v51 = vmul.f32 %v2255_v1, %v882_v3 }
 0x856   :  { %v2274_v33 = vpop.permute.xlu0 %2273 }
 0x857   :  { %3057 = vset.pattern.permute.xlu1 %v5662_v24 }
 0x858   :  { %2781 = vperm.xlu1 %3057, %v5082_v25   ;;  %v2252_v37 = vpop.permute.xlu1 %2251 }
 0x859   :  { %v2256_v27 = vsel %vm75_vm3, 0.0, %v2252_v37 }
 0x85a   :  { %v2298_v0 = vpop.permute.xlu0 %2297 }
 0x85c   :  { %v5111_v11 = vpop.eup %3086  ;;  %3059 = vset.pattern.permute.xlu1 %v3134_v6  ;;  %v2276_v50 = vpop.permute.xlu1 %2275 }
 0x85d   :  { %2789 = vperm.xlu1 %3059, %v5082_v25   ;;  %1376 = vrot.lane.b32.xlu0 %v5111_v11, %s3123_s16  ;;  %v2280_v54 = vsel %vm5664_vm6, %v2276_v50, 0.0 }
 0x85e   :  { %v2322_v60 = vpop.permute.xlu0 %2321 }
 0x860   :  { %v2211_v15 = vpop.permute.xlu1 %2210 }
 0x861   :  { %3060 = vset.pattern.permute.xlu1 %v3136_v58  ;;  %1382 = vrot.lane.b32.xlu0 %v5111_v11, %s3129_s30  ;;  %v2216_v18 = vsel %vm75_vm3, 0.0, %v2211_v15 }
 0x862   :  { %2793 = vperm.xlu1 %3060, %v5082_v25   ;;  %v2213_v17 = vpop.permute.xlu0 %2212  ;;  %v2220_v58 = vmul.f32 %v2216_v18, %v843_v4  ;;  %v2262_v4 = vmul.f32 %v2256_v27, %v885_v16  ;;  %v2279_v16 = vsel %vm5665_vm10, %v2274_v33, 0.0  ;;  %vm5701_vm10 = vmmov %vm5671_vm2 }
 0x863   :  { %v2217_v6 = vsel %vm75_vm3, 0.0, %v2213_v17  ;;  %v2283_v3 = vmul.f32 %v2279_v16, %v906_v30 }
 0x864   :  { %v2223_v44 = vmul.f32 %v2217_v6, %v846_v31  ;;  %v2234_v41 = vpop.permute.xlu1 %2233  ;;  %v2263_v28 = vadd.f32 %v2262_v4, %v2259_v51 }
 0x865   :  { %1388 = vrot.lane.b32.xlu0 %v5111_v11, %s3130_s10  ;;  %v2239_v8 = vsel %vm5663_vm9, %v2234_v41, 0.0  ;;  %vm5690_vm9 = vmmov %vm5687_vm4 }
 0x866   :  { %3062 = vset.pattern.permute.xlu1 %v3138_v9  ;;  %v2224_v13 = vadd.f32 %v2223_v44, %v2220_v58  ;;  %v2243_v9 = vmul.f32 %v2239_v8, %v866_v12 }
 0x867   :  { %2801 = vperm.xlu1 %3062, %v5082_v25  }
 0x868   :  { %v2236_v56 = vpop.permute.xlu1 %2235  ;;  %v2232_v52 = vadd.f32 %v4802_v2, %v2224_v13  ;;  %v5672_v13 = vld [vmem:[#allocation44_spill] sm:$0xff] }
 0x869   :  { %v2240_v31 = vsel %vm5632_vm0, %v2236_v56, 0.0  ;;  %1394 = vrot.lane.b32.xlu0 %v5111_v11, %s3127_s18  ;;  %v5673_v56 = vld [vmem:[#allocation34_spill] sm:$0xff] }
 0x86a   :  { %v2246_v45 = vmul.f32 %v2240_v31, %v869_v20  ;;  %v2286_v20 = vmul.f32 %v2280_v54, %v909_v62  ;;  %v1134_v1 = vsel %vm75_vm3, %v5673_v56, %v5672_v13  ;;  %v1137_v54 = vsel %vm75_vm3, 0.0, %v5673_v56  ;;  %v5686_v13 = vld [vmem:[#allocation21_spill] sm:$0xff] }
 0x86b   :  { %3063 = vset.pattern.permute.xlu1 %v3140_v63  ;;  %v2303_v63 = vsel %vm75_vm3, 0.0, %v2298_v0  ;;  %v2327_v0 = vsel %vm5667_vm7, %v2322_v60, 0.0  ;;  %v1139_v51 = vmul.f32 %v1134_v1, %v3349_v47  ;;  %vm5704_vm7 = vcmask 916480  }
 0x86c   :  { %v2247_v46 = vadd.f32 %v2246_v45, %v2243_v9  ;;  %2805 = vperm.xlu1 %3063, %v5082_v25   ;;  %v2300_v22 = vpop.permute.xlu1 %2299  ;;  %v2307_v15 = vmul.f32 %v2303_v63, %v931_v48  ;;  %v2287_v62 = vadd.f32 %v2286_v20, %v2283_v3  ;;  %v5679_v63 = vld [vmem:[#allocation22_spill] sm:$0xff] }
 0x86d   :  { %v2304_v12 = vsel %vm75_vm3, 0.0, %v2300_v22  ;;  %v1138_v22 = vmul.f32 %v1137_v54, %v3342_v43  ;;  %v5680_v3 = vld [vmem:[#allocation62_spill] sm:$0xff] }
 0x86e   :  { %v2248_v24 = vadd.f32 %v2247_v46, %v2232_v52  ;;  %v2310_v37 = vmul.f32 %v2304_v12, %v934_v7  ;;  %v2331_v7 = vmul.f32 %v2327_v0, %v955_v5  ;;  %v5675_v52 = vld [vmem:[#allocation36_spill] sm:$0xff] }
 0x86f   :  { %v5678_v12 = vld [vmem:[#allocation64_spill] sm:$0xff] }
 0x870   :  { %v2264_v2 = vadd.f32 %v2263_v28, %v2248_v24  ;;  %3065 = vset.pattern.permute.xlu1 %v3142_v53  ;;  %v2324_v50 = vpop.permute.xlu1 %2323  ;;  %v2311_v30 = vadd.f32 %v2310_v37, %v2307_v15  ;;  %v1147_v28 = vmul.f32 %v5678_v12, %v1139_v51 }
 0x871   :  { %v2328_v33 = vsel %vm5666_vm8, %v2324_v50, 0.0  ;;  %2813 = vperm.xlu1 %3065, %v5082_v25   ;;  %v5681_v50 = vld [vmem:[#allocation19_spill] sm:$0xff]  ;;  %vm5702_vm8 = vmmov %vm5671_vm2 }
 0x872   :  { %v2272_v17 = vadd.f32 %v4798_v59, %v2264_v2  ;;  %v2334_v6 = vmul.f32 %v2328_v33, %v958_v40  ;;  %v1163_v2 = vmul.f32 %v5680_v3, %v5679_v63  ;;  %v5682_v33 = vld [vmem:[#allocation18_spill] sm:$0xff]  ;;  %v1151_v0 = vrot.slane %v1147_v28, 1  ;;  %v5691_v28 = vld [vmem:[#allocation15_spill] sm:$0xff] }
 0x873   :  { %v1206_v15 = vsel %vm75_vm3, %v5682_v33, %v5681_v50 }
 0x874   :  { %v2288_v18 = vadd.f32 %v2287_v62, %v2272_v17  ;;  %v2335_v48 = vadd.f32 %v2334_v6, %v2331_v7  ;;  %v1146_v62 = vmul.f32 %v5678_v12, %v1138_v22  ;;  %v1209_v17 = vsel %vm75_vm3, 0.0, %v5682_v33 }
 0x875   :  { %3066 = vset.pattern.permute.xlu1 %v3143_v26 }
 0x876   :  { %v2312_v53 = vadd.f32 %v2311_v30, %v2288_v18  ;;  %2817 = vperm.xlu1 %3066, %v5082_v25   ;;  %v5683_v30 = vld [vmem:[#allocation25_spill] sm:$0xff] }
 0x877   :  { %v1162_v6 = vmul.f32 %v5680_v3, %v5683_v30 }
 0x878   :  { %v2320_v44 = vadd.f32 %v4800_v49, %v2312_v53  ;;  %v1211_v53 = vmul.f32 %v1206_v15, %v3349_v47 }
 0x87a   :  { %v2336_v41 = vadd.f32 %v2335_v48, %v2320_v44  ;;  %3068 = vset.pattern.permute.xlu1 %v3144_v39  ;;  %v1167_v44 = vrot.slane %v1163_v2, 1  ;;  %v5684_v48 = vld [vmem:[#allocation65_spill] sm:$0xff] }
 0x87b   :  { %2825 = vperm.xlu1 %3068, %v5082_v25  }
 0x87c   :  { %v2339_v59 = vadd.f32 %v2336_v41, %v963_v10  ;;  %v1143_v41 = vmul.f32 %v5684_v48, %v1139_v51  ;;  %v5688_v51 = vld [vmem:[#allocation13_spill] sm:$0xff] }
 0x87e   :  { %v2340_v60 = vsub.f32 0.0, %v2339_v59 }
 0x87f   :  { %3069 = vset.pattern.permute.xlu1 %v3145_v21 }
 0x880   :  { %v2341_v40 = vmul.f32 1.442695, %v2340_v60  ;;  %2829 = vperm.xlu1 %3069, %v5082_v25  }
 0x882   :  { %3088 = vpow2.f32 %v2341_v40  ;;  %v1210_v40 = vmul.f32 %v1209_v17, %v3342_v43 }
 0x884   :  { %1379 = vrot.lane.b32.xlu1 %v5111_v11, %s5668_s14 }
 0x885   :  { %3071 = vset.pattern.permute.xlu1 %v3146_v38 }
 0x888   :  { %1385 = vrot.lane.b32.xlu1 %v5111_v11, %s5669_s15 }
 0x88c   :  { %v3089_v49 = vpop.eup %3088  ;;  %1391 = vrot.lane.b32.xlu1 %v5111_v11, %s5670_s19 }
 0x88d   :  { %v2343_v5 = vadd.f32 1.0, %v3089_v49  ;;  %v1150_v49 = vrot.slane %v1146_v62, 1 }
 0x88f   :  { %3090 = vrcp.f32 %v2343_v5  ;;  %v5685_v5 = vld [vmem:[#allocation63_spill] sm:$0xff] }
 0x899   :  { %v5185_v10 = vpop.eup %3090 }
 0x89a   :  { %2754 = vrot.lane.b32.xlu1 %v5185_v10, %s5668_s14  ;;  %2751 = vrot.lane.b32.xlu0 %v5185_v10, %s3123_s16  ;;  %s5220_s16 = sld [smem:[#allocation2 + $0x32]] }
 0x89e   :  { %2760 = vrot.lane.b32.xlu1 %v5185_v10, %s5669_s15  ;;  %2757 = vrot.lane.b32.xlu0 %v5185_v10, %s3129_s30  ;;  %s5243_s30 = sld [smem:[#allocation2 + $0x29]] }
 0x8a0   :  { %v1412_v26 = vpop.permute.xlu1 %1411  ;;  %v1416_v39 = vpop.permute.xlu0 %1415  ;;  %v1217_v60 = vstv %s5220_s16 }
 0x8a1   :  { %v1474_v21 = vsel %vm5671_vm2, %v1412_v26, %v1416_v39  ;;  %v1159_v26 = vmul.f32 %v5685_v5, %v5679_v63  ;;  %v1155_v39 = vadd.f32 %v1151_v0, %v1143_v41  ;;  %v1219_v56 = vmul.f32 %v1217_v60, %v1211_v53  ;;  %v5693_v0 = vld [vmem:[#allocation38_spill] sm:$0xff]  ;;  %vm5705_vm2 = vmmov %vm5704_vm7 }
 0x8a2   :  { %2766 = vrot.lane.b32.xlu1 %v5185_v10, %s5670_s19  ;;  %2763 = vrot.lane.b32.xlu0 %v5185_v10, %s3130_s10  ;;  %s5249_s10 = sld [smem:[#allocation2 + $0x34]] }
 0x8a3   :  { %v1171_v1 = vadd.f32 %v1167_v44, %v1159_v26  ;;  %v1292_v44 = vsel %vm75_vm3, 0.0, %v5693_v0 }
 0x8a5   :  { %v1420_v38 = vpop.permute.xlu1 %1419  ;;  %v1428_v31 = vpop.permute.xlu0 %1427 }
 0x8a6   :  { %v1475_v58 = vsel %vm1398_vm1, %v1474_v21, %v1420_v38  ;;  %2837 = vperm.xlu1 %3071, %v5082_v25   ;;  %2769 = vrot.lane.b32.xlu0 %v5185_v10, %s3127_s18  ;;  %s5229_s18 = sld [smem:[#allocation2 + $0x33]]  ;;  %v1166_v38 = vrot.slane %v1162_v6, 1 }
 0x8a8   :  { %v1263_v50 = vstv %s5249_s10 }
 0x8aa   :  { %v1424_v27 = vpop.permute.xlu1 %1423  ;;  %3072 = vset.pattern.permute.xlu1 %v3147_v23  ;;  %2833 = vperm.xlu0 %3070, %v5082_v25  }
 0x8ab   :  { %v1476_v8 = vsel %vm1400_vm11, %v1475_v58, %v1424_v27  ;;  %2841 = vperm.xlu1 %3072, %v5082_v25   ;;  %v5674_v25 = vld [vmem:[#allocation45_spill] sm:$0xff]  ;;  %v1142_v58 = vmul.f32 %v5684_v48, %v1138_v22  ;;  %v1231_v48 = vstv %s5257_s8 }
 0x8ac   :  { %v1477_v9 = vsel %vm1402_vm12, %v1476_v8, %v1428_v31  ;;  %v1178_v46 = vsel %vm5676_vm5, %v5675_v52, %v5674_v25  ;;  %v1235_v21 = vstv %s5229_s18  ;;  %v5689_v52 = vld [vmem:[#allocation20_spill] sm:$0xff]  ;;  %vm5706_vm5 = vmmov %vm5705_vm2 }
 0x8ad   :  { %v1182_v24 = vmul.f32 %v1178_v46, %v3332_v36  ;;  %v1252_v46 = vsel %vm5690_vm9, %v5689_v52, %v5686_v13  ;;  %v1236_v63 = vmul.f32 %v1235_v21, %v5691_v28  ;;  %vm5714_vm9 = vmmov %vm5705_vm2 }
 0x8ae   :  { %3073 = vset.pattern.permute.xlu0 %v3147_v23  ;;  %v1181_v23 = vsel %vm5677_vm15, %v5674_v25, 0.0  ;;  %v1237_v25 = vmul.f32 %v1235_v21, %v5688_v51  ;;  %v1256_v17 = vmul.f32 %v1252_v46, %v3332_v36  ;;  %v5696_v46 = vld [vmem:[#allocation39_spill] sm:$0xff]  ;;  %vm5707_vm15 = vmmov %vm5702_vm8 }
 0x8af   :  { %v1432_v4 = vpop.permute.xlu1 %1431  ;;  %v1183_v37 = vmul.f32 %v1181_v23, %v3339_v42  ;;  %v1190_v7 = vmul.f32 %v4437_v61, %v1182_v24  ;;  %v1186_v54 = vmul.f32 %v4435_v19, %v1182_v24  ;;  %v1173_v23 = vadd.f32 %v1171_v1, %v1155_v39 }
 0x8b0   :  { %v1478_v45 = vsel %vm1404_vm13, %v1477_v9, %v1432_v4  ;;  %v1218_v4 = vmul.f32 %v1217_v60, %v1210_v40  ;;  %v1158_v9 = vmul.f32 %v5685_v5, %v5683_v30  ;;  %v1223_v24 = vrot.slane %v1219_v56, 1 }
 0x8b1   :  { %v1191_v59 = vmul.f32 %v4437_v61, %v1183_v37  ;;  %v1194_v27 = vrot.slane %v1190_v7, 1  ;;  %v1255_v61 = vsel %vm5687_vm4, %v5686_v13, 0.0  ;;  %v1187_v22 = vmul.f32 %v4435_v19, %v1183_v37  ;;  %v5692_v37 = vld [vmem:[#allocation47_spill] sm:$0xff] }
 0x8b2   :  { %v1170_v12 = vadd.f32 %v1166_v38, %v1158_v9  ;;  %v1257_v2 = vmul.f32 %v1255_v61, %v3339_v42  ;;  %v1222_v62 = vrot.slane %v1218_v4, 1  ;;  %v1289_v30 = vsel %vm75_vm3, %v5693_v0, %v5692_v37  ;;  %vm5695_vm3 = vmmov %vm5687_vm4 }
 0x8b3   :  { %v1195_v31 = vrot.slane %v1191_v59, 1  ;;  %v1198_v3 = vadd.f32 %v1194_v27, %v1186_v54  ;;  %v1241_v41 = vrot.slane %v1237_v25, 1  ;;  %v1240_v26 = vrot.slane %v1236_v63, 1  ;;  %v5694_v54 = vld [vmem:[#allocation49_spill] sm:$0xff]  ;;  %vm5697_vm0 = vmmov %vm5695_vm3 }
 0x8b4   :  { %v1436_v16 = vpop.permute.xlu1 %1435  ;;  %v1265_v5 = vmul.f32 %v1263_v50, %v1257_v2  ;;  %v1294_v39 = vmul.f32 %v1289_v30, %v3349_v47  ;;  %v1264_v38 = vmul.f32 %v1263_v50, %v1256_v17  ;;  %v1233_v27 = vmul.f32 %v1231_v48, %v5688_v51  ;;  %vm5700_vm6 = vmmov %vm5697_vm0 }
 0x8b5   :  { %v5227_v20 = vsel %vm1406_vm14, %v1478_v45, %v1436_v16  ;;  %v1154_v45 = vadd.f32 %v1150_v49, %v1142_v58  ;;  %v1213_v16 = vstv %s5243_s30  ;;  %v1199_v33 = vadd.f32 %v1195_v31, %v1187_v22  ;;  %vm5708_vm4 = vmmov %vm5702_vm8 }
 0x8b6   :  { %v1215_v6 = vmul.f32 %v1213_v16, %v1211_v53  ;;  %v1214_v59 = vmul.f32 %v1213_v16, %v1210_v40  ;;  %v1293_v58 = vmul.f32 %v1292_v44, %v3342_v43  ;;  %v1232_v61 = vmul.f32 %v1231_v48, %v5691_v28  ;;  %v5309_v28 = vpop.permute.xlu0 %1439 }
 0x8b7   :  { %v1172_v19 = vadd.f32 %v1170_v12, %v1154_v45  ;;  %v1201_v7 = vadd.f32 %v1199_v33, %v1173_v23  ;;  %v1259_v56 = vstv %s5274_s0  ;;  %v1269_v1 = vrot.slane %v1265_v5, 1 }
 0x8b8   :  { %v1227_v49 = vadd.f32 %v1223_v24, %v1215_v6  ;;  %v1226_v21 = vadd.f32 %v1222_v62, %v1214_v59  ;;  %v1244_v31 = vadd.f32 %v1240_v26, %v1232_v61  ;;  %v1245_v4 = vadd.f32 %v1241_v41, %v1233_v27 }
 0x8b9   :  { %v5241_v18 = vpop.permute.xlu1 %1443  ;;  %v1200_v60 = vadd.f32 %v1198_v3, %v1172_v19  ;;  %v1302_v47 = vmul.f32 %v4689_v14, %v1294_v39  ;;  %v1268_v9 = vrot.slane %v1264_v38, 1  ;;  %v1318_v45 = vstv %s5282_s2  ;;  %v5698_v3 = vld [vmem:[#allocation23_spill] sm:$0xff] }
 0x8ba   :  { %v1229_v13 = vadd.f32 %v1227_v49, %v1201_v7  ;;  %v1338_v43 = vsel %vm5695_vm3, %v5694_v54, 0.0  ;;  %v1301_v25 = vmul.f32 %v4689_v14, %v1293_v58  ;;  %v1261_v51 = vmul.f32 %v1259_v56, %v1257_v2  ;;  %v5699_v2 = vld [vmem:[#allocation26_spill] sm:$0xff]  ;;  %v5322_v26 = vpop.permute.xlu0 %1451  ;;  %vm5715_vm3 = vmmov %vm5705_vm2 }
 0x8bb   :  { %v1228_v40 = vadd.f32 %v1226_v21, %v1200_v60  ;;  %v1335_v23 = vsel %vm5697_vm0, %v5696_v46, %v5694_v54  ;;  %v1260_v16 = vmul.f32 %v1259_v56, %v1256_v17  ;;  %v1320_v24 = vmul.f32 %v1318_v45, %v5698_v3  ;;  %vm5718_vm0 = vmmov %vm5708_vm4 }
 0x8bc   :  { %v1247_v52 = vadd.f32 %v1245_v4, %v1229_v13  ;;  %v1273_v63 = vadd.f32 %v1269_v1, %v1261_v51  ;;  %v1340_v50 = vmul.f32 %v1338_v43, %v3339_v42  ;;  %v1306_v33 = vrot.slane %v1302_v47, 1 }
 0x8bd   :  { %v1246_v12 = vadd.f32 %v1244_v31, %v1228_v40  ;;  %v1272_v14 = vadd.f32 %v1268_v9, %v1260_v16  ;;  %v1319_v62 = vmul.f32 %v1318_v45, %v5699_v2  ;;  %v1305_v19 = vrot.slane %v1301_v25, 1 }
 0x8be   :  { %v5261_v8 = vpop.permute.xlu1 %1447  ;;  %v1339_v37 = vmul.f32 %v1335_v23, %v3332_v36  ;;  %v1275_v0 = vadd.f32 %v1273_v63, %v1247_v52  ;;  %v1298_v30 = vmul.f32 %v4687_v29, %v1294_v39  ;;  %v1314_v6 = vstv %s5297_s4  ;;  %v5330_v4 = vpop.permute.xlu0 %1463 }
 0x8bf   :  { %v1274_v17 = vadd.f32 %v1272_v14, %v1246_v12  ;;  %v1297_v7 = vmul.f32 %v4687_v29, %v1293_v58  ;;  %v1324_v48 = vrot.slane %v1320_v24, 1  ;;  %v1348_v59 = vmul.f32 %v4703_v55, %v1340_v50 }
 0x8c0   :  { %v1310_v41 = vadd.f32 %v1306_v33, %v1298_v30  ;;  %v1323_v60 = vrot.slane %v1319_v62, 1  ;;  %v1347_v5 = vmul.f32 %v4703_v55, %v1339_v37  ;;  %v1316_v36 = vmul.f32 %v1314_v6, %v5698_v3 }
 0x8c1   :  { %v1309_v49 = vadd.f32 %v1305_v19, %v1297_v7  ;;  %v1315_v39 = vmul.f32 %v1314_v6, %v5699_v2  ;;  %v1352_v58 = vrot.slane %v1348_v59, 1  ;;  %v1344_v40 = vmul.f32 %v4708_v34, %v1340_v50 }
 0x8c2   :  { %v1312_v21 = vadd.f32 %v1310_v41, %v1275_v0  ;;  %v1328_v29 = vadd.f32 %v1324_v48, %v1316_v36  ;;  %v1351_v61 = vrot.slane %v1347_v5, 1  ;;  %v1343_v31 = vmul.f32 %v4708_v34, %v1339_v37  ;;  %v5334_v51 = vpop.permute.xlu0 %2785 }
 0x8c3   :  { %v5279_v15 = vpop.permute.xlu1 %1455  ;;  %v1311_v38 = vadd.f32 %v1309_v49, %v1274_v17  ;;  %v1327_v13 = vadd.f32 %v1323_v60, %v1315_v39  ;;  %v1356_v47 = vadd.f32 %v1352_v58, %v1344_v40  ;;  %v1360_v43 = vstv %s2948_s26 }
 0x8c4   :  { %v1330_v56 = vadd.f32 %v1328_v29, %v1312_v21  ;;  %v1355_v9 = vadd.f32 %v1351_v61, %v1343_v31  ;;  %v2713_v63 = vsel %vm5700_vm6, %v4695_v35, 0.0  ;;  %v2736_v37 = vadd.f32 %v4738_v57, %v1360_v43  ;;  %vm5719_vm6 = vmmov %vm5705_vm2 }
 0x8c5   :  { %v1329_v1 = vadd.f32 %v1327_v13, %v1311_v38  ;;  %v2715_v33 = vmul.f32 %v2713_v63, %v3339_v42 }
 0x8c6   :  { %v1358_v54 = vadd.f32 %v1356_v47, %v1330_v56  ;;  %v5340_v3 = vpop.permute.xlu0 %2797  ;;  %v2738_v30 = vsub.f32 0.0, %v2736_v37  ;;  %v1481_v56 = vsel %vm5702_vm8, %v5241_v18, %v5261_v8 }
 0x8c7   :  { %v1357_v25 = vadd.f32 %v1355_v9, %v1329_v1  ;;  %v2723_v19 = vmul.f32 %v2715_v33, %v4703_v55  ;;  %v2719_v17 = vmul.f32 %v2715_v33, %v4708_v34  ;;  %v1482_v9 = vsel %vm1398_vm1, %v1481_v56, %v5322_v26 }
 0x8c8   :  { %v5292_v53 = vpop.permute.xlu1 %1459  ;;  %v1362_v52 = vadd.f32 %v1360_v43, %v1358_v54  ;;  %v2740_v7 = vmul.f32 1.442695, %v2738_v30 }
 0x8c9   :  { %v1361_v23 = vadd.f32 %v1360_v43, %v1357_v25  ;;  %v2727_v35 = vrot.slane %v2723_v19, 1  ;;  %v1483_v25 = vsel %vm1400_vm11, %v1482_v9, %v5279_v15  ;;  %v1480_v19 = vsel %vm5705_vm2, %v5227_v20, %v5309_v28 }
 0x8ca   :  { %v1364_v16 = vsub.f32 0.0, %v1362_v52  ;;  %v5347_v62 = vpop.permute.xlu0 %2809  ;;  %v1484_v18 = vsel %vm1402_vm12, %v1483_v25, %v5292_v53 }
 0x8cb   :  { %v1363_v12 = vsub.f32 0.0, %v1361_v23  ;;  %v2731_v42 = vadd.f32 %v2727_v35, %v2719_v17  ;;  %v5703_v23 = vld [vmem:[#allocation6_spill] sm:$0xff] }
 0x8cc   :  { %v1367_v50 = vmul.f32 1.442695, %v1364_v16 }
 0x8cd   :  { %v5307_v22 = vpop.permute.xlu1 %1467  ;;  %v1365_v14 = vmul.f32 1.442695, %v1363_v12  ;;  %v2733_v55 = vadd.f32 %v2731_v42, %v4728_v32 }
 0x8ce   :  { %3092 = vpow2.f32 %v1367_v50  ;;  %v5353_v6 = vpop.permute.xlu0 %2821  ;;  %v1485_v50 = vsel %vm1404_vm13, %v1484_v18, %v5330_v4 }
 0x8cf   :  { %3094 = vpow2.f32 %v1365_v14  ;;  %v2737_v21 = vadd.f32 %v2733_v55, %v1360_v43  ;;  %v1486_v15 = vsel %vm1406_vm14, %v1485_v50, %v5307_v22 }
 0x8d0   :  { %3096 = vpow2.f32 %v2740_v7 }
 0x8d1   :  { %v2739_v34 = vsub.f32 0.0, %v2737_v21  ;;  %v5711_v21 = vld [vmem:[#allocation8_spill] sm:$0xff] }
 0x8d2   :  { %v5318_v44 = vpop.permute.xlu1 %1471  ;;  %v1377_v41 = vpop.permute.xlu0 %1376 }
 0x8d3   :  { %v1397_v58 = vsel %vm5701_vm10, %v5111_v11, %v1377_v41  ;;  %v2742_v61 = vmul.f32 1.442695, %v2739_v34  ;;  %v1487_v37 = vsel %vm5706_vm5, %v1486_v15, %v5318_v44  ;;  %v5709_v44 = vld [vmem:[#allocation5_spill] sm:$0xff] }
 0x8d4   :  { %v555_v34 = vadd.f32 %v5711_v21, %v5709_v44 }
 0x8d6   :  { %v1383_v36 = vpop.permute.xlu0 %1382 }
 0x8d7   :  { %v5326_v27 = vpop.permute.xlu1 %2781 }
 0x8d8   :  { %v3093_v59 = vpop.eup %3092  ;;  %v2844_v22 = vsel %vm5708_vm4, %v5326_v27, %v5334_v51  ;;  %v5712_v27 = vld [vmem:[#allocation11_spill] sm:$0xff] }
 0x8d9   :  { %v3095_v60 = vpop.eup %3094  ;;  %v1370_v57 = vadd.f32 1.0, %v3093_v59 }
 0x8da   :  { %v1369_v5 = vadd.f32 1.0, %v3095_v60  ;;  %v1389_v38 = vpop.permute.xlu0 %1388  ;;  %v3097_v29 = vpop.eup %3096  ;;  %v5710_v60 = vld [vmem:[#allocation7_spill] sm:$0xff] }
 0x8db   :  { %3098 = vrcp.f32 %v1370_v57  ;;  %v2744_v40 = vadd.f32 1.0, %v3097_v29  ;;  %v553_v55 = vadd.f32 %v5710_v60, %v5709_v44 }
 0x8dc   :  { %v5332_v45 = vpop.permute.xlu1 %2789  ;;  %3100 = vrcp.f32 %v1369_v5 }
 0x8dd   :  { %3102 = vpow2.f32 %v2742_v61  ;;  %v2845_v41 = vsel %vm1398_vm1, %v2844_v22, %v5332_v45 }
 0x8de   :  { %v1395_v54 = vpop.permute.xlu0 %1394  ;;  %3104 = vrcp.f32 %v2744_v40 }
 0x8e1   :  { %v5336_v46 = vpop.permute.xlu1 %2793 }
 0x8e5   :  { %v3099_v47 = vpop.eup %3098 }
 0x8e6   :  { %v5342_v24 = vpop.permute.xlu1 %2801  ;;  %v3101_v11 = vpop.eup %3100  ;;  %v1495_v12 = vrot.slane %v3099_v47, %v5703_v23 }
 0x8e7   :  { %v1491_v16 = vrot.slane %v3101_v11, %v5703_v23  ;;  %v3103_v59 = vpop.eup %3102 }
 0x8eb   :  { %v5345_v2 = vpop.permute.xlu1 %2805 }
 0x8f0   :  { %v5351_v0 = vpop.permute.xlu1 %2813 }
 0x8f5   :  { %v5356_v48 = vpop.permute.xlu1 %2817 }
 0x8fa   :  { %v5359_v49 = vpop.permute.xlu1 %2825 }
 0x8ff   :  { %v5361_v39 = vpop.permute.xlu1 %2829 }
 0x903   :  { %v1380_v13 = vpop.permute.xlu1 %1379 }
 0x904   :  { %v1399_v32 = vsel %vm1398_vm1, %v1397_v58, %v1380_v13 }
 0x905   :  { %v1401_v31 = vsel %vm1400_vm11, %v1399_v32, %v1383_v36  ;;  %v3105_v36 = vpop.eup %3104 }
 0x907   :  { %v1386_v1 = vpop.permute.xlu1 %1385 }
 0x908   :  { %v1403_v43 = vsel %vm1402_vm12, %v1401_v31, %v1386_v1  ;;  %v2745_v1 = vadd.f32 1.0, %v3103_v59  ;;  %v2861_v31 = vrot.slane %v3105_v36, %v5703_v23 }
 0x909   :  { %v1405_v52 = vsel %vm1404_vm13, %v1403_v43, %v1389_v38  ;;  %v5713_v38 = vld [vmem:[#allocation12_spill] sm:$0xff] }
 0x90a   :  { %3106 = vrcp.f32 %v2745_v1 }
 0x90b   :  { %v1392_v8 = vpop.permute.xlu1 %1391 }
 0x90c   :  { %v1407_v26 = vsel %vm1406_vm14, %v1405_v52, %v1392_v8  ;;  %v2752_v63 = vpop.permute.xlu0 %2751  ;;  %v5716_v8 = vld [vmem:[#allocation9_spill] sm:$0xff] }
 0x90d   :  { %v1408_v33 = vsel %vm5704_vm7, %v1407_v26, %v1395_v54  ;;  %v2772_v35 = vsel %vm5707_vm15, %v5185_v10, %v2752_v63  ;;  %v2846_v10 = vsel %vm1400_vm11, %v2845_v41, %v5336_v46  ;;  %v1950_v52 = vadd.f32 %v5716_v8, %v5709_v44 }
 0x90e   :  { %v1496_v14 = vadd.f32 %v1491_v16, %v1408_v33  ;;  %v1497_v53 = vadd.f32 %v1495_v12, %v1408_v33  ;;  %v2847_v13 = vsel %vm1402_vm12, %v2846_v10, %v5340_v3  ;;  %v5717_v16 = vld [vmem:[#allocation14_spill] sm:$0xff]  ;;  %v2851_v63 = vsel %vm5718_vm0, %v5351_v0, %v5356_v48 }
 0x90f   :  { %v2755_v30 = vpop.permute.xlu1 %2754  ;;  %v2848_v46 = vsel %vm1404_vm13, %v2847_v13, %v5342_v24 }
 0x910   :  { %v1498_v17 = vadd.f32 %v1496_v14, %v1480_v19  ;;  %v1499_v4 = vadd.f32 %v1497_v53, %v1487_v37  ;;  %v2773_v42 = vsel %vm1398_vm1, %v2772_v35, %v2755_v30  ;;  %v2758_v7 = vpop.permute.xlu0 %2757  ;;  %v2849_v47 = vsel %vm1406_vm14, %v2848_v46, %v5345_v2 }
 0x911   :  { %v2774_v57 = vsel %vm1400_vm11, %v2773_v42, %v2758_v7  ;;  %v2850_v25 = vsel %vm5715_vm3, %v2849_v47, %v5347_v62  ;;  %v2852_v62 = vsel %vm1398_vm1, %v2851_v63, %v5353_v6  ;;  %v5720_v6 = vld [vmem:[#allocation10_spill] sm:$0xff] }
 0x912   :  { %v1500_v20 = vmul.f32 0.33333334, %v1498_v17  ;;  %v1501_v28 = vmul.f32 0.33333334, %v1499_v4  ;;  %v2853_v14 = vsel %vm1400_vm11, %v2852_v62, %v5359_v49  ;;  %v1952_v7 = vadd.f32 %v5720_v6, %v5709_v44  ;;  %v5721_v49 = vld [vmem:[#allocation16_spill] sm:$0xff] }
 0x913   :  { %v2761_v5 = vpop.permute.xlu1 %2760  ;;  %v2854_v53 = vsel %vm1402_vm12, %v2853_v14, %v5361_v39 }
 0x914   :  { %v1502_v51 = vmul.f32 %v1500_v20, %v5712_v27  ;;  %v1503_v45 = vmul.f32 %v1501_v28, %v5713_v38  ;;  %v2775_v29 = vsel %vm1402_vm12, %v2774_v57, %v2761_v5  ;;  %v2764_v58 = vpop.permute.xlu0 %2763  ;;  %v3107_v15 = vpop.eup %3106 }
 0x915   :  { %v2776_v56 = vsel %vm1404_vm13, %v2775_v29, %v2764_v58  ;;  %v2865_v19 = vrot.slane %v3107_v15, %v5703_v23 }
 0x916   :  { %v1504_v32 = vadd.f32 %v1502_v51, %v553_v55  ;;  %v1505_v61 = vadd.f32 %v1503_v45, %v555_v34 }
 0x917   :  { %v2767_v40 = vpop.permute.xlu1 %2766 }
 0x918   :  { %v1506_v9 = vmax.f32 %v1504_v32, 0.0  ;;  %v1507_v54 = vmax.f32 %v1505_v61, 0.0  ;;  %v2777_v43 = vsel %vm1406_vm14, %v2776_v56, %v2767_v40  ;;  %v2770_v11 = vpop.permute.xlu0 %2769 }
 0x919   :  { %v2778_v3 = vsel %vm5714_vm9, %v2777_v43, %v2770_v11 }
 0x91a   :  { %1508 = vst [vmem:[%s5461_s9] sm:$0xff] %v1506_v9  ;;  %1509 = vst [vmem:[%s5461_s9 + $0x8] sm:$0xff] %v1507_v54  ;;  %v2866_v24 = vadd.f32 %v2861_v31, %v2778_v3  ;;  %v2867_v35 = vadd.f32 %v2865_v19, %v2778_v3 }
 0x91c   :  { %v2868_v2 = vadd.f32 %v2866_v24, %v2850_v25 }
 0x91e   :  { %v2870_v18 = vmul.f32 0.33333334, %v2868_v2 }
 0x920   :  { %v2872_v12 = vmul.f32 %v2870_v18, %v5717_v16 }
 0x922   :  { %v2874_v26 = vadd.f32 %v2872_v12, %v1950_v52 }
 0x924   :  { %v2876_v50 = vmax.f32 %v2874_v26, 0.0 }
 0x925   :  { %v2838_v33 = vpop.permute.xlu1 %2837 }
 0x926   :  { %3012 = vst [vmem:[%s5461_s9 + $0x10] sm:$0xff] %v2876_v50 }
 0x929   :  { %v2834_v37 = vpop.permute.xlu0 %2833 }
 0x92a   :  { %v2855_v0 = vsel %vm1404_vm13, %v2854_v53, %v2834_v37  ;;  %v2842_v48 = vpop.permute.xlu1 %2841 }
 0x92b   :  { %v2856_v30 = vsel %vm1406_vm14, %v2855_v0, %v2838_v33 }
 0x92c   :  { %v2857_v17 = vsel %vm5719_vm6, %v2856_v30, %v2842_v48 }
 0x92d   :  { %v2869_v4 = vadd.f32 %v2867_v35, %v2857_v17 }
 0x92f   :  { %v2871_v42 = vmul.f32 0.33333334, %v2869_v4 }
 0x931   :  { %v2873_v22 = vmul.f32 %v2871_v42, %v5721_v49 }
 0x933   :  { %v2875_v41 = vadd.f32 %v2873_v22, %v1952_v7 }
 0x935   :  { %v2877_v39 = vmax.f32 %v2875_v41, 0.0 }
 0x937   :  { %3013 = vst [vmem:[%s5461_s9 + $0x18] sm:$0xff] %v2877_v39 }
 0x938   :  { %2885 = vsyncpa [#allocation3], 1 }

</bundles_post_ra>
